<compile_context>
chip_gen: v5e
topology: v5e:2x2
jax: 0.10.0
libtpu: 0.0.40
codegen_flags: <defaults>
</compile_context>

<pallas_src>
import functools

import jax
import jax.numpy as jnp
from jax.experimental import pallas as pl
from jax.experimental.pallas import tpu as pltpu

NUM_CLASSES = 67            # len(classes) in the PyTorch module

# Layout / padding constants (sized for the 16x16 demo input).
CIN = 3
K1 = 5 * 5 * CIN            # conv1 im2col depth (75)
K1_PAD = 128                # padded contraction depth for conv1
C1 = 64                     # conv1 output channels
C1_PAD = 128                # lane-dense / MXU-aligned conv1 channels
C2 = 256                    # conv2 output channels
KH2 = KW2 = 3               # conv2 kernel size


def net_kernel(p_ref, w1_ref, b1_ref, w2_ref, b2_ref, wfc_ref, bfc_ref,
               o_ref, a1_ref, acc2_ref, *, n_batch, hp1, wp1):
    """Entire Net forward pass; all activations resident in VMEM.

    p_ref   : (4, n_batch*hp1*wp1, K1_PAD) bf16  pool-ordered conv1 im2col patches
              (axis 0 = 2x2 pool-window offset, rows ordered (n, hp, wp))
    w1_ref  : (K1_PAD, C1_PAD) bf16  conv1 weight, zero padded (75->128, 64->128)
    b1_ref  : (1, C1_PAD)      f32   conv1 bias (zero padded)
    w2_ref  : (9, C1_PAD, C2)  bf16  conv2 weight per tap (ti*3+tj), rows zero padded
    b2_ref  : (1, C2)          f32   conv2 bias
    wfc_ref : (C2, NUM_CLASSES) bf16 fc weight (pre-transposed)
    bfc_ref : (1, NUM_CLASSES) f32   fc bias
    o_ref   : (n_batch, NUM_CLASSES) f32
    a1_ref  : VMEM scratch (n_batch*hp1*wp1, C1_PAD) f32  = relu(pool(conv1))
    acc2_ref: VMEM scratch (n_batch*(hp1-2), wp1-2, C2) f32 = conv2 accumulator
    """
    sp1 = hp1 * wp1                  # pooled conv1 spatial size per sample (36)
    h2o, w2o = hp1 - 2, wp1 - 2      # conv2 output spatial (4, 4)

    # ---- conv1 + bias + 2x2 maxpool + relu (4 MXU matmuls + max) -------------
    w1 = w1_ref[...]
    m = jnp.dot(p_ref[0], w1, preferred_element_type=jnp.float32)
    for k in range(1, 4):
        m = jnp.maximum(m, jnp.dot(p_ref[k], w1,
                                   preferred_element_type=jnp.float32))
    # relu(maxpool(conv1 + b)) == relu(max_k(patches_k @ W1) + b)
    a1_ref[...] = jnp.maximum(m + b1_ref[...], 0.0)      # rows = (n, hp, wp)

    # ---- conv2: in-VMEM im2col via shifted-slice matmul accumulation --------
    bias2 = jnp.broadcast_to(b2_ref[...], (w2o, C2))      # hoisted broadcast
    for r in range(n_batch * h2o):
        acc2_ref[r] = bias2                               # bias folded into init
    for t in range(KH2 * KW2):                            # tap loop (weight loaded once)
        ti, tj = t // KW2, t % KW2
        w2t = w2_ref[t]                                   # (C1_PAD, C2) bf16
        for n in range(n_batch):
            for h2 in range(h2o):
                base = n * sp1 + (h2 + ti) * wp1 + tj
                lhs = a1_ref[base:base + w2o, :].astype(jnp.bfloat16)  # (w2o, C1_PAD)
                acc2_ref[n * h2o + h2] += jnp.dot(
                    lhs, w2t, preferred_element_type=jnp.float32)

    # ---- 2x2 maxpool + relu + AdaptiveAvgPool2d(1) + fc, per sample ---------
    wfc = wfc_ref[...]
    bfc = bfc_ref[...]
    inv_cnt = 1.0 / ((h2o // 2) * (w2o // 2))
    for n in range(n_batch):
        feat = jnp.zeros((1, C2), jnp.float32)
        for hp in range(h2o // 2):
            r = jnp.maximum(acc2_ref[n * h2o + 2 * hp],
                            acc2_ref[n * h2o + 2 * hp + 1])          # max over row pair
            for wp in range(w2o // 2):
                pooled = jnp.maximum(r[2 * wp:2 * wp + 1, :],
                                     r[2 * wp + 1:2 * wp + 2, :])    # max over col pair
                feat = feat + jnp.maximum(pooled, 0.0)               # relu BEFORE mean
        feat = feat * inv_cnt                                        # adaptive avg pool
        logits = jnp.dot(feat.astype(jnp.bfloat16), wfc,
                         preferred_element_type=jnp.float32) + bfc
        o_ref[n:n + 1, :] = logits


# ---------------- wrapper (glue: transpose + conv1 im2col only) ----------------

def _conv1_pool_patches(x_nhwc):
    """Pool-ordered im2col for conv1 -> (4, N*Hp*Wp, K1_PAD) bf16.

    Axis 0 enumerates the 2x2 maxpool window offsets so the kernel's max over
    that axis implements MaxPool2d(2) on the conv1 output.  Patch element order
    is (kh, kw, cin), matching the (5,5,3,64)->(75,64) weight flatten.
    """
    N, H, W, C = x_nhwc.shape
    KH = KW = 5
    Ho, Wo = H - KH + 1, W - KW + 1
    Hp, Wp = Ho // 2, Wo // 2
    cols = [x_nhwc[:, i:i + Ho, j:j + Wo, :] for i in range(KH) for j in range(KW)]
    patches = jnp.stack(cols, axis=3).reshape(N, Ho, Wo, KH * KW * C)
    offs = [patches[:, di::2, dj::2, :] for di in (0, 1) for dj in (0, 1)]
    p = jnp.stack(offs, axis=0).reshape(4, N * Hp * Wp, KH * KW * C)
    p = jnp.pad(p, ((0, 0), (0, 0), (0, K1_PAD - KH * KW * C)))
    return p.astype(jnp.bfloat16), (N, Hp, Wp)


@jax.jit
def net_forward(x_nchw, params):
    # PyTorch NCHW input -> NHWC working layout (single transpose).
    x = jnp.transpose(x_nchw, (0, 2, 3, 1)).astype(jnp.float32)
    p, (N, Hp, Wp) = _conv1_pool_patches(x)
    M1 = N * Hp * Wp

    kernel = functools.partial(net_kernel, n_batch=N, hp1=Hp, wp1=Wp)
    return pl.pallas_call(
        kernel,
        out_shape=jax.ShapeDtypeStruct((N, NUM_CLASSES), jnp.float32),
        grid=(1,),
        in_specs=[
            pl.BlockSpec((4, M1, K1_PAD), lambda i: (0, 0, 0)),
            pl.BlockSpec((K1_PAD, C1_PAD), lambda i: (0, 0)),
            pl.BlockSpec((1, C1_PAD), lambda i: (0, 0)),
            pl.BlockSpec((KH2 * KW2, C1_PAD, C2), lambda i: (0, 0, 0)),
            pl.BlockSpec((1, C2), lambda i: (0, 0)),
            pl.BlockSpec((C2, NUM_CLASSES), lambda i: (0, 0)),
            pl.BlockSpec((1, NUM_CLASSES), lambda i: (0, 0)),
        ],
        out_specs=pl.BlockSpec((N, NUM_CLASSES), lambda i: (0, 0)),
        scratch_shapes=[
            pltpu.VMEM((M1, C1_PAD), jnp.float32),
            pltpu.VMEM((N * (Hp - 2), Wp - 2, C2), jnp.float32),
        ],
        compiler_params=pltpu.CompilerParams(
            dimension_semantics=("arbitrary",)),
    )(p, params["w1"], params["b1"], params["w2"], params["b2"],
      params["wfc"], params["bfc"])


# ---------------- parameters (kernel-ready layouts) ----------------

def init_params(key):
    # PyTorch-default-style uniform(-1/sqrt(fan_in), 1/sqrt(fan_in)); stored in
    # the padded / transposed layouts the kernel consumes directly.
    ks = jax.random.split(key, 6)

    def u(k, shape, fan_in):
        bound = 1.0 / (fan_in ** 0.5)
        return jax.random.uniform(k, shape, jnp.float32, -bound, bound)

    # conv1: torch (64,3,5,5) == (kh,kw,cin,cout)=(5,5,3,64) -> (75,64) -> pad (128,128)
    w1 = u(ks[0], (5, 5, CIN, C1), K1).reshape(K1, C1)
    w1 = jnp.pad(w1, ((0, K1_PAD - K1), (0, C1_PAD - C1))).astype(jnp.bfloat16)
    b1 = jnp.pad(u(ks[1], (C1,), K1), (0, C1_PAD - C1)).reshape(1, C1_PAD)
    # conv2: torch (256,64,3,3) == (3,3,64,256) -> per-tap (9,64,256) -> pad rows to 128
    w2 = u(ks[2], (KH2, KW2, C1, C2), C1 * KH2 * KW2).reshape(KH2 * KW2, C1, C2)
    w2 = jnp.pad(w2, ((0, 0), (0, C1_PAD - C1), (0, 0))).astype(jnp.bfloat16)
    b2 = u(ks[3], (C2,), C1 * KH2 * KW2).reshape(1, C2)
    # fc1: torch (67,256) stored transposed as (256,67)
    wfc = u(ks[4], (C2, NUM_CLASSES), C2).astype(jnp.bfloat16)
    bfc = u(ks[5], (NUM_CLASSES,), C2).reshape(1, NUM_CLASSES)
    return dict(w1=w1, b1=b1, w2=w2, b2=b2, wfc=wfc, bfc=bfc)


if __name__ == "__main__":
    key = jax.random.PRNGKey(0)
    pkey, xkey = jax.random.split(key)
    params = init_params(pkey)

    # Small NCHW input consistent with the module: batch=2, channels=3, 16x16.
    x = jax.random.normal(xkey, (2, CIN, 16, 16), jnp.float32)

    out = net_forward(x, params)
    out = jax.block_until_ready(out)
    assert out.shape == (2, NUM_CLASSES), out.shape
    assert bool(jnp.all(jnp.isfinite(out)))
    print("KERNEL_OK")
</pallas_src>

<mosaic_0001>
module attributes {stable_mosaic.version = 11 : i64} {
  func.func @net_kernel(%arg0: i32, %arg1: memref<4x72x128xbf16, #tpu.memory_space<vmem>>, %arg2: memref<128x128xbf16, #tpu.memory_space<vmem>>, %arg3: memref<1x128xf32, #tpu.memory_space<vmem>>, %arg4: memref<9x128x256xbf16, #tpu.memory_space<vmem>>, %arg5: memref<1x256xf32, #tpu.memory_space<vmem>>, %arg6: memref<256x67xbf16, #tpu.memory_space<vmem>>, %arg7: memref<1x67xf32, #tpu.memory_space<vmem>>, %arg8: memref<2x67xf32, #tpu.memory_space<vmem>>, %arg9: memref<72x128xf32, #tpu.memory_space<vmem>>, %arg10: memref<8x4x256xf32, #tpu.memory_space<vmem>>) attributes {dimension_semantics = [#tpu.dimension_semantics<arbitrary>], iteration_bounds = array<i64: 1>, scalar_prefetch = 0 : i64, scratch_operands = 2 : i64, tpu.core_type = #tpu.core_type<tc>, window_params = [{pipeline_mode = #tpu.pipeline_mode<synchronous>, transform_indices = @transform_0, window_bounds = array<i64: 4, 72, 128>}, {pipeline_mode = #tpu.pipeline_mode<synchronous>, transform_indices = @transform_1, window_bounds = array<i64: 128, 128>}, {pipeline_mode = #tpu.pipeline_mode<synchronous>, transform_indices = @transform_2, window_bounds = array<i64: 1, 128>}, {pipeline_mode = #tpu.pipeline_mode<synchronous>, transform_indices = @transform_3, window_bounds = array<i64: 9, 128, 256>}, {pipeline_mode = #tpu.pipeline_mode<synchronous>, transform_indices = @transform_4, window_bounds = array<i64: 1, 256>}, {pipeline_mode = #tpu.pipeline_mode<synchronous>, transform_indices = @transform_5, window_bounds = array<i64: 256, 67>}, {pipeline_mode = #tpu.pipeline_mode<synchronous>, transform_indices = @transform_6, window_bounds = array<i64: 1, 67>}, {pipeline_mode = #tpu.pipeline_mode<synchronous>, transform_indices = @transform_7, window_bounds = array<i64: 2, 67>}]} {
    %c0 = arith.constant 0 : index
    %c0_0 = arith.constant 0 : index
    %0 = vector.load %arg2[%c0, %c0_0] : memref<128x128xbf16, #tpu.memory_space<vmem>>, vector<128x128xbf16>
    %c0_1 = arith.constant 0 : index
    %c0_2 = arith.constant 0 : index
    %c0_3 = arith.constant 0 : index
    %1 = vector.load %arg1[%c0_1, %c0_2, %c0_3] : memref<4x72x128xbf16, #tpu.memory_space<vmem>>, vector<1x72x128xbf16>
    %2 = vector.shape_cast %1 : vector<1x72x128xbf16> to vector<72x128xbf16>
    %cst = arith.constant dense<0.000000e+00> : vector<72x128xf32>
    %3 = tpu.matmul %2, %0, %cst {dimension_numbers = #tpu.dot_dimension_numbers<[1], [0], [0], [1], [0, 0, 1, 1], [], []>} : vector<72x128xbf16>, vector<128x128xbf16>, vector<72x128xf32> -> vector<72x128xf32>
    %c1 = arith.constant 1 : index
    %c0_4 = arith.constant 0 : index
    %c0_5 = arith.constant 0 : index
    %4 = vector.load %arg1[%c1, %c0_4, %c0_5] : memref<4x72x128xbf16, #tpu.memory_space<vmem>>, vector<1x72x128xbf16>
    %5 = vector.shape_cast %4 : vector<1x72x128xbf16> to vector<72x128xbf16>
    %cst_6 = arith.constant dense<0.000000e+00> : vector<72x128xf32>
    %6 = tpu.matmul %5, %0, %cst_6 {dimension_numbers = #tpu.dot_dimension_numbers<[1], [0], [0], [1], [0, 0, 1, 1], [], []>} : vector<72x128xbf16>, vector<128x128xbf16>, vector<72x128xf32> -> vector<72x128xf32>
    %7 = arith.maximumf %3, %6 : vector<72x128xf32>
    %c2 = arith.constant 2 : index
    %c0_7 = arith.constant 0 : index
    %c0_8 = arith.constant 0 : index
    %8 = vector.load %arg1[%c2, %c0_7, %c0_8] : memref<4x72x128xbf16, #tpu.memory_space<vmem>>, vector<1x72x128xbf16>
    %9 = vector.shape_cast %8 : vector<1x72x128xbf16> to vector<72x128xbf16>
    %cst_9 = arith.constant dense<0.000000e+00> : vector<72x128xf32>
    %10 = tpu.matmul %9, %0, %cst_9 {dimension_numbers = #tpu.dot_dimension_numbers<[1], [0], [0], [1], [0, 0, 1, 1], [], []>} : vector<72x128xbf16>, vector<128x128xbf16>, vector<72x128xf32> -> vector<72x128xf32>
    %11 = arith.maximumf %7, %10 : vector<72x128xf32>
    %c3 = arith.constant 3 : index
    %c0_10 = arith.constant 0 : index
    %c0_11 = arith.constant 0 : index
    %12 = vector.load %arg1[%c3, %c0_10, %c0_11] : memref<4x72x128xbf16, #tpu.memory_space<vmem>>, vector<1x72x128xbf16>
    %13 = vector.shape_cast %12 : vector<1x72x128xbf16> to vector<72x128xbf16>
    %cst_12 = arith.constant dense<0.000000e+00> : vector<72x128xf32>
    %14 = tpu.matmul %13, %0, %cst_12 {dimension_numbers = #tpu.dot_dimension_numbers<[1], [0], [0], [1], [0, 0, 1, 1], [], []>} : vector<72x128xbf16>, vector<128x128xbf16>, vector<72x128xf32> -> vector<72x128xf32>
    %15 = arith.maximumf %11, %14 : vector<72x128xf32>
    %c0_13 = arith.constant 0 : index
    %c0_14 = arith.constant 0 : index
    %16 = vector.load %arg3[%c0_13, %c0_14] : memref<1x128xf32, #tpu.memory_space<vmem>>, vector<1x128xf32>
    %17 = vector.broadcast %16 : vector<1x128xf32> to vector<72x128xf32>
    %18 = arith.addf %15, %17 : vector<72x128xf32>
    %cst_15 = arith.constant 0.000000e+00 : f32
    %19 = vector.broadcast %cst_15 : f32 to vector<72x128xf32>
    %20 = arith.maximumf %18, %19 : vector<72x128xf32>
    %c0_16 = arith.constant 0 : index
    %c0_17 = arith.constant 0 : index
    %21 = vector.load %arg9[%c0_16, %c0_17] : memref<72x128xf32, #tpu.memory_space<vmem>>, vector<72x128xf32>
    tpu.vector_store %arg9[%c0_16, %c0_17], %20 {strides = array<i32>} : memref<72x128xf32, #tpu.memory_space<vmem>>, vector<72x128xf32>,
    %c0_18 = arith.constant 0 : index
    %c0_19 = arith.constant 0 : index
    %22 = vector.load %arg5[%c0_18, %c0_19] : memref<1x256xf32, #tpu.memory_space<vmem>>, vector<1x256xf32>
    %23 = vector.shape_cast %22 : vector<1x256xf32> to vector<1x256xf32>
    %24 = vector.broadcast %23 : vector<1x256xf32> to vector<4x256xf32>
    %c0_20 = arith.constant 0 : index
    %c0_21 = arith.constant 0 : index
    %c0_22 = arith.constant 0 : index
    %25 = vector.load %arg10[%c0_20, %c0_21, %c0_22] : memref<8x4x256xf32, #tpu.memory_space<vmem>>, vector<1x4x256xf32>
    %26 = vector.shape_cast %25 : vector<1x4x256xf32> to vector<4x256xf32>
    %27 = vector.shape_cast %24 : vector<4x256xf32> to vector<1x4x256xf32>
    tpu.vector_store %arg10[%c0_20, %c0_21, %c0_22], %27 {strides = array<i32>} : memref<8x4x256xf32, #tpu.memory_space<vmem>>, vector<1x4x256xf32>,
    %c1_23 = arith.constant 1 : index
    %c0_24 = arith.constant 0 : index
    %c0_25 = arith.constant 0 : index
    %28 = vector.load %arg10[%c1_23, %c0_24, %c0_25] : memref<8x4x256xf32, #tpu.memory_space<vmem>>, vector<1x4x256xf32>
    %29 = vector.shape_cast %28 : vector<1x4x256xf32> to vector<4x256xf32>
    %30 = vector.shape_cast %24 : vector<4x256xf32> to vector<1x4x256xf32>
    tpu.vector_store %arg10[%c1_23, %c0_24, %c0_25], %30 {strides = array<i32>} : memref<8x4x256xf32, #tpu.memory_space<vmem>>, vector<1x4x256xf32>,
    %c2_26 = arith.constant 2 : index
    %c0_27 = arith.constant 0 : index
    %c0_28 = arith.constant 0 : index
    %31 = vector.load %arg10[%c2_26, %c0_27, %c0_28] : memref<8x4x256xf32, #tpu.memory_space<vmem>>, vector<1x4x256xf32>
    %32 = vector.shape_cast %31 : vector<1x4x256xf32> to vector<4x256xf32>
    %33 = vector.shape_cast %24 : vector<4x256xf32> to vector<1x4x256xf32>
    tpu.vector_store %arg10[%c2_26, %c0_27, %c0_28], %33 {strides = array<i32>} : memref<8x4x256xf32, #tpu.memory_space<vmem>>, vector<1x4x256xf32>,
    %c3_29 = arith.constant 3 : index
    %c0_30 = arith.constant 0 : index
    %c0_31 = arith.constant 0 : index
    %34 = vector.load %arg10[%c3_29, %c0_30, %c0_31] : memref<8x4x256xf32, #tpu.memory_space<vmem>>, vector<1x4x256xf32>
    %35 = vector.shape_cast %34 : vector<1x4x256xf32> to vector<4x256xf32>
    %36 = vector.shape_cast %24 : vector<4x256xf32> to vector<1x4x256xf32>
    tpu.vector_store %arg10[%c3_29, %c0_30, %c0_31], %36 {strides = array<i32>} : memref<8x4x256xf32, #tpu.memory_space<vmem>>, vector<1x4x256xf32>,
    %c4 = arith.constant 4 : index
    %c0_32 = arith.constant 0 : index
    %c0_33 = arith.constant 0 : index
    %37 = vector.load %arg10[%c4, %c0_32, %c0_33] : memref<8x4x256xf32, #tpu.memory_space<vmem>>, vector<1x4x256xf32>
    %38 = vector.shape_cast %37 : vector<1x4x256xf32> to vector<4x256xf32>
    %39 = vector.shape_cast %24 : vector<4x256xf32> to vector<1x4x256xf32>
    tpu.vector_store %arg10[%c4, %c0_32, %c0_33], %39 {strides = array<i32>} : memref<8x4x256xf32, #tpu.memory_space<vmem>>, vector<1x4x256xf32>,
    %c5 = arith.constant 5 : index
    %c0_34 = arith.constant 0 : index
    %c0_35 = arith.constant 0 : index
    %40 = vector.load %arg10[%c5, %c0_34, %c0_35] : memref<8x4x256xf32, #tpu.memory_space<vmem>>, vector<1x4x256xf32>
    %41 = vector.shape_cast %40 : vector<1x4x256xf32> to vector<4x256xf32>
    %42 = vector.shape_cast %24 : vector<4x256xf32> to vector<1x4x256xf32>
    tpu.vector_store %arg10[%c5, %c0_34, %c0_35], %42 {strides = array<i32>} : memref<8x4x256xf32, #tpu.memory_space<vmem>>, vector<1x4x256xf32>,
    %c6 = arith.constant 6 : index
    %c0_36 = arith.constant 0 : index
    %c0_37 = arith.constant 0 : index
    %43 = vector.load %arg10[%c6, %c0_36, %c0_37] : memref<8x4x256xf32, #tpu.memory_space<vmem>>, vector<1x4x256xf32>
    %44 = vector.shape_cast %43 : vector<1x4x256xf32> to vector<4x256xf32>
    %45 = vector.shape_cast %24 : vector<4x256xf32> to vector<1x4x256xf32>
    tpu.vector_store %arg10[%c6, %c0_36, %c0_37], %45 {strides = array<i32>} : memref<8x4x256xf32, #tpu.memory_space<vmem>>, vector<1x4x256xf32>,
    %c7 = arith.constant 7 : index
    %c0_38 = arith.constant 0 : index
    %c0_39 = arith.constant 0 : index
    %46 = vector.load %arg10[%c7, %c0_38, %c0_39] : memref<8x4x256xf32, #tpu.memory_space<vmem>>, vector<1x4x256xf32>
    %47 = vector.shape_cast %46 : vector<1x4x256xf32> to vector<4x256xf32>
    %48 = vector.shape_cast %24 : vector<4x256xf32> to vector<1x4x256xf32>
    tpu.vector_store %arg10[%c7, %c0_38, %c0_39], %48 {strides = array<i32>} : memref<8x4x256xf32, #tpu.memory_space<vmem>>, vector<1x4x256xf32>,
    %c0_40 = arith.constant 0 : index
    %c0_41 = arith.constant 0 : index
    %c0_42 = arith.constant 0 : index
    %49 = vector.load %arg4[%c0_40, %c0_41, %c0_42] : memref<9x128x256xbf16, #tpu.memory_space<vmem>>, vector<1x128x256xbf16>
    %50 = vector.shape_cast %49 : vector<1x128x256xbf16> to vector<128x256xbf16>
    %c0_43 = arith.constant 0 : index
    %c0_44 = arith.constant 0 : index
    %51 = vector.load %arg9[%c0_43, %c0_44] : memref<72x128xf32, #tpu.memory_space<vmem>>, vector<4x128xf32>
    %52 = arith.truncf %51 : vector<4x128xf32> to vector<4x128xbf16>
    %c0_45 = arith.constant 0 : index
    %c0_46 = arith.constant 0 : index
    %c0_47 = arith.constant 0 : index
    %53 = vector.load %arg10[%c0_45, %c0_46, %c0_47] : memref<8x4x256xf32, #tpu.memory_space<vmem>>, vector<1x4x256xf32>
    %54 = vector.shape_cast %53 : vector<1x4x256xf32> to vector<4x256xf32>
    %cst_48 = arith.constant dense<0.000000e+00> : vector<4x256xf32>
    %55 = tpu.matmul %52, %50, %cst_48 {dimension_numbers = #tpu.dot_dimension_numbers<[1], [0], [0], [1], [0, 0, 1, 1], [], []>} : vector<4x128xbf16>, vector<128x256xbf16>, vector<4x256xf32> -> vector<4x256xf32>
    %56 = arith.addf %54, %55 : vector<4x256xf32>
    %c0_49 = arith.constant 0 : index
    %c0_50 = arith.constant 0 : index
    %c0_51 = arith.constant 0 : index
    %57 = vector.load %arg10[%c0_49, %c0_50, %c0_51] : memref<8x4x256xf32, #tpu.memory_space<vmem>>, vector<1x4x256xf32>
    %58 = vector.shape_cast %57 : vector<1x4x256xf32> to vector<4x256xf32>
    %59 = vector.shape_cast %56 : vector<4x256xf32> to vector<1x4x256xf32>
    tpu.vector_store %arg10[%c0_49, %c0_50, %c0_51], %59 {strides = array<i32>} : memref<8x4x256xf32, #tpu.memory_space<vmem>>, vector<1x4x256xf32>,
    %c6_52 = arith.constant 6 : index
    %c0_53 = arith.constant 0 : index
    %60 = vector.load %arg9[%c6_52, %c0_53] : memref<72x128xf32, #tpu.memory_space<vmem>>, vector<4x128xf32>
    %61 = arith.truncf %60 : vector<4x128xf32> to vector<4x128xbf16>
    %c1_54 = arith.constant 1 : index
    %c0_55 = arith.constant 0 : index
    %c0_56 = arith.constant 0 : index
    %62 = vector.load %arg10[%c1_54, %c0_55, %c0_56] : memref<8x4x256xf32, #tpu.memory_space<vmem>>, vector<1x4x256xf32>
    %63 = vector.shape_cast %62 : vector<1x4x256xf32> to vector<4x256xf32>
    %cst_57 = arith.constant dense<0.000000e+00> : vector<4x256xf32>
    %64 = tpu.matmul %61, %50, %cst_57 {dimension_numbers = #tpu.dot_dimension_numbers<[1], [0], [0], [1], [0, 0, 1, 1], [], []>} : vector<4x128xbf16>, vector<128x256xbf16>, vector<4x256xf32> -> vector<4x256xf32>
    %65 = arith.addf %63, %64 : vector<4x256xf32>
    %c1_58 = arith.constant 1 : index
    %c0_59 = arith.constant 0 : index
    %c0_60 = arith.constant 0 : index
    %66 = vector.load %arg10[%c1_58, %c0_59, %c0_60] : memref<8x4x256xf32, #tpu.memory_space<vmem>>, vector<1x4x256xf32>
    %67 = vector.shape_cast %66 : vector<1x4x256xf32> to vector<4x256xf32>
    %68 = vector.shape_cast %65 : vector<4x256xf32> to vector<1x4x256xf32>
    tpu.vector_store %arg10[%c1_58, %c0_59, %c0_60], %68 {strides = array<i32>} : memref<8x4x256xf32, #tpu.memory_space<vmem>>, vector<1x4x256xf32>,
    %c12 = arith.constant 12 : index
    %c0_61 = arith.constant 0 : index
    %69 = vector.load %arg9[%c12, %c0_61] : memref<72x128xf32, #tpu.memory_space<vmem>>, vector<4x128xf32>
    %70 = arith.truncf %69 : vector<4x128xf32> to vector<4x128xbf16>
    %c2_62 = arith.constant 2 : index
    %c0_63 = arith.constant 0 : index
    %c0_64 = arith.constant 0 : index
    %71 = vector.load %arg10[%c2_62, %c0_63, %c0_64] : memref<8x4x256xf32, #tpu.memory_space<vmem>>, vector<1x4x256xf32>
    %72 = vector.shape_cast %71 : vector<1x4x256xf32> to vector<4x256xf32>
    %cst_65 = arith.constant dense<0.000000e+00> : vector<4x256xf32>
    %73 = tpu.matmul %70, %50, %cst_65 {dimension_numbers = #tpu.dot_dimension_numbers<[1], [0], [0], [1], [0, 0, 1, 1], [], []>} : vector<4x128xbf16>, vector<128x256xbf16>, vector<4x256xf32> -> vector<4x256xf32>
    %74 = arith.addf %72, %73 : vector<4x256xf32>
    %c2_66 = arith.constant 2 : index
    %c0_67 = arith.constant 0 : index
    %c0_68 = arith.constant 0 : index
    %75 = vector.load %arg10[%c2_66, %c0_67, %c0_68] : memref<8x4x256xf32, #tpu.memory_space<vmem>>, vector<1x4x256xf32>
    %76 = vector.shape_cast %75 : vector<1x4x256xf32> to vector<4x256xf32>
    %77 = vector.shape_cast %74 : vector<4x256xf32> to vector<1x4x256xf32>
    tpu.vector_store %arg10[%c2_66, %c0_67, %c0_68], %77 {strides = array<i32>} : memref<8x4x256xf32, #tpu.memory_space<vmem>>, vector<1x4x256xf32>,
    %c18 = arith.constant 18 : index
    %c0_69 = arith.constant 0 : index
    %78 = vector.load %arg9[%c18, %c0_69] : memref<72x128xf32, #tpu.memory_space<vmem>>, vector<4x128xf32>
    %79 = arith.truncf %78 : vector<4x128xf32> to vector<4x128xbf16>
    %c3_70 = arith.constant 3 : index
    %c0_71 = arith.constant 0 : index
    %c0_72 = arith.constant 0 : index
    %80 = vector.load %arg10[%c3_70, %c0_71, %c0_72] : memref<8x4x256xf32, #tpu.memory_space<vmem>>, vector<1x4x256xf32>
    %81 = vector.shape_cast %80 : vector<1x4x256xf32> to vector<4x256xf32>
    %cst_73 = arith.constant dense<0.000000e+00> : vector<4x256xf32>
    %82 = tpu.matmul %79, %50, %cst_73 {dimension_numbers = #tpu.dot_dimension_numbers<[1], [0], [0], [1], [0, 0, 1, 1], [], []>} : vector<4x128xbf16>, vector<128x256xbf16>, vector<4x256xf32> -> vector<4x256xf32>
    %83 = arith.addf %81, %82 : vector<4x256xf32>
    %c3_74 = arith.constant 3 : index
    %c0_75 = arith.constant 0 : index
    %c0_76 = arith.constant 0 : index
    %84 = vector.load %arg10[%c3_74, %c0_75, %c0_76] : memref<8x4x256xf32, #tpu.memory_space<vmem>>, vector<1x4x256xf32>
    %85 = vector.shape_cast %84 : vector<1x4x256xf32> to vector<4x256xf32>
    %86 = vector.shape_cast %83 : vector<4x256xf32> to vector<1x4x256xf32>
    tpu.vector_store %arg10[%c3_74, %c0_75, %c0_76], %86 {strides = array<i32>} : memref<8x4x256xf32, #tpu.memory_space<vmem>>, vector<1x4x256xf32>,
    %c36 = arith.constant 36 : index
    %c0_77 = arith.constant 0 : index
    %87 = vector.load %arg9[%c36, %c0_77] : memref<72x128xf32, #tpu.memory_space<vmem>>, vector<4x128xf32>
    %88 = arith.truncf %87 : vector<4x128xf32> to vector<4x128xbf16>
    %c4_78 = arith.constant 4 : index
    %c0_79 = arith.constant 0 : index
    %c0_80 = arith.constant 0 : index
    %89 = vector.load %arg10[%c4_78, %c0_79, %c0_80] : memref<8x4x256xf32, #tpu.memory_space<vmem>>, vector<1x4x256xf32>
    %90 = vector.shape_cast %89 : vector<1x4x256xf32> to vector<4x256xf32>
    %cst_81 = arith.constant dense<0.000000e+00> : vector<4x256xf32>
    %91 = tpu.matmul %88, %50, %cst_81 {dimension_numbers = #tpu.dot_dimension_numbers<[1], [0], [0], [1], [0, 0, 1, 1], [], []>} : vector<4x128xbf16>, vector<128x256xbf16>, vector<4x256xf32> -> vector<4x256xf32>
    %92 = arith.addf %90, %91 : vector<4x256xf32>
    %c4_82 = arith.constant 4 : index
    %c0_83 = arith.constant 0 : index
    %c0_84 = arith.constant 0 : index
    %93 = vector.load %arg10[%c4_82, %c0_83, %c0_84] : memref<8x4x256xf32, #tpu.memory_space<vmem>>, vector<1x4x256xf32>
    %94 = vector.shape_cast %93 : vector<1x4x256xf32> to vector<4x256xf32>
    %95 = vector.shape_cast %92 : vector<4x256xf32> to vector<1x4x256xf32>
    tpu.vector_store %arg10[%c4_82, %c0_83, %c0_84], %95 {strides = array<i32>} : memref<8x4x256xf32, #tpu.memory_space<vmem>>, vector<1x4x256xf32>,
    %c42 = arith.constant 42 : index
    %c0_85 = arith.constant 0 : index
    %96 = vector.load %arg9[%c42, %c0_85] : memref<72x128xf32, #tpu.memory_space<vmem>>, vector<4x128xf32>
    %97 = arith.truncf %96 : vector<4x128xf32> to vector<4x128xbf16>
    %c5_86 = arith.constant 5 : index
    %c0_87 = arith.constant 0 : index
    %c0_88 = arith.constant 0 : index
    %98 = vector.load %arg10[%c5_86, %c0_87, %c0_88] : memref<8x4x256xf32, #tpu.memory_space<vmem>>, vector<1x4x256xf32>
    %99 = vector.shape_cast %98 : vector<1x4x256xf32> to vector<4x256xf32>
    %cst_89 = arith.constant dense<0.000000e+00> : vector<4x256xf32>
    %100 = tpu.matmul %97, %50, %cst_89 {dimension_numbers = #tpu.dot_dimension_numbers<[1], [0], [0], [1], [0, 0, 1, 1], [], []>} : vector<4x128xbf16>, vector<128x256xbf16>, vector<4x256xf32> -> vector<4x256xf32>
    %101 = arith.addf %99, %100 : vector<4x256xf32>
    %c5_90 = arith.constant 5 : index
    %c0_91 = arith.constant 0 : index
    %c0_92 = arith.constant 0 : index
    %102 = vector.load %arg10[%c5_90, %c0_91, %c0_92] : memref<8x4x256xf32, #tpu.memory_space<vmem>>, vector<1x4x256xf32>
    %103 = vector.shape_cast %102 : vector<1x4x256xf32> to vector<4x256xf32>
    %104 = vector.shape_cast %101 : vector<4x256xf32> to vector<1x4x256xf32>
    tpu.vector_store %arg10[%c5_90, %c0_91, %c0_92], %104 {strides = array<i32>} : memref<8x4x256xf32, #tpu.memory_space<vmem>>, vector<1x4x256xf32>,
    %c48 = arith.constant 48 : index
    %c0_93 = arith.constant 0 : index
    %105 = vector.load %arg9[%c48, %c0_93] : memref<72x128xf32, #tpu.memory_space<vmem>>, vector<4x128xf32>
    %106 = arith.truncf %105 : vector<4x128xf32> to vector<4x128xbf16>
    %c6_94 = arith.constant 6 : index
    %c0_95 = arith.constant 0 : index
    %c0_96 = arith.constant 0 : index
    %107 = vector.load %arg10[%c6_94, %c0_95, %c0_96] : memref<8x4x256xf32, #tpu.memory_space<vmem>>, vector<1x4x256xf32>
    %108 = vector.shape_cast %107 : vector<1x4x256xf32> to vector<4x256xf32>
    %cst_97 = arith.constant dense<0.000000e+00> : vector<4x256xf32>
    %109 = tpu.matmul %106, %50, %cst_97 {dimension_numbers = #tpu.dot_dimension_numbers<[1], [0], [0], [1], [0, 0, 1, 1], [], []>} : vector<4x128xbf16>, vector<128x256xbf16>, vector<4x256xf32> -> vector<4x256xf32>
    %110 = arith.addf %108, %109 : vector<4x256xf32>
    %c6_98 = arith.constant 6 : index
    %c0_99 = arith.constant 0 : index
    %c0_100 = arith.constant 0 : index
    %111 = vector.load %arg10[%c6_98, %c0_99, %c0_100] : memref<8x4x256xf32, #tpu.memory_space<vmem>>, vector<1x4x256xf32>
    %112 = vector.shape_cast %111 : vector<1x4x256xf32> to vector<4x256xf32>
    %113 = vector.shape_cast %110 : vector<4x256xf32> to vector<1x4x256xf32>
    tpu.vector_store %arg10[%c6_98, %c0_99, %c0_100], %113 {strides = array<i32>} : memref<8x4x256xf32, #tpu.memory_space<vmem>>, vector<1x4x256xf32>,
    %c54 = arith.constant 54 : index
    %c0_101 = arith.constant 0 : index
    %114 = vector.load %arg9[%c54, %c0_101] : memref<72x128xf32, #tpu.memory_space<vmem>>, vector<4x128xf32>
    %115 = arith.truncf %114 : vector<4x128xf32> to vector<4x128xbf16>
    %c7_102 = arith.constant 7 : index
    %c0_103 = arith.constant 0 : index
    %c0_104 = arith.constant 0 : index
    %116 = vector.load %arg10[%c7_102, %c0_103, %c0_104] : memref<8x4x256xf32, #tpu.memory_space<vmem>>, vector<1x4x256xf32>
    %117 = vector.shape_cast %116 : vector<1x4x256xf32> to vector<4x256xf32>
    %cst_105 = arith.constant dense<0.000000e+00> : vector<4x256xf32>
    %118 = tpu.matmul %115, %50, %cst_105 {dimension_numbers = #tpu.dot_dimension_numbers<[1], [0], [0], [1], [0, 0, 1, 1], [], []>} : vector<4x128xbf16>, vector<128x256xbf16>, vector<4x256xf32> -> vector<4x256xf32>
    %119 = arith.addf %117, %118 : vector<4x256xf32>
    %c7_106 = arith.constant 7 : index
    %c0_107 = arith.constant 0 : index
    %c0_108 = arith.constant 0 : index
    %120 = vector.load %arg10[%c7_106, %c0_107, %c0_108] : memref<8x4x256xf32, #tpu.memory_space<vmem>>, vector<1x4x256xf32>
    %121 = vector.shape_cast %120 : vector<1x4x256xf32> to vector<4x256xf32>
    %122 = vector.shape_cast %119 : vector<4x256xf32> to vector<1x4x256xf32>
    tpu.vector_store %arg10[%c7_106, %c0_107, %c0_108], %122 {strides = array<i32>} : memref<8x4x256xf32, #tpu.memory_space<vmem>>, vector<1x4x256xf32>,
    %c1_109 = arith.constant 1 : index
    %c0_110 = arith.constant 0 : index
    %c0_111 = arith.constant 0 : index
    %123 = vector.load %arg4[%c1_109, %c0_110, %c0_111] : memref<9x128x256xbf16, #tpu.memory_space<vmem>>, vector<1x128x256xbf16>
    %124 = vector.shape_cast %123 : vector<1x128x256xbf16> to vector<128x256xbf16>
    %c1_112 = arith.constant 1 : index
    %c0_113 = arith.constant 0 : index
    %125 = vector.load %arg9[%c1_112, %c0_113] : memref<72x128xf32, #tpu.memory_space<vmem>>, vector<4x128xf32>
    %126 = arith.truncf %125 : vector<4x128xf32> to vector<4x128xbf16>
    %c0_114 = arith.constant 0 : index
    %c0_115 = arith.constant 0 : index
    %c0_116 = arith.constant 0 : index
    %127 = vector.load %arg10[%c0_114, %c0_115, %c0_116] : memref<8x4x256xf32, #tpu.memory_space<vmem>>, vector<1x4x256xf32>
    %128 = vector.shape_cast %127 : vector<1x4x256xf32> to vector<4x256xf32>
    %cst_117 = arith.constant dense<0.000000e+00> : vector<4x256xf32>
    %129 = tpu.matmul %126, %124, %cst_117 {dimension_numbers = #tpu.dot_dimension_numbers<[1], [0], [0], [1], [0, 0, 1, 1], [], []>} : vector<4x128xbf16>, vector<128x256xbf16>, vector<4x256xf32> -> vector<4x256xf32>
    %130 = arith.addf %128, %129 : vector<4x256xf32>
    %c0_118 = arith.constant 0 : index
    %c0_119 = arith.constant 0 : index
    %c0_120 = arith.constant 0 : index
    %131 = vector.load %arg10[%c0_118, %c0_119, %c0_120] : memref<8x4x256xf32, #tpu.memory_space<vmem>>, vector<1x4x256xf32>
    %132 = vector.shape_cast %131 : vector<1x4x256xf32> to vector<4x256xf32>
    %133 = vector.shape_cast %130 : vector<4x256xf32> to vector<1x4x256xf32>
    tpu.vector_store %arg10[%c0_118, %c0_119, %c0_120], %133 {strides = array<i32>} : memref<8x4x256xf32, #tpu.memory_space<vmem>>, vector<1x4x256xf32>,
    %c7_121 = arith.constant 7 : index
    %c0_122 = arith.constant 0 : index
    %134 = vector.load %arg9[%c7_121, %c0_122] : memref<72x128xf32, #tpu.memory_space<vmem>>, vector<4x128xf32>
    %135 = arith.truncf %134 : vector<4x128xf32> to vector<4x128xbf16>
    %c1_123 = arith.constant 1 : index
    %c0_124 = arith.constant 0 : index
    %c0_125 = arith.constant 0 : index
    %136 = vector.load %arg10[%c1_123, %c0_124, %c0_125] : memref<8x4x256xf32, #tpu.memory_space<vmem>>, vector<1x4x256xf32>
    %137 = vector.shape_cast %136 : vector<1x4x256xf32> to vector<4x256xf32>
    %cst_126 = arith.constant dense<0.000000e+00> : vector<4x256xf32>
    %138 = tpu.matmul %135, %124, %cst_126 {dimension_numbers = #tpu.dot_dimension_numbers<[1], [0], [0], [1], [0, 0, 1, 1], [], []>} : vector<4x128xbf16>, vector<128x256xbf16>, vector<4x256xf32> -> vector<4x256xf32>
    %139 = arith.addf %137, %138 : vector<4x256xf32>
    %c1_127 = arith.constant 1 : index
    %c0_128 = arith.constant 0 : index
    %c0_129 = arith.constant 0 : index
    %140 = vector.load %arg10[%c1_127, %c0_128, %c0_129] : memref<8x4x256xf32, #tpu.memory_space<vmem>>, vector<1x4x256xf32>
    %141 = vector.shape_cast %140 : vector<1x4x256xf32> to vector<4x256xf32>
    %142 = vector.shape_cast %139 : vector<4x256xf32> to vector<1x4x256xf32>
    tpu.vector_store %arg10[%c1_127, %c0_128, %c0_129], %142 {strides = array<i32>} : memref<8x4x256xf32, #tpu.memory_space<vmem>>, vector<1x4x256xf32>,
    %c13 = arith.constant 13 : index
    %c0_130 = arith.constant 0 : index
    %143 = vector.load %arg9[%c13, %c0_130] : memref<72x128xf32, #tpu.memory_space<vmem>>, vector<4x128xf32>
    %144 = arith.truncf %143 : vector<4x128xf32> to vector<4x128xbf16>
    %c2_131 = arith.constant 2 : index
    %c0_132 = arith.constant 0 : index
    %c0_133 = arith.constant 0 : index
    %145 = vector.load %arg10[%c2_131, %c0_132, %c0_133] : memref<8x4x256xf32, #tpu.memory_space<vmem>>, vector<1x4x256xf32>
    %146 = vector.shape_cast %145 : vector<1x4x256xf32> to vector<4x256xf32>
    %cst_134 = arith.constant dense<0.000000e+00> : vector<4x256xf32>
    %147 = tpu.matmul %144, %124, %cst_134 {dimension_numbers = #tpu.dot_dimension_numbers<[1], [0], [0], [1], [0, 0, 1, 1], [], []>} : vector<4x128xbf16>, vector<128x256xbf16>, vector<4x256xf32> -> vector<4x256xf32>
    %148 = arith.addf %146, %147 : vector<4x256xf32>
    %c2_135 = arith.constant 2 : index
    %c0_136 = arith.constant 0 : index
    %c0_137 = arith.constant 0 : index
    %149 = vector.load %arg10[%c2_135, %c0_136, %c0_137] : memref<8x4x256xf32, #tpu.memory_space<vmem>>, vector<1x4x256xf32>
    %150 = vector.shape_cast %149 : vector<1x4x256xf32> to vector<4x256xf32>
    %151 = vector.shape_cast %148 : vector<4x256xf32> to vector<1x4x256xf32>
    tpu.vector_store %arg10[%c2_135, %c0_136, %c0_137], %151 {strides = array<i32>} : memref<8x4x256xf32, #tpu.memory_space<vmem>>, vector<1x4x256xf32>,
    %c19 = arith.constant 19 : index
    %c0_138 = arith.constant 0 : index
    %152 = vector.load %arg9[%c19, %c0_138] : memref<72x128xf32, #tpu.memory_space<vmem>>, vector<4x128xf32>
    %153 = arith.truncf %152 : vector<4x128xf32> to vector<4x128xbf16>
    %c3_139 = arith.constant 3 : index
    %c0_140 = arith.constant 0 : index
    %c0_141 = arith.constant 0 : index
    %154 = vector.load %arg10[%c3_139, %c0_140, %c0_141] : memref<8x4x256xf32, #tpu.memory_space<vmem>>, vector<1x4x256xf32>
    %155 = vector.shape_cast %154 : vector<1x4x256xf32> to vector<4x256xf32>
    %cst_142 = arith.constant dense<0.000000e+00> : vector<4x256xf32>
    %156 = tpu.matmul %153, %124, %cst_142 {dimension_numbers = #tpu.dot_dimension_numbers<[1], [0], [0], [1], [0, 0, 1, 1], [], []>} : vector<4x128xbf16>, vector<128x256xbf16>, vector<4x256xf32> -> vector<4x256xf32>
    %157 = arith.addf %155, %156 : vector<4x256xf32>
    %c3_143 = arith.constant 3 : index
    %c0_144 = arith.constant 0 : index
    %c0_145 = arith.constant 0 : index
    %158 = vector.load %arg10[%c3_143, %c0_144, %c0_145] : memref<8x4x256xf32, #tpu.memory_space<vmem>>, vector<1x4x256xf32>
    %159 = vector.shape_cast %158 : vector<1x4x256xf32> to vector<4x256xf32>
    %160 = vector.shape_cast %157 : vector<4x256xf32> to vector<1x4x256xf32>
    tpu.vector_store %arg10[%c3_143, %c0_144, %c0_145], %160 {strides = array<i32>} : memref<8x4x256xf32, #tpu.memory_space<vmem>>, vector<1x4x256xf32>,
    %c37 = arith.constant 37 : index
    %c0_146 = arith.constant 0 : index
    %161 = vector.load %arg9[%c37, %c0_146] : memref<72x128xf32, #tpu.memory_space<vmem>>, vector<4x128xf32>
    %162 = arith.truncf %161 : vector<4x128xf32> to vector<4x128xbf16>
    %c4_147 = arith.constant 4 : index
    %c0_148 = arith.constant 0 : index
    %c0_149 = arith.constant 0 : index
    %163 = vector.load %arg10[%c4_147, %c0_148, %c0_149] : memref<8x4x256xf32, #tpu.memory_space<vmem>>, vector<1x4x256xf32>
    %164 = vector.shape_cast %163 : vector<1x4x256xf32> to vector<4x256xf32>
    %cst_150 = arith.constant dense<0.000000e+00> : vector<4x256xf32>
    %165 = tpu.matmul %162, %124, %cst_150 {dimension_numbers = #tpu.dot_dimension_numbers<[1], [0], [0], [1], [0, 0, 1, 1], [], []>} : vector<4x128xbf16>, vector<128x256xbf16>, vector<4x256xf32> -> vector<4x256xf32>
    %166 = arith.addf %164, %165 : vector<4x256xf32>
    %c4_151 = arith.constant 4 : index
    %c0_152 = arith.constant 0 : index
    %c0_153 = arith.constant 0 : index
    %167 = vector.load %arg10[%c4_151, %c0_152, %c0_153] : memref<8x4x256xf32, #tpu.memory_space<vmem>>, vector<1x4x256xf32>
    %168 = vector.shape_cast %167 : vector<1x4x256xf32> to vector<4x256xf32>
    %169 = vector.shape_cast %166 : vector<4x256xf32> to vector<1x4x256xf32>
    tpu.vector_store %arg10[%c4_151, %c0_152, %c0_153], %169 {strides = array<i32>} : memref<8x4x256xf32, #tpu.memory_space<vmem>>, vector<1x4x256xf32>,
    %c43 = arith.constant 43 : index
    %c0_154 = arith.constant 0 : index
    %170 = vector.load %arg9[%c43, %c0_154] : memref<72x128xf32, #tpu.memory_space<vmem>>, vector<4x128xf32>
    %171 = arith.truncf %170 : vector<4x128xf32> to vector<4x128xbf16>
    %c5_155 = arith.constant 5 : index
    %c0_156 = arith.constant 0 : index
    %c0_157 = arith.constant 0 : index
    %172 = vector.load %arg10[%c5_155, %c0_156, %c0_157] : memref<8x4x256xf32, #tpu.memory_space<vmem>>, vector<1x4x256xf32>
    %173 = vector.shape_cast %172 : vector<1x4x256xf32> to vector<4x256xf32>
    %cst_158 = arith.constant dense<0.000000e+00> : vector<4x256xf32>
    %174 = tpu.matmul %171, %124, %cst_158 {dimension_numbers = #tpu.dot_dimension_numbers<[1], [0], [0], [1], [0, 0, 1, 1], [], []>} : vector<4x128xbf16>, vector<128x256xbf16>, vector<4x256xf32> -> vector<4x256xf32>
    %175 = arith.addf %173, %174 : vector<4x256xf32>
    %c5_159 = arith.constant 5 : index
    %c0_160 = arith.constant 0 : index
    %c0_161 = arith.constant 0 : index
    %176 = vector.load %arg10[%c5_159, %c0_160, %c0_161] : memref<8x4x256xf32, #tpu.memory_space<vmem>>, vector<1x4x256xf32>
    %177 = vector.shape_cast %176 : vector<1x4x256xf32> to vector<4x256xf32>
    %178 = vector.shape_cast %175 : vector<4x256xf32> to vector<1x4x256xf32>
    tpu.vector_store %arg10[%c5_159, %c0_160, %c0_161], %178 {strides = array<i32>} : memref<8x4x256xf32, #tpu.memory_space<vmem>>, vector<1x4x256xf32>,
    %c49 = arith.constant 49 : index
    %c0_162 = arith.constant 0 : index
    %179 = vector.load %arg9[%c49, %c0_162] : memref<72x128xf32, #tpu.memory_space<vmem>>, vector<4x128xf32>
    %180 = arith.truncf %179 : vector<4x128xf32> to vector<4x128xbf16>
    %c6_163 = arith.constant 6 : index
    %c0_164 = arith.constant 0 : index
    %c0_165 = arith.constant 0 : index
    %181 = vector.load %arg10[%c6_163, %c0_164, %c0_165] : memref<8x4x256xf32, #tpu.memory_space<vmem>>, vector<1x4x256xf32>
    %182 = vector.shape_cast %181 : vector<1x4x256xf32> to vector<4x256xf32>
    %cst_166 = arith.constant dense<0.000000e+00> : vector<4x256xf32>
    %183 = tpu.matmul %180, %124, %cst_166 {dimension_numbers = #tpu.dot_dimension_numbers<[1], [0], [0], [1], [0, 0, 1, 1], [], []>} : vector<4x128xbf16>, vector<128x256xbf16>, vector<4x256xf32> -> vector<4x256xf32>
    %184 = arith.addf %182, %183 : vector<4x256xf32>
    %c6_167 = arith.constant 6 : index
    %c0_168 = arith.constant 0 : index
    %c0_169 = arith.constant 0 : index
    %185 = vector.load %arg10[%c6_167, %c0_168, %c0_169] : memref<8x4x256xf32, #tpu.memory_space<vmem>>, vector<1x4x256xf32>
    %186 = vector.shape_cast %185 : vector<1x4x256xf32> to vector<4x256xf32>
    %187 = vector.shape_cast %184 : vector<4x256xf32> to vector<1x4x256xf32>
    tpu.vector_store %arg10[%c6_167, %c0_168, %c0_169], %187 {strides = array<i32>} : memref<8x4x256xf32, #tpu.memory_space<vmem>>, vector<1x4x256xf32>,
    %c55 = arith.constant 55 : index
    %c0_170 = arith.constant 0 : index
    %188 = vector.load %arg9[%c55, %c0_170] : memref<72x128xf32, #tpu.memory_space<vmem>>, vector<4x128xf32>
    %189 = arith.truncf %188 : vector<4x128xf32> to vector<4x128xbf16>
    %c7_171 = arith.constant 7 : index
    %c0_172 = arith.constant 0 : index
    %c0_173 = arith.constant 0 : index
    %190 = vector.load %arg10[%c7_171, %c0_172, %c0_173] : memref<8x4x256xf32, #tpu.memory_space<vmem>>, vector<1x4x256xf32>
    %191 = vector.shape_cast %190 : vector<1x4x256xf32> to vector<4x256xf32>
    %cst_174 = arith.constant dense<0.000000e+00> : vector<4x256xf32>
    %192 = tpu.matmul %189, %124, %cst_174 {dimension_numbers = #tpu.dot_dimension_numbers<[1], [0], [0], [1], [0, 0, 1, 1], [], []>} : vector<4x128xbf16>, vector<128x256xbf16>, vector<4x256xf32> -> vector<4x256xf32>
    %193 = arith.addf %191, %192 : vector<4x256xf32>
    %c7_175 = arith.constant 7 : index
    %c0_176 = arith.constant 0 : index
    %c0_177 = arith.constant 0 : index
    %194 = vector.load %arg10[%c7_175, %c0_176, %c0_177] : memref<8x4x256xf32, #tpu.memory_space<vmem>>, vector<1x4x256xf32>
    %195 = vector.shape_cast %194 : vector<1x4x256xf32> to vector<4x256xf32>
    %196 = vector.shape_cast %193 : vector<4x256xf32> to vector<1x4x256xf32>
    tpu.vector_store %arg10[%c7_175, %c0_176, %c0_177], %196 {strides = array<i32>} : memref<8x4x256xf32, #tpu.memory_space<vmem>>, vector<1x4x256xf32>,
    %c2_178 = arith.constant 2 : index
    %c0_179 = arith.constant 0 : index
    %c0_180 = arith.constant 0 : index
    %197 = vector.load %arg4[%c2_178, %c0_179, %c0_180] : memref<9x128x256xbf16, #tpu.memory_space<vmem>>, vector<1x128x256xbf16>
    %198 = vector.shape_cast %197 : vector<1x128x256xbf16> to vector<128x256xbf16>
    %c2_181 = arith.constant 2 : index
    %c0_182 = arith.constant 0 : index
    %199 = vector.load %arg9[%c2_181, %c0_182] : memref<72x128xf32, #tpu.memory_space<vmem>>, vector<4x128xf32>
    %200 = arith.truncf %199 : vector<4x128xf32> to vector<4x128xbf16>
    %c0_183 = arith.constant 0 : index
    %c0_184 = arith.constant 0 : index
    %c0_185 = arith.constant 0 : index
    %201 = vector.load %arg10[%c0_183, %c0_184, %c0_185] : memref<8x4x256xf32, #tpu.memory_space<vmem>>, vector<1x4x256xf32>
    %202 = vector.shape_cast %201 : vector<1x4x256xf32> to vector<4x256xf32>
    %cst_186 = arith.constant dense<0.000000e+00> : vector<4x256xf32>
    %203 = tpu.matmul %200, %198, %cst_186 {dimension_numbers = #tpu.dot_dimension_numbers<[1], [0], [0], [1], [0, 0, 1, 1], [], []>} : vector<4x128xbf16>, vector<128x256xbf16>, vector<4x256xf32> -> vector<4x256xf32>
    %204 = arith.addf %202, %203 : vector<4x256xf32>
    %c0_187 = arith.constant 0 : index
    %c0_188 = arith.constant 0 : index
    %c0_189 = arith.constant 0 : index
    %205 = vector.load %arg10[%c0_187, %c0_188, %c0_189] : memref<8x4x256xf32, #tpu.memory_space<vmem>>, vector<1x4x256xf32>
    %206 = vector.shape_cast %205 : vector<1x4x256xf32> to vector<4x256xf32>
    %207 = vector.shape_cast %204 : vector<4x256xf32> to vector<1x4x256xf32>
    tpu.vector_store %arg10[%c0_187, %c0_188, %c0_189], %207 {strides = array<i32>} : memref<8x4x256xf32, #tpu.memory_space<vmem>>, vector<1x4x256xf32>,
    %c8 = arith.constant 8 : index
    %c0_190 = arith.constant 0 : index
    %208 = vector.load %arg9[%c8, %c0_190] : memref<72x128xf32, #tpu.memory_space<vmem>>, vector<4x128xf32>
    %209 = arith.truncf %208 : vector<4x128xf32> to vector<4x128xbf16>
    %c1_191 = arith.constant 1 : index
    %c0_192 = arith.constant 0 : index
    %c0_193 = arith.constant 0 : index
    %210 = vector.load %arg10[%c1_191, %c0_192, %c0_193] : memref<8x4x256xf32, #tpu.memory_space<vmem>>, vector<1x4x256xf32>
    %211 = vector.shape_cast %210 : vector<1x4x256xf32> to vector<4x256xf32>
    %cst_194 = arith.constant dense<0.000000e+00> : vector<4x256xf32>
    %212 = tpu.matmul %209, %198, %cst_194 {dimension_numbers = #tpu.dot_dimension_numbers<[1], [0], [0], [1], [0, 0, 1, 1], [], []>} : vector<4x128xbf16>, vector<128x256xbf16>, vector<4x256xf32> -> vector<4x256xf32>
    %213 = arith.addf %211, %212 : vector<4x256xf32>
    %c1_195 = arith.constant 1 : index
    %c0_196 = arith.constant 0 : index
    %c0_197 = arith.constant 0 : index
    %214 = vector.load %arg10[%c1_195, %c0_196, %c0_197] : memref<8x4x256xf32, #tpu.memory_space<vmem>>, vector<1x4x256xf32>
    %215 = vector.shape_cast %214 : vector<1x4x256xf32> to vector<4x256xf32>
    %216 = vector.shape_cast %213 : vector<4x256xf32> to vector<1x4x256xf32>
    tpu.vector_store %arg10[%c1_195, %c0_196, %c0_197], %216 {strides = array<i32>} : memref<8x4x256xf32, #tpu.memory_space<vmem>>, vector<1x4x256xf32>,
    %c14 = arith.constant 14 : index
    %c0_198 = arith.constant 0 : index
    %217 = vector.load %arg9[%c14, %c0_198] : memref<72x128xf32, #tpu.memory_space<vmem>>, vector<4x128xf32>
    %218 = arith.truncf %217 : vector<4x128xf32> to vector<4x128xbf16>
    %c2_199 = arith.constant 2 : index
    %c0_200 = arith.constant 0 : index
    %c0_201 = arith.constant 0 : index
    %219 = vector.load %arg10[%c2_199, %c0_200, %c0_201] : memref<8x4x256xf32, #tpu.memory_space<vmem>>, vector<1x4x256xf32>
    %220 = vector.shape_cast %219 : vector<1x4x256xf32> to vector<4x256xf32>
    %cst_202 = arith.constant dense<0.000000e+00> : vector<4x256xf32>
    %221 = tpu.matmul %218, %198, %cst_202 {dimension_numbers = #tpu.dot_dimension_numbers<[1], [0], [0], [1], [0, 0, 1, 1], [], []>} : vector<4x128xbf16>, vector<128x256xbf16>, vector<4x256xf32> -> vector<4x256xf32>
    %222 = arith.addf %220, %221 : vector<4x256xf32>
    %c2_203 = arith.constant 2 : index
    %c0_204 = arith.constant 0 : index
    %c0_205 = arith.constant 0 : index
    %223 = vector.load %arg10[%c2_203, %c0_204, %c0_205] : memref<8x4x256xf32, #tpu.memory_space<vmem>>, vector<1x4x256xf32>
    %224 = vector.shape_cast %223 : vector<1x4x256xf32> to vector<4x256xf32>
    %225 = vector.shape_cast %222 : vector<4x256xf32> to vector<1x4x256xf32>
    tpu.vector_store %arg10[%c2_203, %c0_204, %c0_205], %225 {strides = array<i32>} : memref<8x4x256xf32, #tpu.memory_space<vmem>>, vector<1x4x256xf32>,
    %c20 = arith.constant 20 : index
    %c0_206 = arith.constant 0 : index
    %226 = vector.load %arg9[%c20, %c0_206] : memref<72x128xf32, #tpu.memory_space<vmem>>, vector<4x128xf32>
    %227 = arith.truncf %226 : vector<4x128xf32> to vector<4x128xbf16>
    %c3_207 = arith.constant 3 : index
    %c0_208 = arith.constant 0 : index
    %c0_209 = arith.constant 0 : index
    %228 = vector.load %arg10[%c3_207, %c0_208, %c0_209] : memref<8x4x256xf32, #tpu.memory_space<vmem>>, vector<1x4x256xf32>
    %229 = vector.shape_cast %228 : vector<1x4x256xf32> to vector<4x256xf32>
    %cst_210 = arith.constant dense<0.000000e+00> : vector<4x256xf32>
    %230 = tpu.matmul %227, %198, %cst_210 {dimension_numbers = #tpu.dot_dimension_numbers<[1], [0], [0], [1], [0, 0, 1, 1], [], []>} : vector<4x128xbf16>, vector<128x256xbf16>, vector<4x256xf32> -> vector<4x256xf32>
    %231 = arith.addf %229, %230 : vector<4x256xf32>
    %c3_211 = arith.constant 3 : index
    %c0_212 = arith.constant 0 : index
    %c0_213 = arith.constant 0 : index
    %232 = vector.load %arg10[%c3_211, %c0_212, %c0_213] : memref<8x4x256xf32, #tpu.memory_space<vmem>>, vector<1x4x256xf32>
    %233 = vector.shape_cast %232 : vector<1x4x256xf32> to vector<4x256xf32>
    %234 = vector.shape_cast %231 : vector<4x256xf32> to vector<1x4x256xf32>
    tpu.vector_store %arg10[%c3_211, %c0_212, %c0_213], %234 {strides = array<i32>} : memref<8x4x256xf32, #tpu.memory_space<vmem>>, vector<1x4x256xf32>,
    %c38 = arith.constant 38 : index
    %c0_214 = arith.constant 0 : index
    %235 = vector.load %arg9[%c38, %c0_214] : memref<72x128xf32, #tpu.memory_space<vmem>>, vector<4x128xf32>
    %236 = arith.truncf %235 : vector<4x128xf32> to vector<4x128xbf16>
    %c4_215 = arith.constant 4 : index
    %c0_216 = arith.constant 0 : index
    %c0_217 = arith.constant 0 : index
    %237 = vector.load %arg10[%c4_215, %c0_216, %c0_217] : memref<8x4x256xf32, #tpu.memory_space<vmem>>, vector<1x4x256xf32>
    %238 = vector.shape_cast %237 : vector<1x4x256xf32> to vector<4x256xf32>
    %cst_218 = arith.constant dense<0.000000e+00> : vector<4x256xf32>
    %239 = tpu.matmul %236, %198, %cst_218 {dimension_numbers = #tpu.dot_dimension_numbers<[1], [0], [0], [1], [0, 0, 1, 1], [], []>} : vector<4x128xbf16>, vector<128x256xbf16>, vector<4x256xf32> -> vector<4x256xf32>
    %240 = arith.addf %238, %239 : vector<4x256xf32>
    %c4_219 = arith.constant 4 : index
    %c0_220 = arith.constant 0 : index
    %c0_221 = arith.constant 0 : index
    %241 = vector.load %arg10[%c4_219, %c0_220, %c0_221] : memref<8x4x256xf32, #tpu.memory_space<vmem>>, vector<1x4x256xf32>
    %242 = vector.shape_cast %241 : vector<1x4x256xf32> to vector<4x256xf32>
    %243 = vector.shape_cast %240 : vector<4x256xf32> to vector<1x4x256xf32>
    tpu.vector_store %arg10[%c4_219, %c0_220, %c0_221], %243 {strides = array<i32>} : memref<8x4x256xf32, #tpu.memory_space<vmem>>, vector<1x4x256xf32>,
    %c44 = arith.constant 44 : index
    %c0_222 = arith.constant 0 : index
    %244 = vector.load %arg9[%c44, %c0_222] : memref<72x128xf32, #tpu.memory_space<vmem>>, vector<4x128xf32>
    %245 = arith.truncf %244 : vector<4x128xf32> to vector<4x128xbf16>
    %c5_223 = arith.constant 5 : index
    %c0_224 = arith.constant 0 : index
    %c0_225 = arith.constant 0 : index
    %246 = vector.load %arg10[%c5_223, %c0_224, %c0_225] : memref<8x4x256xf32, #tpu.memory_space<vmem>>, vector<1x4x256xf32>
    %247 = vector.shape_cast %246 : vector<1x4x256xf32> to vector<4x256xf32>
    %cst_226 = arith.constant dense<0.000000e+00> : vector<4x256xf32>
    %248 = tpu.matmul %245, %198, %cst_226 {dimension_numbers = #tpu.dot_dimension_numbers<[1], [0], [0], [1], [0, 0, 1, 1], [], []>} : vector<4x128xbf16>, vector<128x256xbf16>, vector<4x256xf32> -> vector<4x256xf32>
    %249 = arith.addf %247, %248 : vector<4x256xf32>
    %c5_227 = arith.constant 5 : index
    %c0_228 = arith.constant 0 : index
    %c0_229 = arith.constant 0 : index
    %250 = vector.load %arg10[%c5_227, %c0_228, %c0_229] : memref<8x4x256xf32, #tpu.memory_space<vmem>>, vector<1x4x256xf32>
    %251 = vector.shape_cast %250 : vector<1x4x256xf32> to vector<4x256xf32>
    %252 = vector.shape_cast %249 : vector<4x256xf32> to vector<1x4x256xf32>
    tpu.vector_store %arg10[%c5_227, %c0_228, %c0_229], %252 {strides = array<i32>} : memref<8x4x256xf32, #tpu.memory_space<vmem>>, vector<1x4x256xf32>,
    %c50 = arith.constant 50 : index
    %c0_230 = arith.constant 0 : index
    %253 = vector.load %arg9[%c50, %c0_230] : memref<72x128xf32, #tpu.memory_space<vmem>>, vector<4x128xf32>
    %254 = arith.truncf %253 : vector<4x128xf32> to vector<4x128xbf16>
    %c6_231 = arith.constant 6 : index
    %c0_232 = arith.constant 0 : index
    %c0_233 = arith.constant 0 : index
    %255 = vector.load %arg10[%c6_231, %c0_232, %c0_233] : memref<8x4x256xf32, #tpu.memory_space<vmem>>, vector<1x4x256xf32>
    %256 = vector.shape_cast %255 : vector<1x4x256xf32> to vector<4x256xf32>
    %cst_234 = arith.constant dense<0.000000e+00> : vector<4x256xf32>
    %257 = tpu.matmul %254, %198, %cst_234 {dimension_numbers = #tpu.dot_dimension_numbers<[1], [0], [0], [1], [0, 0, 1, 1], [], []>} : vector<4x128xbf16>, vector<128x256xbf16>, vector<4x256xf32> -> vector<4x256xf32>
    %258 = arith.addf %256, %257 : vector<4x256xf32>
    %c6_235 = arith.constant 6 : index
    %c0_236 = arith.constant 0 : index
    %c0_237 = arith.constant 0 : index
    %259 = vector.load %arg10[%c6_235, %c0_236, %c0_237] : memref<8x4x256xf32, #tpu.memory_space<vmem>>, vector<1x4x256xf32>
    %260 = vector.shape_cast %259 : vector<1x4x256xf32> to vector<4x256xf32>
    %261 = vector.shape_cast %258 : vector<4x256xf32> to vector<1x4x256xf32>
    tpu.vector_store %arg10[%c6_235, %c0_236, %c0_237], %261 {strides = array<i32>} : memref<8x4x256xf32, #tpu.memory_space<vmem>>, vector<1x4x256xf32>,
    %c56 = arith.constant 56 : index
    %c0_238 = arith.constant 0 : index
    %262 = vector.load %arg9[%c56, %c0_238] : memref<72x128xf32, #tpu.memory_space<vmem>>, vector<4x128xf32>
    %263 = arith.truncf %262 : vector<4x128xf32> to vector<4x128xbf16>
    %c7_239 = arith.constant 7 : index
    %c0_240 = arith.constant 0 : index
    %c0_241 = arith.constant 0 : index
    %264 = vector.load %arg10[%c7_239, %c0_240, %c0_241] : memref<8x4x256xf32, #tpu.memory_space<vmem>>, vector<1x4x256xf32>
    %265 = vector.shape_cast %264 : vector<1x4x256xf32> to vector<4x256xf32>
    %cst_242 = arith.constant dense<0.000000e+00> : vector<4x256xf32>
    %266 = tpu.matmul %263, %198, %cst_242 {dimension_numbers = #tpu.dot_dimension_numbers<[1], [0], [0], [1], [0, 0, 1, 1], [], []>} : vector<4x128xbf16>, vector<128x256xbf16>, vector<4x256xf32> -> vector<4x256xf32>
    %267 = arith.addf %265, %266 : vector<4x256xf32>
    %c7_243 = arith.constant 7 : index
    %c0_244 = arith.constant 0 : index
    %c0_245 = arith.constant 0 : index
    %268 = vector.load %arg10[%c7_243, %c0_244, %c0_245] : memref<8x4x256xf32, #tpu.memory_space<vmem>>, vector<1x4x256xf32>
    %269 = vector.shape_cast %268 : vector<1x4x256xf32> to vector<4x256xf32>
    %270 = vector.shape_cast %267 : vector<4x256xf32> to vector<1x4x256xf32>
    tpu.vector_store %arg10[%c7_243, %c0_244, %c0_245], %270 {strides = array<i32>} : memref<8x4x256xf32, #tpu.memory_space<vmem>>, vector<1x4x256xf32>,
    %c3_246 = arith.constant 3 : index
    %c0_247 = arith.constant 0 : index
    %c0_248 = arith.constant 0 : index
    %271 = vector.load %arg4[%c3_246, %c0_247, %c0_248] : memref<9x128x256xbf16, #tpu.memory_space<vmem>>, vector<1x128x256xbf16>
    %272 = vector.shape_cast %271 : vector<1x128x256xbf16> to vector<128x256xbf16>
    %c6_249 = arith.constant 6 : index
    %c0_250 = arith.constant 0 : index
    %273 = vector.load %arg9[%c6_249, %c0_250] : memref<72x128xf32, #tpu.memory_space<vmem>>, vector<4x128xf32>
    %274 = arith.truncf %273 : vector<4x128xf32> to vector<4x128xbf16>
    %c0_251 = arith.constant 0 : index
    %c0_252 = arith.constant 0 : index
    %c0_253 = arith.constant 0 : index
    %275 = vector.load %arg10[%c0_251, %c0_252, %c0_253] : memref<8x4x256xf32, #tpu.memory_space<vmem>>, vector<1x4x256xf32>
    %276 = vector.shape_cast %275 : vector<1x4x256xf32> to vector<4x256xf32>
    %cst_254 = arith.constant dense<0.000000e+00> : vector<4x256xf32>
    %277 = tpu.matmul %274, %272, %cst_254 {dimension_numbers = #tpu.dot_dimension_numbers<[1], [0], [0], [1], [0, 0, 1, 1], [], []>} : vector<4x128xbf16>, vector<128x256xbf16>, vector<4x256xf32> -> vector<4x256xf32>
    %278 = arith.addf %276, %277 : vector<4x256xf32>
    %c0_255 = arith.constant 0 : index
    %c0_256 = arith.constant 0 : index
    %c0_257 = arith.constant 0 : index
    %279 = vector.load %arg10[%c0_255, %c0_256, %c0_257] : memref<8x4x256xf32, #tpu.memory_space<vmem>>, vector<1x4x256xf32>
    %280 = vector.shape_cast %279 : vector<1x4x256xf32> to vector<4x256xf32>
    %281 = vector.shape_cast %278 : vector<4x256xf32> to vector<1x4x256xf32>
    tpu.vector_store %arg10[%c0_255, %c0_256, %c0_257], %281 {strides = array<i32>} : memref<8x4x256xf32, #tpu.memory_space<vmem>>, vector<1x4x256xf32>,
    %c12_258 = arith.constant 12 : index
    %c0_259 = arith.constant 0 : index
    %282 = vector.load %arg9[%c12_258, %c0_259] : memref<72x128xf32, #tpu.memory_space<vmem>>, vector<4x128xf32>
    %283 = arith.truncf %282 : vector<4x128xf32> to vector<4x128xbf16>
    %c1_260 = arith.constant 1 : index
    %c0_261 = arith.constant 0 : index
    %c0_262 = arith.constant 0 : index
    %284 = vector.load %arg10[%c1_260, %c0_261, %c0_262] : memref<8x4x256xf32, #tpu.memory_space<vmem>>, vector<1x4x256xf32>
    %285 = vector.shape_cast %284 : vector<1x4x256xf32> to vector<4x256xf32>
    %cst_263 = arith.constant dense<0.000000e+00> : vector<4x256xf32>
    %286 = tpu.matmul %283, %272, %cst_263 {dimension_numbers = #tpu.dot_dimension_numbers<[1], [0], [0], [1], [0, 0, 1, 1], [], []>} : vector<4x128xbf16>, vector<128x256xbf16>, vector<4x256xf32> -> vector<4x256xf32>
    %287 = arith.addf %285, %286 : vector<4x256xf32>
    %c1_264 = arith.constant 1 : index
    %c0_265 = arith.constant 0 : index
    %c0_266 = arith.constant 0 : index
    %288 = vector.load %arg10[%c1_264, %c0_265, %c0_266] : memref<8x4x256xf32, #tpu.memory_space<vmem>>, vector<1x4x256xf32>
    %289 = vector.shape_cast %288 : vector<1x4x256xf32> to vector<4x256xf32>
    %290 = vector.shape_cast %287 : vector<4x256xf32> to vector<1x4x256xf32>
    tpu.vector_store %arg10[%c1_264, %c0_265, %c0_266], %290 {strides = array<i32>} : memref<8x4x256xf32, #tpu.memory_space<vmem>>, vector<1x4x256xf32>,
    %c18_267 = arith.constant 18 : index
    %c0_268 = arith.constant 0 : index
    %291 = vector.load %arg9[%c18_267, %c0_268] : memref<72x128xf32, #tpu.memory_space<vmem>>, vector<4x128xf32>
    %292 = arith.truncf %291 : vector<4x128xf32> to vector<4x128xbf16>
    %c2_269 = arith.constant 2 : index
    %c0_270 = arith.constant 0 : index
    %c0_271 = arith.constant 0 : index
    %293 = vector.load %arg10[%c2_269, %c0_270, %c0_271] : memref<8x4x256xf32, #tpu.memory_space<vmem>>, vector<1x4x256xf32>
    %294 = vector.shape_cast %293 : vector<1x4x256xf32> to vector<4x256xf32>
    %cst_272 = arith.constant dense<0.000000e+00> : vector<4x256xf32>
    %295 = tpu.matmul %292, %272, %cst_272 {dimension_numbers = #tpu.dot_dimension_numbers<[1], [0], [0], [1], [0, 0, 1, 1], [], []>} : vector<4x128xbf16>, vector<128x256xbf16>, vector<4x256xf32> -> vector<4x256xf32>
    %296 = arith.addf %294, %295 : vector<4x256xf32>
    %c2_273 = arith.constant 2 : index
    %c0_274 = arith.constant 0 : index
    %c0_275 = arith.constant 0 : index
    %297 = vector.load %arg10[%c2_273, %c0_274, %c0_275] : memref<8x4x256xf32, #tpu.memory_space<vmem>>, vector<1x4x256xf32>
    %298 = vector.shape_cast %297 : vector<1x4x256xf32> to vector<4x256xf32>
    %299 = vector.shape_cast %296 : vector<4x256xf32> to vector<1x4x256xf32>
    tpu.vector_store %arg10[%c2_273, %c0_274, %c0_275], %299 {strides = array<i32>} : memref<8x4x256xf32, #tpu.memory_space<vmem>>, vector<1x4x256xf32>,
    %c24 = arith.constant 24 : index
    %c0_276 = arith.constant 0 : index
    %300 = vector.load %arg9[%c24, %c0_276] : memref<72x128xf32, #tpu.memory_space<vmem>>, vector<4x128xf32>
    %301 = arith.truncf %300 : vector<4x128xf32> to vector<4x128xbf16>
    %c3_277 = arith.constant 3 : index
    %c0_278 = arith.constant 0 : index
    %c0_279 = arith.constant 0 : index
    %302 = vector.load %arg10[%c3_277, %c0_278, %c0_279] : memref<8x4x256xf32, #tpu.memory_space<vmem>>, vector<1x4x256xf32>
    %303 = vector.shape_cast %302 : vector<1x4x256xf32> to vector<4x256xf32>
    %cst_280 = arith.constant dense<0.000000e+00> : vector<4x256xf32>
    %304 = tpu.matmul %301, %272, %cst_280 {dimension_numbers = #tpu.dot_dimension_numbers<[1], [0], [0], [1], [0, 0, 1, 1], [], []>} : vector<4x128xbf16>, vector<128x256xbf16>, vector<4x256xf32> -> vector<4x256xf32>
    %305 = arith.addf %303, %304 : vector<4x256xf32>
    %c3_281 = arith.constant 3 : index
    %c0_282 = arith.constant 0 : index
    %c0_283 = arith.constant 0 : index
    %306 = vector.load %arg10[%c3_281, %c0_282, %c0_283] : memref<8x4x256xf32, #tpu.memory_space<vmem>>, vector<1x4x256xf32>
    %307 = vector.shape_cast %306 : vector<1x4x256xf32> to vector<4x256xf32>
    %308 = vector.shape_cast %305 : vector<4x256xf32> to vector<1x4x256xf32>
    tpu.vector_store %arg10[%c3_281, %c0_282, %c0_283], %308 {strides = array<i32>} : memref<8x4x256xf32, #tpu.memory_space<vmem>>, vector<1x4x256xf32>,
    %c42_284 = arith.constant 42 : index
    %c0_285 = arith.constant 0 : index
    %309 = vector.load %arg9[%c42_284, %c0_285] : memref<72x128xf32, #tpu.memory_space<vmem>>, vector<4x128xf32>
    %310 = arith.truncf %309 : vector<4x128xf32> to vector<4x128xbf16>
    %c4_286 = arith.constant 4 : index
    %c0_287 = arith.constant 0 : index
    %c0_288 = arith.constant 0 : index
    %311 = vector.load %arg10[%c4_286, %c0_287, %c0_288] : memref<8x4x256xf32, #tpu.memory_space<vmem>>, vector<1x4x256xf32>
    %312 = vector.shape_cast %311 : vector<1x4x256xf32> to vector<4x256xf32>
    %cst_289 = arith.constant dense<0.000000e+00> : vector<4x256xf32>
    %313 = tpu.matmul %310, %272, %cst_289 {dimension_numbers = #tpu.dot_dimension_numbers<[1], [0], [0], [1], [0, 0, 1, 1], [], []>} : vector<4x128xbf16>, vector<128x256xbf16>, vector<4x256xf32> -> vector<4x256xf32>
    %314 = arith.addf %312, %313 : vector<4x256xf32>
    %c4_290 = arith.constant 4 : index
    %c0_291 = arith.constant 0 : index
    %c0_292 = arith.constant 0 : index
    %315 = vector.load %arg10[%c4_290, %c0_291, %c0_292] : memref<8x4x256xf32, #tpu.memory_space<vmem>>, vector<1x4x256xf32>
    %316 = vector.shape_cast %315 : vector<1x4x256xf32> to vector<4x256xf32>
    %317 = vector.shape_cast %314 : vector<4x256xf32> to vector<1x4x256xf32>
    tpu.vector_store %arg10[%c4_290, %c0_291, %c0_292], %317 {strides = array<i32>} : memref<8x4x256xf32, #tpu.memory_space<vmem>>, vector<1x4x256xf32>,
    %c48_293 = arith.constant 48 : index
    %c0_294 = arith.constant 0 : index
    %318 = vector.load %arg9[%c48_293, %c0_294] : memref<72x128xf32, #tpu.memory_space<vmem>>, vector<4x128xf32>
    %319 = arith.truncf %318 : vector<4x128xf32> to vector<4x128xbf16>
    %c5_295 = arith.constant 5 : index
    %c0_296 = arith.constant 0 : index
    %c0_297 = arith.constant 0 : index
    %320 = vector.load %arg10[%c5_295, %c0_296, %c0_297] : memref<8x4x256xf32, #tpu.memory_space<vmem>>, vector<1x4x256xf32>
    %321 = vector.shape_cast %320 : vector<1x4x256xf32> to vector<4x256xf32>
    %cst_298 = arith.constant dense<0.000000e+00> : vector<4x256xf32>
    %322 = tpu.matmul %319, %272, %cst_298 {dimension_numbers = #tpu.dot_dimension_numbers<[1], [0], [0], [1], [0, 0, 1, 1], [], []>} : vector<4x128xbf16>, vector<128x256xbf16>, vector<4x256xf32> -> vector<4x256xf32>
    %323 = arith.addf %321, %322 : vector<4x256xf32>
    %c5_299 = arith.constant 5 : index
    %c0_300 = arith.constant 0 : index
    %c0_301 = arith.constant 0 : index
    %324 = vector.load %arg10[%c5_299, %c0_300, %c0_301] : memref<8x4x256xf32, #tpu.memory_space<vmem>>, vector<1x4x256xf32>
    %325 = vector.shape_cast %324 : vector<1x4x256xf32> to vector<4x256xf32>
    %326 = vector.shape_cast %323 : vector<4x256xf32> to vector<1x4x256xf32>
    tpu.vector_store %arg10[%c5_299, %c0_300, %c0_301], %326 {strides = array<i32>} : memref<8x4x256xf32, #tpu.memory_space<vmem>>, vector<1x4x256xf32>,
    %c54_302 = arith.constant 54 : index
    %c0_303 = arith.constant 0 : index
    %327 = vector.load %arg9[%c54_302, %c0_303] : memref<72x128xf32, #tpu.memory_space<vmem>>, vector<4x128xf32>
    %328 = arith.truncf %327 : vector<4x128xf32> to vector<4x128xbf16>
    %c6_304 = arith.constant 6 : index
    %c0_305 = arith.constant 0 : index
    %c0_306 = arith.constant 0 : index
    %329 = vector.load %arg10[%c6_304, %c0_305, %c0_306] : memref<8x4x256xf32, #tpu.memory_space<vmem>>, vector<1x4x256xf32>
    %330 = vector.shape_cast %329 : vector<1x4x256xf32> to vector<4x256xf32>
    %cst_307 = arith.constant dense<0.000000e+00> : vector<4x256xf32>
    %331 = tpu.matmul %328, %272, %cst_307 {dimension_numbers = #tpu.dot_dimension_numbers<[1], [0], [0], [1], [0, 0, 1, 1], [], []>} : vector<4x128xbf16>, vector<128x256xbf16>, vector<4x256xf32> -> vector<4x256xf32>
    %332 = arith.addf %330, %331 : vector<4x256xf32>
    %c6_308 = arith.constant 6 : index
    %c0_309 = arith.constant 0 : index
    %c0_310 = arith.constant 0 : index
    %333 = vector.load %arg10[%c6_308, %c0_309, %c0_310] : memref<8x4x256xf32, #tpu.memory_space<vmem>>, vector<1x4x256xf32>
    %334 = vector.shape_cast %333 : vector<1x4x256xf32> to vector<4x256xf32>
    %335 = vector.shape_cast %332 : vector<4x256xf32> to vector<1x4x256xf32>
    tpu.vector_store %arg10[%c6_308, %c0_309, %c0_310], %335 {strides = array<i32>} : memref<8x4x256xf32, #tpu.memory_space<vmem>>, vector<1x4x256xf32>,
    %c60 = arith.constant 60 : index
    %c0_311 = arith.constant 0 : index
    %336 = vector.load %arg9[%c60, %c0_311] : memref<72x128xf32, #tpu.memory_space<vmem>>, vector<4x128xf32>
    %337 = arith.truncf %336 : vector<4x128xf32> to vector<4x128xbf16>
    %c7_312 = arith.constant 7 : index
    %c0_313 = arith.constant 0 : index
    %c0_314 = arith.constant 0 : index
    %338 = vector.load %arg10[%c7_312, %c0_313, %c0_314] : memref<8x4x256xf32, #tpu.memory_space<vmem>>, vector<1x4x256xf32>
    %339 = vector.shape_cast %338 : vector<1x4x256xf32> to vector<4x256xf32>
    %cst_315 = arith.constant dense<0.000000e+00> : vector<4x256xf32>
    %340 = tpu.matmul %337, %272, %cst_315 {dimension_numbers = #tpu.dot_dimension_numbers<[1], [0], [0], [1], [0, 0, 1, 1], [], []>} : vector<4x128xbf16>, vector<128x256xbf16>, vector<4x256xf32> -> vector<4x256xf32>
    %341 = arith.addf %339, %340 : vector<4x256xf32>
    %c7_316 = arith.constant 7 : index
    %c0_317 = arith.constant 0 : index
    %c0_318 = arith.constant 0 : index
    %342 = vector.load %arg10[%c7_316, %c0_317, %c0_318] : memref<8x4x256xf32, #tpu.memory_space<vmem>>, vector<1x4x256xf32>
    %343 = vector.shape_cast %342 : vector<1x4x256xf32> to vector<4x256xf32>
    %344 = vector.shape_cast %341 : vector<4x256xf32> to vector<1x4x256xf32>
    tpu.vector_store %arg10[%c7_316, %c0_317, %c0_318], %344 {strides = array<i32>} : memref<8x4x256xf32, #tpu.memory_space<vmem>>, vector<1x4x256xf32>,
    %c4_319 = arith.constant 4 : index
    %c0_320 = arith.constant 0 : index
    %c0_321 = arith.constant 0 : index
    %345 = vector.load %arg4[%c4_319, %c0_320, %c0_321] : memref<9x128x256xbf16, #tpu.memory_space<vmem>>, vector<1x128x256xbf16>
    %346 = vector.shape_cast %345 : vector<1x128x256xbf16> to vector<128x256xbf16>
    %c7_322 = arith.constant 7 : index
    %c0_323 = arith.constant 0 : index
    %347 = vector.load %arg9[%c7_322, %c0_323] : memref<72x128xf32, #tpu.memory_space<vmem>>, vector<4x128xf32>
    %348 = arith.truncf %347 : vector<4x128xf32> to vector<4x128xbf16>
    %c0_324 = arith.constant 0 : index
    %c0_325 = arith.constant 0 : index
    %c0_326 = arith.constant 0 : index
    %349 = vector.load %arg10[%c0_324, %c0_325, %c0_326] : memref<8x4x256xf32, #tpu.memory_space<vmem>>, vector<1x4x256xf32>
    %350 = vector.shape_cast %349 : vector<1x4x256xf32> to vector<4x256xf32>
    %cst_327 = arith.constant dense<0.000000e+00> : vector<4x256xf32>
    %351 = tpu.matmul %348, %346, %cst_327 {dimension_numbers = #tpu.dot_dimension_numbers<[1], [0], [0], [1], [0, 0, 1, 1], [], []>} : vector<4x128xbf16>, vector<128x256xbf16>, vector<4x256xf32> -> vector<4x256xf32>
    %352 = arith.addf %350, %351 : vector<4x256xf32>
    %c0_328 = arith.constant 0 : index
    %c0_329 = arith.constant 0 : index
    %c0_330 = arith.constant 0 : index
    %353 = vector.load %arg10[%c0_328, %c0_329, %c0_330] : memref<8x4x256xf32, #tpu.memory_space<vmem>>, vector<1x4x256xf32>
    %354 = vector.shape_cast %353 : vector<1x4x256xf32> to vector<4x256xf32>
    %355 = vector.shape_cast %352 : vector<4x256xf32> to vector<1x4x256xf32>
    tpu.vector_store %arg10[%c0_328, %c0_329, %c0_330], %355 {strides = array<i32>} : memref<8x4x256xf32, #tpu.memory_space<vmem>>, vector<1x4x256xf32>,
    %c13_331 = arith.constant 13 : index
    %c0_332 = arith.constant 0 : index
    %356 = vector.load %arg9[%c13_331, %c0_332] : memref<72x128xf32, #tpu.memory_space<vmem>>, vector<4x128xf32>
    %357 = arith.truncf %356 : vector<4x128xf32> to vector<4x128xbf16>
    %c1_333 = arith.constant 1 : index
    %c0_334 = arith.constant 0 : index
    %c0_335 = arith.constant 0 : index
    %358 = vector.load %arg10[%c1_333, %c0_334, %c0_335] : memref<8x4x256xf32, #tpu.memory_space<vmem>>, vector<1x4x256xf32>
    %359 = vector.shape_cast %358 : vector<1x4x256xf32> to vector<4x256xf32>
    %cst_336 = arith.constant dense<0.000000e+00> : vector<4x256xf32>
    %360 = tpu.matmul %357, %346, %cst_336 {dimension_numbers = #tpu.dot_dimension_numbers<[1], [0], [0], [1], [0, 0, 1, 1], [], []>} : vector<4x128xbf16>, vector<128x256xbf16>, vector<4x256xf32> -> vector<4x256xf32>
    %361 = arith.addf %359, %360 : vector<4x256xf32>
    %c1_337 = arith.constant 1 : index
    %c0_338 = arith.constant 0 : index
    %c0_339 = arith.constant 0 : index
    %362 = vector.load %arg10[%c1_337, %c0_338, %c0_339] : memref<8x4x256xf32, #tpu.memory_space<vmem>>, vector<1x4x256xf32>
    %363 = vector.shape_cast %362 : vector<1x4x256xf32> to vector<4x256xf32>
    %364 = vector.shape_cast %361 : vector<4x256xf32> to vector<1x4x256xf32>
    tpu.vector_store %arg10[%c1_337, %c0_338, %c0_339], %364 {strides = array<i32>} : memref<8x4x256xf32, #tpu.memory_space<vmem>>, vector<1x4x256xf32>,
    %c19_340 = arith.constant 19 : index
    %c0_341 = arith.constant 0 : index
    %365 = vector.load %arg9[%c19_340, %c0_341] : memref<72x128xf32, #tpu.memory_space<vmem>>, vector<4x128xf32>
    %366 = arith.truncf %365 : vector<4x128xf32> to vector<4x128xbf16>
    %c2_342 = arith.constant 2 : index
    %c0_343 = arith.constant 0 : index
    %c0_344 = arith.constant 0 : index
    %367 = vector.load %arg10[%c2_342, %c0_343, %c0_344] : memref<8x4x256xf32, #tpu.memory_space<vmem>>, vector<1x4x256xf32>
    %368 = vector.shape_cast %367 : vector<1x4x256xf32> to vector<4x256xf32>
    %cst_345 = arith.constant dense<0.000000e+00> : vector<4x256xf32>
    %369 = tpu.matmul %366, %346, %cst_345 {dimension_numbers = #tpu.dot_dimension_numbers<[1], [0], [0], [1], [0, 0, 1, 1], [], []>} : vector<4x128xbf16>, vector<128x256xbf16>, vector<4x256xf32> -> vector<4x256xf32>
    %370 = arith.addf %368, %369 : vector<4x256xf32>
    %c2_346 = arith.constant 2 : index
    %c0_347 = arith.constant 0 : index
    %c0_348 = arith.constant 0 : index
    %371 = vector.load %arg10[%c2_346, %c0_347, %c0_348] : memref<8x4x256xf32, #tpu.memory_space<vmem>>, vector<1x4x256xf32>
    %372 = vector.shape_cast %371 : vector<1x4x256xf32> to vector<4x256xf32>
    %373 = vector.shape_cast %370 : vector<4x256xf32> to vector<1x4x256xf32>
    tpu.vector_store %arg10[%c2_346, %c0_347, %c0_348], %373 {strides = array<i32>} : memref<8x4x256xf32, #tpu.memory_space<vmem>>, vector<1x4x256xf32>,
    %c25 = arith.constant 25 : index
    %c0_349 = arith.constant 0 : index
    %374 = vector.load %arg9[%c25, %c0_349] : memref<72x128xf32, #tpu.memory_space<vmem>>, vector<4x128xf32>
    %375 = arith.truncf %374 : vector<4x128xf32> to vector<4x128xbf16>
    %c3_350 = arith.constant 3 : index
    %c0_351 = arith.constant 0 : index
    %c0_352 = arith.constant 0 : index
    %376 = vector.load %arg10[%c3_350, %c0_351, %c0_352] : memref<8x4x256xf32, #tpu.memory_space<vmem>>, vector<1x4x256xf32>
    %377 = vector.shape_cast %376 : vector<1x4x256xf32> to vector<4x256xf32>
    %cst_353 = arith.constant dense<0.000000e+00> : vector<4x256xf32>
    %378 = tpu.matmul %375, %346, %cst_353 {dimension_numbers = #tpu.dot_dimension_numbers<[1], [0], [0], [1], [0, 0, 1, 1], [], []>} : vector<4x128xbf16>, vector<128x256xbf16>, vector<4x256xf32> -> vector<4x256xf32>
    %379 = arith.addf %377, %378 : vector<4x256xf32>
    %c3_354 = arith.constant 3 : index
    %c0_355 = arith.constant 0 : index
    %c0_356 = arith.constant 0 : index
    %380 = vector.load %arg10[%c3_354, %c0_355, %c0_356] : memref<8x4x256xf32, #tpu.memory_space<vmem>>, vector<1x4x256xf32>
    %381 = vector.shape_cast %380 : vector<1x4x256xf32> to vector<4x256xf32>
    %382 = vector.shape_cast %379 : vector<4x256xf32> to vector<1x4x256xf32>
    tpu.vector_store %arg10[%c3_354, %c0_355, %c0_356], %382 {strides = array<i32>} : memref<8x4x256xf32, #tpu.memory_space<vmem>>, vector<1x4x256xf32>,
    %c43_357 = arith.constant 43 : index
    %c0_358 = arith.constant 0 : index
    %383 = vector.load %arg9[%c43_357, %c0_358] : memref<72x128xf32, #tpu.memory_space<vmem>>, vector<4x128xf32>
    %384 = arith.truncf %383 : vector<4x128xf32> to vector<4x128xbf16>
    %c4_359 = arith.constant 4 : index
    %c0_360 = arith.constant 0 : index
    %c0_361 = arith.constant 0 : index
    %385 = vector.load %arg10[%c4_359, %c0_360, %c0_361] : memref<8x4x256xf32, #tpu.memory_space<vmem>>, vector<1x4x256xf32>
    %386 = vector.shape_cast %385 : vector<1x4x256xf32> to vector<4x256xf32>
    %cst_362 = arith.constant dense<0.000000e+00> : vector<4x256xf32>
    %387 = tpu.matmul %384, %346, %cst_362 {dimension_numbers = #tpu.dot_dimension_numbers<[1], [0], [0], [1], [0, 0, 1, 1], [], []>} : vector<4x128xbf16>, vector<128x256xbf16>, vector<4x256xf32> -> vector<4x256xf32>
    %388 = arith.addf %386, %387 : vector<4x256xf32>
    %c4_363 = arith.constant 4 : index
    %c0_364 = arith.constant 0 : index
    %c0_365 = arith.constant 0 : index
    %389 = vector.load %arg10[%c4_363, %c0_364, %c0_365] : memref<8x4x256xf32, #tpu.memory_space<vmem>>, vector<1x4x256xf32>
    %390 = vector.shape_cast %389 : vector<1x4x256xf32> to vector<4x256xf32>
    %391 = vector.shape_cast %388 : vector<4x256xf32> to vector<1x4x256xf32>
    tpu.vector_store %arg10[%c4_363, %c0_364, %c0_365], %391 {strides = array<i32>} : memref<8x4x256xf32, #tpu.memory_space<vmem>>, vector<1x4x256xf32>,
    %c49_366 = arith.constant 49 : index
    %c0_367 = arith.constant 0 : index
    %392 = vector.load %arg9[%c49_366, %c0_367] : memref<72x128xf32, #tpu.memory_space<vmem>>, vector<4x128xf32>
    %393 = arith.truncf %392 : vector<4x128xf32> to vector<4x128xbf16>
    %c5_368 = arith.constant 5 : index
    %c0_369 = arith.constant 0 : index
    %c0_370 = arith.constant 0 : index
    %394 = vector.load %arg10[%c5_368, %c0_369, %c0_370] : memref<8x4x256xf32, #tpu.memory_space<vmem>>, vector<1x4x256xf32>
    %395 = vector.shape_cast %394 : vector<1x4x256xf32> to vector<4x256xf32>
    %cst_371 = arith.constant dense<0.000000e+00> : vector<4x256xf32>
    %396 = tpu.matmul %393, %346, %cst_371 {dimension_numbers = #tpu.dot_dimension_numbers<[1], [0], [0], [1], [0, 0, 1, 1], [], []>} : vector<4x128xbf16>, vector<128x256xbf16>, vector<4x256xf32> -> vector<4x256xf32>
    %397 = arith.addf %395, %396 : vector<4x256xf32>
    %c5_372 = arith.constant 5 : index
    %c0_373 = arith.constant 0 : index
    %c0_374 = arith.constant 0 : index
    %398 = vector.load %arg10[%c5_372, %c0_373, %c0_374] : memref<8x4x256xf32, #tpu.memory_space<vmem>>, vector<1x4x256xf32>
    %399 = vector.shape_cast %398 : vector<1x4x256xf32> to vector<4x256xf32>
    %400 = vector.shape_cast %397 : vector<4x256xf32> to vector<1x4x256xf32>
    tpu.vector_store %arg10[%c5_372, %c0_373, %c0_374], %400 {strides = array<i32>} : memref<8x4x256xf32, #tpu.memory_space<vmem>>, vector<1x4x256xf32>,
    %c55_375 = arith.constant 55 : index
    %c0_376 = arith.constant 0 : index
    %401 = vector.load %arg9[%c55_375, %c0_376] : memref<72x128xf32, #tpu.memory_space<vmem>>, vector<4x128xf32>
    %402 = arith.truncf %401 : vector<4x128xf32> to vector<4x128xbf16>
    %c6_377 = arith.constant 6 : index
    %c0_378 = arith.constant 0 : index
    %c0_379 = arith.constant 0 : index
    %403 = vector.load %arg10[%c6_377, %c0_378, %c0_379] : memref<8x4x256xf32, #tpu.memory_space<vmem>>, vector<1x4x256xf32>
    %404 = vector.shape_cast %403 : vector<1x4x256xf32> to vector<4x256xf32>
    %cst_380 = arith.constant dense<0.000000e+00> : vector<4x256xf32>
    %405 = tpu.matmul %402, %346, %cst_380 {dimension_numbers = #tpu.dot_dimension_numbers<[1], [0], [0], [1], [0, 0, 1, 1], [], []>} : vector<4x128xbf16>, vector<128x256xbf16>, vector<4x256xf32> -> vector<4x256xf32>
    %406 = arith.addf %404, %405 : vector<4x256xf32>
    %c6_381 = arith.constant 6 : index
    %c0_382 = arith.constant 0 : index
    %c0_383 = arith.constant 0 : index
    %407 = vector.load %arg10[%c6_381, %c0_382, %c0_383] : memref<8x4x256xf32, #tpu.memory_space<vmem>>, vector<1x4x256xf32>
    %408 = vector.shape_cast %407 : vector<1x4x256xf32> to vector<4x256xf32>
    %409 = vector.shape_cast %406 : vector<4x256xf32> to vector<1x4x256xf32>
    tpu.vector_store %arg10[%c6_381, %c0_382, %c0_383], %409 {strides = array<i32>} : memref<8x4x256xf32, #tpu.memory_space<vmem>>, vector<1x4x256xf32>,
    %c61 = arith.constant 61 : index
    %c0_384 = arith.constant 0 : index
    %410 = vector.load %arg9[%c61, %c0_384] : memref<72x128xf32, #tpu.memory_space<vmem>>, vector<4x128xf32>
    %411 = arith.truncf %410 : vector<4x128xf32> to vector<4x128xbf16>
    %c7_385 = arith.constant 7 : index
    %c0_386 = arith.constant 0 : index
    %c0_387 = arith.constant 0 : index
    %412 = vector.load %arg10[%c7_385, %c0_386, %c0_387] : memref<8x4x256xf32, #tpu.memory_space<vmem>>, vector<1x4x256xf32>
    %413 = vector.shape_cast %412 : vector<1x4x256xf32> to vector<4x256xf32>
    %cst_388 = arith.constant dense<0.000000e+00> : vector<4x256xf32>
    %414 = tpu.matmul %411, %346, %cst_388 {dimension_numbers = #tpu.dot_dimension_numbers<[1], [0], [0], [1], [0, 0, 1, 1], [], []>} : vector<4x128xbf16>, vector<128x256xbf16>, vector<4x256xf32> -> vector<4x256xf32>
    %415 = arith.addf %413, %414 : vector<4x256xf32>
    %c7_389 = arith.constant 7 : index
    %c0_390 = arith.constant 0 : index
    %c0_391 = arith.constant 0 : index
    %416 = vector.load %arg10[%c7_389, %c0_390, %c0_391] : memref<8x4x256xf32, #tpu.memory_space<vmem>>, vector<1x4x256xf32>
    %417 = vector.shape_cast %416 : vector<1x4x256xf32> to vector<4x256xf32>
    %418 = vector.shape_cast %415 : vector<4x256xf32> to vector<1x4x256xf32>
    tpu.vector_store %arg10[%c7_389, %c0_390, %c0_391], %418 {strides = array<i32>} : memref<8x4x256xf32, #tpu.memory_space<vmem>>, vector<1x4x256xf32>,
    %c5_392 = arith.constant 5 : index
    %c0_393 = arith.constant 0 : index
    %c0_394 = arith.constant 0 : index
    %419 = vector.load %arg4[%c5_392, %c0_393, %c0_394] : memref<9x128x256xbf16, #tpu.memory_space<vmem>>, vector<1x128x256xbf16>
    %420 = vector.shape_cast %419 : vector<1x128x256xbf16> to vector<128x256xbf16>
    %c8_395 = arith.constant 8 : index
    %c0_396 = arith.constant 0 : index
    %421 = vector.load %arg9[%c8_395, %c0_396] : memref<72x128xf32, #tpu.memory_space<vmem>>, vector<4x128xf32>
    %422 = arith.truncf %421 : vector<4x128xf32> to vector<4x128xbf16>
    %c0_397 = arith.constant 0 : index
    %c0_398 = arith.constant 0 : index
    %c0_399 = arith.constant 0 : index
    %423 = vector.load %arg10[%c0_397, %c0_398, %c0_399] : memref<8x4x256xf32, #tpu.memory_space<vmem>>, vector<1x4x256xf32>
    %424 = vector.shape_cast %423 : vector<1x4x256xf32> to vector<4x256xf32>
    %cst_400 = arith.constant dense<0.000000e+00> : vector<4x256xf32>
    %425 = tpu.matmul %422, %420, %cst_400 {dimension_numbers = #tpu.dot_dimension_numbers<[1], [0], [0], [1], [0, 0, 1, 1], [], []>} : vector<4x128xbf16>, vector<128x256xbf16>, vector<4x256xf32> -> vector<4x256xf32>
    %426 = arith.addf %424, %425 : vector<4x256xf32>
    %c0_401 = arith.constant 0 : index
    %c0_402 = arith.constant 0 : index
    %c0_403 = arith.constant 0 : index
    %427 = vector.load %arg10[%c0_401, %c0_402, %c0_403] : memref<8x4x256xf32, #tpu.memory_space<vmem>>, vector<1x4x256xf32>
    %428 = vector.shape_cast %427 : vector<1x4x256xf32> to vector<4x256xf32>
    %429 = vector.shape_cast %426 : vector<4x256xf32> to vector<1x4x256xf32>
    tpu.vector_store %arg10[%c0_401, %c0_402, %c0_403], %429 {strides = array<i32>} : memref<8x4x256xf32, #tpu.memory_space<vmem>>, vector<1x4x256xf32>,
    %c14_404 = arith.constant 14 : index
    %c0_405 = arith.constant 0 : index
    %430 = vector.load %arg9[%c14_404, %c0_405] : memref<72x128xf32, #tpu.memory_space<vmem>>, vector<4x128xf32>
    %431 = arith.truncf %430 : vector<4x128xf32> to vector<4x128xbf16>
    %c1_406 = arith.constant 1 : index
    %c0_407 = arith.constant 0 : index
    %c0_408 = arith.constant 0 : index
    %432 = vector.load %arg10[%c1_406, %c0_407, %c0_408] : memref<8x4x256xf32, #tpu.memory_space<vmem>>, vector<1x4x256xf32>
    %433 = vector.shape_cast %432 : vector<1x4x256xf32> to vector<4x256xf32>
    %cst_409 = arith.constant dense<0.000000e+00> : vector<4x256xf32>
    %434 = tpu.matmul %431, %420, %cst_409 {dimension_numbers = #tpu.dot_dimension_numbers<[1], [0], [0], [1], [0, 0, 1, 1], [], []>} : vector<4x128xbf16>, vector<128x256xbf16>, vector<4x256xf32> -> vector<4x256xf32>
    %435 = arith.addf %433, %434 : vector<4x256xf32>
    %c1_410 = arith.constant 1 : index
    %c0_411 = arith.constant 0 : index
    %c0_412 = arith.constant 0 : index
    %436 = vector.load %arg10[%c1_410, %c0_411, %c0_412] : memref<8x4x256xf32, #tpu.memory_space<vmem>>, vector<1x4x256xf32>
    %437 = vector.shape_cast %436 : vector<1x4x256xf32> to vector<4x256xf32>
    %438 = vector.shape_cast %435 : vector<4x256xf32> to vector<1x4x256xf32>
    tpu.vector_store %arg10[%c1_410, %c0_411, %c0_412], %438 {strides = array<i32>} : memref<8x4x256xf32, #tpu.memory_space<vmem>>, vector<1x4x256xf32>,
    %c20_413 = arith.constant 20 : index
    %c0_414 = arith.constant 0 : index
    %439 = vector.load %arg9[%c20_413, %c0_414] : memref<72x128xf32, #tpu.memory_space<vmem>>, vector<4x128xf32>
    %440 = arith.truncf %439 : vector<4x128xf32> to vector<4x128xbf16>
    %c2_415 = arith.constant 2 : index
    %c0_416 = arith.constant 0 : index
    %c0_417 = arith.constant 0 : index
    %441 = vector.load %arg10[%c2_415, %c0_416, %c0_417] : memref<8x4x256xf32, #tpu.memory_space<vmem>>, vector<1x4x256xf32>
    %442 = vector.shape_cast %441 : vector<1x4x256xf32> to vector<4x256xf32>
    %cst_418 = arith.constant dense<0.000000e+00> : vector<4x256xf32>
    %443 = tpu.matmul %440, %420, %cst_418 {dimension_numbers = #tpu.dot_dimension_numbers<[1], [0], [0], [1], [0, 0, 1, 1], [], []>} : vector<4x128xbf16>, vector<128x256xbf16>, vector<4x256xf32> -> vector<4x256xf32>
    %444 = arith.addf %442, %443 : vector<4x256xf32>
    %c2_419 = arith.constant 2 : index
    %c0_420 = arith.constant 0 : index
    %c0_421 = arith.constant 0 : index
    %445 = vector.load %arg10[%c2_419, %c0_420, %c0_421] : memref<8x4x256xf32, #tpu.memory_space<vmem>>, vector<1x4x256xf32>
    %446 = vector.shape_cast %445 : vector<1x4x256xf32> to vector<4x256xf32>
    %447 = vector.shape_cast %444 : vector<4x256xf32> to vector<1x4x256xf32>
    tpu.vector_store %arg10[%c2_419, %c0_420, %c0_421], %447 {strides = array<i32>} : memref<8x4x256xf32, #tpu.memory_space<vmem>>, vector<1x4x256xf32>,
    %c26 = arith.constant 26 : index
    %c0_422 = arith.constant 0 : index
    %448 = vector.load %arg9[%c26, %c0_422] : memref<72x128xf32, #tpu.memory_space<vmem>>, vector<4x128xf32>
    %449 = arith.truncf %448 : vector<4x128xf32> to vector<4x128xbf16>
    %c3_423 = arith.constant 3 : index
    %c0_424 = arith.constant 0 : index
    %c0_425 = arith.constant 0 : index
    %450 = vector.load %arg10[%c3_423, %c0_424, %c0_425] : memref<8x4x256xf32, #tpu.memory_space<vmem>>, vector<1x4x256xf32>
    %451 = vector.shape_cast %450 : vector<1x4x256xf32> to vector<4x256xf32>
    %cst_426 = arith.constant dense<0.000000e+00> : vector<4x256xf32>
    %452 = tpu.matmul %449, %420, %cst_426 {dimension_numbers = #tpu.dot_dimension_numbers<[1], [0], [0], [1], [0, 0, 1, 1], [], []>} : vector<4x128xbf16>, vector<128x256xbf16>, vector<4x256xf32> -> vector<4x256xf32>
    %453 = arith.addf %451, %452 : vector<4x256xf32>
    %c3_427 = arith.constant 3 : index
    %c0_428 = arith.constant 0 : index
    %c0_429 = arith.constant 0 : index
    %454 = vector.load %arg10[%c3_427, %c0_428, %c0_429] : memref<8x4x256xf32, #tpu.memory_space<vmem>>, vector<1x4x256xf32>
    %455 = vector.shape_cast %454 : vector<1x4x256xf32> to vector<4x256xf32>
    %456 = vector.shape_cast %453 : vector<4x256xf32> to vector<1x4x256xf32>
    tpu.vector_store %arg10[%c3_427, %c0_428, %c0_429], %456 {strides = array<i32>} : memref<8x4x256xf32, #tpu.memory_space<vmem>>, vector<1x4x256xf32>,
    %c44_430 = arith.constant 44 : index
    %c0_431 = arith.constant 0 : index
    %457 = vector.load %arg9[%c44_430, %c0_431] : memref<72x128xf32, #tpu.memory_space<vmem>>, vector<4x128xf32>
    %458 = arith.truncf %457 : vector<4x128xf32> to vector<4x128xbf16>
    %c4_432 = arith.constant 4 : index
    %c0_433 = arith.constant 0 : index
    %c0_434 = arith.constant 0 : index
    %459 = vector.load %arg10[%c4_432, %c0_433, %c0_434] : memref<8x4x256xf32, #tpu.memory_space<vmem>>, vector<1x4x256xf32>
    %460 = vector.shape_cast %459 : vector<1x4x256xf32> to vector<4x256xf32>
    %cst_435 = arith.constant dense<0.000000e+00> : vector<4x256xf32>
    %461 = tpu.matmul %458, %420, %cst_435 {dimension_numbers = #tpu.dot_dimension_numbers<[1], [0], [0], [1], [0, 0, 1, 1], [], []>} : vector<4x128xbf16>, vector<128x256xbf16>, vector<4x256xf32> -> vector<4x256xf32>
    %462 = arith.addf %460, %461 : vector<4x256xf32>
    %c4_436 = arith.constant 4 : index
    %c0_437 = arith.constant 0 : index
    %c0_438 = arith.constant 0 : index
    %463 = vector.load %arg10[%c4_436, %c0_437, %c0_438] : memref<8x4x256xf32, #tpu.memory_space<vmem>>, vector<1x4x256xf32>
    %464 = vector.shape_cast %463 : vector<1x4x256xf32> to vector<4x256xf32>
    %465 = vector.shape_cast %462 : vector<4x256xf32> to vector<1x4x256xf32>
    tpu.vector_store %arg10[%c4_436, %c0_437, %c0_438], %465 {strides = array<i32>} : memref<8x4x256xf32, #tpu.memory_space<vmem>>, vector<1x4x256xf32>,
    %c50_439 = arith.constant 50 : index
    %c0_440 = arith.constant 0 : index
    %466 = vector.load %arg9[%c50_439, %c0_440] : memref<72x128xf32, #tpu.memory_space<vmem>>, vector<4x128xf32>
    %467 = arith.truncf %466 : vector<4x128xf32> to vector<4x128xbf16>
    %c5_441 = arith.constant 5 : index
    %c0_442 = arith.constant 0 : index
    %c0_443 = arith.constant 0 : index
    %468 = vector.load %arg10[%c5_441, %c0_442, %c0_443] : memref<8x4x256xf32, #tpu.memory_space<vmem>>, vector<1x4x256xf32>
    %469 = vector.shape_cast %468 : vector<1x4x256xf32> to vector<4x256xf32>
    %cst_444 = arith.constant dense<0.000000e+00> : vector<4x256xf32>
    %470 = tpu.matmul %467, %420, %cst_444 {dimension_numbers = #tpu.dot_dimension_numbers<[1], [0], [0], [1], [0, 0, 1, 1], [], []>} : vector<4x128xbf16>, vector<128x256xbf16>, vector<4x256xf32> -> vector<4x256xf32>
    %471 = arith.addf %469, %470 : vector<4x256xf32>
    %c5_445 = arith.constant 5 : index
    %c0_446 = arith.constant 0 : index
    %c0_447 = arith.constant 0 : index
    %472 = vector.load %arg10[%c5_445, %c0_446, %c0_447] : memref<8x4x256xf32, #tpu.memory_space<vmem>>, vector<1x4x256xf32>
    %473 = vector.shape_cast %472 : vector<1x4x256xf32> to vector<4x256xf32>
    %474 = vector.shape_cast %471 : vector<4x256xf32> to vector<1x4x256xf32>
    tpu.vector_store %arg10[%c5_445, %c0_446, %c0_447], %474 {strides = array<i32>} : memref<8x4x256xf32, #tpu.memory_space<vmem>>, vector<1x4x256xf32>,
    %c56_448 = arith.constant 56 : index
    %c0_449 = arith.constant 0 : index
    %475 = vector.load %arg9[%c56_448, %c0_449] : memref<72x128xf32, #tpu.memory_space<vmem>>, vector<4x128xf32>
    %476 = arith.truncf %475 : vector<4x128xf32> to vector<4x128xbf16>
    %c6_450 = arith.constant 6 : index
    %c0_451 = arith.constant 0 : index
    %c0_452 = arith.constant 0 : index
    %477 = vector.load %arg10[%c6_450, %c0_451, %c0_452] : memref<8x4x256xf32, #tpu.memory_space<vmem>>, vector<1x4x256xf32>
    %478 = vector.shape_cast %477 : vector<1x4x256xf32> to vector<4x256xf32>
    %cst_453 = arith.constant dense<0.000000e+00> : vector<4x256xf32>
    %479 = tpu.matmul %476, %420, %cst_453 {dimension_numbers = #tpu.dot_dimension_numbers<[1], [0], [0], [1], [0, 0, 1, 1], [], []>} : vector<4x128xbf16>, vector<128x256xbf16>, vector<4x256xf32> -> vector<4x256xf32>
    %480 = arith.addf %478, %479 : vector<4x256xf32>
    %c6_454 = arith.constant 6 : index
    %c0_455 = arith.constant 0 : index
    %c0_456 = arith.constant 0 : index
    %481 = vector.load %arg10[%c6_454, %c0_455, %c0_456] : memref<8x4x256xf32, #tpu.memory_space<vmem>>, vector<1x4x256xf32>
    %482 = vector.shape_cast %481 : vector<1x4x256xf32> to vector<4x256xf32>
    %483 = vector.shape_cast %480 : vector<4x256xf32> to vector<1x4x256xf32>
    tpu.vector_store %arg10[%c6_454, %c0_455, %c0_456], %483 {strides = array<i32>} : memref<8x4x256xf32, #tpu.memory_space<vmem>>, vector<1x4x256xf32>,
    %c62 = arith.constant 62 : index
    %c0_457 = arith.constant 0 : index
    %484 = vector.load %arg9[%c62, %c0_457] : memref<72x128xf32, #tpu.memory_space<vmem>>, vector<4x128xf32>
    %485 = arith.truncf %484 : vector<4x128xf32> to vector<4x128xbf16>
    %c7_458 = arith.constant 7 : index
    %c0_459 = arith.constant 0 : index
    %c0_460 = arith.constant 0 : index
    %486 = vector.load %arg10[%c7_458, %c0_459, %c0_460] : memref<8x4x256xf32, #tpu.memory_space<vmem>>, vector<1x4x256xf32>
    %487 = vector.shape_cast %486 : vector<1x4x256xf32> to vector<4x256xf32>
    %cst_461 = arith.constant dense<0.000000e+00> : vector<4x256xf32>
    %488 = tpu.matmul %485, %420, %cst_461 {dimension_numbers = #tpu.dot_dimension_numbers<[1], [0], [0], [1], [0, 0, 1, 1], [], []>} : vector<4x128xbf16>, vector<128x256xbf16>, vector<4x256xf32> -> vector<4x256xf32>
    %489 = arith.addf %487, %488 : vector<4x256xf32>
    %c7_462 = arith.constant 7 : index
    %c0_463 = arith.constant 0 : index
    %c0_464 = arith.constant 0 : index
    %490 = vector.load %arg10[%c7_462, %c0_463, %c0_464] : memref<8x4x256xf32, #tpu.memory_space<vmem>>, vector<1x4x256xf32>
    %491 = vector.shape_cast %490 : vector<1x4x256xf32> to vector<4x256xf32>
    %492 = vector.shape_cast %489 : vector<4x256xf32> to vector<1x4x256xf32>
    tpu.vector_store %arg10[%c7_462, %c0_463, %c0_464], %492 {strides = array<i32>} : memref<8x4x256xf32, #tpu.memory_space<vmem>>, vector<1x4x256xf32>,
    %c6_465 = arith.constant 6 : index
    %c0_466 = arith.constant 0 : index
    %c0_467 = arith.constant 0 : index
    %493 = vector.load %arg4[%c6_465, %c0_466, %c0_467] : memref<9x128x256xbf16, #tpu.memory_space<vmem>>, vector<1x128x256xbf16>
    %494 = vector.shape_cast %493 : vector<1x128x256xbf16> to vector<128x256xbf16>
    %c12_468 = arith.constant 12 : index
    %c0_469 = arith.constant 0 : index
    %495 = vector.load %arg9[%c12_468, %c0_469] : memref<72x128xf32, #tpu.memory_space<vmem>>, vector<4x128xf32>
    %496 = arith.truncf %495 : vector<4x128xf32> to vector<4x128xbf16>
    %c0_470 = arith.constant 0 : index
    %c0_471 = arith.constant 0 : index
    %c0_472 = arith.constant 0 : index
    %497 = vector.load %arg10[%c0_470, %c0_471, %c0_472] : memref<8x4x256xf32, #tpu.memory_space<vmem>>, vector<1x4x256xf32>
    %498 = vector.shape_cast %497 : vector<1x4x256xf32> to vector<4x256xf32>
    %cst_473 = arith.constant dense<0.000000e+00> : vector<4x256xf32>
    %499 = tpu.matmul %496, %494, %cst_473 {dimension_numbers = #tpu.dot_dimension_numbers<[1], [0], [0], [1], [0, 0, 1, 1], [], []>} : vector<4x128xbf16>, vector<128x256xbf16>, vector<4x256xf32> -> vector<4x256xf32>
    %500 = arith.addf %498, %499 : vector<4x256xf32>
    %c0_474 = arith.constant 0 : index
    %c0_475 = arith.constant 0 : index
    %c0_476 = arith.constant 0 : index
    %501 = vector.load %arg10[%c0_474, %c0_475, %c0_476] : memref<8x4x256xf32, #tpu.memory_space<vmem>>, vector<1x4x256xf32>
    %502 = vector.shape_cast %501 : vector<1x4x256xf32> to vector<4x256xf32>
    %503 = vector.shape_cast %500 : vector<4x256xf32> to vector<1x4x256xf32>
    tpu.vector_store %arg10[%c0_474, %c0_475, %c0_476], %503 {strides = array<i32>} : memref<8x4x256xf32, #tpu.memory_space<vmem>>, vector<1x4x256xf32>,
    %c18_477 = arith.constant 18 : index
    %c0_478 = arith.constant 0 : index
    %504 = vector.load %arg9[%c18_477, %c0_478] : memref<72x128xf32, #tpu.memory_space<vmem>>, vector<4x128xf32>
    %505 = arith.truncf %504 : vector<4x128xf32> to vector<4x128xbf16>
    %c1_479 = arith.constant 1 : index
    %c0_480 = arith.constant 0 : index
    %c0_481 = arith.constant 0 : index
    %506 = vector.load %arg10[%c1_479, %c0_480, %c0_481] : memref<8x4x256xf32, #tpu.memory_space<vmem>>, vector<1x4x256xf32>
    %507 = vector.shape_cast %506 : vector<1x4x256xf32> to vector<4x256xf32>
    %cst_482 = arith.constant dense<0.000000e+00> : vector<4x256xf32>
    %508 = tpu.matmul %505, %494, %cst_482 {dimension_numbers = #tpu.dot_dimension_numbers<[1], [0], [0], [1], [0, 0, 1, 1], [], []>} : vector<4x128xbf16>, vector<128x256xbf16>, vector<4x256xf32> -> vector<4x256xf32>
    %509 = arith.addf %507, %508 : vector<4x256xf32>
    %c1_483 = arith.constant 1 : index
    %c0_484 = arith.constant 0 : index
    %c0_485 = arith.constant 0 : index
    %510 = vector.load %arg10[%c1_483, %c0_484, %c0_485] : memref<8x4x256xf32, #tpu.memory_space<vmem>>, vector<1x4x256xf32>
    %511 = vector.shape_cast %510 : vector<1x4x256xf32> to vector<4x256xf32>
    %512 = vector.shape_cast %509 : vector<4x256xf32> to vector<1x4x256xf32>
    tpu.vector_store %arg10[%c1_483, %c0_484, %c0_485], %512 {strides = array<i32>} : memref<8x4x256xf32, #tpu.memory_space<vmem>>, vector<1x4x256xf32>,
    %c24_486 = arith.constant 24 : index
    %c0_487 = arith.constant 0 : index
    %513 = vector.load %arg9[%c24_486, %c0_487] : memref<72x128xf32, #tpu.memory_space<vmem>>, vector<4x128xf32>
    %514 = arith.truncf %513 : vector<4x128xf32> to vector<4x128xbf16>
    %c2_488 = arith.constant 2 : index
    %c0_489 = arith.constant 0 : index
    %c0_490 = arith.constant 0 : index
    %515 = vector.load %arg10[%c2_488, %c0_489, %c0_490] : memref<8x4x256xf32, #tpu.memory_space<vmem>>, vector<1x4x256xf32>
    %516 = vector.shape_cast %515 : vector<1x4x256xf32> to vector<4x256xf32>
    %cst_491 = arith.constant dense<0.000000e+00> : vector<4x256xf32>
    %517 = tpu.matmul %514, %494, %cst_491 {dimension_numbers = #tpu.dot_dimension_numbers<[1], [0], [0], [1], [0, 0, 1, 1], [], []>} : vector<4x128xbf16>, vector<128x256xbf16>, vector<4x256xf32> -> vector<4x256xf32>
    %518 = arith.addf %516, %517 : vector<4x256xf32>
    %c2_492 = arith.constant 2 : index
    %c0_493 = arith.constant 0 : index
    %c0_494 = arith.constant 0 : index
    %519 = vector.load %arg10[%c2_492, %c0_493, %c0_494] : memref<8x4x256xf32, #tpu.memory_space<vmem>>, vector<1x4x256xf32>
    %520 = vector.shape_cast %519 : vector<1x4x256xf32> to vector<4x256xf32>
    %521 = vector.shape_cast %518 : vector<4x256xf32> to vector<1x4x256xf32>
    tpu.vector_store %arg10[%c2_492, %c0_493, %c0_494], %521 {strides = array<i32>} : memref<8x4x256xf32, #tpu.memory_space<vmem>>, vector<1x4x256xf32>,
    %c30 = arith.constant 30 : index
    %c0_495 = arith.constant 0 : index
    %522 = vector.load %arg9[%c30, %c0_495] : memref<72x128xf32, #tpu.memory_space<vmem>>, vector<4x128xf32>
    %523 = arith.truncf %522 : vector<4x128xf32> to vector<4x128xbf16>
    %c3_496 = arith.constant 3 : index
    %c0_497 = arith.constant 0 : index
    %c0_498 = arith.constant 0 : index
    %524 = vector.load %arg10[%c3_496, %c0_497, %c0_498] : memref<8x4x256xf32, #tpu.memory_space<vmem>>, vector<1x4x256xf32>
    %525 = vector.shape_cast %524 : vector<1x4x256xf32> to vector<4x256xf32>
    %cst_499 = arith.constant dense<0.000000e+00> : vector<4x256xf32>
    %526 = tpu.matmul %523, %494, %cst_499 {dimension_numbers = #tpu.dot_dimension_numbers<[1], [0], [0], [1], [0, 0, 1, 1], [], []>} : vector<4x128xbf16>, vector<128x256xbf16>, vector<4x256xf32> -> vector<4x256xf32>
    %527 = arith.addf %525, %526 : vector<4x256xf32>
    %c3_500 = arith.constant 3 : index
    %c0_501 = arith.constant 0 : index
    %c0_502 = arith.constant 0 : index
    %528 = vector.load %arg10[%c3_500, %c0_501, %c0_502] : memref<8x4x256xf32, #tpu.memory_space<vmem>>, vector<1x4x256xf32>
    %529 = vector.shape_cast %528 : vector<1x4x256xf32> to vector<4x256xf32>
    %530 = vector.shape_cast %527 : vector<4x256xf32> to vector<1x4x256xf32>
    tpu.vector_store %arg10[%c3_500, %c0_501, %c0_502], %530 {strides = array<i32>} : memref<8x4x256xf32, #tpu.memory_space<vmem>>, vector<1x4x256xf32>,
    %c48_503 = arith.constant 48 : index
    %c0_504 = arith.constant 0 : index
    %531 = vector.load %arg9[%c48_503, %c0_504] : memref<72x128xf32, #tpu.memory_space<vmem>>, vector<4x128xf32>
    %532 = arith.truncf %531 : vector<4x128xf32> to vector<4x128xbf16>
    %c4_505 = arith.constant 4 : index
    %c0_506 = arith.constant 0 : index
    %c0_507 = arith.constant 0 : index
    %533 = vector.load %arg10[%c4_505, %c0_506, %c0_507] : memref<8x4x256xf32, #tpu.memory_space<vmem>>, vector<1x4x256xf32>
    %534 = vector.shape_cast %533 : vector<1x4x256xf32> to vector<4x256xf32>
    %cst_508 = arith.constant dense<0.000000e+00> : vector<4x256xf32>
    %535 = tpu.matmul %532, %494, %cst_508 {dimension_numbers = #tpu.dot_dimension_numbers<[1], [0], [0], [1], [0, 0, 1, 1], [], []>} : vector<4x128xbf16>, vector<128x256xbf16>, vector<4x256xf32> -> vector<4x256xf32>
    %536 = arith.addf %534, %535 : vector<4x256xf32>
    %c4_509 = arith.constant 4 : index
    %c0_510 = arith.constant 0 : index
    %c0_511 = arith.constant 0 : index
    %537 = vector.load %arg10[%c4_509, %c0_510, %c0_511] : memref<8x4x256xf32, #tpu.memory_space<vmem>>, vector<1x4x256xf32>
    %538 = vector.shape_cast %537 : vector<1x4x256xf32> to vector<4x256xf32>
    %539 = vector.shape_cast %536 : vector<4x256xf32> to vector<1x4x256xf32>
    tpu.vector_store %arg10[%c4_509, %c0_510, %c0_511], %539 {strides = array<i32>} : memref<8x4x256xf32, #tpu.memory_space<vmem>>, vector<1x4x256xf32>,
    %c54_512 = arith.constant 54 : index
    %c0_513 = arith.constant 0 : index
    %540 = vector.load %arg9[%c54_512, %c0_513] : memref<72x128xf32, #tpu.memory_space<vmem>>, vector<4x128xf32>
    %541 = arith.truncf %540 : vector<4x128xf32> to vector<4x128xbf16>
    %c5_514 = arith.constant 5 : index
    %c0_515 = arith.constant 0 : index
    %c0_516 = arith.constant 0 : index
    %542 = vector.load %arg10[%c5_514, %c0_515, %c0_516] : memref<8x4x256xf32, #tpu.memory_space<vmem>>, vector<1x4x256xf32>
    %543 = vector.shape_cast %542 : vector<1x4x256xf32> to vector<4x256xf32>
    %cst_517 = arith.constant dense<0.000000e+00> : vector<4x256xf32>
    %544 = tpu.matmul %541, %494, %cst_517 {dimension_numbers = #tpu.dot_dimension_numbers<[1], [0], [0], [1], [0, 0, 1, 1], [], []>} : vector<4x128xbf16>, vector<128x256xbf16>, vector<4x256xf32> -> vector<4x256xf32>
    %545 = arith.addf %543, %544 : vector<4x256xf32>
    %c5_518 = arith.constant 5 : index
    %c0_519 = arith.constant 0 : index
    %c0_520 = arith.constant 0 : index
    %546 = vector.load %arg10[%c5_518, %c0_519, %c0_520] : memref<8x4x256xf32, #tpu.memory_space<vmem>>, vector<1x4x256xf32>
    %547 = vector.shape_cast %546 : vector<1x4x256xf32> to vector<4x256xf32>
    %548 = vector.shape_cast %545 : vector<4x256xf32> to vector<1x4x256xf32>
    tpu.vector_store %arg10[%c5_518, %c0_519, %c0_520], %548 {strides = array<i32>} : memref<8x4x256xf32, #tpu.memory_space<vmem>>, vector<1x4x256xf32>,
    %c60_521 = arith.constant 60 : index
    %c0_522 = arith.constant 0 : index
    %549 = vector.load %arg9[%c60_521, %c0_522] : memref<72x128xf32, #tpu.memory_space<vmem>>, vector<4x128xf32>
    %550 = arith.truncf %549 : vector<4x128xf32> to vector<4x128xbf16>
    %c6_523 = arith.constant 6 : index
    %c0_524 = arith.constant 0 : index
    %c0_525 = arith.constant 0 : index
    %551 = vector.load %arg10[%c6_523, %c0_524, %c0_525] : memref<8x4x256xf32, #tpu.memory_space<vmem>>, vector<1x4x256xf32>
    %552 = vector.shape_cast %551 : vector<1x4x256xf32> to vector<4x256xf32>
    %cst_526 = arith.constant dense<0.000000e+00> : vector<4x256xf32>
    %553 = tpu.matmul %550, %494, %cst_526 {dimension_numbers = #tpu.dot_dimension_numbers<[1], [0], [0], [1], [0, 0, 1, 1], [], []>} : vector<4x128xbf16>, vector<128x256xbf16>, vector<4x256xf32> -> vector<4x256xf32>
    %554 = arith.addf %552, %553 : vector<4x256xf32>
    %c6_527 = arith.constant 6 : index
    %c0_528 = arith.constant 0 : index
    %c0_529 = arith.constant 0 : index
    %555 = vector.load %arg10[%c6_527, %c0_528, %c0_529] : memref<8x4x256xf32, #tpu.memory_space<vmem>>, vector<1x4x256xf32>
    %556 = vector.shape_cast %555 : vector<1x4x256xf32> to vector<4x256xf32>
    %557 = vector.shape_cast %554 : vector<4x256xf32> to vector<1x4x256xf32>
    tpu.vector_store %arg10[%c6_527, %c0_528, %c0_529], %557 {strides = array<i32>} : memref<8x4x256xf32, #tpu.memory_space<vmem>>, vector<1x4x256xf32>,
    %c66 = arith.constant 66 : index
    %c0_530 = arith.constant 0 : index
    %558 = vector.load %arg9[%c66, %c0_530] : memref<72x128xf32, #tpu.memory_space<vmem>>, vector<4x128xf32>
    %559 = arith.truncf %558 : vector<4x128xf32> to vector<4x128xbf16>
    %c7_531 = arith.constant 7 : index
    %c0_532 = arith.constant 0 : index
    %c0_533 = arith.constant 0 : index
    %560 = vector.load %arg10[%c7_531, %c0_532, %c0_533] : memref<8x4x256xf32, #tpu.memory_space<vmem>>, vector<1x4x256xf32>
    %561 = vector.shape_cast %560 : vector<1x4x256xf32> to vector<4x256xf32>
    %cst_534 = arith.constant dense<0.000000e+00> : vector<4x256xf32>
    %562 = tpu.matmul %559, %494, %cst_534 {dimension_numbers = #tpu.dot_dimension_numbers<[1], [0], [0], [1], [0, 0, 1, 1], [], []>} : vector<4x128xbf16>, vector<128x256xbf16>, vector<4x256xf32> -> vector<4x256xf32>
    %563 = arith.addf %561, %562 : vector<4x256xf32>
    %c7_535 = arith.constant 7 : index
    %c0_536 = arith.constant 0 : index
    %c0_537 = arith.constant 0 : index
    %564 = vector.load %arg10[%c7_535, %c0_536, %c0_537] : memref<8x4x256xf32, #tpu.memory_space<vmem>>, vector<1x4x256xf32>
    %565 = vector.shape_cast %564 : vector<1x4x256xf32> to vector<4x256xf32>
    %566 = vector.shape_cast %563 : vector<4x256xf32> to vector<1x4x256xf32>
    tpu.vector_store %arg10[%c7_535, %c0_536, %c0_537], %566 {strides = array<i32>} : memref<8x4x256xf32, #tpu.memory_space<vmem>>, vector<1x4x256xf32>,
    %c7_538 = arith.constant 7 : index
    %c0_539 = arith.constant 0 : index
    %c0_540 = arith.constant 0 : index
    %567 = vector.load %arg4[%c7_538, %c0_539, %c0_540] : memref<9x128x256xbf16, #tpu.memory_space<vmem>>, vector<1x128x256xbf16>
    %568 = vector.shape_cast %567 : vector<1x128x256xbf16> to vector<128x256xbf16>
    %c13_541 = arith.constant 13 : index
    %c0_542 = arith.constant 0 : index
    %569 = vector.load %arg9[%c13_541, %c0_542] : memref<72x128xf32, #tpu.memory_space<vmem>>, vector<4x128xf32>
    %570 = arith.truncf %569 : vector<4x128xf32> to vector<4x128xbf16>
    %c0_543 = arith.constant 0 : index
    %c0_544 = arith.constant 0 : index
    %c0_545 = arith.constant 0 : index
    %571 = vector.load %arg10[%c0_543, %c0_544, %c0_545] : memref<8x4x256xf32, #tpu.memory_space<vmem>>, vector<1x4x256xf32>
    %572 = vector.shape_cast %571 : vector<1x4x256xf32> to vector<4x256xf32>
    %cst_546 = arith.constant dense<0.000000e+00> : vector<4x256xf32>
    %573 = tpu.matmul %570, %568, %cst_546 {dimension_numbers = #tpu.dot_dimension_numbers<[1], [0], [0], [1], [0, 0, 1, 1], [], []>} : vector<4x128xbf16>, vector<128x256xbf16>, vector<4x256xf32> -> vector<4x256xf32>
    %574 = arith.addf %572, %573 : vector<4x256xf32>
    %c0_547 = arith.constant 0 : index
    %c0_548 = arith.constant 0 : index
    %c0_549 = arith.constant 0 : index
    %575 = vector.load %arg10[%c0_547, %c0_548, %c0_549] : memref<8x4x256xf32, #tpu.memory_space<vmem>>, vector<1x4x256xf32>
    %576 = vector.shape_cast %575 : vector<1x4x256xf32> to vector<4x256xf32>
    %577 = vector.shape_cast %574 : vector<4x256xf32> to vector<1x4x256xf32>
    tpu.vector_store %arg10[%c0_547, %c0_548, %c0_549], %577 {strides = array<i32>} : memref<8x4x256xf32, #tpu.memory_space<vmem>>, vector<1x4x256xf32>,
    %c19_550 = arith.constant 19 : index
    %c0_551 = arith.constant 0 : index
    %578 = vector.load %arg9[%c19_550, %c0_551] : memref<72x128xf32, #tpu.memory_space<vmem>>, vector<4x128xf32>
    %579 = arith.truncf %578 : vector<4x128xf32> to vector<4x128xbf16>
    %c1_552 = arith.constant 1 : index
    %c0_553 = arith.constant 0 : index
    %c0_554 = arith.constant 0 : index
    %580 = vector.load %arg10[%c1_552, %c0_553, %c0_554] : memref<8x4x256xf32, #tpu.memory_space<vmem>>, vector<1x4x256xf32>
    %581 = vector.shape_cast %580 : vector<1x4x256xf32> to vector<4x256xf32>
    %cst_555 = arith.constant dense<0.000000e+00> : vector<4x256xf32>
    %582 = tpu.matmul %579, %568, %cst_555 {dimension_numbers = #tpu.dot_dimension_numbers<[1], [0], [0], [1], [0, 0, 1, 1], [], []>} : vector<4x128xbf16>, vector<128x256xbf16>, vector<4x256xf32> -> vector<4x256xf32>
    %583 = arith.addf %581, %582 : vector<4x256xf32>
    %c1_556 = arith.constant 1 : index
    %c0_557 = arith.constant 0 : index
    %c0_558 = arith.constant 0 : index
    %584 = vector.load %arg10[%c1_556, %c0_557, %c0_558] : memref<8x4x256xf32, #tpu.memory_space<vmem>>, vector<1x4x256xf32>
    %585 = vector.shape_cast %584 : vector<1x4x256xf32> to vector<4x256xf32>
    %586 = vector.shape_cast %583 : vector<4x256xf32> to vector<1x4x256xf32>
    tpu.vector_store %arg10[%c1_556, %c0_557, %c0_558], %586 {strides = array<i32>} : memref<8x4x256xf32, #tpu.memory_space<vmem>>, vector<1x4x256xf32>,
    %c25_559 = arith.constant 25 : index
    %c0_560 = arith.constant 0 : index
    %587 = vector.load %arg9[%c25_559, %c0_560] : memref<72x128xf32, #tpu.memory_space<vmem>>, vector<4x128xf32>
    %588 = arith.truncf %587 : vector<4x128xf32> to vector<4x128xbf16>
    %c2_561 = arith.constant 2 : index
    %c0_562 = arith.constant 0 : index
    %c0_563 = arith.constant 0 : index
    %589 = vector.load %arg10[%c2_561, %c0_562, %c0_563] : memref<8x4x256xf32, #tpu.memory_space<vmem>>, vector<1x4x256xf32>
    %590 = vector.shape_cast %589 : vector<1x4x256xf32> to vector<4x256xf32>
    %cst_564 = arith.constant dense<0.000000e+00> : vector<4x256xf32>
    %591 = tpu.matmul %588, %568, %cst_564 {dimension_numbers = #tpu.dot_dimension_numbers<[1], [0], [0], [1], [0, 0, 1, 1], [], []>} : vector<4x128xbf16>, vector<128x256xbf16>, vector<4x256xf32> -> vector<4x256xf32>
    %592 = arith.addf %590, %591 : vector<4x256xf32>
    %c2_565 = arith.constant 2 : index
    %c0_566 = arith.constant 0 : index
    %c0_567 = arith.constant 0 : index
    %593 = vector.load %arg10[%c2_565, %c0_566, %c0_567] : memref<8x4x256xf32, #tpu.memory_space<vmem>>, vector<1x4x256xf32>
    %594 = vector.shape_cast %593 : vector<1x4x256xf32> to vector<4x256xf32>
    %595 = vector.shape_cast %592 : vector<4x256xf32> to vector<1x4x256xf32>
    tpu.vector_store %arg10[%c2_565, %c0_566, %c0_567], %595 {strides = array<i32>} : memref<8x4x256xf32, #tpu.memory_space<vmem>>, vector<1x4x256xf32>,
    %c31 = arith.constant 31 : index
    %c0_568 = arith.constant 0 : index
    %596 = vector.load %arg9[%c31, %c0_568] : memref<72x128xf32, #tpu.memory_space<vmem>>, vector<4x128xf32>
    %597 = arith.truncf %596 : vector<4x128xf32> to vector<4x128xbf16>
    %c3_569 = arith.constant 3 : index
    %c0_570 = arith.constant 0 : index
    %c0_571 = arith.constant 0 : index
    %598 = vector.load %arg10[%c3_569, %c0_570, %c0_571] : memref<8x4x256xf32, #tpu.memory_space<vmem>>, vector<1x4x256xf32>
    %599 = vector.shape_cast %598 : vector<1x4x256xf32> to vector<4x256xf32>
    %cst_572 = arith.constant dense<0.000000e+00> : vector<4x256xf32>
    %600 = tpu.matmul %597, %568, %cst_572 {dimension_numbers = #tpu.dot_dimension_numbers<[1], [0], [0], [1], [0, 0, 1, 1], [], []>} : vector<4x128xbf16>, vector<128x256xbf16>, vector<4x256xf32> -> vector<4x256xf32>
    %601 = arith.addf %599, %600 : vector<4x256xf32>
    %c3_573 = arith.constant 3 : index
    %c0_574 = arith.constant 0 : index
    %c0_575 = arith.constant 0 : index
    %602 = vector.load %arg10[%c3_573, %c0_574, %c0_575] : memref<8x4x256xf32, #tpu.memory_space<vmem>>, vector<1x4x256xf32>
    %603 = vector.shape_cast %602 : vector<1x4x256xf32> to vector<4x256xf32>
    %604 = vector.shape_cast %601 : vector<4x256xf32> to vector<1x4x256xf32>
    tpu.vector_store %arg10[%c3_573, %c0_574, %c0_575], %604 {strides = array<i32>} : memref<8x4x256xf32, #tpu.memory_space<vmem>>, vector<1x4x256xf32>,
    %c49_576 = arith.constant 49 : index
    %c0_577 = arith.constant 0 : index
    %605 = vector.load %arg9[%c49_576, %c0_577] : memref<72x128xf32, #tpu.memory_space<vmem>>, vector<4x128xf32>
    %606 = arith.truncf %605 : vector<4x128xf32> to vector<4x128xbf16>
    %c4_578 = arith.constant 4 : index
    %c0_579 = arith.constant 0 : index
    %c0_580 = arith.constant 0 : index
    %607 = vector.load %arg10[%c4_578, %c0_579, %c0_580] : memref<8x4x256xf32, #tpu.memory_space<vmem>>, vector<1x4x256xf32>
    %608 = vector.shape_cast %607 : vector<1x4x256xf32> to vector<4x256xf32>
    %cst_581 = arith.constant dense<0.000000e+00> : vector<4x256xf32>
    %609 = tpu.matmul %606, %568, %cst_581 {dimension_numbers = #tpu.dot_dimension_numbers<[1], [0], [0], [1], [0, 0, 1, 1], [], []>} : vector<4x128xbf16>, vector<128x256xbf16>, vector<4x256xf32> -> vector<4x256xf32>
    %610 = arith.addf %608, %609 : vector<4x256xf32>
    %c4_582 = arith.constant 4 : index
    %c0_583 = arith.constant 0 : index
    %c0_584 = arith.constant 0 : index
    %611 = vector.load %arg10[%c4_582, %c0_583, %c0_584] : memref<8x4x256xf32, #tpu.memory_space<vmem>>, vector<1x4x256xf32>
    %612 = vector.shape_cast %611 : vector<1x4x256xf32> to vector<4x256xf32>
    %613 = vector.shape_cast %610 : vector<4x256xf32> to vector<1x4x256xf32>
    tpu.vector_store %arg10[%c4_582, %c0_583, %c0_584], %613 {strides = array<i32>} : memref<8x4x256xf32, #tpu.memory_space<vmem>>, vector<1x4x256xf32>,
    %c55_585 = arith.constant 55 : index
    %c0_586 = arith.constant 0 : index
    %614 = vector.load %arg9[%c55_585, %c0_586] : memref<72x128xf32, #tpu.memory_space<vmem>>, vector<4x128xf32>
    %615 = arith.truncf %614 : vector<4x128xf32> to vector<4x128xbf16>
    %c5_587 = arith.constant 5 : index
    %c0_588 = arith.constant 0 : index
    %c0_589 = arith.constant 0 : index
    %616 = vector.load %arg10[%c5_587, %c0_588, %c0_589] : memref<8x4x256xf32, #tpu.memory_space<vmem>>, vector<1x4x256xf32>
    %617 = vector.shape_cast %616 : vector<1x4x256xf32> to vector<4x256xf32>
    %cst_590 = arith.constant dense<0.000000e+00> : vector<4x256xf32>
    %618 = tpu.matmul %615, %568, %cst_590 {dimension_numbers = #tpu.dot_dimension_numbers<[1], [0], [0], [1], [0, 0, 1, 1], [], []>} : vector<4x128xbf16>, vector<128x256xbf16>, vector<4x256xf32> -> vector<4x256xf32>
    %619 = arith.addf %617, %618 : vector<4x256xf32>
    %c5_591 = arith.constant 5 : index
    %c0_592 = arith.constant 0 : index
    %c0_593 = arith.constant 0 : index
    %620 = vector.load %arg10[%c5_591, %c0_592, %c0_593] : memref<8x4x256xf32, #tpu.memory_space<vmem>>, vector<1x4x256xf32>
    %621 = vector.shape_cast %620 : vector<1x4x256xf32> to vector<4x256xf32>
    %622 = vector.shape_cast %619 : vector<4x256xf32> to vector<1x4x256xf32>
    tpu.vector_store %arg10[%c5_591, %c0_592, %c0_593], %622 {strides = array<i32>} : memref<8x4x256xf32, #tpu.memory_space<vmem>>, vector<1x4x256xf32>,
    %c61_594 = arith.constant 61 : index
    %c0_595 = arith.constant 0 : index
    %623 = vector.load %arg9[%c61_594, %c0_595] : memref<72x128xf32, #tpu.memory_space<vmem>>, vector<4x128xf32>
    %624 = arith.truncf %623 : vector<4x128xf32> to vector<4x128xbf16>
    %c6_596 = arith.constant 6 : index
    %c0_597 = arith.constant 0 : index
    %c0_598 = arith.constant 0 : index
    %625 = vector.load %arg10[%c6_596, %c0_597, %c0_598] : memref<8x4x256xf32, #tpu.memory_space<vmem>>, vector<1x4x256xf32>
    %626 = vector.shape_cast %625 : vector<1x4x256xf32> to vector<4x256xf32>
    %cst_599 = arith.constant dense<0.000000e+00> : vector<4x256xf32>
    %627 = tpu.matmul %624, %568, %cst_599 {dimension_numbers = #tpu.dot_dimension_numbers<[1], [0], [0], [1], [0, 0, 1, 1], [], []>} : vector<4x128xbf16>, vector<128x256xbf16>, vector<4x256xf32> -> vector<4x256xf32>
    %628 = arith.addf %626, %627 : vector<4x256xf32>
    %c6_600 = arith.constant 6 : index
    %c0_601 = arith.constant 0 : index
    %c0_602 = arith.constant 0 : index
    %629 = vector.load %arg10[%c6_600, %c0_601, %c0_602] : memref<8x4x256xf32, #tpu.memory_space<vmem>>, vector<1x4x256xf32>
    %630 = vector.shape_cast %629 : vector<1x4x256xf32> to vector<4x256xf32>
    %631 = vector.shape_cast %628 : vector<4x256xf32> to vector<1x4x256xf32>
    tpu.vector_store %arg10[%c6_600, %c0_601, %c0_602], %631 {strides = array<i32>} : memref<8x4x256xf32, #tpu.memory_space<vmem>>, vector<1x4x256xf32>,
    %c67 = arith.constant 67 : index
    %c0_603 = arith.constant 0 : index
    %632 = vector.load %arg9[%c67, %c0_603] : memref<72x128xf32, #tpu.memory_space<vmem>>, vector<4x128xf32>
    %633 = arith.truncf %632 : vector<4x128xf32> to vector<4x128xbf16>
    %c7_604 = arith.constant 7 : index
    %c0_605 = arith.constant 0 : index
    %c0_606 = arith.constant 0 : index
    %634 = vector.load %arg10[%c7_604, %c0_605, %c0_606] : memref<8x4x256xf32, #tpu.memory_space<vmem>>, vector<1x4x256xf32>
    %635 = vector.shape_cast %634 : vector<1x4x256xf32> to vector<4x256xf32>
    %cst_607 = arith.constant dense<0.000000e+00> : vector<4x256xf32>
    %636 = tpu.matmul %633, %568, %cst_607 {dimension_numbers = #tpu.dot_dimension_numbers<[1], [0], [0], [1], [0, 0, 1, 1], [], []>} : vector<4x128xbf16>, vector<128x256xbf16>, vector<4x256xf32> -> vector<4x256xf32>
    %637 = arith.addf %635, %636 : vector<4x256xf32>
    %c7_608 = arith.constant 7 : index
    %c0_609 = arith.constant 0 : index
    %c0_610 = arith.constant 0 : index
    %638 = vector.load %arg10[%c7_608, %c0_609, %c0_610] : memref<8x4x256xf32, #tpu.memory_space<vmem>>, vector<1x4x256xf32>
    %639 = vector.shape_cast %638 : vector<1x4x256xf32> to vector<4x256xf32>
    %640 = vector.shape_cast %637 : vector<4x256xf32> to vector<1x4x256xf32>
    tpu.vector_store %arg10[%c7_608, %c0_609, %c0_610], %640 {strides = array<i32>} : memref<8x4x256xf32, #tpu.memory_space<vmem>>, vector<1x4x256xf32>,
    %c8_611 = arith.constant 8 : index
    %c0_612 = arith.constant 0 : index
    %c0_613 = arith.constant 0 : index
    %641 = vector.load %arg4[%c8_611, %c0_612, %c0_613] : memref<9x128x256xbf16, #tpu.memory_space<vmem>>, vector<1x128x256xbf16>
    %642 = vector.shape_cast %641 : vector<1x128x256xbf16> to vector<128x256xbf16>
    %c14_614 = arith.constant 14 : index
    %c0_615 = arith.constant 0 : index
    %643 = vector.load %arg9[%c14_614, %c0_615] : memref<72x128xf32, #tpu.memory_space<vmem>>, vector<4x128xf32>
    %644 = arith.truncf %643 : vector<4x128xf32> to vector<4x128xbf16>
    %c0_616 = arith.constant 0 : index
    %c0_617 = arith.constant 0 : index
    %c0_618 = arith.constant 0 : index
    %645 = vector.load %arg10[%c0_616, %c0_617, %c0_618] : memref<8x4x256xf32, #tpu.memory_space<vmem>>, vector<1x4x256xf32>
    %646 = vector.shape_cast %645 : vector<1x4x256xf32> to vector<4x256xf32>
    %cst_619 = arith.constant dense<0.000000e+00> : vector<4x256xf32>
    %647 = tpu.matmul %644, %642, %cst_619 {dimension_numbers = #tpu.dot_dimension_numbers<[1], [0], [0], [1], [0, 0, 1, 1], [], []>} : vector<4x128xbf16>, vector<128x256xbf16>, vector<4x256xf32> -> vector<4x256xf32>
    %648 = arith.addf %646, %647 : vector<4x256xf32>
    %c0_620 = arith.constant 0 : index
    %c0_621 = arith.constant 0 : index
    %c0_622 = arith.constant 0 : index
    %649 = vector.load %arg10[%c0_620, %c0_621, %c0_622] : memref<8x4x256xf32, #tpu.memory_space<vmem>>, vector<1x4x256xf32>
    %650 = vector.shape_cast %649 : vector<1x4x256xf32> to vector<4x256xf32>
    %651 = vector.shape_cast %648 : vector<4x256xf32> to vector<1x4x256xf32>
    tpu.vector_store %arg10[%c0_620, %c0_621, %c0_622], %651 {strides = array<i32>} : memref<8x4x256xf32, #tpu.memory_space<vmem>>, vector<1x4x256xf32>,
    %c20_623 = arith.constant 20 : index
    %c0_624 = arith.constant 0 : index
    %652 = vector.load %arg9[%c20_623, %c0_624] : memref<72x128xf32, #tpu.memory_space<vmem>>, vector<4x128xf32>
    %653 = arith.truncf %652 : vector<4x128xf32> to vector<4x128xbf16>
    %c1_625 = arith.constant 1 : index
    %c0_626 = arith.constant 0 : index
    %c0_627 = arith.constant 0 : index
    %654 = vector.load %arg10[%c1_625, %c0_626, %c0_627] : memref<8x4x256xf32, #tpu.memory_space<vmem>>, vector<1x4x256xf32>
    %655 = vector.shape_cast %654 : vector<1x4x256xf32> to vector<4x256xf32>
    %cst_628 = arith.constant dense<0.000000e+00> : vector<4x256xf32>
    %656 = tpu.matmul %653, %642, %cst_628 {dimension_numbers = #tpu.dot_dimension_numbers<[1], [0], [0], [1], [0, 0, 1, 1], [], []>} : vector<4x128xbf16>, vector<128x256xbf16>, vector<4x256xf32> -> vector<4x256xf32>
    %657 = arith.addf %655, %656 : vector<4x256xf32>
    %c1_629 = arith.constant 1 : index
    %c0_630 = arith.constant 0 : index
    %c0_631 = arith.constant 0 : index
    %658 = vector.load %arg10[%c1_629, %c0_630, %c0_631] : memref<8x4x256xf32, #tpu.memory_space<vmem>>, vector<1x4x256xf32>
    %659 = vector.shape_cast %658 : vector<1x4x256xf32> to vector<4x256xf32>
    %660 = vector.shape_cast %657 : vector<4x256xf32> to vector<1x4x256xf32>
    tpu.vector_store %arg10[%c1_629, %c0_630, %c0_631], %660 {strides = array<i32>} : memref<8x4x256xf32, #tpu.memory_space<vmem>>, vector<1x4x256xf32>,
    %c26_632 = arith.constant 26 : index
    %c0_633 = arith.constant 0 : index
    %661 = vector.load %arg9[%c26_632, %c0_633] : memref<72x128xf32, #tpu.memory_space<vmem>>, vector<4x128xf32>
    %662 = arith.truncf %661 : vector<4x128xf32> to vector<4x128xbf16>
    %c2_634 = arith.constant 2 : index
    %c0_635 = arith.constant 0 : index
    %c0_636 = arith.constant 0 : index
    %663 = vector.load %arg10[%c2_634, %c0_635, %c0_636] : memref<8x4x256xf32, #tpu.memory_space<vmem>>, vector<1x4x256xf32>
    %664 = vector.shape_cast %663 : vector<1x4x256xf32> to vector<4x256xf32>
    %cst_637 = arith.constant dense<0.000000e+00> : vector<4x256xf32>
    %665 = tpu.matmul %662, %642, %cst_637 {dimension_numbers = #tpu.dot_dimension_numbers<[1], [0], [0], [1], [0, 0, 1, 1], [], []>} : vector<4x128xbf16>, vector<128x256xbf16>, vector<4x256xf32> -> vector<4x256xf32>
    %666 = arith.addf %664, %665 : vector<4x256xf32>
    %c2_638 = arith.constant 2 : index
    %c0_639 = arith.constant 0 : index
    %c0_640 = arith.constant 0 : index
    %667 = vector.load %arg10[%c2_638, %c0_639, %c0_640] : memref<8x4x256xf32, #tpu.memory_space<vmem>>, vector<1x4x256xf32>
    %668 = vector.shape_cast %667 : vector<1x4x256xf32> to vector<4x256xf32>
    %669 = vector.shape_cast %666 : vector<4x256xf32> to vector<1x4x256xf32>
    tpu.vector_store %arg10[%c2_638, %c0_639, %c0_640], %669 {strides = array<i32>} : memref<8x4x256xf32, #tpu.memory_space<vmem>>, vector<1x4x256xf32>,
    %c32 = arith.constant 32 : index
    %c0_641 = arith.constant 0 : index
    %670 = vector.load %arg9[%c32, %c0_641] : memref<72x128xf32, #tpu.memory_space<vmem>>, vector<4x128xf32>
    %671 = arith.truncf %670 : vector<4x128xf32> to vector<4x128xbf16>
    %c3_642 = arith.constant 3 : index
    %c0_643 = arith.constant 0 : index
    %c0_644 = arith.constant 0 : index
    %672 = vector.load %arg10[%c3_642, %c0_643, %c0_644] : memref<8x4x256xf32, #tpu.memory_space<vmem>>, vector<1x4x256xf32>
    %673 = vector.shape_cast %672 : vector<1x4x256xf32> to vector<4x256xf32>
    %cst_645 = arith.constant dense<0.000000e+00> : vector<4x256xf32>
    %674 = tpu.matmul %671, %642, %cst_645 {dimension_numbers = #tpu.dot_dimension_numbers<[1], [0], [0], [1], [0, 0, 1, 1], [], []>} : vector<4x128xbf16>, vector<128x256xbf16>, vector<4x256xf32> -> vector<4x256xf32>
    %675 = arith.addf %673, %674 : vector<4x256xf32>
    %c3_646 = arith.constant 3 : index
    %c0_647 = arith.constant 0 : index
    %c0_648 = arith.constant 0 : index
    %676 = vector.load %arg10[%c3_646, %c0_647, %c0_648] : memref<8x4x256xf32, #tpu.memory_space<vmem>>, vector<1x4x256xf32>
    %677 = vector.shape_cast %676 : vector<1x4x256xf32> to vector<4x256xf32>
    %678 = vector.shape_cast %675 : vector<4x256xf32> to vector<1x4x256xf32>
    tpu.vector_store %arg10[%c3_646, %c0_647, %c0_648], %678 {strides = array<i32>} : memref<8x4x256xf32, #tpu.memory_space<vmem>>, vector<1x4x256xf32>,
    %c50_649 = arith.constant 50 : index
    %c0_650 = arith.constant 0 : index
    %679 = vector.load %arg9[%c50_649, %c0_650] : memref<72x128xf32, #tpu.memory_space<vmem>>, vector<4x128xf32>
    %680 = arith.truncf %679 : vector<4x128xf32> to vector<4x128xbf16>
    %c4_651 = arith.constant 4 : index
    %c0_652 = arith.constant 0 : index
    %c0_653 = arith.constant 0 : index
    %681 = vector.load %arg10[%c4_651, %c0_652, %c0_653] : memref<8x4x256xf32, #tpu.memory_space<vmem>>, vector<1x4x256xf32>
    %682 = vector.shape_cast %681 : vector<1x4x256xf32> to vector<4x256xf32>
    %cst_654 = arith.constant dense<0.000000e+00> : vector<4x256xf32>
    %683 = tpu.matmul %680, %642, %cst_654 {dimension_numbers = #tpu.dot_dimension_numbers<[1], [0], [0], [1], [0, 0, 1, 1], [], []>} : vector<4x128xbf16>, vector<128x256xbf16>, vector<4x256xf32> -> vector<4x256xf32>
    %684 = arith.addf %682, %683 : vector<4x256xf32>
    %c4_655 = arith.constant 4 : index
    %c0_656 = arith.constant 0 : index
    %c0_657 = arith.constant 0 : index
    %685 = vector.load %arg10[%c4_655, %c0_656, %c0_657] : memref<8x4x256xf32, #tpu.memory_space<vmem>>, vector<1x4x256xf32>
    %686 = vector.shape_cast %685 : vector<1x4x256xf32> to vector<4x256xf32>
    %687 = vector.shape_cast %684 : vector<4x256xf32> to vector<1x4x256xf32>
    tpu.vector_store %arg10[%c4_655, %c0_656, %c0_657], %687 {strides = array<i32>} : memref<8x4x256xf32, #tpu.memory_space<vmem>>, vector<1x4x256xf32>,
    %c56_658 = arith.constant 56 : index
    %c0_659 = arith.constant 0 : index
    %688 = vector.load %arg9[%c56_658, %c0_659] : memref<72x128xf32, #tpu.memory_space<vmem>>, vector<4x128xf32>
    %689 = arith.truncf %688 : vector<4x128xf32> to vector<4x128xbf16>
    %c5_660 = arith.constant 5 : index
    %c0_661 = arith.constant 0 : index
    %c0_662 = arith.constant 0 : index
    %690 = vector.load %arg10[%c5_660, %c0_661, %c0_662] : memref<8x4x256xf32, #tpu.memory_space<vmem>>, vector<1x4x256xf32>
    %691 = vector.shape_cast %690 : vector<1x4x256xf32> to vector<4x256xf32>
    %cst_663 = arith.constant dense<0.000000e+00> : vector<4x256xf32>
    %692 = tpu.matmul %689, %642, %cst_663 {dimension_numbers = #tpu.dot_dimension_numbers<[1], [0], [0], [1], [0, 0, 1, 1], [], []>} : vector<4x128xbf16>, vector<128x256xbf16>, vector<4x256xf32> -> vector<4x256xf32>
    %693 = arith.addf %691, %692 : vector<4x256xf32>
    %c5_664 = arith.constant 5 : index
    %c0_665 = arith.constant 0 : index
    %c0_666 = arith.constant 0 : index
    %694 = vector.load %arg10[%c5_664, %c0_665, %c0_666] : memref<8x4x256xf32, #tpu.memory_space<vmem>>, vector<1x4x256xf32>
    %695 = vector.shape_cast %694 : vector<1x4x256xf32> to vector<4x256xf32>
    %696 = vector.shape_cast %693 : vector<4x256xf32> to vector<1x4x256xf32>
    tpu.vector_store %arg10[%c5_664, %c0_665, %c0_666], %696 {strides = array<i32>} : memref<8x4x256xf32, #tpu.memory_space<vmem>>, vector<1x4x256xf32>,
    %c62_667 = arith.constant 62 : index
    %c0_668 = arith.constant 0 : index
    %697 = vector.load %arg9[%c62_667, %c0_668] : memref<72x128xf32, #tpu.memory_space<vmem>>, vector<4x128xf32>
    %698 = arith.truncf %697 : vector<4x128xf32> to vector<4x128xbf16>
    %c6_669 = arith.constant 6 : index
    %c0_670 = arith.constant 0 : index
    %c0_671 = arith.constant 0 : index
    %699 = vector.load %arg10[%c6_669, %c0_670, %c0_671] : memref<8x4x256xf32, #tpu.memory_space<vmem>>, vector<1x4x256xf32>
    %700 = vector.shape_cast %699 : vector<1x4x256xf32> to vector<4x256xf32>
    %cst_672 = arith.constant dense<0.000000e+00> : vector<4x256xf32>
    %701 = tpu.matmul %698, %642, %cst_672 {dimension_numbers = #tpu.dot_dimension_numbers<[1], [0], [0], [1], [0, 0, 1, 1], [], []>} : vector<4x128xbf16>, vector<128x256xbf16>, vector<4x256xf32> -> vector<4x256xf32>
    %702 = arith.addf %700, %701 : vector<4x256xf32>
    %c6_673 = arith.constant 6 : index
    %c0_674 = arith.constant 0 : index
    %c0_675 = arith.constant 0 : index
    %703 = vector.load %arg10[%c6_673, %c0_674, %c0_675] : memref<8x4x256xf32, #tpu.memory_space<vmem>>, vector<1x4x256xf32>
    %704 = vector.shape_cast %703 : vector<1x4x256xf32> to vector<4x256xf32>
    %705 = vector.shape_cast %702 : vector<4x256xf32> to vector<1x4x256xf32>
    tpu.vector_store %arg10[%c6_673, %c0_674, %c0_675], %705 {strides = array<i32>} : memref<8x4x256xf32, #tpu.memory_space<vmem>>, vector<1x4x256xf32>,
    %c68 = arith.constant 68 : index
    %c0_676 = arith.constant 0 : index
    %706 = vector.load %arg9[%c68, %c0_676] : memref<72x128xf32, #tpu.memory_space<vmem>>, vector<4x128xf32>
    %707 = arith.truncf %706 : vector<4x128xf32> to vector<4x128xbf16>
    %c7_677 = arith.constant 7 : index
    %c0_678 = arith.constant 0 : index
    %c0_679 = arith.constant 0 : index
    %708 = vector.load %arg10[%c7_677, %c0_678, %c0_679] : memref<8x4x256xf32, #tpu.memory_space<vmem>>, vector<1x4x256xf32>
    %709 = vector.shape_cast %708 : vector<1x4x256xf32> to vector<4x256xf32>
    %cst_680 = arith.constant dense<0.000000e+00> : vector<4x256xf32>
    %710 = tpu.matmul %707, %642, %cst_680 {dimension_numbers = #tpu.dot_dimension_numbers<[1], [0], [0], [1], [0, 0, 1, 1], [], []>} : vector<4x128xbf16>, vector<128x256xbf16>, vector<4x256xf32> -> vector<4x256xf32>
    %711 = arith.addf %709, %710 : vector<4x256xf32>
    %c7_681 = arith.constant 7 : index
    %c0_682 = arith.constant 0 : index
    %c0_683 = arith.constant 0 : index
    %712 = vector.load %arg10[%c7_681, %c0_682, %c0_683] : memref<8x4x256xf32, #tpu.memory_space<vmem>>, vector<1x4x256xf32>
    %713 = vector.shape_cast %712 : vector<1x4x256xf32> to vector<4x256xf32>
    %714 = vector.shape_cast %711 : vector<4x256xf32> to vector<1x4x256xf32>
    tpu.vector_store %arg10[%c7_681, %c0_682, %c0_683], %714 {strides = array<i32>} : memref<8x4x256xf32, #tpu.memory_space<vmem>>, vector<1x4x256xf32>,
    %c0_684 = arith.constant 0 : index
    %c0_685 = arith.constant 0 : index
    %715 = vector.load %arg6[%c0_684, %c0_685] : memref<256x67xbf16, #tpu.memory_space<vmem>>, vector<256x67xbf16>
    %c0_686 = arith.constant 0 : index
    %c0_687 = arith.constant 0 : index
    %716 = vector.load %arg7[%c0_686, %c0_687] : memref<1x67xf32, #tpu.memory_space<vmem>>, vector<1x67xf32>
    %cst_688 = arith.constant 0.000000e+00 : f32
    %717 = vector.broadcast %cst_688 : f32 to vector<1x256xf32>
    %c0_689 = arith.constant 0 : index
    %c0_690 = arith.constant 0 : index
    %c0_691 = arith.constant 0 : index
    %718 = vector.load %arg10[%c0_689, %c0_690, %c0_691] : memref<8x4x256xf32, #tpu.memory_space<vmem>>, vector<1x4x256xf32>
    %719 = vector.shape_cast %718 : vector<1x4x256xf32> to vector<4x256xf32>
    %c1_692 = arith.constant 1 : index
    %c0_693 = arith.constant 0 : index
    %c0_694 = arith.constant 0 : index
    %720 = vector.load %arg10[%c1_692, %c0_693, %c0_694] : memref<8x4x256xf32, #tpu.memory_space<vmem>>, vector<1x4x256xf32>
    %721 = vector.shape_cast %720 : vector<1x4x256xf32> to vector<4x256xf32>
    %722 = arith.maximumf %719, %721 : vector<4x256xf32>
    %723 = vector.extract_strided_slice %722 {offsets = [0, 0], sizes = [1, 256], strides = [1, 1]} : vector<4x256xf32> to vector<1x256xf32>
    %724 = vector.extract_strided_slice %722 {offsets = [1, 0], sizes = [1, 256], strides = [1, 1]} : vector<4x256xf32> to vector<1x256xf32>
    %725 = arith.maximumf %723, %724 : vector<1x256xf32>
    %cst_695 = arith.constant 0.000000e+00 : f32
    %726 = vector.broadcast %cst_695 : f32 to vector<1x256xf32>
    %727 = arith.maximumf %725, %726 : vector<1x256xf32>
    %728 = arith.addf %717, %727 : vector<1x256xf32>
    %729 = vector.extract_strided_slice %722 {offsets = [2, 0], sizes = [1, 256], strides = [1, 1]} : vector<4x256xf32> to vector<1x256xf32>
    %730 = vector.extract_strided_slice %722 {offsets = [3, 0], sizes = [1, 256], strides = [1, 1]} : vector<4x256xf32> to vector<1x256xf32>
    %731 = arith.maximumf %729, %730 : vector<1x256xf32>
    %cst_696 = arith.constant 0.000000e+00 : f32
    %732 = vector.broadcast %cst_696 : f32 to vector<1x256xf32>
    %733 = arith.maximumf %731, %732 : vector<1x256xf32>
    %734 = arith.addf %728, %733 : vector<1x256xf32>
    %c2_697 = arith.constant 2 : index
    %c0_698 = arith.constant 0 : index
    %c0_699 = arith.constant 0 : index
    %735 = vector.load %arg10[%c2_697, %c0_698, %c0_699] : memref<8x4x256xf32, #tpu.memory_space<vmem>>, vector<1x4x256xf32>
    %736 = vector.shape_cast %735 : vector<1x4x256xf32> to vector<4x256xf32>
    %c3_700 = arith.constant 3 : index
    %c0_701 = arith.constant 0 : index
    %c0_702 = arith.constant 0 : index
    %737 = vector.load %arg10[%c3_700, %c0_701, %c0_702] : memref<8x4x256xf32, #tpu.memory_space<vmem>>, vector<1x4x256xf32>
    %738 = vector.shape_cast %737 : vector<1x4x256xf32> to vector<4x256xf32>
    %739 = arith.maximumf %736, %738 : vector<4x256xf32>
    %740 = vector.extract_strided_slice %739 {offsets = [0, 0], sizes = [1, 256], strides = [1, 1]} : vector<4x256xf32> to vector<1x256xf32>
    %741 = vector.extract_strided_slice %739 {offsets = [1, 0], sizes = [1, 256], strides = [1, 1]} : vector<4x256xf32> to vector<1x256xf32>
    %742 = arith.maximumf %740, %741 : vector<1x256xf32>
    %cst_703 = arith.constant 0.000000e+00 : f32
    %743 = vector.broadcast %cst_703 : f32 to vector<1x256xf32>
    %744 = arith.maximumf %742, %743 : vector<1x256xf32>
    %745 = arith.addf %734, %744 : vector<1x256xf32>
    %746 = vector.extract_strided_slice %739 {offsets = [2, 0], sizes = [1, 256], strides = [1, 1]} : vector<4x256xf32> to vector<1x256xf32>
    %747 = vector.extract_strided_slice %739 {offsets = [3, 0], sizes = [1, 256], strides = [1, 1]} : vector<4x256xf32> to vector<1x256xf32>
    %748 = arith.maximumf %746, %747 : vector<1x256xf32>
    %cst_704 = arith.constant 0.000000e+00 : f32
    %749 = vector.broadcast %cst_704 : f32 to vector<1x256xf32>
    %750 = arith.maximumf %748, %749 : vector<1x256xf32>
    %751 = arith.addf %745, %750 : vector<1x256xf32>
    %cst_705 = arith.constant 2.500000e-01 : f32
    %752 = vector.broadcast %cst_705 : f32 to vector<1x256xf32>
    %753 = arith.mulf %751, %752 : vector<1x256xf32>
    %754 = arith.truncf %753 : vector<1x256xf32> to vector<1x256xbf16>
    %cst_706 = arith.constant dense<0.000000e+00> : vector<1x67xf32>
    %755 = tpu.matmul %754, %715, %cst_706 {dimension_numbers = #tpu.dot_dimension_numbers<[1], [0], [0], [1], [0, 0, 1, 1], [], []>} : vector<1x256xbf16>, vector<256x67xbf16>, vector<1x67xf32> -> vector<1x67xf32>
    %756 = arith.addf %755, %716 : vector<1x67xf32>
    %c0_707 = arith.constant 0 : index
    %c0_708 = arith.constant 0 : index
    %757 = vector.load %arg8[%c0_707, %c0_708] : memref<2x67xf32, #tpu.memory_space<vmem>>, vector<1x67xf32>
    tpu.vector_store %arg8[%c0_707, %c0_708], %756 {strides = array<i32>} : memref<2x67xf32, #tpu.memory_space<vmem>>, vector<1x67xf32>,
    %cst_709 = arith.constant 0.000000e+00 : f32
    %758 = vector.broadcast %cst_709 : f32 to vector<1x256xf32>
    %c4_710 = arith.constant 4 : index
    %c0_711 = arith.constant 0 : index
    %c0_712 = arith.constant 0 : index
    %759 = vector.load %arg10[%c4_710, %c0_711, %c0_712] : memref<8x4x256xf32, #tpu.memory_space<vmem>>, vector<1x4x256xf32>
    %760 = vector.shape_cast %759 : vector<1x4x256xf32> to vector<4x256xf32>
    %c5_713 = arith.constant 5 : index
    %c0_714 = arith.constant 0 : index
    %c0_715 = arith.constant 0 : index
    %761 = vector.load %arg10[%c5_713, %c0_714, %c0_715] : memref<8x4x256xf32, #tpu.memory_space<vmem>>, vector<1x4x256xf32>
    %762 = vector.shape_cast %761 : vector<1x4x256xf32> to vector<4x256xf32>
    %763 = arith.maximumf %760, %762 : vector<4x256xf32>
    %764 = vector.extract_strided_slice %763 {offsets = [0, 0], sizes = [1, 256], strides = [1, 1]} : vector<4x256xf32> to vector<1x256xf32>
    %765 = vector.extract_strided_slice %763 {offsets = [1, 0], sizes = [1, 256], strides = [1, 1]} : vector<4x256xf32> to vector<1x256xf32>
    %766 = arith.maximumf %764, %765 : vector<1x256xf32>
    %cst_716 = arith.constant 0.000000e+00 : f32
    %767 = vector.broadcast %cst_716 : f32 to vector<1x256xf32>
    %768 = arith.maximumf %766, %767 : vector<1x256xf32>
    %769 = arith.addf %758, %768 : vector<1x256xf32>
    %770 = vector.extract_strided_slice %763 {offsets = [2, 0], sizes = [1, 256], strides = [1, 1]} : vector<4x256xf32> to vector<1x256xf32>
    %771 = vector.extract_strided_slice %763 {offsets = [3, 0], sizes = [1, 256], strides = [1, 1]} : vector<4x256xf32> to vector<1x256xf32>
    %772 = arith.maximumf %770, %771 : vector<1x256xf32>
    %cst_717 = arith.constant 0.000000e+00 : f32
    %773 = vector.broadcast %cst_717 : f32 to vector<1x256xf32>
    %774 = arith.maximumf %772, %773 : vector<1x256xf32>
    %775 = arith.addf %769, %774 : vector<1x256xf32>
    %c6_718 = arith.constant 6 : index
    %c0_719 = arith.constant 0 : index
    %c0_720 = arith.constant 0 : index
    %776 = vector.load %arg10[%c6_718, %c0_719, %c0_720] : memref<8x4x256xf32, #tpu.memory_space<vmem>>, vector<1x4x256xf32>
    %777 = vector.shape_cast %776 : vector<1x4x256xf32> to vector<4x256xf32>
    %c7_721 = arith.constant 7 : index
    %c0_722 = arith.constant 0 : index
    %c0_723 = arith.constant 0 : index
    %778 = vector.load %arg10[%c7_721, %c0_722, %c0_723] : memref<8x4x256xf32, #tpu.memory_space<vmem>>, vector<1x4x256xf32>
    %779 = vector.shape_cast %778 : vector<1x4x256xf32> to vector<4x256xf32>
    %780 = arith.maximumf %777, %779 : vector<4x256xf32>
    %781 = vector.extract_strided_slice %780 {offsets = [0, 0], sizes = [1, 256], strides = [1, 1]} : vector<4x256xf32> to vector<1x256xf32>
    %782 = vector.extract_strided_slice %780 {offsets = [1, 0], sizes = [1, 256], strides = [1, 1]} : vector<4x256xf32> to vector<1x256xf32>
    %783 = arith.maximumf %781, %782 : vector<1x256xf32>
    %cst_724 = arith.constant 0.000000e+00 : f32
    %784 = vector.broadcast %cst_724 : f32 to vector<1x256xf32>
    %785 = arith.maximumf %783, %784 : vector<1x256xf32>
    %786 = arith.addf %775, %785 : vector<1x256xf32>
    %787 = vector.extract_strided_slice %780 {offsets = [2, 0], sizes = [1, 256], strides = [1, 1]} : vector<4x256xf32> to vector<1x256xf32>
    %788 = vector.extract_strided_slice %780 {offsets = [3, 0], sizes = [1, 256], strides = [1, 1]} : vector<4x256xf32> to vector<1x256xf32>
    %789 = arith.maximumf %787, %788 : vector<1x256xf32>
    %cst_725 = arith.constant 0.000000e+00 : f32
    %790 = vector.broadcast %cst_725 : f32 to vector<1x256xf32>
    %791 = arith.maximumf %789, %790 : vector<1x256xf32>
    %792 = arith.addf %786, %791 : vector<1x256xf32>
    %cst_726 = arith.constant 2.500000e-01 : f32
    %793 = vector.broadcast %cst_726 : f32 to vector<1x256xf32>
    %794 = arith.mulf %792, %793 : vector<1x256xf32>
    %795 = arith.truncf %794 : vector<1x256xf32> to vector<1x256xbf16>
    %cst_727 = arith.constant dense<0.000000e+00> : vector<1x67xf32>
    %796 = tpu.matmul %795, %715, %cst_727 {dimension_numbers = #tpu.dot_dimension_numbers<[1], [0], [0], [1], [0, 0, 1, 1], [], []>} : vector<1x256xbf16>, vector<256x67xbf16>, vector<1x67xf32> -> vector<1x67xf32>
    %797 = arith.addf %796, %716 : vector<1x67xf32>
    %c1_728 = arith.constant 1 : index
    %c0_729 = arith.constant 0 : index
    %798 = vector.load %arg8[%c1_728, %c0_729] : memref<2x67xf32, #tpu.memory_space<vmem>>, vector<1x67xf32>
    tpu.vector_store %arg8[%c1_728, %c0_729], %797 {strides = array<i32>} : memref<2x67xf32, #tpu.memory_space<vmem>>, vector<1x67xf32>,
    return
  }
  func.func @transform_0(%arg0: i32) -> (i32, i32, i32) {
    %c0_i32 = arith.constant 0 : i32
    %c0_i32_0 = arith.constant 0 : i32
    %c0_i32_1 = arith.constant 0 : i32
    %c0_i32_2 = arith.constant 0 : i32
    return %c0_i32, %c0_i32_0, %c0_i32_1 : i32, i32, i32
  }
  func.func @transform_1(%arg0: i32) -> (i32, i32) {
    %c0_i32 = arith.constant 0 : i32
    %c0_i32_0 = arith.constant 0 : i32
    %c0_i32_1 = arith.constant 0 : i32
    return %c0_i32, %c0_i32_0 : i32, i32
  }
  func.func @transform_2(%arg0: i32) -> (i32, i32) {
    %c0_i32 = arith.constant 0 : i32
    %c0_i32_0 = arith.constant 0 : i32
    %c0_i32_1 = arith.constant 0 : i32
    return %c0_i32, %c0_i32_0 : i32, i32
  }
  func.func @transform_3(%arg0: i32) -> (i32, i32, i32) {
    %c0_i32 = arith.constant 0 : i32
    %c0_i32_0 = arith.constant 0 : i32
    %c0_i32_1 = arith.constant 0 : i32
    %c0_i32_2 = arith.constant 0 : i32
    return %c0_i32, %c0_i32_0, %c0_i32_1 : i32, i32, i32
  }
  func.func @transform_4(%arg0: i32) -> (i32, i32) {
    %c0_i32 = arith.constant 0 : i32
    %c0_i32_0 = arith.constant 0 : i32
    %c0_i32_1 = arith.constant 0 : i32
    return %c0_i32, %c0_i32_0 : i32, i32
  }
  func.func @transform_5(%arg0: i32) -> (i32, i32) {
    %c0_i32 = arith.constant 0 : i32
    %c0_i32_0 = arith.constant 0 : i32
    %c0_i32_1 = arith.constant 0 : i32
    return %c0_i32, %c0_i32_0 : i32, i32
  }
  func.func @transform_6(%arg0: i32) -> (i32, i32) {
    %c0_i32 = arith.constant 0 : i32
    %c0_i32_0 = arith.constant 0 : i32
    %c0_i32_1 = arith.constant 0 : i32
    return %c0_i32, %c0_i32_0 : i32, i32
  }
  func.func @transform_7(%arg0: i32) -> (i32, i32) {
    %c0_i32 = arith.constant 0 : i32
    %c0_i32_0 = arith.constant 0 : i32
    %c0_i32_1 = arith.constant 0 : i32
    return %c0_i32, %c0_i32_0 : i32, i32
  }
}

</mosaic_0001>

<bundles_post_ra>
// kernel: net_forward.1
= control target key start
LH: loop header
LB: loop body
LE: loop exit
PB: predicated region body
PF: predicated region fallthrough
CT: control target
= control target key end

     0   :  { %s8081_s0 = inlined_call_operand.vmem [shape: bf16[4,72,128], index: 0, kind: input, shape index: {}]   ;;  %s8082_s1 = inlined_call_operand.vmem [shape: bf16[128,128], index: 1, kind: input, shape index: {}]   ;;  %s8083_s2 = inlined_call_operand.vmem [shape: f32[1,128], index: 2, kind: input, shape index: {}]   ;;  %s8084_s3 = inlined_call_operand.vmem [shape: bf16[9,128,256], index: 3, kind: input, shape index: {}]   ;;  %s8085_s4 = inlined_call_operand.vmem [shape: f32[1,256], index: 4, kind: input, shape index: {}]   ;;  %s8086_s5 = inlined_call_operand.vmem [shape: bf16[256,67], index: 5, kind: input, shape index: {}]   ;;  %s8087_s6 = inlined_call_operand.vmem [shape: f32[1,67], index: 6, kind: input, shape index: {}]   ;;  %s8088_s7 = inlined_call_operand.hbm [shape: f32[2,67], index: 7, kind: output, shape index: {}]  }
   0x1   :  { %v5101_v0 = vld [vmem:[%s8082_s1 + $0x38] sm:$0xff]  ;;  %v5100_v1 = vld [vmem:[%s8082_s1 + $0x30] sm:$0xff] }
   0x2   :  { %128 = vmatpush.bf16.msra.mxu0 %v5101_v0  ;;  %199 = vmatpush.bf16.msra.mxu1 %v5101_v0 }
   0x3   :  { %279 = vmatpush.bf16.msra.mxu2 %v5101_v0  ;;  %359 = vmatpush.bf16.msra.mxu3 %v5101_v0 }
   0x4   :  { %12 = vsyncpa [#allocation5], 0  ;;  %v5099_v2 = vld [vmem:[%s8082_s1 + $0x28] sm:$0xff]  ;;  %v5098_v3 = vld [vmem:[%s8082_s1 + $0x20] sm:$0xff]  ;;  %vm437_vm0 = vcmask 1043456   ;;  %vm4112_vm1 = vcmask 540672  }
   0x5   :  { %v5097_v4 = vld [vmem:[%s8082_s1 + $0x18] sm:$0xff]  ;;  %v5096_v5 = vld [vmem:[%s8082_s1 + $0x10] sm:$0xff]  ;;  %v5095_v6 = vld [vmem:[%s8082_s1 + $0x8] sm:$0xff]  ;;  %s5306_s8 = smov [#allocation4]   ;;  %s4186_s12 = sshll.u32 %s8088_s7, 4  ;;  %s4187_s12 = int_to_ptr.hbm [resolvable:$true] %s4186_s12 }
   0x6   :  { %129 = vmatpush.bf16.msra.mxu0 %v5100_v1  ;;  %200 = vmatpush.bf16.msra.mxu1 %v5100_v1  ;;  %v5094_v7 = vld [vmem:[%s8082_s1] sm:$0xff]  ;;  %v5110_v10 = vld [vmem:[%s8081_s0 + $0x48] sm:$0xff]  ;;  %v5111_v14 = vld [vmem:[%s8081_s0 + $0x50] sm:$0xff]  ;;  %s4184_s9 = sshll.u32 %s5306_s8, 4  ;;  %s4185_s9 = int_to_ptr.vmem [resolvable:$true] %s4184_s9 }
   0x7   :  { %280 = vmatpush.bf16.msra.mxu2 %v5100_v1  ;;  %360 = vmatpush.bf16.msra.mxu3 %v5100_v1  ;;  %v5102_v8 = vld [vmem:[%s8081_s0] sm:$0xff]  ;;  %v5114_v11 = vld [vmem:[%s8081_s0 + $0x6c] sm:$0xff]  ;;  %v5115_v15 = vld [vmem:[%s8081_s0 + $0x74] sm:$0xff] }
   0x8   :  { %v5106_v9 = vld [vmem:[%s8081_s0 + $0x24] sm:$0xff]  ;;  %v5107_v13 = vld [vmem:[%s8081_s0 + $0x2c] sm:$0xff]  ;;  %v5108_v17 = vld [vmem:[%s8081_s0 + $0x34] sm:$0xff] }
   0x9   :  { %v5103_v12 = vld [vmem:[%s8081_s0 + $0x8] sm:$0xff]  ;;  %v5104_v16 = vld [vmem:[%s8081_s0 + $0x10] sm:$0xff]  ;;  %v5112_v18 = vld [vmem:[%s8081_s0 + $0x58] sm:$0xff] }
   0xa   :  { %130 = vmatpush.bf16.msra.mxu0 %v5099_v2  ;;  %201 = vmatpush.bf16.msra.mxu1 %v5099_v2  ;;  %v5116_v19 = vld [vmem:[%s8081_s0 + $0x7c] sm:$0xff]  ;;  %v4376_v20 = vld [vmem:[%s8084_s3 + $0x70] sm:$0xf]  ;;  %v5133_v21 = vld [vmem:[%s8084_s3 + $0x74] sm:$0xf0] }
   0xb   :  { %281 = vmatpush.bf16.msra.mxu2 %v5099_v2  ;;  %361 = vmatpush.bf16.msra.mxu3 %v5099_v2  ;;  %v5132_v22 = vld [vmem:[%s8084_s3 + $0x74] sm:$0xf]  ;;  %v5416_v23 = vor.u32 %v5133_v21, %v4376_v20  ;;  %v4378_v24 = vld [vmem:[%s8084_s3 + $0x78] sm:$0xf0]  ;;  %v4368_v25 = vld [vmem:[%s8084_s3 + $0x60] sm:$0xf] }
   0xc   :  { %v5131_v26 = vld [vmem:[%s8084_s3 + $0x64] sm:$0xf0]  ;;  %v5427_v27 = vor.u32 %v5132_v22, %v4378_v24  ;;  %v5130_v28 = vld [vmem:[%s8084_s3 + $0x64] sm:$0xf]  ;;  %v4370_v29 = vld [vmem:[%s8084_s3 + $0x68] sm:$0xf0] }
   0xd   :  { %v5436_v30 = vor.u32 %v5131_v26, %v4368_v25  ;;  %v5440_v31 = vor.u32 %v5130_v28, %v4370_v29  ;;  %v4360_v32 = vld [vmem:[%s8084_s3 + $0x50] sm:$0xf]  ;;  %v5129_v33 = vld [vmem:[%s8084_s3 + $0x54] sm:$0xf0]  ;;  %v5128_v34 = vld [vmem:[%s8084_s3 + $0x54] sm:$0xf] }
   0xe   :  { %131 = vmatpush.bf16.msra.mxu0 %v5098_v3  ;;  %202 = vmatpush.bf16.msra.mxu1 %v5098_v3  ;;  %v4362_v35 = vld [vmem:[%s8084_s3 + $0x58] sm:$0xf0]  ;;  %v5456_v36 = vor.u32 %v5129_v33, %v4360_v32  ;;  %v4352_v38 = vld [vmem:[%s8084_s3 + $0x40] sm:$0xf]  ;;  %v5127_v39 = vld [vmem:[%s8084_s3 + $0x44] sm:$0xf0] }
   0xf   :  { %282 = vmatpush.bf16.msra.mxu2 %v5098_v3  ;;  %362 = vmatpush.bf16.msra.mxu3 %v5098_v3  ;;  %v5460_v37 = vor.u32 %v5128_v34, %v4362_v35  ;;  %v5126_v40 = vld [vmem:[%s8084_s3 + $0x44] sm:$0xf]  ;;  %v4354_v41 = vld [vmem:[%s8084_s3 + $0x48] sm:$0xf0]  ;;  %v5105_v42 = vld [vmem:[%s8081_s0 + $0x18] sm:$0xff]  ;;  %v5490_v46 = vor.u32 %v5127_v39, %v4352_v38 }
  0x10   :  { %v5109_v43 = vld [vmem:[%s8081_s0 + $0x3c] sm:$0xff]  ;;  %v5117_v45 = vld [vmem:[%s8081_s0 + $0x84] sm:$0xff]  ;;  %v5492_v47 = vor.u32 %v5126_v40, %v4354_v41  ;;  %v4344_v48 = vld [vmem:[%s8084_s3 + $0x30] sm:$0xf] }
  0x11   :  { %v5113_v44 = vld [vmem:[%s8081_s0 + $0x60] sm:$0xff]  ;;  %v5125_v49 = vld [vmem:[%s8084_s3 + $0x34] sm:$0xf0]  ;;  %v5124_v50 = vld [vmem:[%s8084_s3 + $0x34] sm:$0xf] }
  0x12   :  { %132 = vmatpush.bf16.msra.mxu0 %v5097_v4  ;;  %203 = vmatpush.bf16.msra.mxu1 %v5097_v4  ;;  %v4346_v51 = vld [vmem:[%s8084_s3 + $0x38] sm:$0xf0]  ;;  %v5509_v52 = vor.u32 %v5125_v49, %v4344_v48  ;;  %v4336_v54 = vld [vmem:[%s8084_s3 + $0x20] sm:$0xf]  ;;  %v5123_v55 = vld [vmem:[%s8084_s3 + $0x24] sm:$0xf0] }
  0x13   :  { %283 = vmatpush.bf16.msra.mxu2 %v5097_v4  ;;  %363 = vmatpush.bf16.msra.mxu3 %v5097_v4  ;;  %v5511_v53 = vor.u32 %v5124_v50, %v4346_v51  ;;  %v5122_v56 = vld [vmem:[%s8084_s3 + $0x24] sm:$0xf]  ;;  %v4338_v57 = vld [vmem:[%s8084_s3 + $0x28] sm:$0xf0]  ;;  %v51_v58 = vld [vmem:[%s8081_s0 + $0x20] sm:$0xf]  ;;  %v5541_v62 = vor.u32 %v5123_v55, %v4336_v54 }
  0x14   :  { %v4251_v59 = vld [vmem:[%s8081_s0 + $0x44] sm:$0xf]  ;;  %v4276_v60 = vld [vmem:[%s8081_s0 + $0x68] sm:$0xf]  ;;  %v4301_v61 = vld [vmem:[%s8081_s0 + $0x8c] sm:$0xf]  ;;  %v5543_v63 = vor.u32 %v5122_v56, %v4338_v57  ;;  %v69_v4 = vunpack.c.l.b16 %v51_v58 }
  0x15   :  { %v4328_v0 = vld [vmem:[%s8084_s3 + $0x10] sm:$0xf]  ;;  %v5121_v1 = vld [vmem:[%s8084_s3 + $0x14] sm:$0xf0]  ;;  %v5120_v2 = vld [vmem:[%s8084_s3 + $0x14] sm:$0xf] }
  0x16   :  { %133 = vmatpush.bf16.msra.mxu0 %v5096_v5  ;;  %204 = vmatpush.bf16.msra.mxu1 %v5096_v5  ;;  %v4330_v3 = vld [vmem:[%s8084_s3 + $0x18] sm:$0xf0]  ;;  %v5626_v28 = vld [vmem:[%s8083_s2] ss:$0 sm:$0xff] }
  0x17   :  { %284 = vmatpush.bf16.msra.mxu2 %v5096_v5  ;;  %364 = vmatpush.bf16.msra.mxu3 %v5096_v5  ;;  %v188_v5 = vunpack.c.l.b16 %v4251_v59 }
  0x1a   :  { %134 = vmatpush.bf16.msra.mxu0 %v5095_v6  ;;  %205 = vmatpush.bf16.msra.mxu1 %v5095_v6 }
  0x1b   :  { %285 = vmatpush.bf16.msra.mxu2 %v5095_v6  ;;  %365 = vmatpush.bf16.msra.mxu3 %v5095_v6  ;;  %v268_v6 = vunpack.c.l.b16 %v4276_v60 }
  0x1e   :  { %135 = vmatpush.bf16.msra.mxu0 %v5094_v7  ;;  %206 = vmatpush.bf16.msra.mxu1 %v5094_v7 }
  0x1f   :  { %286 = vmatpush.bf16.msra.mxu2 %v5094_v7  ;;  %366 = vmatpush.bf16.msra.mxu3 %v5094_v7  ;;  %v348_v7 = vunpack.c.l.b16 %v4301_v61 }
  0x21   :  { %136 = vmatmul.bf16.vlgmr.msra.gmra.mxu0 %v5102_v8  ;;  %207 = vmatmul.bf16.vlgmr.msra.gmra.mxu1 %v5106_v9  ;;  %v5561_v8 = vor.u32 %v5121_v1, %v4328_v0  ;;  %v5563_v9 = vor.u32 %v5120_v2, %v4330_v3 }
  0x22   :  { %287 = vmatmul.bf16.vlgmr.msra.gmra.mxu2 %v5110_v10  ;;  %367 = vmatmul.bf16.vlgmr.msra.gmra.mxu3 %v5114_v11  ;;  %v4320_v10 = vld [vmem:[%s8084_s3] sm:$0xf]  ;;  %v5119_v11 = vld [vmem:[%s8084_s3 + $0x4] sm:$0xf0] }
  0x23   :  { %554 = vmatpush.bf16.msrb.mxu0 %v5416_v23  ;;  %590 = vmatpush.bf16.msrb.mxu2 %v5416_v23 }
  0x24   :  { %567 = vmatpush.bf16.msrb.mxu1 %v5427_v27  ;;  %603 = vmatpush.bf16.msrb.mxu3 %v5427_v27 }
  0x27   :  { %555 = vmatpush.bf16.msrb.mxu0 %v5436_v30  ;;  %591 = vmatpush.bf16.msrb.mxu2 %v5436_v30 }
  0x28   :  { %568 = vmatpush.bf16.msrb.mxu1 %v5440_v31  ;;  %604 = vmatpush.bf16.msrb.mxu3 %v5440_v31 }
  0x2b   :  { %556 = vmatpush.bf16.msrb.mxu0 %v5456_v36  ;;  %592 = vmatpush.bf16.msrb.mxu2 %v5456_v36 }
  0x2c   :  { %569 = vmatpush.bf16.msrb.mxu1 %v5460_v37  ;;  %605 = vmatpush.bf16.msrb.mxu3 %v5460_v37 }
  0x2f   :  { %557 = vmatpush.bf16.msrb.mxu0 %v5490_v46  ;;  %593 = vmatpush.bf16.msrb.mxu2 %v5490_v46 }
  0x30   :  { %570 = vmatpush.bf16.msrb.mxu1 %v5492_v47  ;;  %606 = vmatpush.bf16.msrb.mxu3 %v5492_v47 }
  0x31   :  { %141 = vmatmul.bf16.gmra.mxu0 %v5103_v12  ;;  %212 = vmatmul.bf16.gmra.mxu1 %v5107_v13  ;;  %v5118_v12 = vld [vmem:[%s8084_s3 + $0x4] sm:$0xf]  ;;  %v4322_v13 = vld [vmem:[%s8084_s3 + $0x8] sm:$0xf0] }
  0x32   :  { %292 = vmatmul.bf16.gmra.mxu2 %v5111_v14  ;;  %372 = vmatmul.bf16.gmra.mxu3 %v5115_v15  ;;  %v74_v14 = vpack.c.b16 %v69_v4, %v69_v4  ;;  %v193_v15 = vpack.c.b16 %v188_v5, %v188_v5 }
  0x33   :  { %558 = vmatpush.bf16.msrb.mxu0 %v5509_v52  ;;  %594 = vmatpush.bf16.msrb.mxu2 %v5509_v52 }
  0x34   :  { %571 = vmatpush.bf16.msrb.mxu1 %v5511_v53  ;;  %607 = vmatpush.bf16.msrb.mxu3 %v5511_v53 }
  0x37   :  { %559 = vmatpush.bf16.msrb.mxu0 %v5541_v62  ;;  %595 = vmatpush.bf16.msrb.mxu2 %v5541_v62 }
  0x38   :  { %572 = vmatpush.bf16.msrb.mxu1 %v5543_v63  ;;  %608 = vmatpush.bf16.msrb.mxu3 %v5543_v63 }
  0x3b   :  { %560 = vmatpush.bf16.msrb.mxu0 %v5561_v8  ;;  %596 = vmatpush.bf16.msrb.mxu2 %v5561_v8 }
  0x3c   :  { %573 = vmatpush.bf16.msrb.mxu1 %v5563_v9  ;;  %609 = vmatpush.bf16.msrb.mxu3 %v5563_v9 }
  0x41   :  { %146 = vmatmul.bf16.gmra.mxu0 %v5104_v16  ;;  %217 = vmatmul.bf16.gmra.mxu1 %v5108_v17  ;;  %v273_v16 = vpack.c.b16 %v268_v6, %v268_v6  ;;  %v353_v17 = vpack.c.b16 %v348_v7, %v348_v7 }
  0x42   :  { %297 = vmatmul.bf16.gmra.mxu2 %v5112_v18  ;;  %377 = vmatmul.bf16.gmra.mxu3 %v5116_v19  ;;  %v5581_v18 = vor.u32 %v5119_v11, %v4320_v10  ;;  %v5583_v19 = vor.u32 %v5118_v12, %v4322_v13 }
  0x44   :  { %561 = vmatpush.bf16.msrb.mxu0 %v5581_v18  ;;  %574 = vmatpush.bf16.msrb.mxu1 %v5583_v19 }
  0x45   :  { %597 = vmatpush.bf16.msrb.mxu2 %v5581_v18  ;;  %610 = vmatpush.bf16.msrb.mxu3 %v5583_v19 }
  0x48   :  { %626 = vmatpush.bf16.msra.mxu0 %v5416_v23  ;;  %639 = vmatpush.bf16.msra.mxu1 %v5427_v27 }
  0x49   :  { %662 = vmatpush.bf16.msra.mxu2 %v5416_v23  ;;  %675 = vmatpush.bf16.msra.mxu3 %v5427_v27 }
  0x4c   :  { %627 = vmatpush.bf16.msra.mxu0 %v5436_v30  ;;  %640 = vmatpush.bf16.msra.mxu1 %v5440_v31 }
  0x4d   :  { %663 = vmatpush.bf16.msra.mxu2 %v5436_v30  ;;  %676 = vmatpush.bf16.msra.mxu3 %v5440_v31 }
  0x50   :  { %628 = vmatpush.bf16.msra.mxu0 %v5456_v36  ;;  %641 = vmatpush.bf16.msra.mxu1 %v5460_v37 }
  0x51   :  { %151 = vmatmul.bf16.gmra.mxu0 %v5105_v42  ;;  %222 = vmatmul.bf16.gmra.mxu1 %v5109_v43 }
  0x52   :  { %302 = vmatmul.bf16.gmra.mxu2 %v5113_v44  ;;  %382 = vmatmul.bf16.gmra.mxu3 %v5117_v45 }
  0x53   :  { %664 = vmatpush.bf16.msra.mxu2 %v5456_v36  ;;  %677 = vmatpush.bf16.msra.mxu3 %v5460_v37 }
  0x54   :  { %629 = vmatpush.bf16.msra.mxu0 %v5490_v46  ;;  %642 = vmatpush.bf16.msra.mxu1 %v5492_v47 }
  0x57   :  { %665 = vmatpush.bf16.msra.mxu2 %v5490_v46  ;;  %678 = vmatpush.bf16.msra.mxu3 %v5492_v47 }
  0x58   :  { %630 = vmatpush.bf16.msra.mxu0 %v5509_v52  ;;  %643 = vmatpush.bf16.msra.mxu1 %v5511_v53 }
  0x5b   :  { %666 = vmatpush.bf16.msra.mxu2 %v5509_v52  ;;  %679 = vmatpush.bf16.msra.mxu3 %v5511_v53 }
  0x5c   :  { %631 = vmatpush.bf16.msra.mxu0 %v5541_v62  ;;  %644 = vmatpush.bf16.msra.mxu1 %v5543_v63 }
  0x5f   :  { %667 = vmatpush.bf16.msra.mxu2 %v5541_v62  ;;  %680 = vmatpush.bf16.msra.mxu3 %v5543_v63 }
  0x60   :  { %632 = vmatpush.bf16.msra.mxu0 %v5561_v8  ;;  %645 = vmatpush.bf16.msra.mxu1 %v5563_v9 }
  0x61   :  { %156 = vmatmul.bf16.gmra.mxu0 %v74_v14  ;;  %227 = vmatmul.bf16.gmra.mxu1 %v193_v15 }
  0x62   :  { %307 = vmatmul.bf16.gmra.mxu2 %v273_v16  ;;  %387 = vmatmul.bf16.gmra.mxu3 %v353_v17 }
  0x63   :  { %668 = vmatpush.bf16.msra.mxu2 %v5561_v8  ;;  %681 = vmatpush.bf16.msra.mxu3 %v5563_v9 }
  0x64   :  { %633 = vmatpush.bf16.msra.mxu0 %v5581_v18  ;;  %646 = vmatpush.bf16.msra.mxu1 %v5583_v19 }
  0x67   :  { %669 = vmatpush.bf16.msra.mxu2 %v5581_v18  ;;  %682 = vmatpush.bf16.msra.mxu3 %v5583_v19 }
  0x9e   :  { %v137_v20 = vpop.f32.mrf.mxu0  ;;  %v208_v21 = vpop.f32.mrf.mxu1 }
  0x9f   :  { %v232_v22 = vmax.f32 %v137_v20, %v208_v21 }
  0xa5   :  { %v288_v24 = vpop.f32.mrf.mxu2  ;;  %v368_v25 = vpop.f32.mrf.mxu3 }
  0xa6   :  { %v312_v26 = vmax.f32 %v232_v22, %v288_v24  ;;  %v139_v29 = vpop.f32.mrf.mxu0  ;;  %v210_v32 = vpop.f32.mrf.mxu1 }
  0xa7   :  { %v233_v38 = vmax.f32 %v139_v29, %v210_v32 }
  0xa8   :  { %v392_v33 = vmax.f32 %v312_v26, %v368_v25 }
  0xaa   :  { %v405_v34 = vadd.f32 %v5626_v28, %v392_v33 }
  0xac   :  { %v414_v35 = vmax.f32 %v405_v34, 0.0 }
  0xad   :  { %v290_v39 = vpop.f32.mrf.mxu2  ;;  %v370_v40 = vpop.f32.mrf.mxu3 }
  0xae   :  { %423 = vst [vmem:[#allocation2] sm:$0xff] %v414_v35  ;;  %v313_v41 = vmax.f32 %v233_v38, %v290_v39  ;;  %v142_v42 = vpop.f32.mrf.mxu0  ;;  %v213_v43 = vpop.f32.mrf.mxu1 }
  0xaf   :  { %v234_v48 = vmax.f32 %v142_v42, %v213_v43 }
  0xb0   :  { %v393_v44 = vmax.f32 %v313_v41, %v370_v40 }
  0xb2   :  { %v406_v45 = vadd.f32 %v5626_v28, %v393_v44 }
  0xb4   :  { %v415_v49 = vmax.f32 %v406_v45, 0.0 }
  0xb5   :  { %v293_v50 = vpop.f32.mrf.mxu2  ;;  %v373_v51 = vpop.f32.mrf.mxu3  ;;  %v471_v54 = vld [vmem:[#allocation2] sm:$0xf] }
  0xb6   :  { %424 = vst [vmem:[#allocation2 + $0x8] sm:$0xff] %v415_v49  ;;  %v314_v55 = vmax.f32 %v234_v48, %v293_v50  ;;  %v472_v56 = vpack.c.bf16 %v471_v54, %v471_v54  ;;  %v144_v57 = vpop.f32.mrf.mxu0  ;;  %v215_v58 = vpop.f32.mrf.mxu1 }
  0xb7   :  { %v235_v61 = vmax.f32 %v144_v57, %v215_v58 }
  0xb8   :  { %v394_v59 = vmax.f32 %v314_v55, %v373_v51  ;;  %562 = vmatmul.bf16.vlgmr.msrb.gmra.mxu0 %v472_v56  ;;  %575 = vmatmul.bf16.vlgmr.msrb.gmra.mxu1 %v472_v56 }
  0xb9   :  { %698 = vmatpush.bf16.msrb.mxu0 %v5416_v23  ;;  %711 = vmatpush.bf16.msrb.mxu1 %v5427_v27 }
  0xba   :  { %v407_v60 = vadd.f32 %v5626_v28, %v394_v59 }
  0xbc   :  { %v416_v0 = vmax.f32 %v407_v60, 0.0 }
  0xbd   :  { %699 = vmatpush.bf16.msrb.mxu0 %v5436_v30  ;;  %712 = vmatpush.bf16.msrb.mxu1 %v5440_v31  ;;  %v587_v1 = vld [vmem:[#allocation2 + $0x6] sm:$0xf]  ;;  %v295_v2 = vpop.f32.mrf.mxu2  ;;  %v375_v3 = vpop.f32.mrf.mxu3  ;;  %v623_v13 = vld [vmem:[#allocation2 + $0xc] sm:$0xf] }
  0xbe   :  { %425 = vst [vmem:[#allocation2 + $0x10] sm:$0xff] %v416_v0  ;;  %v588_v4 = vpack.c.bf16 %v587_v1, %v587_v1  ;;  %v315_v5 = vmax.f32 %v235_v61, %v295_v2  ;;  %v147_v6 = vpop.f32.mrf.mxu0  ;;  %v218_v7 = vpop.f32.mrf.mxu1  ;;  %v624_v17 = vpack.c.bf16 %v623_v13, %v623_v13 }
  0xbf   :  { %v236_v12 = vmax.f32 %v147_v6, %v218_v7 }
  0xc0   :  { %598 = vmatmul.bf16.vlgmr.msrb.gmra.mxu2 %v588_v4  ;;  %611 = vmatmul.bf16.vlgmr.msrb.gmra.mxu3 %v588_v4  ;;  %v395_v10 = vmax.f32 %v315_v5, %v375_v3 }
  0xc1   :  { %700 = vmatpush.bf16.msrb.mxu0 %v5456_v36  ;;  %713 = vmatpush.bf16.msrb.mxu1 %v5460_v37 }
  0xc2   :  { %734 = vmatpush.bf16.msrb.mxu2 %v5416_v23  ;;  %747 = vmatpush.bf16.msrb.mxu3 %v5427_v27  ;;  %v408_v11 = vadd.f32 %v5626_v28, %v395_v10 }
  0xc4   :  { %v417_v14 = vmax.f32 %v408_v11, 0.0 }
  0xc5   :  { %701 = vmatpush.bf16.msrb.mxu0 %v5490_v46  ;;  %714 = vmatpush.bf16.msrb.mxu1 %v5492_v47  ;;  %v298_v15 = vpop.f32.mrf.mxu2  ;;  %v378_v16 = vpop.f32.mrf.mxu3  ;;  %v659_v25 = vld [vmem:[#allocation2 + $0x12] sm:$0xf] }
  0xc6   :  { %426 = vst [vmem:[#allocation2 + $0x18] sm:$0xff] %v417_v14  ;;  %735 = vmatpush.bf16.msrb.mxu2 %v5436_v30  ;;  %748 = vmatpush.bf16.msrb.mxu3 %v5440_v31  ;;  %v316_v20 = vmax.f32 %v236_v12, %v298_v15  ;;  %v149_v21 = vpop.f32.mrf.mxu0  ;;  %v220_v22 = vpop.f32.mrf.mxu1  ;;  %v660_v33 = vpack.c.bf16 %v659_v25, %v659_v25  ;;  %v4456_v15 = vld [vmem:[%s8084_s3 + $0xf0] sm:$0xf] }
  0xc7   :  { %v237_v29 = vmax.f32 %v149_v21, %v220_v22  ;;  %v4448_v21 = vld [vmem:[%s8084_s3 + $0xe0] sm:$0xf]  ;;  %v5147_v22 = vld [vmem:[%s8084_s3 + $0xe4] sm:$0xf0] }
  0xc8   :  { %634 = vmatmul.bf16.vlgmr.msra.gmra.mxu0 %v624_v17  ;;  %647 = vmatmul.bf16.vlgmr.msra.gmra.mxu1 %v624_v17  ;;  %v396_v24 = vmax.f32 %v316_v20, %v378_v16  ;;  %v5727_v25 = vor.u32 %v5147_v22, %v4448_v21 }
  0xc9   :  { %702 = vmatpush.bf16.msrb.mxu0 %v5509_v52  ;;  %715 = vmatpush.bf16.msrb.mxu1 %v5511_v53 }
  0xca   :  { %736 = vmatpush.bf16.msrb.mxu2 %v5456_v36  ;;  %749 = vmatpush.bf16.msrb.mxu3 %v5460_v37  ;;  %v409_v26 = vadd.f32 %v5626_v28, %v396_v24  ;;  %v5146_v24 = vld [vmem:[%s8084_s3 + $0xe4] sm:$0xf] }
  0xcc   :  { %v418_v32 = vmax.f32 %v409_v26, 0.0 }
  0xcd   :  { %703 = vmatpush.bf16.msrb.mxu0 %v5541_v62  ;;  %716 = vmatpush.bf16.msrb.mxu1 %v5543_v63  ;;  %v300_v34 = vpop.f32.mrf.mxu2  ;;  %v380_v35 = vpop.f32.mrf.mxu3 }
  0xce   :  { %427 = vst [vmem:[#allocation2 + $0x20] sm:$0xff] %v418_v32  ;;  %737 = vmatpush.bf16.msrb.mxu2 %v5490_v46  ;;  %750 = vmatpush.bf16.msrb.mxu3 %v5492_v47  ;;  %v317_v38 = vmax.f32 %v237_v29, %v300_v34  ;;  %v152_v39 = vpop.f32.mrf.mxu0  ;;  %v223_v40 = vpop.f32.mrf.mxu1  ;;  %v4440_v29 = vld [vmem:[%s8084_s3 + $0xd0] sm:$0xf]  ;;  %v5145_v32 = vld [vmem:[%s8084_s3 + $0xd4] sm:$0xf0] }
  0xcf   :  { %v238_v43 = vmax.f32 %v152_v39, %v223_v40  ;;  %v5747_v34 = vor.u32 %v5145_v32, %v4440_v29  ;;  %v5143_v39 = vld [vmem:[%s8084_s3 + $0xc4] sm:$0xf0] }
  0xd0   :  { %670 = vmatmul.bf16.vlgmr.msra.gmra.mxu2 %v660_v33  ;;  %683 = vmatmul.bf16.vlgmr.msra.gmra.mxu3 %v660_v33  ;;  %v397_v41 = vmax.f32 %v317_v38, %v380_v35  ;;  %v4432_v38 = vld [vmem:[%s8084_s3 + $0xc0] sm:$0xf] }
  0xd1   :  { %704 = vmatpush.bf16.msrb.mxu0 %v5561_v8  ;;  %717 = vmatpush.bf16.msrb.mxu1 %v5563_v9 }
  0xd2   :  { %738 = vmatpush.bf16.msrb.mxu2 %v5509_v52  ;;  %751 = vmatpush.bf16.msrb.mxu3 %v5511_v53  ;;  %v410_v42 = vadd.f32 %v5626_v28, %v397_v41  ;;  %v5767_v41 = vor.u32 %v5143_v39, %v4432_v38 }
  0xd4   :  { %v419_v44 = vmax.f32 %v410_v42, 0.0 }
  0xd5   :  { %705 = vmatpush.bf16.msrb.mxu0 %v5581_v18  ;;  %718 = vmatpush.bf16.msrb.mxu1 %v5583_v19  ;;  %v695_v45 = vld [vmem:[#allocation2 + $0x24] sm:$0xf]  ;;  %v303_v48 = vpop.f32.mrf.mxu2  ;;  %v383_v49 = vpop.f32.mrf.mxu3 }
  0xd6   :  { %739 = vmatpush.bf16.msrb.mxu2 %v5541_v62  ;;  %752 = vmatpush.bf16.msrb.mxu3 %v5543_v63  ;;  %428 = vst [vmem:[#allocation2 + $0x28] sm:$0xff] %v419_v44  ;;  %v696_v50 = vpack.c.bf16 %v695_v45, %v695_v45  ;;  %v318_v51 = vmax.f32 %v238_v43, %v303_v48  ;;  %v154_v54 = vpop.f32.mrf.mxu0  ;;  %v225_v55 = vpop.f32.mrf.mxu1  ;;  %v4424_v43 = vld [vmem:[%s8084_s3 + $0xb0] sm:$0xf]  ;;  %v4426_v44 = vld [vmem:[%s8084_s3 + $0xb8] sm:$0xf0] }
  0xd7   :  { %v239_v58 = vmax.f32 %v154_v54, %v225_v55  ;;  %v4418_v54 = vld [vmem:[%s8084_s3 + $0xa8] sm:$0xf0] }
  0xd8   :  { %706 = vmatmul.bf16.vlgmr.msrb.gmra.mxu0 %v696_v50  ;;  %719 = vmatmul.bf16.vlgmr.msrb.gmra.mxu1 %v696_v50  ;;  %v398_v56 = vmax.f32 %v318_v51, %v383_v49  ;;  %v4416_v49 = vld [vmem:[%s8084_s3 + $0xa0] sm:$0xf]  ;;  %v5139_v50 = vld [vmem:[%s8084_s3 + $0xa4] sm:$0xf0]  ;;  %v5138_v51 = vld [vmem:[%s8084_s3 + $0xa4] sm:$0xf] }
  0xd9   :  { %770 = vmatpush.bf16.msra.mxu0 %v5416_v23  ;;  %783 = vmatpush.bf16.msra.mxu1 %v5427_v27  ;;  %v5807_v55 = vor.u32 %v5139_v50, %v4416_v49 }
  0xda   :  { %740 = vmatpush.bf16.msrb.mxu2 %v5561_v8  ;;  %753 = vmatpush.bf16.msrb.mxu3 %v5563_v9  ;;  %v411_v57 = vadd.f32 %v5626_v28, %v398_v56  ;;  %v5809_v56 = vor.u32 %v5138_v51, %v4418_v54 }
  0xdc   :  { %v420_v59 = vmax.f32 %v411_v57, 0.0  ;;  %v4408_v57 = vld [vmem:[%s8084_s3 + $0x90] sm:$0xf] }
  0xdd   :  { %771 = vmatpush.bf16.msra.mxu0 %v5436_v30  ;;  %784 = vmatpush.bf16.msra.mxu1 %v5440_v31  ;;  %v731_v60 = vld [vmem:[#allocation2 + $0x2a] sm:$0xf]  ;;  %v305_v61 = vpop.f32.mrf.mxu2  ;;  %v385_v0 = vpop.f32.mrf.mxu3 }
  0xde   :  { %741 = vmatpush.bf16.msrb.mxu2 %v5581_v18  ;;  %754 = vmatpush.bf16.msrb.mxu3 %v5583_v19  ;;  %v732_v1 = vpack.c.bf16 %v731_v60, %v731_v60  ;;  %429 = vst [vmem:[#allocation2 + $0x30] sm:$0xff] %v420_v59  ;;  %v319_v2 = vmax.f32 %v239_v58, %v305_v61  ;;  %v157_v3 = vpop.f32.mrf.mxu0  ;;  %v228_v4 = vpop.f32.mrf.mxu1  ;;  %v5137_v58 = vld [vmem:[%s8084_s3 + $0x94] sm:$0xf0]  ;;  %v5136_v59 = vld [vmem:[%s8084_s3 + $0x94] sm:$0xf] }
  0xdf   :  { %v240_v7 = vmax.f32 %v157_v3, %v228_v4  ;;  %v4410_v60 = vld [vmem:[%s8084_s3 + $0x98] sm:$0xf0]  ;;  %v5827_v61 = vor.u32 %v5137_v58, %v4408_v57  ;;  %v5134_v3 = vld [vmem:[%s8084_s3 + $0x84] sm:$0xf]  ;;  %v4402_v4 = vld [vmem:[%s8084_s3 + $0x88] sm:$0xf0] }
  0xe0   :  { %v399_v5 = vmax.f32 %v319_v2, %v385_v0  ;;  %v5829_v0 = vor.u32 %v5136_v59, %v4410_v60  ;;  %v5135_v2 = vld [vmem:[%s8084_s3 + $0x84] sm:$0xf0]  ;;  %v432_v59 = vld [vmem:[%s8085_s4] sm:$0x3] }
  0xe1   :  { %772 = vmatpush.bf16.msra.mxu0 %v5456_v36  ;;  %785 = vmatpush.bf16.msra.mxu1 %v5460_v37 }
  0xe2   :  { %806 = vmatpush.bf16.msra.mxu2 %v5416_v23  ;;  %819 = vmatpush.bf16.msra.mxu3 %v5427_v27  ;;  %v412_v6 = vadd.f32 %v5626_v28, %v399_v5 }
  0xe3   :  { %742 = vmatmul.bf16.vlgmr.msrb.gmra.mxu2 %v732_v1  ;;  %755 = vmatmul.bf16.vlgmr.msrb.gmra.mxu3 %v732_v1  ;;  %v4400_v1 = vld [vmem:[%s8084_s3 + $0x80] sm:$0xf] }
  0xe4   :  { %v421_v10 = vmax.f32 %v412_v6, 0.0  ;;  %v5847_v5 = vor.u32 %v5135_v2, %v4400_v1  ;;  %v5849_v6 = vor.u32 %v5134_v3, %v4402_v4  ;;  %v4528_v3 = vld [vmem:[%s8084_s3 + $0x160] sm:$0xf]  ;;  %v5163_v4 = vld [vmem:[%s8084_s3 + $0x164] sm:$0xf0] }
  0xe5   :  { %773 = vmatpush.bf16.msra.mxu0 %v5490_v46  ;;  %786 = vmatpush.bf16.msra.mxu1 %v5492_v47  ;;  %v308_v11 = vpop.f32.mrf.mxu2  ;;  %v388_v12 = vpop.f32.mrf.mxu3  ;;  %v1152_v2 = vld [vmem:[#allocation2 + $0x31] sm:$0xf] }
  0xe6   :  { %807 = vmatpush.bf16.msra.mxu2 %v5436_v30  ;;  %820 = vmatpush.bf16.msra.mxu3 %v5440_v31  ;;  %430 = vst [vmem:[#allocation2 + $0x38] sm:$0xff] %v421_v10  ;;  %v320_v23 = vmax.f32 %v240_v7, %v308_v11  ;;  %v159_v27 = vpop.f32.mrf.mxu0  ;;  %v230_v13 = vpop.f32.mrf.mxu1  ;;  %v856_v7 = vld [vmem:[#allocation2 + $0x1] sm:$0xf]  ;;  %v972_v11 = vld [vmem:[#allocation2 + $0x7] sm:$0xf] }
  0xe7   :  { %v857_v10 = vpack.c.bf16 %v856_v7, %v856_v7  ;;  %v1153_v7 = vpack.c.bf16 %v1152_v2, %v1152_v2  ;;  %v4482_v2 = vld [vmem:[%s8084_s3 + $0x108] sm:$0xf0] }
  0xe8   :  { %v400_v14 = vmax.f32 %v320_v23, %v388_v12  ;;  %v973_v12 = vpack.c.bf16 %v972_v11, %v972_v11  ;;  %v1008_v23 = vld [vmem:[#allocation2 + $0xd] sm:$0xf] }
  0xe9   :  { %774 = vmatpush.bf16.msra.mxu0 %v5509_v52  ;;  %787 = vmatpush.bf16.msra.mxu1 %v5511_v53  ;;  %v1009_v27 = vpack.c.bf16 %v1008_v23, %v1008_v23  ;;  %v6004_v23 = vor.u32 %v5163_v4, %v4528_v3 }
  0xea   :  { %808 = vmatpush.bf16.msra.mxu2 %v5456_v36  ;;  %821 = vmatpush.bf16.msra.mxu3 %v5460_v37  ;;  %v413_v30 = vadd.f32 %v5626_v28, %v400_v14  ;;  %v5149_v36 = vld [vmem:[%s8084_s3 + $0xf4] sm:$0xf0]  ;;  %v5148_v28 = vld [vmem:[%s8084_s3 + $0xf4] sm:$0xf] }
  0xeb   :  { %v5705_v17 = vor.u32 %v5149_v36, %v4456_v15 }
  0xec   :  { %v422_v31 = vmax.f32 %v413_v30, 0.0 }
  0xed   :  { %775 = vmatpush.bf16.msra.mxu0 %v5541_v62  ;;  %788 = vmatpush.bf16.msra.mxu1 %v5543_v63  ;;  %v390_v37 = vpop.f32.mrf.mxu3  ;;  %v310_v16 = vpop.f32.mrf.mxu2  ;;  %v803_v33 = vld [vmem:[#allocation2 + $0x36] sm:$0xf] }
  0xee   :  { %809 = vmatpush.bf16.msra.mxu2 %v5490_v46  ;;  %822 = vmatpush.bf16.msra.mxu3 %v5492_v47  ;;  %v4458_v46 = vld [vmem:[%s8084_s3 + $0xf8] sm:$0xf0]  ;;  %431 = vst [vmem:[#allocation2 + $0x40] sm:$0xff] %v422_v31  ;;  %v767_v47 = vld [vmem:[#allocation2 + $0x30] sm:$0xf]  ;;  %v804_v40 = vpack.c.bf16 %v803_v33, %v803_v33 }
  0xef   :  { %v5707_v20 = vor.u32 %v5148_v28, %v4458_v46  ;;  %v1044_v31 = vld [vmem:[#allocation2 + $0x13] sm:$0xf] }
  0xf0   :  { %v1045_v36 = vpack.c.bf16 %v1044_v31, %v1044_v31 }
  0xf1   :  { %776 = vmatpush.bf16.msra.mxu0 %v5561_v8  ;;  %789 = vmatpush.bf16.msra.mxu1 %v5563_v9 }
  0xf2   :  { %810 = vmatpush.bf16.msra.mxu2 %v5509_v52  ;;  %823 = vmatpush.bf16.msra.mxu3 %v5511_v53  ;;  %v4450_v52 = vld [vmem:[%s8084_s3 + $0xe8] sm:$0xf0]  ;;  %v768_v53 = vpack.c.bf16 %v767_v47, %v767_v47 }
  0xf3   :  { %v5729_v26 = vor.u32 %v5146_v24, %v4450_v52 }
  0xf5   :  { %777 = vmatpush.bf16.msra.mxu0 %v5581_v18  ;;  %790 = vmatpush.bf16.msra.mxu1 %v5583_v19 }
  0xf6   :  { %811 = vmatpush.bf16.msra.mxu2 %v5541_v62  ;;  %824 = vmatpush.bf16.msra.mxu3 %v5543_v63  ;;  %v5144_v62 = vld [vmem:[%s8084_s3 + $0xd4] sm:$0xf]  ;;  %v4442_v63 = vld [vmem:[%s8084_s3 + $0xd8] sm:$0xf0] }
  0xf7   :  { %v5749_v35 = vor.u32 %v5144_v62, %v4442_v63  ;;  %v1080_v62 = vld [vmem:[#allocation2 + $0x25] sm:$0xf] }
  0xf8   :  { %778 = vmatmul.bf16.vlgmr.msra.gmra.mxu0 %v768_v53  ;;  %791 = vmatmul.bf16.vlgmr.msra.gmra.mxu1 %v768_v53  ;;  %v1081_v38 = vpack.c.bf16 %v1080_v62, %v1080_v62  ;;  %v4504_v62 = vld [vmem:[%s8084_s3 + $0x130] sm:$0xf] }
  0xf9   :  { %939 = vmatpush.bf16.msrb.mxu0 %v5705_v17  ;;  %952 = vmatpush.bf16.msrb.mxu1 %v5707_v20 }
  0xfa   :  { %812 = vmatpush.bf16.msra.mxu2 %v5561_v8  ;;  %825 = vmatpush.bf16.msra.mxu3 %v5563_v9  ;;  %v5142_v8 = vld [vmem:[%s8084_s3 + $0xc4] sm:$0xf]  ;;  %v4434_v9 = vld [vmem:[%s8084_s3 + $0xc8] sm:$0xf0] }
  0xfb   :  { %v5769_v42 = vor.u32 %v5142_v8, %v4434_v9  ;;  %v1116_v9 = vld [vmem:[#allocation2 + $0x2b] sm:$0xf] }
  0xfc   :  { %v1117_v49 = vpack.c.bf16 %v1116_v9, %v1116_v9 }
  0xfd   :  { %940 = vmatpush.bf16.msrb.mxu0 %v5727_v25  ;;  %953 = vmatpush.bf16.msrb.mxu1 %v5729_v26 }
  0xfe   :  { %813 = vmatpush.bf16.msra.mxu2 %v5581_v18  ;;  %826 = vmatpush.bf16.msra.mxu3 %v5583_v19  ;;  %v5141_v18 = vld [vmem:[%s8084_s3 + $0xb4] sm:$0xf0]  ;;  %v5140_v19 = vld [vmem:[%s8084_s3 + $0xb4] sm:$0xf] }
  0xff   :  { %v5787_v45 = vor.u32 %v5141_v18, %v4424_v43  ;;  %v5789_v48 = vor.u32 %v5140_v19, %v4426_v44 }
 0x101   :  { %941 = vmatpush.bf16.msrb.mxu0 %v5747_v34  ;;  %954 = vmatpush.bf16.msrb.mxu1 %v5749_v35 }
 0x102   :  { %975 = vmatpush.bf16.msrb.mxu2 %v5705_v17  ;;  %988 = vmatpush.bf16.msrb.mxu3 %v5707_v20 }
 0x103   :  { %814 = vmatmul.bf16.vlgmr.msra.gmra.mxu2 %v804_v40  ;;  %827 = vmatmul.bf16.vlgmr.msra.gmra.mxu3 %v804_v40 }
 0x105   :  { %942 = vmatpush.bf16.msrb.mxu0 %v5767_v41  ;;  %955 = vmatpush.bf16.msrb.mxu1 %v5769_v42 }
 0x106   :  { %976 = vmatpush.bf16.msrb.mxu2 %v5727_v25  ;;  %989 = vmatpush.bf16.msrb.mxu3 %v5729_v26 }
 0x109   :  { %943 = vmatpush.bf16.msrb.mxu0 %v5787_v45  ;;  %956 = vmatpush.bf16.msrb.mxu1 %v5789_v48 }
 0x10a   :  { %977 = vmatpush.bf16.msrb.mxu2 %v5747_v34  ;;  %990 = vmatpush.bf16.msrb.mxu3 %v5749_v35 }
 0x10d   :  { %944 = vmatpush.bf16.msrb.mxu0 %v5807_v55  ;;  %957 = vmatpush.bf16.msrb.mxu1 %v5809_v56 }
 0x10e   :  { %978 = vmatpush.bf16.msrb.mxu2 %v5767_v41  ;;  %991 = vmatpush.bf16.msrb.mxu3 %v5769_v42 }
 0x111   :  { %945 = vmatpush.bf16.msrb.mxu0 %v5827_v61  ;;  %958 = vmatpush.bf16.msrb.mxu1 %v5829_v0 }
 0x112   :  { %979 = vmatpush.bf16.msrb.mxu2 %v5787_v45  ;;  %992 = vmatpush.bf16.msrb.mxu3 %v5789_v48 }
 0x115   :  { %946 = vmatpush.bf16.msrb.mxu0 %v5847_v5  ;;  %959 = vmatpush.bf16.msrb.mxu1 %v5849_v6 }
 0x116   :  { %980 = vmatpush.bf16.msrb.mxu2 %v5807_v55  ;;  %993 = vmatpush.bf16.msrb.mxu3 %v5809_v56 }
 0x118   :  { %947 = vmatmul.bf16.vlgmr.msrb.gmra.mxu0 %v857_v10  ;;  %960 = vmatmul.bf16.vlgmr.msrb.gmra.mxu1 %v857_v10 }
 0x119   :  { %1011 = vmatpush.bf16.msra.mxu0 %v5705_v17  ;;  %1024 = vmatpush.bf16.msra.mxu1 %v5707_v20 }
 0x11a   :  { %981 = vmatpush.bf16.msrb.mxu2 %v5827_v61  ;;  %994 = vmatpush.bf16.msrb.mxu3 %v5829_v0 }
 0x11d   :  { %1012 = vmatpush.bf16.msra.mxu0 %v5727_v25  ;;  %1025 = vmatpush.bf16.msra.mxu1 %v5729_v26 }
 0x11e   :  { %982 = vmatpush.bf16.msrb.mxu2 %v5847_v5  ;;  %995 = vmatpush.bf16.msrb.mxu3 %v5849_v6 }
 0x121   :  { %1013 = vmatpush.bf16.msra.mxu0 %v5747_v34  ;;  %1026 = vmatpush.bf16.msra.mxu1 %v5749_v35 }
 0x122   :  { %1047 = vmatpush.bf16.msra.mxu2 %v5705_v17  ;;  %1060 = vmatpush.bf16.msra.mxu3 %v5707_v20 }
 0x123   :  { %983 = vmatmul.bf16.vlgmr.msrb.gmra.mxu2 %v973_v12  ;;  %996 = vmatmul.bf16.vlgmr.msrb.gmra.mxu3 %v973_v12  ;;  %v435_v12 = vperm.slane %v432_v59, 1 }
 0x125   :  { %1014 = vmatpush.bf16.msra.mxu0 %v5767_v41  ;;  %1027 = vmatpush.bf16.msra.mxu1 %v5769_v42  ;;  %v436_v31 = vrot.slane %v435_v12, 4  ;;  %v1241_v12 = vld [vmem:[#allocation2 + $0x2] sm:$0xf] }
 0x126   :  { %1048 = vmatpush.bf16.msra.mxu2 %v5727_v25  ;;  %1061 = vmatpush.bf16.msra.mxu3 %v5729_v26 }
 0x129   :  { %1015 = vmatpush.bf16.msra.mxu0 %v5787_v45  ;;  %1028 = vmatpush.bf16.msra.mxu1 %v5789_v48 }
 0x12a   :  { %1049 = vmatpush.bf16.msra.mxu2 %v5747_v34  ;;  %1062 = vmatpush.bf16.msra.mxu3 %v5749_v35 }
 0x12d   :  { %1016 = vmatpush.bf16.msra.mxu0 %v5807_v55  ;;  %1029 = vmatpush.bf16.msra.mxu1 %v5809_v56 }
 0x12e   :  { %1050 = vmatpush.bf16.msra.mxu2 %v5767_v41  ;;  %1063 = vmatpush.bf16.msra.mxu3 %v5769_v42 }
 0x131   :  { %1017 = vmatpush.bf16.msra.mxu0 %v5827_v61  ;;  %1030 = vmatpush.bf16.msra.mxu1 %v5829_v0 }
 0x132   :  { %1051 = vmatpush.bf16.msra.mxu2 %v5787_v45  ;;  %1064 = vmatpush.bf16.msra.mxu3 %v5789_v48 }
 0x135   :  { %1018 = vmatpush.bf16.msra.mxu0 %v5847_v5  ;;  %1031 = vmatpush.bf16.msra.mxu1 %v5849_v6  ;;  %v563_v13 = vpop.f32.mrf.mxu0  ;;  %v576_v14 = vpop.f32.mrf.mxu1 }
 0x136   :  { %1052 = vmatpush.bf16.msra.mxu2 %v5807_v55  ;;  %1065 = vmatpush.bf16.msra.mxu3 %v5809_v56  ;;  %v582_v30 = vrot.slane %v576_v14, 4  ;;  %v4522_v14 = vld [vmem:[%s8084_s3 + $0x158] sm:$0xf0] }
 0x138   :  { %1019 = vmatmul.bf16.vlgmr.msra.gmra.mxu0 %v1009_v27  ;;  %1032 = vmatmul.bf16.vlgmr.msra.gmra.mxu1 %v1009_v27  ;;  %v5898_v15 = vsel %vm437_vm0, %v563_v13, %v582_v30  ;;  %v4520_v13 = vld [vmem:[%s8084_s3 + $0x150] sm:$0xf]  ;;  %v434_v30 = vperm.slane %v432_v59, 0  ;;  %v5150_v59 = vld [vmem:[%s8084_s3 + $0x104] sm:$0xf] }
 0x139   :  { %1083 = vmatpush.bf16.msrb.mxu0 %v5705_v17  ;;  %1096 = vmatpush.bf16.msrb.mxu1 %v5707_v20 }
 0x13a   :  { %1053 = vmatpush.bf16.msra.mxu2 %v5827_v61  ;;  %1066 = vmatpush.bf16.msra.mxu3 %v5829_v0 }
 0x13d   :  { %1084 = vmatpush.bf16.msrb.mxu0 %v5727_v25  ;;  %1097 = vmatpush.bf16.msrb.mxu1 %v5729_v26  ;;  %v565_v37 = vpop.f32.mrf.mxu0  ;;  %v578_v16 = vpop.f32.mrf.mxu1 }
 0x13e   :  { %1054 = vmatpush.bf16.msra.mxu2 %v5847_v5  ;;  %1067 = vmatpush.bf16.msra.mxu3 %v5849_v6  ;;  %v1188_v16 = vld [vmem:[#allocation2 + $0x37] sm:$0xf] }
 0x141   :  { %1085 = vmatpush.bf16.msrb.mxu0 %v5747_v34  ;;  %1098 = vmatpush.bf16.msrb.mxu1 %v5749_v35 }
 0x142   :  { %1119 = vmatpush.bf16.msrb.mxu2 %v5705_v17  ;;  %1132 = vmatpush.bf16.msrb.mxu3 %v5707_v20 }
 0x143   :  { %1055 = vmatmul.bf16.vlgmr.msra.gmra.mxu2 %v1045_v36  ;;  %1068 = vmatmul.bf16.vlgmr.msra.gmra.mxu3 %v1045_v36  ;;  %v599_v28 = vpop.f32.mrf.mxu2  ;;  %v612_v46 = vpop.f32.mrf.mxu3 }
 0x144   :  { %v618_v47 = vrot.slane %v612_v46, 4  ;;  %v4514_v46 = vld [vmem:[%s8084_s3 + $0x148] sm:$0xf0] }
 0x145   :  { %1086 = vmatpush.bf16.msrb.mxu0 %v5767_v41  ;;  %1099 = vmatpush.bf16.msrb.mxu1 %v5769_v42  ;;  %v635_v21 = vpop.f32.mrf.mxu0  ;;  %v648_v22 = vpop.f32.mrf.mxu1 }
 0x146   :  { %1120 = vmatpush.bf16.msrb.mxu2 %v5727_v25  ;;  %1133 = vmatpush.bf16.msrb.mxu3 %v5729_v26  ;;  %v5917_v24 = vsel %vm437_vm0, %v599_v28, %v618_v47  ;;  %v654_v52 = vrot.slane %v648_v22, 4  ;;  %v4512_v28 = vld [vmem:[%s8084_s3 + $0x140] sm:$0xf] }
 0x148   :  { %v5920_v53 = vsel %vm437_vm0, %v635_v21, %v654_v52  ;;  %v1189_v52 = vpack.c.bf16 %v1188_v16, %v1188_v16 }
 0x149   :  { %1087 = vmatpush.bf16.msrb.mxu0 %v5787_v45  ;;  %1100 = vmatpush.bf16.msrb.mxu1 %v5789_v48 }
 0x14a   :  { %1121 = vmatpush.bf16.msrb.mxu2 %v5747_v34  ;;  %1134 = vmatpush.bf16.msrb.mxu3 %v5749_v35 }
 0x14b   :  { %v601_v29 = vpop.f32.mrf.mxu2  ;;  %v614_v32 = vpop.f32.mrf.mxu3 }
 0x14d   :  { %1088 = vmatpush.bf16.msrb.mxu0 %v5807_v55  ;;  %1101 = vmatpush.bf16.msrb.mxu1 %v5809_v56  ;;  %v637_v63 = vpop.f32.mrf.mxu0  ;;  %v650_v33 = vpop.f32.mrf.mxu1 }
 0x14e   :  { %1122 = vmatpush.bf16.msrb.mxu2 %v5767_v41  ;;  %1135 = vmatpush.bf16.msrb.mxu3 %v5769_v42  ;;  %v6052_v63 = vsel %vm437_vm0, %v434_v30, %v436_v31  ;;  %v4506_v33 = vld [vmem:[%s8084_s3 + $0x138] sm:$0xf0] }
 0x151   :  { %1089 = vmatpush.bf16.msrb.mxu0 %v5827_v61  ;;  %1102 = vmatpush.bf16.msrb.mxu1 %v5829_v0 }
 0x152   :  { %1123 = vmatpush.bf16.msrb.mxu2 %v5787_v45  ;;  %1136 = vmatpush.bf16.msrb.mxu3 %v5789_v48 }
 0x153   :  { %v671_v39 = vpop.f32.mrf.mxu2  ;;  %v684_v8 = vpop.f32.mrf.mxu3 }
 0x154   :  { %v690_v40 = vrot.slane %v684_v8, 4 }
 0x155   :  { %1090 = vmatpush.bf16.msrb.mxu0 %v5847_v5  ;;  %1103 = vmatpush.bf16.msrb.mxu1 %v5849_v6  ;;  %v707_v43 = vpop.f32.mrf.mxu0  ;;  %v720_v18 = vpop.f32.mrf.mxu1 }
 0x156   :  { %1124 = vmatpush.bf16.msrb.mxu2 %v5807_v55  ;;  %1137 = vmatpush.bf16.msrb.mxu3 %v5809_v56  ;;  %v5939_v19 = vsel %vm437_vm0, %v671_v39, %v690_v40  ;;  %v726_v44 = vrot.slane %v720_v18, 4  ;;  %v4496_v40 = vld [vmem:[%s8084_s3 + $0x120] sm:$0xf]  ;;  %v5154_v18 = vld [vmem:[%s8084_s3 + $0x124] sm:$0xf] }
 0x158   :  { %1091 = vmatmul.bf16.vlgmr.msrb.gmra.mxu0 %v1081_v38  ;;  %1104 = vmatmul.bf16.vlgmr.msrb.gmra.mxu1 %v1081_v38  ;;  %v5946_v50 = vsel %vm437_vm0, %v707_v43, %v726_v44  ;;  %v5155_v43 = vld [vmem:[%s8084_s3 + $0x124] sm:$0xf0]  ;;  %v4498_v44 = vld [vmem:[%s8084_s3 + $0x128] sm:$0xf0] }
 0x159   :  { %1155 = vmatpush.bf16.msra.mxu0 %v5705_v17  ;;  %1168 = vmatpush.bf16.msra.mxu1 %v5707_v20 }
 0x15a   :  { %1125 = vmatpush.bf16.msrb.mxu2 %v5827_v61  ;;  %1138 = vmatpush.bf16.msrb.mxu3 %v5829_v0 }
 0x15b   :  { %v673_v51 = vpop.f32.mrf.mxu2  ;;  %v686_v54 = vpop.f32.mrf.mxu3 }
 0x15c   :  { %v6091_v54 = vor.u32 %v5155_v43, %v4496_v40  ;;  %v1429_v43 = vld [vmem:[#allocation2 + $0x14] sm:$0xf] }
 0x15d   :  { %1156 = vmatpush.bf16.msra.mxu0 %v5727_v25  ;;  %1169 = vmatpush.bf16.msra.mxu1 %v5729_v26  ;;  %v709_v57 = vpop.f32.mrf.mxu0  ;;  %v722_v58 = vpop.f32.mrf.mxu1 }
 0x15e   :  { %1126 = vmatpush.bf16.msrb.mxu2 %v5847_v5  ;;  %1139 = vmatpush.bf16.msrb.mxu3 %v5849_v6  ;;  %v6093_v57 = vor.u32 %v5154_v18, %v4498_v44  ;;  %v4488_v58 = vld [vmem:[%s8084_s3 + $0x110] sm:$0xf] }
 0x161   :  { %1157 = vmatpush.bf16.msra.mxu0 %v5747_v34  ;;  %1170 = vmatpush.bf16.msra.mxu1 %v5749_v35 }
 0x162   :  { %1191 = vmatpush.bf16.msra.mxu2 %v5705_v17  ;;  %1204 = vmatpush.bf16.msra.mxu3 %v5707_v20 }
 0x163   :  { %1127 = vmatmul.bf16.vlgmr.msrb.gmra.mxu2 %v1117_v49  ;;  %1140 = vmatmul.bf16.vlgmr.msrb.gmra.mxu3 %v1117_v49 }
 0x165   :  { %1158 = vmatpush.bf16.msra.mxu0 %v5767_v41  ;;  %1171 = vmatpush.bf16.msra.mxu1 %v5769_v42 }
 0x166   :  { %1192 = vmatpush.bf16.msra.mxu2 %v5727_v25  ;;  %1205 = vmatpush.bf16.msra.mxu3 %v5729_v26  ;;  %v743_v17 = vpop.f32.mrf.mxu2  ;;  %v756_v20 = vpop.f32.mrf.mxu3  ;;  %v4536_v25 = vld [vmem:[%s8084_s3 + $0x170] sm:$0xf] }
 0x167   :  { %v762_v26 = vrot.slane %v756_v20, 4  ;;  %v5152_v20 = vld [vmem:[%s8084_s3 + $0x114] sm:$0xf] }
 0x169   :  { %1159 = vmatpush.bf16.msra.mxu0 %v5787_v45  ;;  %1172 = vmatpush.bf16.msra.mxu1 %v5789_v48 }
 0x16a   :  { %1193 = vmatpush.bf16.msra.mxu2 %v5747_v34  ;;  %1206 = vmatpush.bf16.msra.mxu3 %v5749_v35  ;;  %v5165_v34 = vld [vmem:[%s8084_s3 + $0x174] sm:$0xf0]  ;;  %v5164_v35 = vld [vmem:[%s8084_s3 + $0x174] sm:$0xf] }
 0x16b   :  { %v5982_v60 = vor.u32 %v5165_v34, %v4536_v25  ;;  %v4490_v25 = vld [vmem:[%s8084_s3 + $0x118] sm:$0xf0] }
 0x16c   :  { %v6113_v34 = vor.u32 %v5152_v20, %v4490_v25 }
 0x16d   :  { %1160 = vmatpush.bf16.msra.mxu0 %v5807_v55  ;;  %1173 = vmatpush.bf16.msra.mxu1 %v5809_v56 }
 0x16e   :  { %1194 = vmatpush.bf16.msra.mxu2 %v5767_v41  ;;  %1207 = vmatpush.bf16.msra.mxu3 %v5769_v42  ;;  %v4538_v41 = vld [vmem:[%s8084_s3 + $0x178] sm:$0xf0]  ;;  %v5975_v42 = vsel %vm437_vm0, %v743_v17, %v762_v26  ;;  %v745_v10 = vpop.f32.mrf.mxu2  ;;  %v758_v11 = vpop.f32.mrf.mxu3  ;;  %v5153_v17 = vld [vmem:[%s8084_s3 + $0x114] sm:$0xf0] }
 0x16f   :  { %v5984_v1 = vor.u32 %v5164_v35, %v4538_v41  ;;  %v6111_v26 = vor.u32 %v5153_v17, %v4488_v58  ;;  %v4480_v35 = vld [vmem:[%s8084_s3 + $0x100] sm:$0xf]  ;;  %v5151_v41 = vld [vmem:[%s8084_s3 + $0x104] sm:$0xf0]  ;;  %v1430_v58 = vpack.c.bf16 %v1429_v43, %v1429_v43 }
 0x171   :  { %1161 = vmatpush.bf16.msra.mxu0 %v5827_v61  ;;  %1174 = vmatpush.bf16.msra.mxu1 %v5829_v0 }
 0x172   :  { %1195 = vmatpush.bf16.msra.mxu2 %v5787_v45  ;;  %1208 = vmatpush.bf16.msra.mxu3 %v5789_v48  ;;  %v5162_v45 = vld [vmem:[%s8084_s3 + $0x164] sm:$0xf]  ;;  %v4530_v48 = vld [vmem:[%s8084_s3 + $0x168] sm:$0xf0] }
 0x173   :  { %v6006_v27 = vor.u32 %v5162_v45, %v4530_v48  ;;  %v6131_v48 = vor.u32 %v5151_v41, %v4480_v35 }
 0x175   :  { %1162 = vmatpush.bf16.msra.mxu0 %v5847_v5  ;;  %1175 = vmatpush.bf16.msra.mxu1 %v5849_v6  ;;  %v779_v47 = vpop.f32.mrf.mxu0  ;;  %v792_v21 = vpop.f32.mrf.mxu1 }
 0x176   :  { %1196 = vmatpush.bf16.msra.mxu2 %v5807_v55  ;;  %1209 = vmatpush.bf16.msra.mxu3 %v5809_v56  ;;  %v5161_v55 = vld [vmem:[%s8084_s3 + $0x154] sm:$0xf0]  ;;  %v5160_v56 = vld [vmem:[%s8084_s3 + $0x154] sm:$0xf]  ;;  %v798_v22 = vrot.slane %v792_v21, 4 }
 0x177   :  { %v6024_v36 = vor.u32 %v5161_v55, %v4520_v13  ;;  %v6026_v37 = vor.u32 %v5160_v56, %v4522_v14  ;;  %v1242_v13 = vpack.c.bf16 %v1241_v12, %v1241_v12  ;;  %v1357_v14 = vld [vmem:[#allocation2 + $0x8] sm:$0xf] }
 0x178   :  { %1163 = vmatmul.bf16.vlgmr.msra.gmra.mxu0 %v1153_v7  ;;  %1176 = vmatmul.bf16.vlgmr.msra.gmra.mxu1 %v1153_v7  ;;  %v799_v38 = vsel %vm437_vm0, %v779_v47, %v798_v22  ;;  %v6133_v7 = vor.u32 %v5150_v59, %v4482_v2  ;;  %v693_v2 = vadd.f32 %v5939_v19, %v6052_v63 }
 0x179   :  { %1324 = vmatpush.bf16.msrb.mxu0 %v5982_v60  ;;  %1337 = vmatpush.bf16.msrb.mxu1 %v5984_v1  ;;  %v6067_v39 = vadd.f32 %v799_v38, %v6052_v63 }
 0x17a   :  { %1197 = vmatpush.bf16.msra.mxu2 %v5827_v61  ;;  %1210 = vmatpush.bf16.msra.mxu3 %v5829_v0  ;;  %v5159_v61 = vld [vmem:[%s8084_s3 + $0x144] sm:$0xf0]  ;;  %v5158_v0 = vld [vmem:[%s8084_s3 + $0x144] sm:$0xf] }
 0x17b   :  { %v6044_v29 = vor.u32 %v5159_v61, %v4512_v28  ;;  %v6046_v32 = vor.u32 %v5158_v0, %v4514_v46  ;;  %v585_v28 = vadd.f32 %v5898_v15, %v6052_v63  ;;  %v1358_v61 = vpack.c.bf16 %v1357_v14, %v1357_v14 }
 0x17d   :  { %1325 = vmatpush.bf16.msrb.mxu0 %v6004_v23  ;;  %1338 = vmatpush.bf16.msrb.mxu1 %v6006_v27  ;;  %v781_v49 = vpop.f32.mrf.mxu0  ;;  %v794_v51 = vpop.f32.mrf.mxu1 }
 0x17e   :  { %1198 = vmatpush.bf16.msra.mxu2 %v5847_v5  ;;  %1211 = vmatpush.bf16.msra.mxu3 %v5849_v6  ;;  %v5157_v5 = vld [vmem:[%s8084_s3 + $0x134] sm:$0xf0]  ;;  %v5156_v6 = vld [vmem:[%s8084_s3 + $0x134] sm:$0xf]  ;;  %v657_v51 = vadd.f32 %v5920_v53, %v6052_v63 }
 0x17f   :  { %v6071_v8 = vor.u32 %v5157_v5, %v4504_v62  ;;  %v6073_v9 = vor.u32 %v5156_v6, %v4506_v33  ;;  %v621_v62 = vadd.f32 %v5917_v24, %v6052_v63  ;;  %v1393_v33 = vld [vmem:[#allocation2 + $0xe] sm:$0xf] }
 0x180   :  { %v1394_v24 = vpack.c.bf16 %v1393_v33, %v1393_v33 }
 0x181   :  { %1326 = vmatpush.bf16.msrb.mxu0 %v6024_v36  ;;  %1339 = vmatpush.bf16.msrb.mxu1 %v6026_v37 }
 0x182   :  { %1360 = vmatpush.bf16.msrb.mxu2 %v5982_v60  ;;  %1373 = vmatpush.bf16.msrb.mxu3 %v5984_v1 }
 0x183   :  { %1199 = vmatmul.bf16.vlgmr.msra.gmra.mxu2 %v1189_v52  ;;  %1212 = vmatmul.bf16.vlgmr.msra.gmra.mxu3 %v1189_v52 }
 0x185   :  { %1327 = vmatpush.bf16.msrb.mxu0 %v6044_v29  ;;  %1340 = vmatpush.bf16.msrb.mxu1 %v6046_v32 }
 0x186   :  { %1361 = vmatpush.bf16.msrb.mxu2 %v6004_v23  ;;  %1374 = vmatpush.bf16.msrb.mxu3 %v6006_v27  ;;  %v815_v3 = vpop.f32.mrf.mxu2  ;;  %v828_v4 = vpop.f32.mrf.mxu3 }
 0x187   :  { %v834_v45 = vrot.slane %v828_v4, 4 }
 0x189   :  { %1328 = vmatpush.bf16.msrb.mxu0 %v6071_v8  ;;  %1341 = vmatpush.bf16.msrb.mxu1 %v6073_v9  ;;  %v835_v10 = vsel %vm437_vm0, %v815_v3, %v834_v45  ;;  %v1465_v45 = vld [vmem:[#allocation2 + $0x26] sm:$0xf] }
 0x18a   :  { %1362 = vmatpush.bf16.msrb.mxu2 %v6024_v36  ;;  %1375 = vmatpush.bf16.msrb.mxu3 %v6026_v37  ;;  %v6139_v11 = vadd.f32 %v835_v10, %v6052_v63  ;;  %v1466_v19 = vpack.c.bf16 %v1465_v45, %v1465_v45 }
 0x18d   :  { %1329 = vmatpush.bf16.msrb.mxu0 %v6091_v54  ;;  %1342 = vmatpush.bf16.msrb.mxu1 %v6093_v57 }
 0x18e   :  { %1363 = vmatpush.bf16.msrb.mxu2 %v6044_v29  ;;  %1376 = vmatpush.bf16.msrb.mxu3 %v6046_v32  ;;  %v817_v55 = vpop.f32.mrf.mxu2  ;;  %v830_v56 = vpop.f32.mrf.mxu3 }
 0x191   :  { %1330 = vmatpush.bf16.msrb.mxu0 %v6111_v26  ;;  %1343 = vmatpush.bf16.msrb.mxu1 %v6113_v34 }
 0x192   :  { %1364 = vmatpush.bf16.msrb.mxu2 %v6071_v8  ;;  %1377 = vmatpush.bf16.msrb.mxu3 %v6073_v9 }
 0x195   :  { %1331 = vmatpush.bf16.msrb.mxu0 %v6131_v48  ;;  %1344 = vmatpush.bf16.msrb.mxu1 %v6133_v7  ;;  %v948_v30 = vpop.f32.mrf.mxu0  ;;  %v961_v31 = vpop.f32.mrf.mxu1 }
 0x196   :  { %1365 = vmatpush.bf16.msrb.mxu2 %v6091_v54  ;;  %1378 = vmatpush.bf16.msrb.mxu3 %v6093_v57  ;;  %v967_v16 = vrot.slane %v961_v31, 4 }
 0x198   :  { %1332 = vmatmul.bf16.vlgmr.msrb.gmra.mxu0 %v1242_v13  ;;  %1345 = vmatmul.bf16.vlgmr.msrb.gmra.mxu1 %v1242_v13  ;;  %v968_v0 = vsel %vm437_vm0, %v948_v30, %v967_v16  ;;  %v1501_v13 = vld [vmem:[#allocation2 + $0x2c] sm:$0xf]  ;;  %v729_v30 = vadd.f32 %v5946_v50, %v6052_v63 }
 0x199   :  { %1396 = vmatpush.bf16.msra.mxu0 %v5982_v60  ;;  %1409 = vmatpush.bf16.msra.mxu1 %v5984_v1  ;;  %v6160_v46 = vadd.f32 %v968_v0, %v585_v28  ;;  %v1502_v31 = vpack.c.bf16 %v1501_v13, %v1501_v13  ;;  %v5170_v13 = vld [vmem:[%s8084_s3 + $0x1a4] sm:$0xf] }
 0x19a   :  { %1366 = vmatpush.bf16.msrb.mxu2 %v6111_v26  ;;  %1379 = vmatpush.bf16.msrb.mxu3 %v6113_v34 }
 0x19d   :  { %1397 = vmatpush.bf16.msra.mxu0 %v6004_v23  ;;  %1410 = vmatpush.bf16.msra.mxu1 %v6006_v27  ;;  %v950_v15 = vpop.f32.mrf.mxu0  ;;  %v963_v47 = vpop.f32.mrf.mxu1 }
 0x19e   :  { %1367 = vmatpush.bf16.msrb.mxu2 %v6131_v48  ;;  %1380 = vmatpush.bf16.msrb.mxu3 %v6133_v7  ;;  %v1537_v47 = vld [vmem:[#allocation2 + $0x32] sm:$0xf] }
 0x1a1   :  { %1398 = vmatpush.bf16.msra.mxu0 %v6024_v36  ;;  %1411 = vmatpush.bf16.msra.mxu1 %v6026_v37 }
 0x1a2   :  { %1432 = vmatpush.bf16.msra.mxu2 %v5982_v60  ;;  %1445 = vmatpush.bf16.msra.mxu3 %v5984_v1 }
 0x1a3   :  { %1368 = vmatmul.bf16.vlgmr.msrb.gmra.mxu2 %v1358_v61  ;;  %1381 = vmatmul.bf16.vlgmr.msrb.gmra.mxu3 %v1358_v61 }
 0x1a5   :  { %1399 = vmatpush.bf16.msra.mxu0 %v6044_v29  ;;  %1412 = vmatpush.bf16.msra.mxu1 %v6046_v32 }
 0x1a6   :  { %1433 = vmatpush.bf16.msra.mxu2 %v6004_v23  ;;  %1446 = vmatpush.bf16.msra.mxu3 %v6006_v27  ;;  %v984_v21 = vpop.f32.mrf.mxu2  ;;  %v997_v22 = vpop.f32.mrf.mxu3 }
 0x1a7   :  { %v1003_v52 = vrot.slane %v997_v22, 4  ;;  %v5179_v22 = vld [vmem:[%s8084_s3 + $0x1e4] sm:$0xf0] }
 0x1a9   :  { %1400 = vmatpush.bf16.msra.mxu0 %v6071_v8  ;;  %1413 = vmatpush.bf16.msra.mxu1 %v6073_v9  ;;  %v1004_v5 = vsel %vm437_vm0, %v984_v21, %v1003_v52  ;;  %v4608_v21 = vld [vmem:[%s8084_s3 + $0x1e0] sm:$0xf]  ;;  %v1538_v52 = vpack.c.bf16 %v1537_v47, %v1537_v47 }
 0x1aa   :  { %1434 = vmatpush.bf16.msra.mxu2 %v6024_v36  ;;  %1447 = vmatpush.bf16.msra.mxu3 %v6026_v37  ;;  %v6181_v6 = vadd.f32 %v1004_v5, %v621_v62  ;;  %v6301_v33 = vor.u32 %v5179_v22, %v4608_v21 }
 0x1ad   :  { %1401 = vmatpush.bf16.msra.mxu0 %v6091_v54  ;;  %1414 = vmatpush.bf16.msra.mxu1 %v6093_v57 }
 0x1ae   :  { %1435 = vmatpush.bf16.msra.mxu2 %v6044_v29  ;;  %1448 = vmatpush.bf16.msra.mxu3 %v6046_v32  ;;  %v986_v38 = vpop.f32.mrf.mxu2  ;;  %v999_v40 = vpop.f32.mrf.mxu3 }
 0x1af   :  { %v4600_v38 = vld [vmem:[%s8084_s3 + $0x1d0] sm:$0xf]  ;;  %v4602_v40 = vld [vmem:[%s8084_s3 + $0x1d8] sm:$0xf0] }
 0x1b1   :  { %1402 = vmatpush.bf16.msra.mxu0 %v6111_v26  ;;  %1415 = vmatpush.bf16.msra.mxu1 %v6113_v34 }
 0x1b2   :  { %1436 = vmatpush.bf16.msra.mxu2 %v6071_v8  ;;  %1449 = vmatpush.bf16.msra.mxu3 %v6073_v9 }
 0x1b5   :  { %1403 = vmatpush.bf16.msra.mxu0 %v6131_v48  ;;  %1416 = vmatpush.bf16.msra.mxu1 %v6133_v7  ;;  %v1020_v18 = vpop.f32.mrf.mxu0  ;;  %v1033_v44 = vpop.f32.mrf.mxu1 }
 0x1b6   :  { %1437 = vmatpush.bf16.msra.mxu2 %v6091_v54  ;;  %1450 = vmatpush.bf16.msra.mxu3 %v6093_v57  ;;  %v1039_v49 = vrot.slane %v1033_v44, 4  ;;  %v1573_v44 = vld [vmem:[#allocation2 + $0x38] sm:$0xf] }
 0x1b8   :  { %1404 = vmatmul.bf16.vlgmr.msra.gmra.mxu0 %v1394_v24  ;;  %1417 = vmatmul.bf16.vlgmr.msra.gmra.mxu1 %v1394_v24  ;;  %v1040_v17 = vsel %vm437_vm0, %v1020_v18, %v1039_v49  ;;  %v4592_v49 = vld [vmem:[%s8084_s3 + $0x1c0] sm:$0xf] }
 0x1b9   :  { %1468 = vmatpush.bf16.msrb.mxu0 %v5982_v60  ;;  %1481 = vmatpush.bf16.msrb.mxu1 %v5984_v1  ;;  %v6202_v20 = vadd.f32 %v1040_v17, %v657_v51  ;;  %v5175_v51 = vld [vmem:[%s8084_s3 + $0x1c4] sm:$0xf0] }
 0x1ba   :  { %1438 = vmatpush.bf16.msra.mxu2 %v6111_v26  ;;  %1451 = vmatpush.bf16.msra.mxu3 %v6113_v34 }
 0x1bd   :  { %1469 = vmatpush.bf16.msrb.mxu0 %v6004_v23  ;;  %1482 = vmatpush.bf16.msrb.mxu1 %v6006_v27  ;;  %v1022_v53 = vpop.f32.mrf.mxu0  ;;  %v1035_v25 = vpop.f32.mrf.mxu1 }
 0x1be   :  { %1439 = vmatpush.bf16.msra.mxu2 %v6131_v48  ;;  %1452 = vmatpush.bf16.msra.mxu3 %v6133_v7  ;;  %v1574_v25 = vpack.c.bf16 %v1573_v44, %v1573_v44 }
 0x1c1   :  { %1470 = vmatpush.bf16.msrb.mxu0 %v6024_v36  ;;  %1483 = vmatpush.bf16.msrb.mxu1 %v6026_v37 }
 0x1c2   :  { %1504 = vmatpush.bf16.msrb.mxu2 %v5982_v60  ;;  %1517 = vmatpush.bf16.msrb.mxu3 %v5984_v1 }
 0x1c3   :  { %1440 = vmatmul.bf16.vlgmr.msra.gmra.mxu2 %v1430_v58  ;;  %1453 = vmatmul.bf16.vlgmr.msra.gmra.mxu3 %v1430_v58 }
 0x1c5   :  { %1471 = vmatpush.bf16.msrb.mxu0 %v6044_v29  ;;  %1484 = vmatpush.bf16.msrb.mxu1 %v6046_v32 }
 0x1c6   :  { %1505 = vmatpush.bf16.msrb.mxu2 %v6004_v23  ;;  %1518 = vmatpush.bf16.msrb.mxu3 %v6006_v27  ;;  %v1056_v35 = vpop.f32.mrf.mxu2  ;;  %v1069_v41 = vpop.f32.mrf.mxu3 }
 0x1c7   :  { %v1075_v59 = vrot.slane %v1069_v41, 4 }
 0x1c9   :  { %1472 = vmatpush.bf16.msrb.mxu0 %v6071_v8  ;;  %1485 = vmatpush.bf16.msrb.mxu1 %v6073_v9  ;;  %v1076_v3 = vsel %vm437_vm0, %v1056_v35, %v1075_v59  ;;  %v6341_v35 = vor.u32 %v5175_v51, %v4592_v49  ;;  %v4584_v59 = vld [vmem:[%s8084_s3 + $0x1b0] sm:$0xf] }
 0x1ca   :  { %1506 = vmatpush.bf16.msrb.mxu2 %v6024_v36  ;;  %1519 = vmatpush.bf16.msrb.mxu3 %v6026_v37  ;;  %v6223_v4 = vadd.f32 %v1076_v3, %v693_v2  ;;  %v5172_v2 = vld [vmem:[%s8084_s3 + $0x1b4] sm:$0xf]  ;;  %v4586_v3 = vld [vmem:[%s8084_s3 + $0x1b8] sm:$0xf0] }
 0x1cd   :  { %1473 = vmatpush.bf16.msrb.mxu0 %v6091_v54  ;;  %1486 = vmatpush.bf16.msrb.mxu1 %v6093_v57 }
 0x1ce   :  { %1507 = vmatpush.bf16.msrb.mxu2 %v6044_v29  ;;  %1520 = vmatpush.bf16.msrb.mxu3 %v6046_v32  ;;  %v1058_v10 = vpop.f32.mrf.mxu2  ;;  %v1071_v12 = vpop.f32.mrf.mxu3 }
 0x1cf   :  { %v6367_v10 = vor.u32 %v5172_v2, %v4586_v3  ;;  %v4576_v12 = vld [vmem:[%s8084_s3 + $0x1a0] sm:$0xf] }
 0x1d1   :  { %1474 = vmatpush.bf16.msrb.mxu0 %v6111_v26  ;;  %1487 = vmatpush.bf16.msrb.mxu1 %v6113_v34 }
 0x1d2   :  { %1508 = vmatpush.bf16.msrb.mxu2 %v6071_v8  ;;  %1521 = vmatpush.bf16.msrb.mxu3 %v6073_v9 }
 0x1d5   :  { %1475 = vmatpush.bf16.msrb.mxu0 %v6131_v48  ;;  %1488 = vmatpush.bf16.msrb.mxu1 %v6133_v7  ;;  %v1092_v55 = vpop.f32.mrf.mxu0  ;;  %v1105_v56 = vpop.f32.mrf.mxu1 }
 0x1d6   :  { %1509 = vmatpush.bf16.msrb.mxu2 %v6091_v54  ;;  %1522 = vmatpush.bf16.msrb.mxu3 %v6093_v57  ;;  %v1111_v14 = vrot.slane %v1105_v56, 4 }
 0x1d8   :  { %1476 = vmatmul.bf16.vlgmr.msrb.gmra.mxu0 %v1466_v19  ;;  %1489 = vmatmul.bf16.vlgmr.msrb.gmra.mxu1 %v1466_v19  ;;  %v1112_v16 = vsel %vm437_vm0, %v1092_v55, %v1111_v14  ;;  %v4578_v55 = vld [vmem:[%s8084_s3 + $0x1a8] sm:$0xf0] }
 0x1d9   :  { %1540 = vmatpush.bf16.msra.mxu0 %v5982_v60  ;;  %1553 = vmatpush.bf16.msra.mxu1 %v5984_v1  ;;  %v6244_v28 = vadd.f32 %v1112_v16, %v729_v30  ;;  %v4568_v16 = vld [vmem:[%s8084_s3 + $0x190] sm:$0xf] }
 0x1da   :  { %1510 = vmatpush.bf16.msrb.mxu2 %v6111_v26  ;;  %1523 = vmatpush.bf16.msrb.mxu3 %v6113_v34 }
 0x1dd   :  { %1541 = vmatpush.bf16.msra.mxu0 %v6004_v23  ;;  %1554 = vmatpush.bf16.msra.mxu1 %v6006_v27  ;;  %v1094_v50 = vpop.f32.mrf.mxu0  ;;  %v1107_v61 = vpop.f32.mrf.mxu1 }
 0x1de   :  { %1511 = vmatpush.bf16.msrb.mxu2 %v6131_v48  ;;  %1524 = vmatpush.bf16.msrb.mxu3 %v6133_v7  ;;  %v5169_v50 = vld [vmem:[%s8084_s3 + $0x194] sm:$0xf0]  ;;  %v5168_v61 = vld [vmem:[%s8084_s3 + $0x194] sm:$0xf] }
 0x1e1   :  { %1542 = vmatpush.bf16.msra.mxu0 %v6024_v36  ;;  %1555 = vmatpush.bf16.msra.mxu1 %v6026_v37 }
 0x1e2   :  { %1576 = vmatpush.bf16.msra.mxu2 %v5982_v60  ;;  %1589 = vmatpush.bf16.msra.mxu3 %v5984_v1 }
 0x1e3   :  { %1512 = vmatmul.bf16.vlgmr.msrb.gmra.mxu2 %v1502_v31  ;;  %1525 = vmatmul.bf16.vlgmr.msrb.gmra.mxu3 %v1502_v31  ;;  %v6387_v31 = vor.u32 %v5170_v13, %v4578_v55 }
 0x1e5   :  { %1543 = vmatpush.bf16.msra.mxu0 %v6044_v29  ;;  %1556 = vmatpush.bf16.msra.mxu1 %v6046_v32 }
 0x1e6   :  { %1577 = vmatpush.bf16.msra.mxu2 %v6004_v23  ;;  %1590 = vmatpush.bf16.msra.mxu3 %v6006_v27  ;;  %v1128_v60 = vpop.f32.mrf.mxu2  ;;  %v1141_v1 = vpop.f32.mrf.mxu3  ;;  %v4616_v27 = vld [vmem:[%s8084_s3 + $0x1f0] sm:$0xf] }
 0x1e7   :  { %v1147_v23 = vrot.slane %v1141_v1, 4  ;;  %v6405_v1 = vor.u32 %v5169_v50, %v4568_v16 }
 0x1e9   :  { %1544 = vmatpush.bf16.msra.mxu0 %v6071_v8  ;;  %1557 = vmatpush.bf16.msra.mxu1 %v6073_v9  ;;  %v1148_v0 = vsel %vm437_vm0, %v1128_v60, %v1147_v23  ;;  %v4570_v60 = vld [vmem:[%s8084_s3 + $0x198] sm:$0xf0] }
 0x1ea   :  { %1578 = vmatpush.bf16.msra.mxu2 %v6024_v36  ;;  %1591 = vmatpush.bf16.msra.mxu3 %v6026_v37  ;;  %v765_v36 = vadd.f32 %v5975_v42, %v6052_v63  ;;  %v5181_v37 = vld [vmem:[%s8084_s3 + $0x1f4] sm:$0xf0]  ;;  %v6407_v23 = vor.u32 %v5168_v61, %v4570_v60 }
 0x1eb   :  { %v6279_v63 = vor.u32 %v5181_v37, %v4616_v27  ;;  %v4560_v27 = vld [vmem:[%s8084_s3 + $0x180] sm:$0xf] }
 0x1ec   :  { %v6277_v42 = vadd.f32 %v1148_v0, %v765_v36  ;;  %v4562_v0 = vld [vmem:[%s8084_s3 + $0x188] sm:$0xf0] }
 0x1ed   :  { %1545 = vmatpush.bf16.msra.mxu0 %v6091_v54  ;;  %1558 = vmatpush.bf16.msra.mxu1 %v6093_v57 }
 0x1ee   :  { %1579 = vmatpush.bf16.msra.mxu2 %v6044_v29  ;;  %1592 = vmatpush.bf16.msra.mxu3 %v6046_v32  ;;  %v5180_v29 = vld [vmem:[%s8084_s3 + $0x1f4] sm:$0xf]  ;;  %v4618_v32 = vld [vmem:[%s8084_s3 + $0x1f8] sm:$0xf0]  ;;  %v1130_v62 = vpop.f32.mrf.mxu2  ;;  %v1143_v5 = vpop.f32.mrf.mxu3 }
 0x1ef   :  { %v6281_v15 = vor.u32 %v5180_v29, %v4618_v32  ;;  %v5167_v29 = vld [vmem:[%s8084_s3 + $0x184] sm:$0xf0]  ;;  %v5166_v32 = vld [vmem:[%s8084_s3 + $0x184] sm:$0xf] }
 0x1f0   :  { %v6426_v22 = vor.u32 %v5167_v29, %v4560_v27 }
 0x1f1   :  { %1546 = vmatpush.bf16.msra.mxu0 %v6111_v26  ;;  %1559 = vmatpush.bf16.msra.mxu1 %v6113_v34 }
 0x1f2   :  { %1580 = vmatpush.bf16.msra.mxu2 %v6071_v8  ;;  %1593 = vmatpush.bf16.msra.mxu3 %v6073_v9  ;;  %v5178_v8 = vld [vmem:[%s8084_s3 + $0x1e4] sm:$0xf]  ;;  %v4610_v9 = vld [vmem:[%s8084_s3 + $0x1e8] sm:$0xf0] }
 0x1f3   :  { %v6303_v24 = vor.u32 %v5178_v8, %v4610_v9  ;;  %v6428_v8 = vor.u32 %v5166_v32, %v4562_v0 }
 0x1f5   :  { %1547 = vmatpush.bf16.msra.mxu0 %v6131_v48  ;;  %1560 = vmatpush.bf16.msra.mxu1 %v6133_v7  ;;  %v1164_v58 = vpop.f32.mrf.mxu0  ;;  %v1177_v17 = vpop.f32.mrf.mxu1 }
 0x1f6   :  { %1581 = vmatpush.bf16.msra.mxu2 %v6091_v54  ;;  %1594 = vmatpush.bf16.msra.mxu3 %v6093_v57  ;;  %v5177_v54 = vld [vmem:[%s8084_s3 + $0x1d4] sm:$0xf0]  ;;  %v5176_v57 = vld [vmem:[%s8084_s3 + $0x1d4] sm:$0xf]  ;;  %v1183_v53 = vrot.slane %v1177_v17, 4 }
 0x1f7   :  { %v6321_v43 = vor.u32 %v5177_v54, %v4600_v38  ;;  %v6323_v18 = vor.u32 %v5176_v57, %v4602_v40 }
 0x1f8   :  { %1548 = vmatmul.bf16.vlgmr.msra.gmra.mxu0 %v1538_v52  ;;  %1561 = vmatmul.bf16.vlgmr.msra.gmra.mxu1 %v1538_v52  ;;  %v1626_v52 = vld [vmem:[#allocation2 + $0x6] sm:$0xf] }
 0x1f9   :  { %1709 = vmatpush.bf16.msrb.mxu0 %v6279_v63  ;;  %1722 = vmatpush.bf16.msrb.mxu1 %v6281_v15  ;;  %v1627_v62 = vpack.c.bf16 %v1626_v52, %v1626_v52 }
 0x1fa   :  { %1582 = vmatpush.bf16.msra.mxu2 %v6111_v26  ;;  %1595 = vmatpush.bf16.msra.mxu3 %v6113_v34  ;;  %v5174_v26 = vld [vmem:[%s8084_s3 + $0x1c4] sm:$0xf]  ;;  %v4594_v34 = vld [vmem:[%s8084_s3 + $0x1c8] sm:$0xf0] }
 0x1fb   :  { %v6343_v41 = vor.u32 %v5174_v26, %v4594_v34 }
 0x1fd   :  { %1710 = vmatpush.bf16.msrb.mxu0 %v6301_v33  ;;  %1723 = vmatpush.bf16.msrb.mxu1 %v6303_v24  ;;  %v1166_v56 = vpop.f32.mrf.mxu0  ;;  %v1179_v14 = vpop.f32.mrf.mxu1 }
 0x1fe   :  { %1583 = vmatpush.bf16.msra.mxu2 %v6131_v48  ;;  %1596 = vmatpush.bf16.msra.mxu3 %v6133_v7  ;;  %v1184_v48 = vsel %vm437_vm0, %v1164_v58, %v1183_v53  ;;  %v5173_v7 = vld [vmem:[%s8084_s3 + $0x1b4] sm:$0xf0] }
 0x1ff   :  { %v6361_v45 = vadd.f32 %v1184_v48, %v6067_v39  ;;  %v6365_v19 = vor.u32 %v5173_v7, %v4584_v59  ;;  %v5171_v39 = vld [vmem:[%s8084_s3 + $0x1a4] sm:$0xf0]  ;;  %v1778_v59 = vld [vmem:[#allocation2 + $0x12] sm:$0xf] }
 0x200   :  { %v6385_v30 = vor.u32 %v5171_v39, %v4576_v12  ;;  %v1779_v48 = vpack.c.bf16 %v1778_v59, %v1778_v59 }
 0x201   :  { %1711 = vmatpush.bf16.msrb.mxu0 %v6321_v43  ;;  %1724 = vmatpush.bf16.msrb.mxu1 %v6323_v18 }
 0x202   :  { %1745 = vmatpush.bf16.msrb.mxu2 %v6279_v63  ;;  %1758 = vmatpush.bf16.msrb.mxu3 %v6281_v15 }
 0x203   :  { %1584 = vmatmul.bf16.vlgmr.msra.gmra.mxu2 %v1574_v25  ;;  %1597 = vmatmul.bf16.vlgmr.msra.gmra.mxu3 %v1574_v25 }
 0x205   :  { %1712 = vmatpush.bf16.msrb.mxu0 %v6341_v35  ;;  %1725 = vmatpush.bf16.msrb.mxu1 %v6343_v41 }
 0x206   :  { %1746 = vmatpush.bf16.msrb.mxu2 %v6301_v33  ;;  %1759 = vmatpush.bf16.msrb.mxu3 %v6303_v24  ;;  %v1200_v36 = vpop.f32.mrf.mxu2  ;;  %v1213_v37 = vpop.f32.mrf.mxu3 }
 0x207   :  { %v1219_v47 = vrot.slane %v1213_v37, 4 }
 0x209   :  { %1713 = vmatpush.bf16.msrb.mxu0 %v6365_v19  ;;  %1726 = vmatpush.bf16.msrb.mxu1 %v6367_v10  ;;  %v1220_v21 = vsel %vm437_vm0, %v1200_v36, %v1219_v47  ;;  %v1850_v36 = vld [vmem:[#allocation2 + $0x2a] sm:$0xf] }
 0x20a   :  { %1747 = vmatpush.bf16.msrb.mxu2 %v6321_v43  ;;  %1760 = vmatpush.bf16.msrb.mxu3 %v6323_v18  ;;  %v6433_v9 = vadd.f32 %v1220_v21, %v6139_v11  ;;  %v1742_v11 = vld [vmem:[#allocation2 + $0xc] sm:$0xf]  ;;  %v1851_v37 = vpack.c.bf16 %v1850_v36, %v1850_v36 }
 0x20b   :  { %v1743_v44 = vpack.c.bf16 %v1742_v11, %v1742_v11 }
 0x20d   :  { %1714 = vmatpush.bf16.msrb.mxu0 %v6385_v30  ;;  %1727 = vmatpush.bf16.msrb.mxu1 %v6387_v31 }
 0x20e   :  { %1748 = vmatpush.bf16.msrb.mxu2 %v6341_v35  ;;  %1761 = vmatpush.bf16.msrb.mxu3 %v6343_v41  ;;  %v1202_v5 = vpop.f32.mrf.mxu2  ;;  %v1215_v38 = vpop.f32.mrf.mxu3 }
 0x211   :  { %1715 = vmatpush.bf16.msrb.mxu0 %v6405_v1  ;;  %1728 = vmatpush.bf16.msrb.mxu1 %v6407_v23 }
 0x212   :  { %1749 = vmatpush.bf16.msrb.mxu2 %v6365_v19  ;;  %1762 = vmatpush.bf16.msrb.mxu3 %v6367_v10 }
 0x215   :  { %1716 = vmatpush.bf16.msrb.mxu0 %v6426_v22  ;;  %1729 = vmatpush.bf16.msrb.mxu1 %v6428_v8  ;;  %v1333_v54 = vpop.f32.mrf.mxu0  ;;  %v1346_v57 = vpop.f32.mrf.mxu1 }
 0x216   :  { %1750 = vmatpush.bf16.msrb.mxu2 %v6385_v30  ;;  %1763 = vmatpush.bf16.msrb.mxu3 %v6387_v31  ;;  %v1352_v40 = vrot.slane %v1346_v57, 4 }
 0x218   :  { %1717 = vmatmul.bf16.vlgmr.msrb.gmra.mxu0 %v1627_v62  ;;  %1730 = vmatmul.bf16.vlgmr.msrb.gmra.mxu1 %v1627_v62  ;;  %v1353_v49 = vsel %vm437_vm0, %v1333_v54, %v1352_v40  ;;  %v1922_v40 = vld [vmem:[#allocation2 + $0x36] sm:$0xf] }
 0x219   :  { %1781 = vmatpush.bf16.msra.mxu0 %v6279_v63  ;;  %1794 = vmatpush.bf16.msra.mxu1 %v6281_v15  ;;  %v6453_v51 = vadd.f32 %v1353_v49, %v6160_v46  ;;  %v5195_v49 = vld [vmem:[%s8084_s3 + $0x264] sm:$0xf0] }
 0x21a   :  { %1751 = vmatpush.bf16.msrb.mxu2 %v6405_v1  ;;  %1764 = vmatpush.bf16.msrb.mxu3 %v6407_v23 }
 0x21d   :  { %1782 = vmatpush.bf16.msra.mxu0 %v6301_v33  ;;  %1795 = vmatpush.bf16.msra.mxu1 %v6303_v24  ;;  %v1335_v26 = vpop.f32.mrf.mxu0  ;;  %v1348_v34 = vpop.f32.mrf.mxu1 }
 0x21e   :  { %1752 = vmatpush.bf16.msrb.mxu2 %v6426_v22  ;;  %1765 = vmatpush.bf16.msrb.mxu3 %v6428_v8 }
 0x221   :  { %1783 = vmatpush.bf16.msra.mxu0 %v6321_v43  ;;  %1796 = vmatpush.bf16.msra.mxu1 %v6323_v18 }
 0x222   :  { %1817 = vmatpush.bf16.msra.mxu2 %v6279_v63  ;;  %1830 = vmatpush.bf16.msra.mxu3 %v6281_v15 }
 0x223   :  { %1753 = vmatmul.bf16.vlgmr.msrb.gmra.mxu2 %v1743_v44  ;;  %1766 = vmatmul.bf16.vlgmr.msrb.gmra.mxu3 %v1743_v44  ;;  %v4688_v44 = vld [vmem:[%s8084_s3 + $0x260] sm:$0xf] }
 0x225   :  { %1784 = vmatpush.bf16.msra.mxu0 %v6341_v35  ;;  %1797 = vmatpush.bf16.msra.mxu1 %v6343_v41 }
 0x226   :  { %1818 = vmatpush.bf16.msra.mxu2 %v6301_v33  ;;  %1831 = vmatpush.bf16.msra.mxu3 %v6303_v24  ;;  %v1369_v46 = vpop.f32.mrf.mxu2  ;;  %v1382_v58 = vpop.f32.mrf.mxu3 }
 0x227   :  { %v1388_v17 = vrot.slane %v1382_v58, 4 }
 0x229   :  { %1785 = vmatpush.bf16.msra.mxu0 %v6365_v19  ;;  %1798 = vmatpush.bf16.msra.mxu1 %v6367_v10  ;;  %v1389_v53 = vsel %vm437_vm0, %v1369_v46, %v1388_v17  ;;  %v6589_v46 = vor.u32 %v5195_v49, %v4688_v44  ;;  %v4680_v17 = vld [vmem:[%s8084_s3 + $0x250] sm:$0xf] }
 0x22a   :  { %1819 = vmatpush.bf16.msra.mxu2 %v6321_v43  ;;  %1832 = vmatpush.bf16.msra.mxu3 %v6323_v18  ;;  %v6473_v25 = vadd.f32 %v1389_v53, %v6181_v6  ;;  %v1814_v6 = vld [vmem:[#allocation2 + $0x18] sm:$0xf]  ;;  %v4682_v53 = vld [vmem:[%s8084_s3 + $0x258] sm:$0xf0] }
 0x22b   :  { %v1815_v13 = vpack.c.bf16 %v1814_v6, %v1814_v6  ;;  %v5191_v6 = vld [vmem:[%s8084_s3 + $0x244] sm:$0xf0] }
 0x22d   :  { %1786 = vmatpush.bf16.msra.mxu0 %v6385_v30  ;;  %1799 = vmatpush.bf16.msra.mxu1 %v6387_v31 }
 0x22e   :  { %1820 = vmatpush.bf16.msra.mxu2 %v6341_v35  ;;  %1833 = vmatpush.bf16.msra.mxu3 %v6343_v41  ;;  %v1371_v7 = vpop.f32.mrf.mxu2  ;;  %v1384_v2 = vpop.f32.mrf.mxu3 }
 0x22f   :  { %v1958_v7 = vld [vmem:[#allocation2 + $0x3c] sm:$0xf]  ;;  %v4672_v2 = vld [vmem:[%s8084_s3 + $0x240] sm:$0xf] }
 0x231   :  { %1787 = vmatpush.bf16.msra.mxu0 %v6405_v1  ;;  %1800 = vmatpush.bf16.msra.mxu1 %v6407_v23 }
 0x232   :  { %1821 = vmatpush.bf16.msra.mxu2 %v6365_v19  ;;  %1834 = vmatpush.bf16.msra.mxu3 %v6367_v10 }
 0x235   :  { %1788 = vmatpush.bf16.msra.mxu0 %v6426_v22  ;;  %1801 = vmatpush.bf16.msra.mxu1 %v6428_v8  ;;  %v1405_v3 = vpop.f32.mrf.mxu0  ;;  %v1418_v12 = vpop.f32.mrf.mxu1 }
 0x236   :  { %1822 = vmatpush.bf16.msra.mxu2 %v6385_v30  ;;  %1835 = vmatpush.bf16.msra.mxu3 %v6387_v31  ;;  %v1424_v39 = vrot.slane %v1418_v12, 4 }
 0x238   :  { %1789 = vmatmul.bf16.vlgmr.msra.gmra.mxu0 %v1779_v48  ;;  %1802 = vmatmul.bf16.vlgmr.msra.gmra.mxu1 %v1779_v48  ;;  %v1425_v55 = vsel %vm437_vm0, %v1405_v3, %v1424_v39 }
 0x239   :  { %1853 = vmatpush.bf16.msrb.mxu0 %v6279_v63  ;;  %1866 = vmatpush.bf16.msrb.mxu1 %v6281_v15  ;;  %v6493_v56 = vadd.f32 %v1425_v55, %v6202_v20  ;;  %v6629_v55 = vor.u32 %v5191_v6, %v4672_v2 }
 0x23a   :  { %1823 = vmatpush.bf16.msra.mxu2 %v6405_v1  ;;  %1836 = vmatpush.bf16.msra.mxu3 %v6407_v23 }
 0x23d   :  { %1854 = vmatpush.bf16.msrb.mxu0 %v6301_v33  ;;  %1867 = vmatpush.bf16.msrb.mxu1 %v6303_v24  ;;  %v1407_v14 = vpop.f32.mrf.mxu0  ;;  %v1420_v16 = vpop.f32.mrf.mxu1 }
 0x23e   :  { %1824 = vmatpush.bf16.msra.mxu2 %v6426_v22  ;;  %1837 = vmatpush.bf16.msra.mxu3 %v6428_v8  ;;  %v4664_v16 = vld [vmem:[%s8084_s3 + $0x230] sm:$0xf] }
 0x241   :  { %1855 = vmatpush.bf16.msrb.mxu0 %v6321_v43  ;;  %1868 = vmatpush.bf16.msrb.mxu1 %v6323_v18 }
 0x242   :  { %1889 = vmatpush.bf16.msrb.mxu2 %v6279_v63  ;;  %1902 = vmatpush.bf16.msrb.mxu3 %v6281_v15 }
 0x243   :  { %1825 = vmatmul.bf16.vlgmr.msra.gmra.mxu2 %v1815_v13  ;;  %1838 = vmatmul.bf16.vlgmr.msra.gmra.mxu3 %v1815_v13  ;;  %v1959_v13 = vpack.c.bf16 %v1958_v7, %v1958_v7 }
 0x245   :  { %1856 = vmatpush.bf16.msrb.mxu0 %v6341_v35  ;;  %1869 = vmatpush.bf16.msrb.mxu1 %v6343_v41 }
 0x246   :  { %1890 = vmatpush.bf16.msrb.mxu2 %v6301_v33  ;;  %1903 = vmatpush.bf16.msrb.mxu3 %v6303_v24  ;;  %v1441_v20 = vpop.f32.mrf.mxu2  ;;  %v1454_v50 = vpop.f32.mrf.mxu3 }
 0x247   :  { %v1460_v61 = vrot.slane %v1454_v50, 4  ;;  %v4666_v50 = vld [vmem:[%s8084_s3 + $0x238] sm:$0xf0] }
 0x249   :  { %1857 = vmatpush.bf16.msrb.mxu0 %v6365_v19  ;;  %1870 = vmatpush.bf16.msrb.mxu1 %v6367_v10  ;;  %v1461_v60 = vsel %vm437_vm0, %v1441_v20, %v1460_v61  ;;  %v5188_v20 = vld [vmem:[%s8084_s3 + $0x234] sm:$0xf] }
 0x24a   :  { %1891 = vmatpush.bf16.msrb.mxu2 %v6321_v43  ;;  %1904 = vmatpush.bf16.msrb.mxu3 %v6323_v18  ;;  %v6513_v27 = vadd.f32 %v1461_v60, %v6223_v4  ;;  %v1886_v4 = vld [vmem:[#allocation2 + $0x30] sm:$0xf]  ;;  %v6655_v36 = vor.u32 %v5188_v20, %v4666_v50 }
 0x24b   :  { %v1887_v52 = vpack.c.bf16 %v1886_v4, %v1886_v4 }
 0x24d   :  { %1858 = vmatpush.bf16.msrb.mxu0 %v6385_v30  ;;  %1871 = vmatpush.bf16.msrb.mxu1 %v6387_v31 }
 0x24e   :  { %1892 = vmatpush.bf16.msrb.mxu2 %v6341_v35  ;;  %1905 = vmatpush.bf16.msrb.mxu3 %v6343_v41  ;;  %v1443_v29 = vpop.f32.mrf.mxu2  ;;  %v1456_v32 = vpop.f32.mrf.mxu3 }
 0x24f   :  { %v5186_v29 = vld [vmem:[%s8084_s3 + $0x224] sm:$0xf]  ;;  %v4658_v32 = vld [vmem:[%s8084_s3 + $0x228] sm:$0xf0] }
 0x251   :  { %1859 = vmatpush.bf16.msrb.mxu0 %v6405_v1  ;;  %1872 = vmatpush.bf16.msrb.mxu1 %v6407_v23 }
 0x252   :  { %1893 = vmatpush.bf16.msrb.mxu2 %v6365_v19  ;;  %1906 = vmatpush.bf16.msrb.mxu3 %v6367_v10 }
 0x255   :  { %1860 = vmatpush.bf16.msrb.mxu0 %v6426_v22  ;;  %1873 = vmatpush.bf16.msrb.mxu1 %v6428_v8  ;;  %v1477_v0 = vpop.f32.mrf.mxu0  ;;  %v1490_v47 = vpop.f32.mrf.mxu1 }
 0x256   :  { %1894 = vmatpush.bf16.msrb.mxu2 %v6385_v30  ;;  %1907 = vmatpush.bf16.msrb.mxu3 %v6387_v31  ;;  %v1496_v21 = vrot.slane %v1490_v47, 4 }
 0x258   :  { %1861 = vmatmul.bf16.vlgmr.msrb.gmra.mxu0 %v1851_v37  ;;  %1874 = vmatmul.bf16.vlgmr.msrb.gmra.mxu1 %v1851_v37  ;;  %v1497_v62 = vsel %vm437_vm0, %v1477_v0, %v1496_v21  ;;  %v4656_v37 = vld [vmem:[%s8084_s3 + $0x220] sm:$0xf]  ;;  %v6675_v21 = vor.u32 %v5186_v29, %v4658_v32 }
 0x259   :  { %1925 = vmatpush.bf16.msra.mxu0 %v6279_v63  ;;  %1938 = vmatpush.bf16.msra.mxu1 %v6281_v15  ;;  %v6533_v5 = vadd.f32 %v1497_v62, %v6244_v28  ;;  %v5185_v62 = vld [vmem:[%s8084_s3 + $0x214] sm:$0xf0] }
 0x25a   :  { %1895 = vmatpush.bf16.msrb.mxu2 %v6405_v1  ;;  %1908 = vmatpush.bf16.msrb.mxu3 %v6407_v23 }
 0x25d   :  { %1926 = vmatpush.bf16.msra.mxu0 %v6301_v33  ;;  %1939 = vmatpush.bf16.msra.mxu1 %v6303_v24  ;;  %v1479_v38 = vpop.f32.mrf.mxu0  ;;  %v1492_v11 = vpop.f32.mrf.mxu1 }
 0x25e   :  { %1896 = vmatpush.bf16.msrb.mxu2 %v6426_v22  ;;  %1909 = vmatpush.bf16.msrb.mxu3 %v6428_v8  ;;  %v5184_v38 = vld [vmem:[%s8084_s3 + $0x214] sm:$0xf]  ;;  %v4650_v11 = vld [vmem:[%s8084_s3 + $0x218] sm:$0xf0] }
 0x261   :  { %1927 = vmatpush.bf16.msra.mxu0 %v6321_v43  ;;  %1940 = vmatpush.bf16.msra.mxu1 %v6323_v18 }
 0x262   :  { %1961 = vmatpush.bf16.msra.mxu2 %v6279_v63  ;;  %1974 = vmatpush.bf16.msra.mxu3 %v6281_v15 }
 0x263   :  { %1897 = vmatmul.bf16.vlgmr.msrb.gmra.mxu2 %v1887_v52  ;;  %1910 = vmatmul.bf16.vlgmr.msrb.gmra.mxu3 %v1887_v52  ;;  %v4648_v52 = vld [vmem:[%s8084_s3 + $0x210] sm:$0xf] }
 0x265   :  { %1928 = vmatpush.bf16.msra.mxu0 %v6341_v35  ;;  %1941 = vmatpush.bf16.msra.mxu1 %v6343_v41 }
 0x266   :  { %1962 = vmatpush.bf16.msra.mxu2 %v6301_v33  ;;  %1975 = vmatpush.bf16.msra.mxu3 %v6303_v24  ;;  %v1513_v28 = vpop.f32.mrf.mxu2  ;;  %v1526_v63 = vpop.f32.mrf.mxu3  ;;  %v4696_v33 = vld [vmem:[%s8084_s3 + $0x270] sm:$0xf]  ;;  %v5197_v24 = vld [vmem:[%s8084_s3 + $0x274] sm:$0xf0] }
 0x267   :  { %v1532_v15 = vrot.slane %v1526_v63, 4  ;;  %v6567_v54 = vor.u32 %v5197_v24, %v4696_v33  ;;  %v6695_v63 = vor.u32 %v5184_v38, %v4650_v11 }
 0x269   :  { %1929 = vmatpush.bf16.msra.mxu0 %v6365_v19  ;;  %1942 = vmatpush.bf16.msra.mxu1 %v6367_v10 }
 0x26a   :  { %1963 = vmatpush.bf16.msra.mxu2 %v6321_v43  ;;  %1976 = vmatpush.bf16.msra.mxu3 %v6323_v18  ;;  %v5196_v43 = vld [vmem:[%s8084_s3 + $0x274] sm:$0xf]  ;;  %v4698_v18 = vld [vmem:[%s8084_s3 + $0x278] sm:$0xf0] }
 0x26b   :  { %v6569_v57 = vor.u32 %v5196_v43, %v4698_v18  ;;  %v5183_v43 = vld [vmem:[%s8084_s3 + $0x204] sm:$0xf0]  ;;  %v5182_v18 = vld [vmem:[%s8084_s3 + $0x204] sm:$0xf] }
 0x26d   :  { %1930 = vmatpush.bf16.msra.mxu0 %v6385_v30  ;;  %1943 = vmatpush.bf16.msra.mxu1 %v6387_v31 }
 0x26e   :  { %1964 = vmatpush.bf16.msra.mxu2 %v6341_v35  ;;  %1977 = vmatpush.bf16.msra.mxu3 %v6343_v41  ;;  %v1533_v35 = vsel %vm437_vm0, %v1513_v28, %v1532_v15  ;;  %v1515_v26 = vpop.f32.mrf.mxu2  ;;  %v1528_v34 = vpop.f32.mrf.mxu3  ;;  %v6693_v28 = vor.u32 %v5185_v62, %v4648_v52  ;;  %v4640_v15 = vld [vmem:[%s8084_s3 + $0x200] sm:$0xf] }
 0x26f   :  { %v6565_v41 = vadd.f32 %v1533_v35, %v6277_v42  ;;  %v4690_v42 = vld [vmem:[%s8084_s3 + $0x268] sm:$0xf0]  ;;  %v6714_v49 = vor.u32 %v5183_v43, %v4640_v15 }
 0x270   :  { %v4642_v35 = vld [vmem:[%s8084_s3 + $0x208] sm:$0xf0] }
 0x271   :  { %1931 = vmatpush.bf16.msra.mxu0 %v6405_v1  ;;  %1944 = vmatpush.bf16.msra.mxu1 %v6407_v23 }
 0x272   :  { %1965 = vmatpush.bf16.msra.mxu2 %v6365_v19  ;;  %1978 = vmatpush.bf16.msra.mxu3 %v6367_v10  ;;  %v5194_v19 = vld [vmem:[%s8084_s3 + $0x264] sm:$0xf]  ;;  %v1923_v10 = vpack.c.bf16 %v1922_v40, %v1922_v40 }
 0x273   :  { %v6591_v58 = vor.u32 %v5194_v19, %v4690_v42  ;;  %v6716_v19 = vor.u32 %v5182_v18, %v4642_v35 }
 0x275   :  { %1932 = vmatpush.bf16.msra.mxu0 %v6426_v22  ;;  %1945 = vmatpush.bf16.msra.mxu1 %v6428_v8  ;;  %v1549_v3 = vpop.f32.mrf.mxu0  ;;  %v1562_v12 = vpop.f32.mrf.mxu1 }
 0x276   :  { %1966 = vmatpush.bf16.msra.mxu2 %v6385_v30  ;;  %1979 = vmatpush.bf16.msra.mxu3 %v6387_v31  ;;  %v5193_v30 = vld [vmem:[%s8084_s3 + $0x254] sm:$0xf0]  ;;  %v5192_v31 = vld [vmem:[%s8084_s3 + $0x254] sm:$0xf]  ;;  %v1568_v39 = vrot.slane %v1562_v12, 4 }
 0x277   :  { %v6609_v59 = vor.u32 %v5193_v30, %v4680_v17  ;;  %v6611_v48 = vor.u32 %v5192_v31, %v4682_v53 }
 0x278   :  { %1933 = vmatmul.bf16.vlgmr.msra.gmra.mxu0 %v1923_v10  ;;  %1946 = vmatmul.bf16.vlgmr.msra.gmra.mxu1 %v1923_v10  ;;  %v2011_v10 = vld [vmem:[#allocation2 + $0x7] sm:$0xf] }
 0x279   :  { %2094 = vmatpush.bf16.msrb.mxu0 %v6567_v54  ;;  %2107 = vmatpush.bf16.msrb.mxu1 %v6569_v57  ;;  %v2012_v26 = vpack.c.bf16 %v2011_v10, %v2011_v10 }
 0x27a   :  { %1967 = vmatpush.bf16.msra.mxu2 %v6405_v1  ;;  %1980 = vmatpush.bf16.msra.mxu3 %v6407_v23  ;;  %v5190_v1 = vld [vmem:[%s8084_s3 + $0x244] sm:$0xf]  ;;  %v4674_v23 = vld [vmem:[%s8084_s3 + $0x248] sm:$0xf0] }
 0x27b   :  { %v6631_v14 = vor.u32 %v5190_v1, %v4674_v23 }
 0x27d   :  { %2095 = vmatpush.bf16.msrb.mxu0 %v6589_v46  ;;  %2108 = vmatpush.bf16.msrb.mxu1 %v6591_v58  ;;  %v1551_v4 = vpop.f32.mrf.mxu0  ;;  %v1564_v0 = vpop.f32.mrf.mxu1 }
 0x27e   :  { %1968 = vmatpush.bf16.msra.mxu2 %v6426_v22  ;;  %1981 = vmatpush.bf16.msra.mxu3 %v6428_v8  ;;  %v1569_v22 = vsel %vm437_vm0, %v1549_v3, %v1568_v39  ;;  %v5189_v8 = vld [vmem:[%s8084_s3 + $0x234] sm:$0xf0] }
 0x27f   :  { %v6649_v61 = vadd.f32 %v1569_v22, %v6361_v45  ;;  %v6653_v60 = vor.u32 %v5189_v8, %v4664_v16  ;;  %v5187_v45 = vld [vmem:[%s8084_s3 + $0x224] sm:$0xf0]  ;;  %v2163_v16 = vld [vmem:[#allocation2 + $0x13] sm:$0xf] }
 0x280   :  { %v6673_v47 = vor.u32 %v5187_v45, %v4656_v37  ;;  %v2164_v22 = vpack.c.bf16 %v2163_v16, %v2163_v16 }
 0x281   :  { %2096 = vmatpush.bf16.msrb.mxu0 %v6609_v59  ;;  %2109 = vmatpush.bf16.msrb.mxu1 %v6611_v48 }
 0x282   :  { %2130 = vmatpush.bf16.msrb.mxu2 %v6567_v54  ;;  %2143 = vmatpush.bf16.msrb.mxu3 %v6569_v57 }
 0x283   :  { %1969 = vmatmul.bf16.vlgmr.msra.gmra.mxu2 %v1959_v13  ;;  %1982 = vmatmul.bf16.vlgmr.msra.gmra.mxu3 %v1959_v13 }
 0x285   :  { %2097 = vmatpush.bf16.msrb.mxu0 %v6629_v55  ;;  %2110 = vmatpush.bf16.msrb.mxu1 %v6631_v14 }
 0x286   :  { %2131 = vmatpush.bf16.msrb.mxu2 %v6589_v46  ;;  %2144 = vmatpush.bf16.msrb.mxu3 %v6591_v58  ;;  %v1585_v33 = vpop.f32.mrf.mxu2  ;;  %v1598_v24 = vpop.f32.mrf.mxu3 }
 0x287   :  { %v1604_v40 = vrot.slane %v1598_v24, 4 }
 0x289   :  { %2098 = vmatpush.bf16.msrb.mxu0 %v6653_v60  ;;  %2111 = vmatpush.bf16.msrb.mxu1 %v6655_v36  ;;  %v1605_v44 = vsel %vm437_vm0, %v1585_v33, %v1604_v40  ;;  %v2235_v33 = vld [vmem:[#allocation2 + $0x2b] sm:$0xf] }
 0x28a   :  { %2132 = vmatpush.bf16.msrb.mxu2 %v6609_v59  ;;  %2145 = vmatpush.bf16.msrb.mxu3 %v6611_v48  ;;  %v6721_v42 = vadd.f32 %v1605_v44, %v6433_v9  ;;  %v2127_v9 = vld [vmem:[#allocation2 + $0xd] sm:$0xf]  ;;  %v2236_v24 = vpack.c.bf16 %v2235_v33, %v2235_v33 }
 0x28b   :  { %v2128_v7 = vpack.c.bf16 %v2127_v9, %v2127_v9 }
 0x28d   :  { %2099 = vmatpush.bf16.msrb.mxu0 %v6673_v47  ;;  %2112 = vmatpush.bf16.msrb.mxu1 %v6675_v21 }
 0x28e   :  { %2133 = vmatpush.bf16.msrb.mxu2 %v6629_v55  ;;  %2146 = vmatpush.bf16.msrb.mxu3 %v6631_v14  ;;  %v1587_v34 = vpop.f32.mrf.mxu2  ;;  %v1600_v17 = vpop.f32.mrf.mxu3 }
 0x291   :  { %2100 = vmatpush.bf16.msrb.mxu0 %v6693_v28  ;;  %2113 = vmatpush.bf16.msrb.mxu1 %v6695_v63 }
 0x292   :  { %2134 = vmatpush.bf16.msrb.mxu2 %v6653_v60  ;;  %2147 = vmatpush.bf16.msrb.mxu3 %v6655_v36 }
 0x295   :  { %2101 = vmatpush.bf16.msrb.mxu0 %v6714_v49  ;;  %2114 = vmatpush.bf16.msrb.mxu1 %v6716_v19  ;;  %v1718_v30 = vpop.f32.mrf.mxu0  ;;  %v1731_v31 = vpop.f32.mrf.mxu1 }
 0x296   :  { %2135 = vmatpush.bf16.msrb.mxu2 %v6673_v47  ;;  %2148 = vmatpush.bf16.msrb.mxu3 %v6675_v21  ;;  %v1737_v53 = vrot.slane %v1731_v31, 4 }
 0x298   :  { %2102 = vmatmul.bf16.vlgmr.msrb.gmra.mxu0 %v2012_v26  ;;  %2115 = vmatmul.bf16.vlgmr.msrb.gmra.mxu1 %v2012_v26  ;;  %v1738_v2 = vsel %vm437_vm0, %v1718_v30, %v1737_v53  ;;  %v2307_v53 = vld [vmem:[#allocation2 + $0x37] sm:$0xf] }
 0x299   :  { %2166 = vmatpush.bf16.msra.mxu0 %v6567_v54  ;;  %2179 = vmatpush.bf16.msra.mxu1 %v6569_v57  ;;  %v6741_v6 = vadd.f32 %v1738_v2, %v6453_v51  ;;  %v5211_v2 = vld [vmem:[%s8084_s3 + $0x2e4] sm:$0xf0] }
 0x29a   :  { %2136 = vmatpush.bf16.msrb.mxu2 %v6693_v28  ;;  %2149 = vmatpush.bf16.msrb.mxu3 %v6695_v63 }
 0x29d   :  { %2167 = vmatpush.bf16.msra.mxu0 %v6589_v46  ;;  %2180 = vmatpush.bf16.msra.mxu1 %v6591_v58  ;;  %v1720_v1 = vpop.f32.mrf.mxu0  ;;  %v1733_v23 = vpop.f32.mrf.mxu1 }
 0x29e   :  { %2137 = vmatpush.bf16.msrb.mxu2 %v6714_v49  ;;  %2150 = vmatpush.bf16.msrb.mxu3 %v6716_v19 }
 0x2a1   :  { %2168 = vmatpush.bf16.msra.mxu0 %v6609_v59  ;;  %2181 = vmatpush.bf16.msra.mxu1 %v6611_v48 }
 0x2a2   :  { %2202 = vmatpush.bf16.msra.mxu2 %v6567_v54  ;;  %2215 = vmatpush.bf16.msra.mxu3 %v6569_v57 }
 0x2a3   :  { %2138 = vmatmul.bf16.vlgmr.msrb.gmra.mxu2 %v2128_v7  ;;  %2151 = vmatmul.bf16.vlgmr.msrb.gmra.mxu3 %v2128_v7  ;;  %v4768_v7 = vld [vmem:[%s8084_s3 + $0x2e0] sm:$0xf] }
 0x2a5   :  { %2169 = vmatpush.bf16.msra.mxu0 %v6629_v55  ;;  %2182 = vmatpush.bf16.msra.mxu1 %v6631_v14 }
 0x2a6   :  { %2203 = vmatpush.bf16.msra.mxu2 %v6589_v46  ;;  %2216 = vmatpush.bf16.msra.mxu3 %v6591_v58  ;;  %v1754_v51 = vpop.f32.mrf.mxu2  ;;  %v1767_v3 = vpop.f32.mrf.mxu3 }
 0x2a7   :  { %v1773_v12 = vrot.slane %v1767_v3, 4 }
 0x2a9   :  { %2170 = vmatpush.bf16.msra.mxu0 %v6653_v60  ;;  %2183 = vmatpush.bf16.msra.mxu1 %v6655_v36  ;;  %v1774_v39 = vsel %vm437_vm0, %v1754_v51, %v1773_v12  ;;  %v6877_v51 = vor.u32 %v5211_v2, %v4768_v7  ;;  %v4760_v12 = vld [vmem:[%s8084_s3 + $0x2d0] sm:$0xf] }
 0x2aa   :  { %2204 = vmatpush.bf16.msra.mxu2 %v6609_v59  ;;  %2217 = vmatpush.bf16.msra.mxu3 %v6611_v48  ;;  %v6761_v13 = vadd.f32 %v1774_v39, %v6473_v25  ;;  %v2199_v25 = vld [vmem:[#allocation2 + $0x19] sm:$0xf] }
 0x2ab   :  { %v2200_v29 = vpack.c.bf16 %v2199_v25, %v2199_v25  ;;  %v4762_v39 = vld [vmem:[%s8084_s3 + $0x2d8] sm:$0xf0]  ;;  %v5207_v25 = vld [vmem:[%s8084_s3 + $0x2c4] sm:$0xf0] }
 0x2ad   :  { %2171 = vmatpush.bf16.msra.mxu0 %v6673_v47  ;;  %2184 = vmatpush.bf16.msra.mxu1 %v6675_v21 }
 0x2ae   :  { %2205 = vmatpush.bf16.msra.mxu2 %v6629_v55  ;;  %2218 = vmatpush.bf16.msra.mxu3 %v6631_v14  ;;  %v1756_v8 = vpop.f32.mrf.mxu2  ;;  %v1769_v20 = vpop.f32.mrf.mxu3 }
 0x2af   :  { %v2343_v8 = vld [vmem:[#allocation2 + $0x3d] sm:$0xf] }
 0x2b0   :  { %v4752_v20 = vld [vmem:[%s8084_s3 + $0x2c0] sm:$0xf] }
 0x2b1   :  { %2172 = vmatpush.bf16.msra.mxu0 %v6693_v28  ;;  %2185 = vmatpush.bf16.msra.mxu1 %v6695_v63 }
 0x2b2   :  { %2206 = vmatpush.bf16.msra.mxu2 %v6653_v60  ;;  %2219 = vmatpush.bf16.msra.mxu3 %v6655_v36 }
 0x2b5   :  { %2173 = vmatpush.bf16.msra.mxu0 %v6714_v49  ;;  %2186 = vmatpush.bf16.msra.mxu1 %v6716_v19  ;;  %v1790_v50 = vpop.f32.mrf.mxu0  ;;  %v1803_v37 = vpop.f32.mrf.mxu1 }
 0x2b6   :  { %2207 = vmatpush.bf16.msra.mxu2 %v6673_v47  ;;  %2220 = vmatpush.bf16.msra.mxu3 %v6675_v21  ;;  %v1809_v45 = vrot.slane %v1803_v37, 4 }
 0x2b8   :  { %2174 = vmatmul.bf16.vlgmr.msra.gmra.mxu0 %v2164_v22  ;;  %2187 = vmatmul.bf16.vlgmr.msra.gmra.mxu1 %v2164_v22  ;;  %v1810_v32 = vsel %vm437_vm0, %v1790_v50, %v1809_v45 }
 0x2b9   :  { %2238 = vmatpush.bf16.msrb.mxu0 %v6567_v54  ;;  %2251 = vmatpush.bf16.msrb.mxu1 %v6569_v57  ;;  %v6781_v4 = vadd.f32 %v1810_v32, %v6493_v56  ;;  %v6917_v32 = vor.u32 %v5207_v25, %v4752_v20 }
 0x2ba   :  { %2208 = vmatpush.bf16.msra.mxu2 %v6693_v28  ;;  %2221 = vmatpush.bf16.msra.mxu3 %v6695_v63 }
 0x2bd   :  { %2239 = vmatpush.bf16.msrb.mxu0 %v6589_v46  ;;  %2252 = vmatpush.bf16.msrb.mxu1 %v6591_v58  ;;  %v1792_v0 = vpop.f32.mrf.mxu0  ;;  %v1805_v52 = vpop.f32.mrf.mxu1 }
 0x2be   :  { %2209 = vmatpush.bf16.msra.mxu2 %v6714_v49  ;;  %2222 = vmatpush.bf16.msra.mxu3 %v6716_v19  ;;  %v4744_v52 = vld [vmem:[%s8084_s3 + $0x2b0] sm:$0xf] }
 0x2c1   :  { %2240 = vmatpush.bf16.msrb.mxu0 %v6609_v59  ;;  %2253 = vmatpush.bf16.msrb.mxu1 %v6611_v48 }
 0x2c2   :  { %2274 = vmatpush.bf16.msrb.mxu2 %v6567_v54  ;;  %2287 = vmatpush.bf16.msrb.mxu3 %v6569_v57 }
 0x2c3   :  { %2210 = vmatmul.bf16.vlgmr.msra.gmra.mxu2 %v2200_v29  ;;  %2223 = vmatmul.bf16.vlgmr.msra.gmra.mxu3 %v2200_v29  ;;  %v2344_v29 = vpack.c.bf16 %v2343_v8, %v2343_v8 }
 0x2c5   :  { %2241 = vmatpush.bf16.msrb.mxu0 %v6629_v55  ;;  %2254 = vmatpush.bf16.msrb.mxu1 %v6631_v14 }
 0x2c6   :  { %2275 = vmatpush.bf16.msrb.mxu2 %v6589_v46  ;;  %2288 = vmatpush.bf16.msrb.mxu3 %v6591_v58  ;;  %v1826_v56 = vpop.f32.mrf.mxu2  ;;  %v1839_v62 = vpop.f32.mrf.mxu3 }
 0x2c7   :  { %v1845_v38 = vrot.slane %v1839_v62, 4  ;;  %v4746_v62 = vld [vmem:[%s8084_s3 + $0x2b8] sm:$0xf0] }
 0x2c9   :  { %2242 = vmatpush.bf16.msrb.mxu0 %v6653_v60  ;;  %2255 = vmatpush.bf16.msrb.mxu1 %v6655_v36  ;;  %v1846_v11 = vsel %vm437_vm0, %v1826_v56, %v1845_v38  ;;  %v5204_v56 = vld [vmem:[%s8084_s3 + $0x2b4] sm:$0xf] }
 0x2ca   :  { %2276 = vmatpush.bf16.msrb.mxu2 %v6609_v59  ;;  %2289 = vmatpush.bf16.msrb.mxu3 %v6611_v48  ;;  %v6801_v15 = vadd.f32 %v1846_v11, %v6513_v27  ;;  %v2271_v27 = vld [vmem:[#allocation2 + $0x31] sm:$0xf]  ;;  %v6943_v33 = vor.u32 %v5204_v56, %v4746_v62 }
 0x2cb   :  { %v2272_v10 = vpack.c.bf16 %v2271_v27, %v2271_v27 }
 0x2cd   :  { %2243 = vmatpush.bf16.msrb.mxu0 %v6673_v47  ;;  %2256 = vmatpush.bf16.msrb.mxu1 %v6675_v21 }
 0x2ce   :  { %2277 = vmatpush.bf16.msrb.mxu2 %v6629_v55  ;;  %2290 = vmatpush.bf16.msrb.mxu3 %v6631_v14  ;;  %v1828_v43 = vpop.f32.mrf.mxu2  ;;  %v1841_v18 = vpop.f32.mrf.mxu3 }
 0x2cf   :  { %v5202_v43 = vld [vmem:[%s8084_s3 + $0x2a4] sm:$0xf]  ;;  %v4738_v18 = vld [vmem:[%s8084_s3 + $0x2a8] sm:$0xf0] }
 0x2d1   :  { %2244 = vmatpush.bf16.msrb.mxu0 %v6693_v28  ;;  %2257 = vmatpush.bf16.msrb.mxu1 %v6695_v63 }
 0x2d2   :  { %2278 = vmatpush.bf16.msrb.mxu2 %v6653_v60  ;;  %2291 = vmatpush.bf16.msrb.mxu3 %v6655_v36 }
 0x2d5   :  { %2245 = vmatpush.bf16.msrb.mxu0 %v6714_v49  ;;  %2258 = vmatpush.bf16.msrb.mxu1 %v6716_v19  ;;  %v1862_v35 = vpop.f32.mrf.mxu0  ;;  %v1875_v40 = vpop.f32.mrf.mxu1 }
 0x2d6   :  { %2279 = vmatpush.bf16.msrb.mxu2 %v6673_v47  ;;  %2292 = vmatpush.bf16.msrb.mxu3 %v6675_v21  ;;  %v1881_v44 = vrot.slane %v1875_v40, 4 }
 0x2d8   :  { %2246 = vmatmul.bf16.vlgmr.msrb.gmra.mxu0 %v2236_v24  ;;  %2259 = vmatmul.bf16.vlgmr.msrb.gmra.mxu1 %v2236_v24  ;;  %v1882_v26 = vsel %vm437_vm0, %v1862_v35, %v1881_v44  ;;  %v4736_v24 = vld [vmem:[%s8084_s3 + $0x2a0] sm:$0xf]  ;;  %v6963_v44 = vor.u32 %v5202_v43, %v4738_v18 }
 0x2d9   :  { %2310 = vmatpush.bf16.msra.mxu0 %v6567_v54  ;;  %2323 = vmatpush.bf16.msra.mxu1 %v6569_v57  ;;  %v6821_v34 = vadd.f32 %v1882_v26, %v6533_v5  ;;  %v5201_v26 = vld [vmem:[%s8084_s3 + $0x294] sm:$0xf0] }
 0x2da   :  { %2280 = vmatpush.bf16.msrb.mxu2 %v6693_v28  ;;  %2293 = vmatpush.bf16.msrb.mxu3 %v6695_v63 }
 0x2dd   :  { %2311 = vmatpush.bf16.msra.mxu0 %v6589_v46  ;;  %2324 = vmatpush.bf16.msra.mxu1 %v6591_v58  ;;  %v1864_v17 = vpop.f32.mrf.mxu0  ;;  %v1877_v9 = vpop.f32.mrf.mxu1 }
 0x2de   :  { %2281 = vmatpush.bf16.msrb.mxu2 %v6714_v49  ;;  %2294 = vmatpush.bf16.msrb.mxu3 %v6716_v19  ;;  %v5200_v17 = vld [vmem:[%s8084_s3 + $0x294] sm:$0xf]  ;;  %v4730_v9 = vld [vmem:[%s8084_s3 + $0x298] sm:$0xf0] }
 0x2e1   :  { %2312 = vmatpush.bf16.msra.mxu0 %v6609_v59  ;;  %2325 = vmatpush.bf16.msra.mxu1 %v6611_v48 }
 0x2e2   :  { %2346 = vmatpush.bf16.msra.mxu2 %v6567_v54  ;;  %2359 = vmatpush.bf16.msra.mxu3 %v6569_v57 }
 0x2e3   :  { %2282 = vmatmul.bf16.vlgmr.msrb.gmra.mxu2 %v2272_v10  ;;  %2295 = vmatmul.bf16.vlgmr.msrb.gmra.mxu3 %v2272_v10  ;;  %v4728_v10 = vld [vmem:[%s8084_s3 + $0x290] sm:$0xf] }
 0x2e5   :  { %2313 = vmatpush.bf16.msra.mxu0 %v6629_v55  ;;  %2326 = vmatpush.bf16.msra.mxu1 %v6631_v14 }
 0x2e6   :  { %2347 = vmatpush.bf16.msra.mxu2 %v6589_v46  ;;  %2360 = vmatpush.bf16.msra.mxu3 %v6591_v58  ;;  %v1898_v5 = vpop.f32.mrf.mxu2  ;;  %v1911_v54 = vpop.f32.mrf.mxu3  ;;  %v4776_v46 = vld [vmem:[%s8084_s3 + $0x2f0] sm:$0xf]  ;;  %v5213_v58 = vld [vmem:[%s8084_s3 + $0x2f4] sm:$0xf0] }
 0x2e7   :  { %v1917_v57 = vrot.slane %v1911_v54, 4  ;;  %v6855_v30 = vor.u32 %v5213_v58, %v4776_v46  ;;  %v6983_v54 = vor.u32 %v5200_v17, %v4730_v9 }
 0x2e9   :  { %2314 = vmatpush.bf16.msra.mxu0 %v6653_v60  ;;  %2327 = vmatpush.bf16.msra.mxu1 %v6655_v36 }
 0x2ea   :  { %2348 = vmatpush.bf16.msra.mxu2 %v6609_v59  ;;  %2361 = vmatpush.bf16.msra.mxu3 %v6611_v48  ;;  %v5212_v59 = vld [vmem:[%s8084_s3 + $0x2f4] sm:$0xf]  ;;  %v4778_v48 = vld [vmem:[%s8084_s3 + $0x2f8] sm:$0xf0] }
 0x2eb   :  { %v6857_v31 = vor.u32 %v5212_v59, %v4778_v48  ;;  %v5199_v59 = vld [vmem:[%s8084_s3 + $0x284] sm:$0xf0]  ;;  %v5198_v48 = vld [vmem:[%s8084_s3 + $0x284] sm:$0xf] }
 0x2ed   :  { %2315 = vmatpush.bf16.msra.mxu0 %v6673_v47  ;;  %2328 = vmatpush.bf16.msra.mxu1 %v6675_v21 }
 0x2ee   :  { %2349 = vmatpush.bf16.msra.mxu2 %v6629_v55  ;;  %2362 = vmatpush.bf16.msra.mxu3 %v6631_v14  ;;  %v1918_v55 = vsel %vm437_vm0, %v1898_v5, %v1917_v57  ;;  %v1900_v1 = vpop.f32.mrf.mxu2  ;;  %v1913_v23 = vpop.f32.mrf.mxu3  ;;  %v6981_v5 = vor.u32 %v5201_v26, %v4728_v10  ;;  %v4720_v57 = vld [vmem:[%s8084_s3 + $0x280] sm:$0xf] }
 0x2ef   :  { %v6853_v14 = vadd.f32 %v1918_v55, %v6565_v41  ;;  %v4770_v41 = vld [vmem:[%s8084_s3 + $0x2e8] sm:$0xf0]  ;;  %v7002_v2 = vor.u32 %v5199_v59, %v4720_v57 }
 0x2f0   :  { %v4722_v55 = vld [vmem:[%s8084_s3 + $0x288] sm:$0xf0] }
 0x2f1   :  { %2316 = vmatpush.bf16.msra.mxu0 %v6693_v28  ;;  %2329 = vmatpush.bf16.msra.mxu1 %v6695_v63 }
 0x2f2   :  { %2350 = vmatpush.bf16.msra.mxu2 %v6653_v60  ;;  %2363 = vmatpush.bf16.msra.mxu3 %v6655_v36  ;;  %v5210_v60 = vld [vmem:[%s8084_s3 + $0x2e4] sm:$0xf]  ;;  %v2308_v36 = vpack.c.bf16 %v2307_v53, %v2307_v53 }
 0x2f3   :  { %v6879_v3 = vor.u32 %v5210_v60, %v4770_v41  ;;  %v7004_v60 = vor.u32 %v5198_v48, %v4722_v55 }
 0x2f5   :  { %2317 = vmatpush.bf16.msra.mxu0 %v6714_v49  ;;  %2330 = vmatpush.bf16.msra.mxu1 %v6716_v19  ;;  %v1934_v50 = vpop.f32.mrf.mxu0  ;;  %v1947_v37 = vpop.f32.mrf.mxu1 }
 0x2f6   :  { %2351 = vmatpush.bf16.msra.mxu2 %v6673_v47  ;;  %2364 = vmatpush.bf16.msra.mxu3 %v6675_v21  ;;  %v5209_v47 = vld [vmem:[%s8084_s3 + $0x2d4] sm:$0xf0]  ;;  %v5208_v21 = vld [vmem:[%s8084_s3 + $0x2d4] sm:$0xf]  ;;  %v1953_v45 = vrot.slane %v1947_v37, 4 }
 0x2f7   :  { %v6897_v16 = vor.u32 %v5209_v47, %v4760_v12  ;;  %v6899_v22 = vor.u32 %v5208_v21, %v4762_v39 }
 0x2f8   :  { %2318 = vmatmul.bf16.vlgmr.msra.gmra.mxu0 %v2308_v36  ;;  %2331 = vmatmul.bf16.vlgmr.msra.gmra.mxu1 %v2308_v36  ;;  %v2396_v36 = vld [vmem:[#allocation2 + $0x8] sm:$0xf] }
 0x2f9   :  { %2479 = vmatpush.bf16.msrb.mxu0 %v6855_v30  ;;  %2492 = vmatpush.bf16.msrb.mxu1 %v6857_v31  ;;  %v2397_v1 = vpack.c.bf16 %v2396_v36, %v2396_v36 }
 0x2fa   :  { %2352 = vmatpush.bf16.msra.mxu2 %v6693_v28  ;;  %2365 = vmatpush.bf16.msra.mxu3 %v6695_v63  ;;  %v5206_v28 = vld [vmem:[%s8084_s3 + $0x2c4] sm:$0xf]  ;;  %v4754_v63 = vld [vmem:[%s8084_s3 + $0x2c8] sm:$0xf0] }
 0x2fb   :  { %v6919_v0 = vor.u32 %v5206_v28, %v4754_v63 }
 0x2fd   :  { %2480 = vmatpush.bf16.msrb.mxu0 %v6877_v51  ;;  %2493 = vmatpush.bf16.msrb.mxu1 %v6879_v3  ;;  %v1936_v27 = vpop.f32.mrf.mxu0  ;;  %v1949_v35 = vpop.f32.mrf.mxu1 }
 0x2fe   :  { %2353 = vmatpush.bf16.msra.mxu2 %v6714_v49  ;;  %2366 = vmatpush.bf16.msra.mxu3 %v6716_v19  ;;  %v1954_v49 = vsel %vm437_vm0, %v1934_v50, %v1953_v45  ;;  %v5205_v19 = vld [vmem:[%s8084_s3 + $0x2b4] sm:$0xf0] }
 0x2ff   :  { %v6937_v38 = vadd.f32 %v1954_v49, %v6649_v61  ;;  %v6941_v11 = vor.u32 %v5205_v19, %v4744_v52  ;;  %v5203_v61 = vld [vmem:[%s8084_s3 + $0x2a4] sm:$0xf0]  ;;  %v2548_v52 = vld [vmem:[#allocation2 + $0x14] sm:$0xf] }
 0x300   :  { %v6961_v40 = vor.u32 %v5203_v61, %v4736_v24  ;;  %v2549_v49 = vpack.c.bf16 %v2548_v52, %v2548_v52 }
 0x301   :  { %2481 = vmatpush.bf16.msrb.mxu0 %v6897_v16  ;;  %2494 = vmatpush.bf16.msrb.mxu1 %v6899_v22 }
 0x302   :  { %2515 = vmatpush.bf16.msrb.mxu2 %v6855_v30  ;;  %2528 = vmatpush.bf16.msrb.mxu3 %v6857_v31 }
 0x303   :  { %2354 = vmatmul.bf16.vlgmr.msra.gmra.mxu2 %v2344_v29  ;;  %2367 = vmatmul.bf16.vlgmr.msra.gmra.mxu3 %v2344_v29 }
 0x305   :  { %2482 = vmatpush.bf16.msrb.mxu0 %v6917_v32  ;;  %2495 = vmatpush.bf16.msrb.mxu1 %v6919_v0 }
 0x306   :  { %2516 = vmatpush.bf16.msrb.mxu2 %v6877_v51  ;;  %2529 = vmatpush.bf16.msrb.mxu3 %v6879_v3  ;;  %v1970_v46 = vpop.f32.mrf.mxu2  ;;  %v1983_v58 = vpop.f32.mrf.mxu3 }
 0x307   :  { %v1989_v53 = vrot.slane %v1983_v58, 4 }
 0x309   :  { %2483 = vmatpush.bf16.msrb.mxu0 %v6941_v11  ;;  %2496 = vmatpush.bf16.msrb.mxu1 %v6943_v33  ;;  %v1990_v7 = vsel %vm437_vm0, %v1970_v46, %v1989_v53  ;;  %v2620_v46 = vld [vmem:[#allocation2 + $0x2c] sm:$0xf] }
 0x30a   :  { %2517 = vmatpush.bf16.msrb.mxu2 %v6897_v16  ;;  %2530 = vmatpush.bf16.msrb.mxu3 %v6899_v22  ;;  %v7009_v41 = vadd.f32 %v1990_v7, %v6721_v42  ;;  %v2512_v42 = vld [vmem:[#allocation2 + $0xe] sm:$0xf]  ;;  %v2621_v58 = vpack.c.bf16 %v2620_v46, %v2620_v46 }
 0x30b   :  { %v2513_v8 = vpack.c.bf16 %v2512_v42, %v2512_v42 }
 0x30d   :  { %2484 = vmatpush.bf16.msrb.mxu0 %v6961_v40  ;;  %2497 = vmatpush.bf16.msrb.mxu1 %v6963_v44 }
 0x30e   :  { %2518 = vmatpush.bf16.msrb.mxu2 %v6917_v32  ;;  %2531 = vmatpush.bf16.msrb.mxu3 %v6919_v0  ;;  %v1972_v23 = vpop.f32.mrf.mxu2  ;;  %v1985_v12 = vpop.f32.mrf.mxu3 }
 0x311   :  { %2485 = vmatpush.bf16.msrb.mxu0 %v6981_v5  ;;  %2498 = vmatpush.bf16.msrb.mxu1 %v6983_v54 }
 0x312   :  { %2519 = vmatpush.bf16.msrb.mxu2 %v6941_v11  ;;  %2532 = vmatpush.bf16.msrb.mxu3 %v6943_v33 }
 0x315   :  { %2486 = vmatpush.bf16.msrb.mxu0 %v7002_v2  ;;  %2499 = vmatpush.bf16.msrb.mxu1 %v7004_v60  ;;  %v2103_v47 = vpop.f32.mrf.mxu0  ;;  %v2116_v21 = vpop.f32.mrf.mxu1 }
 0x316   :  { %2520 = vmatpush.bf16.msrb.mxu2 %v6961_v40  ;;  %2533 = vmatpush.bf16.msrb.mxu3 %v6963_v44  ;;  %v2122_v39 = vrot.slane %v2116_v21, 4 }
 0x318   :  { %2487 = vmatmul.bf16.vlgmr.msrb.gmra.mxu0 %v2397_v1  ;;  %2500 = vmatmul.bf16.vlgmr.msrb.gmra.mxu1 %v2397_v1  ;;  %v2123_v20 = vsel %vm437_vm0, %v2103_v47, %v2122_v39  ;;  %v2692_v39 = vld [vmem:[#allocation2 + $0x38] sm:$0xf] }
 0x319   :  { %2551 = vmatpush.bf16.msra.mxu0 %v6855_v30  ;;  %2564 = vmatpush.bf16.msra.mxu1 %v6857_v31  ;;  %v7029_v25 = vadd.f32 %v2123_v20, %v6741_v6  ;;  %v5227_v20 = vld [vmem:[%s8084_s3 + $0x364] sm:$0xf0] }
 0x31a   :  { %2521 = vmatpush.bf16.msrb.mxu2 %v6981_v5  ;;  %2534 = vmatpush.bf16.msrb.mxu3 %v6983_v54 }
 0x31d   :  { %2552 = vmatpush.bf16.msra.mxu0 %v6877_v51  ;;  %2565 = vmatpush.bf16.msra.mxu1 %v6879_v3  ;;  %v2105_v28 = vpop.f32.mrf.mxu0  ;;  %v2118_v63 = vpop.f32.mrf.mxu1 }
 0x31e   :  { %2522 = vmatpush.bf16.msrb.mxu2 %v7002_v2  ;;  %2535 = vmatpush.bf16.msrb.mxu3 %v7004_v60 }
 0x321   :  { %2553 = vmatpush.bf16.msra.mxu0 %v6897_v16  ;;  %2566 = vmatpush.bf16.msra.mxu1 %v6899_v22 }
 0x322   :  { %2587 = vmatpush.bf16.msra.mxu2 %v6855_v30  ;;  %2600 = vmatpush.bf16.msra.mxu3 %v6857_v31 }
 0x323   :  { %2523 = vmatmul.bf16.vlgmr.msrb.gmra.mxu2 %v2513_v8  ;;  %2536 = vmatmul.bf16.vlgmr.msrb.gmra.mxu3 %v2513_v8  ;;  %v4848_v8 = vld [vmem:[%s8084_s3 + $0x360] sm:$0xf] }
 0x325   :  { %2554 = vmatpush.bf16.msra.mxu0 %v6917_v32  ;;  %2567 = vmatpush.bf16.msra.mxu1 %v6919_v0 }
 0x326   :  { %2588 = vmatpush.bf16.msra.mxu2 %v6877_v51  ;;  %2601 = vmatpush.bf16.msra.mxu3 %v6879_v3  ;;  %v2139_v6 = vpop.f32.mrf.mxu2  ;;  %v2152_v50 = vpop.f32.mrf.mxu3 }
 0x327   :  { %v2158_v37 = vrot.slane %v2152_v50, 4 }
 0x329   :  { %2555 = vmatpush.bf16.msra.mxu0 %v6941_v11  ;;  %2568 = vmatpush.bf16.msra.mxu1 %v6943_v33  ;;  %v2159_v45 = vsel %vm437_vm0, %v2139_v6, %v2158_v37  ;;  %v7165_v6 = vor.u32 %v5227_v20, %v4848_v8  ;;  %v4840_v37 = vld [vmem:[%s8084_s3 + $0x350] sm:$0xf] }
 0x32a   :  { %2589 = vmatpush.bf16.msra.mxu2 %v6897_v16  ;;  %2602 = vmatpush.bf16.msra.mxu3 %v6899_v22  ;;  %v7049_v29 = vadd.f32 %v2159_v45, %v6761_v13  ;;  %v2584_v13 = vld [vmem:[#allocation2 + $0x1a] sm:$0xf] }
 0x32b   :  { %v2585_v43 = vpack.c.bf16 %v2584_v13, %v2584_v13  ;;  %v4842_v45 = vld [vmem:[%s8084_s3 + $0x358] sm:$0xf0]  ;;  %v5223_v13 = vld [vmem:[%s8084_s3 + $0x344] sm:$0xf0] }
 0x32d   :  { %2556 = vmatpush.bf16.msra.mxu0 %v6961_v40  ;;  %2569 = vmatpush.bf16.msra.mxu1 %v6963_v44 }
 0x32e   :  { %2590 = vmatpush.bf16.msra.mxu2 %v6917_v32  ;;  %2603 = vmatpush.bf16.msra.mxu3 %v6919_v0  ;;  %v2141_v19 = vpop.f32.mrf.mxu2  ;;  %v2154_v56 = vpop.f32.mrf.mxu3 }
 0x32f   :  { %v2728_v19 = vld [vmem:[#allocation2 + $0x3e] sm:$0xf] }
 0x330   :  { %v4832_v56 = vld [vmem:[%s8084_s3 + $0x340] sm:$0xf] }
 0x331   :  { %2557 = vmatpush.bf16.msra.mxu0 %v6981_v5  ;;  %2570 = vmatpush.bf16.msra.mxu1 %v6983_v54 }
 0x332   :  { %2591 = vmatpush.bf16.msra.mxu2 %v6941_v11  ;;  %2604 = vmatpush.bf16.msra.mxu3 %v6943_v33 }
 0x335   :  { %2558 = vmatpush.bf16.msra.mxu0 %v7002_v2  ;;  %2571 = vmatpush.bf16.msra.mxu1 %v7004_v60  ;;  %v2175_v62 = vpop.f32.mrf.mxu0  ;;  %v2188_v24 = vpop.f32.mrf.mxu1 }
 0x336   :  { %2592 = vmatpush.bf16.msra.mxu2 %v6961_v40  ;;  %2605 = vmatpush.bf16.msra.mxu3 %v6963_v44  ;;  %v2194_v61 = vrot.slane %v2188_v24, 4 }
 0x338   :  { %2559 = vmatmul.bf16.vlgmr.msra.gmra.mxu0 %v2549_v49  ;;  %2572 = vmatmul.bf16.vlgmr.msra.gmra.mxu1 %v2549_v49  ;;  %v2195_v18 = vsel %vm437_vm0, %v2175_v62, %v2194_v61 }
 0x339   :  { %2623 = vmatpush.bf16.msrb.mxu0 %v6855_v30  ;;  %2636 = vmatpush.bf16.msrb.mxu1 %v6857_v31  ;;  %v7069_v27 = vadd.f32 %v2195_v18, %v6781_v4  ;;  %v7205_v18 = vor.u32 %v5223_v13, %v4832_v56 }
 0x33a   :  { %2593 = vmatpush.bf16.msra.mxu2 %v6981_v5  ;;  %2606 = vmatpush.bf16.msra.mxu3 %v6983_v54 }
 0x33d   :  { %2624 = vmatpush.bf16.msrb.mxu0 %v6877_v51  ;;  %2637 = vmatpush.bf16.msrb.mxu1 %v6879_v3  ;;  %v2177_v35 = vpop.f32.mrf.mxu0  ;;  %v2190_v10 = vpop.f32.mrf.mxu1 }
 0x33e   :  { %2594 = vmatpush.bf16.msra.mxu2 %v7002_v2  ;;  %2607 = vmatpush.bf16.msra.mxu3 %v7004_v60  ;;  %v4824_v10 = vld [vmem:[%s8084_s3 + $0x330] sm:$0xf] }
 0x341   :  { %2625 = vmatpush.bf16.msrb.mxu0 %v6897_v16  ;;  %2638 = vmatpush.bf16.msrb.mxu1 %v6899_v22 }
 0x342   :  { %2659 = vmatpush.bf16.msrb.mxu2 %v6855_v30  ;;  %2672 = vmatpush.bf16.msrb.mxu3 %v6857_v31 }
 0x343   :  { %2595 = vmatmul.bf16.vlgmr.msra.gmra.mxu2 %v2585_v43  ;;  %2608 = vmatmul.bf16.vlgmr.msra.gmra.mxu3 %v2585_v43  ;;  %v2729_v43 = vpack.c.bf16 %v2728_v19, %v2728_v19 }
 0x345   :  { %2626 = vmatpush.bf16.msrb.mxu0 %v6917_v32  ;;  %2639 = vmatpush.bf16.msrb.mxu1 %v6919_v0 }
 0x346   :  { %2660 = vmatpush.bf16.msrb.mxu2 %v6877_v51  ;;  %2673 = vmatpush.bf16.msrb.mxu3 %v6879_v3  ;;  %v2211_v4 = vpop.f32.mrf.mxu2  ;;  %v2224_v26 = vpop.f32.mrf.mxu3 }
 0x347   :  { %v2230_v17 = vrot.slane %v2224_v26, 4  ;;  %v4826_v26 = vld [vmem:[%s8084_s3 + $0x338] sm:$0xf0] }
 0x349   :  { %2627 = vmatpush.bf16.msrb.mxu0 %v6941_v11  ;;  %2640 = vmatpush.bf16.msrb.mxu1 %v6943_v33  ;;  %v2231_v9 = vsel %vm437_vm0, %v2211_v4, %v2230_v17  ;;  %v5220_v4 = vld [vmem:[%s8084_s3 + $0x334] sm:$0xf] }
 0x34a   :  { %2661 = vmatpush.bf16.msrb.mxu2 %v6897_v16  ;;  %2674 = vmatpush.bf16.msrb.mxu3 %v6899_v22  ;;  %v7089_v57 = vadd.f32 %v2231_v9, %v6801_v15  ;;  %v2656_v15 = vld [vmem:[#allocation2 + $0x32] sm:$0xf]  ;;  %v7231_v46 = vor.u32 %v5220_v4, %v4826_v26 }
 0x34b   :  { %v2657_v36 = vpack.c.bf16 %v2656_v15, %v2656_v15 }
 0x34d   :  { %2628 = vmatpush.bf16.msrb.mxu0 %v6961_v40  ;;  %2641 = vmatpush.bf16.msrb.mxu1 %v6963_v44 }
 0x34e   :  { %2662 = vmatpush.bf16.msrb.mxu2 %v6917_v32  ;;  %2675 = vmatpush.bf16.msrb.mxu3 %v6919_v0  ;;  %v2213_v59 = vpop.f32.mrf.mxu2  ;;  %v2226_v48 = vpop.f32.mrf.mxu3 }
 0x34f   :  { %v5218_v59 = vld [vmem:[%s8084_s3 + $0x324] sm:$0xf]  ;;  %v4818_v48 = vld [vmem:[%s8084_s3 + $0x328] sm:$0xf0] }
 0x351   :  { %2629 = vmatpush.bf16.msrb.mxu0 %v6981_v5  ;;  %2642 = vmatpush.bf16.msrb.mxu1 %v6983_v54 }
 0x352   :  { %2663 = vmatpush.bf16.msrb.mxu2 %v6941_v11  ;;  %2676 = vmatpush.bf16.msrb.mxu3 %v6943_v33 }
 0x355   :  { %2630 = vmatpush.bf16.msrb.mxu0 %v7002_v2  ;;  %2643 = vmatpush.bf16.msrb.mxu1 %v7004_v60  ;;  %v2247_v55 = vpop.f32.mrf.mxu0  ;;  %v2260_v53 = vpop.f32.mrf.mxu1 }
 0x356   :  { %2664 = vmatpush.bf16.msrb.mxu2 %v6961_v40  ;;  %2677 = vmatpush.bf16.msrb.mxu3 %v6963_v44  ;;  %v2266_v7 = vrot.slane %v2260_v53, 4 }
 0x358   :  { %2631 = vmatmul.bf16.vlgmr.msrb.gmra.mxu0 %v2621_v58  ;;  %2644 = vmatmul.bf16.vlgmr.msrb.gmra.mxu1 %v2621_v58  ;;  %v2267_v1 = vsel %vm437_vm0, %v2247_v55, %v2266_v7  ;;  %v4816_v58 = vld [vmem:[%s8084_s3 + $0x320] sm:$0xf]  ;;  %v7251_v7 = vor.u32 %v5218_v59, %v4818_v48 }
 0x359   :  { %2695 = vmatpush.bf16.msra.mxu0 %v6855_v30  ;;  %2708 = vmatpush.bf16.msra.mxu1 %v6857_v31  ;;  %v7109_v23 = vadd.f32 %v2267_v1, %v6821_v34  ;;  %v5217_v1 = vld [vmem:[%s8084_s3 + $0x314] sm:$0xf0] }
 0x35a   :  { %2665 = vmatpush.bf16.msrb.mxu2 %v6981_v5  ;;  %2678 = vmatpush.bf16.msrb.mxu3 %v6983_v54 }
 0x35d   :  { %2696 = vmatpush.bf16.msra.mxu0 %v6877_v51  ;;  %2709 = vmatpush.bf16.msra.mxu1 %v6879_v3  ;;  %v2249_v12 = vpop.f32.mrf.mxu0  ;;  %v2262_v42 = vpop.f32.mrf.mxu1 }
 0x35e   :  { %2666 = vmatpush.bf16.msrb.mxu2 %v7002_v2  ;;  %2679 = vmatpush.bf16.msrb.mxu3 %v7004_v60  ;;  %v5216_v12 = vld [vmem:[%s8084_s3 + $0x314] sm:$0xf]  ;;  %v4810_v42 = vld [vmem:[%s8084_s3 + $0x318] sm:$0xf0] }
 0x361   :  { %2697 = vmatpush.bf16.msra.mxu0 %v6897_v16  ;;  %2710 = vmatpush.bf16.msra.mxu1 %v6899_v22 }
 0x362   :  { %2731 = vmatpush.bf16.msra.mxu2 %v6855_v30  ;;  %2744 = vmatpush.bf16.msra.mxu3 %v6857_v31 }
 0x363   :  { %2667 = vmatmul.bf16.vlgmr.msrb.gmra.mxu2 %v2657_v36  ;;  %2680 = vmatmul.bf16.vlgmr.msrb.gmra.mxu3 %v2657_v36  ;;  %v4808_v36 = vld [vmem:[%s8084_s3 + $0x310] sm:$0xf] }
 0x365   :  { %2698 = vmatpush.bf16.msra.mxu0 %v6917_v32  ;;  %2711 = vmatpush.bf16.msra.mxu1 %v6919_v0 }
 0x366   :  { %2732 = vmatpush.bf16.msra.mxu2 %v6877_v51  ;;  %2745 = vmatpush.bf16.msra.mxu3 %v6879_v3  ;;  %v2283_v34 = vpop.f32.mrf.mxu2  ;;  %v2296_v30 = vpop.f32.mrf.mxu3  ;;  %v4856_v51 = vld [vmem:[%s8084_s3 + $0x370] sm:$0xf]  ;;  %v5229_v3 = vld [vmem:[%s8084_s3 + $0x374] sm:$0xf0] }
 0x367   :  { %v2302_v31 = vrot.slane %v2296_v30, 4  ;;  %v7143_v47 = vor.u32 %v5229_v3, %v4856_v51  ;;  %v7271_v30 = vor.u32 %v5216_v12, %v4810_v42 }
 0x369   :  { %2699 = vmatpush.bf16.msra.mxu0 %v6941_v11  ;;  %2712 = vmatpush.bf16.msra.mxu1 %v6943_v33 }
 0x36a   :  { %2733 = vmatpush.bf16.msra.mxu2 %v6897_v16  ;;  %2746 = vmatpush.bf16.msra.mxu3 %v6899_v22  ;;  %v5228_v16 = vld [vmem:[%s8084_s3 + $0x374] sm:$0xf]  ;;  %v4858_v22 = vld [vmem:[%s8084_s3 + $0x378] sm:$0xf0] }
 0x36b   :  { %v7145_v21 = vor.u32 %v5228_v16, %v4858_v22  ;;  %v5215_v16 = vld [vmem:[%s8084_s3 + $0x304] sm:$0xf0]  ;;  %v5214_v22 = vld [vmem:[%s8084_s3 + $0x304] sm:$0xf] }
 0x36d   :  { %2700 = vmatpush.bf16.msra.mxu0 %v6961_v40  ;;  %2713 = vmatpush.bf16.msra.mxu1 %v6963_v44 }
 0x36e   :  { %2734 = vmatpush.bf16.msra.mxu2 %v6917_v32  ;;  %2747 = vmatpush.bf16.msra.mxu3 %v6919_v0  ;;  %v2303_v32 = vsel %vm437_vm0, %v2283_v34, %v2302_v31  ;;  %v2285_v28 = vpop.f32.mrf.mxu2  ;;  %v2298_v63 = vpop.f32.mrf.mxu3  ;;  %v7269_v34 = vor.u32 %v5217_v1, %v4808_v36  ;;  %v4800_v31 = vld [vmem:[%s8084_s3 + $0x300] sm:$0xf] }
 0x36f   :  { %v7141_v0 = vadd.f32 %v2303_v32, %v6853_v14  ;;  %v4850_v14 = vld [vmem:[%s8084_s3 + $0x368] sm:$0xf0]  ;;  %v7290_v20 = vor.u32 %v5215_v16, %v4800_v31 }
 0x370   :  { %v4802_v32 = vld [vmem:[%s8084_s3 + $0x308] sm:$0xf0] }
 0x371   :  { %2701 = vmatpush.bf16.msra.mxu0 %v6981_v5  ;;  %2714 = vmatpush.bf16.msra.mxu1 %v6983_v54 }
 0x372   :  { %2735 = vmatpush.bf16.msra.mxu2 %v6941_v11  ;;  %2748 = vmatpush.bf16.msra.mxu3 %v6943_v33  ;;  %v5226_v11 = vld [vmem:[%s8084_s3 + $0x364] sm:$0xf]  ;;  %v2693_v33 = vpack.c.bf16 %v2692_v39, %v2692_v39 }
 0x373   :  { %v7167_v50 = vor.u32 %v5226_v11, %v4850_v14  ;;  %v7292_v11 = vor.u32 %v5214_v22, %v4802_v32 }
 0x375   :  { %2702 = vmatpush.bf16.msra.mxu0 %v7002_v2  ;;  %2715 = vmatpush.bf16.msra.mxu1 %v7004_v60  ;;  %v2319_v62 = vpop.f32.mrf.mxu0  ;;  %v2332_v24 = vpop.f32.mrf.mxu1 }
 0x376   :  { %2736 = vmatpush.bf16.msra.mxu2 %v6961_v40  ;;  %2749 = vmatpush.bf16.msra.mxu3 %v6963_v44  ;;  %v5225_v40 = vld [vmem:[%s8084_s3 + $0x354] sm:$0xf0]  ;;  %v5224_v44 = vld [vmem:[%s8084_s3 + $0x354] sm:$0xf]  ;;  %v2338_v61 = vrot.slane %v2332_v24, 4 }
 0x377   :  { %v7185_v52 = vor.u32 %v5225_v40, %v4840_v37  ;;  %v7187_v49 = vor.u32 %v5224_v44, %v4842_v45 }
 0x378   :  { %2703 = vmatmul.bf16.vlgmr.msra.gmra.mxu0 %v2693_v33  ;;  %2716 = vmatmul.bf16.vlgmr.msra.gmra.mxu1 %v2693_v33  ;;  %v2781_v33 = vld [vmem:[#allocation2 + $0xc] sm:$0xf] }
 0x379   :  { %2864 = vmatpush.bf16.msrb.mxu0 %v7143_v47  ;;  %2877 = vmatpush.bf16.msrb.mxu1 %v7145_v21  ;;  %v2782_v28 = vpack.c.bf16 %v2781_v33, %v2781_v33 }
 0x37a   :  { %2737 = vmatpush.bf16.msra.mxu2 %v6981_v5  ;;  %2750 = vmatpush.bf16.msra.mxu3 %v6983_v54  ;;  %v5222_v5 = vld [vmem:[%s8084_s3 + $0x344] sm:$0xf]  ;;  %v4834_v54 = vld [vmem:[%s8084_s3 + $0x348] sm:$0xf0] }
 0x37b   :  { %v7207_v35 = vor.u32 %v5222_v5, %v4834_v54 }
 0x37d   :  { %2865 = vmatpush.bf16.msrb.mxu0 %v7165_v6  ;;  %2878 = vmatpush.bf16.msrb.mxu1 %v7167_v50  ;;  %v2321_v15 = vpop.f32.mrf.mxu0  ;;  %v2334_v55 = vpop.f32.mrf.mxu1 }
 0x37e   :  { %2738 = vmatpush.bf16.msra.mxu2 %v7002_v2  ;;  %2751 = vmatpush.bf16.msra.mxu3 %v7004_v60  ;;  %v2339_v2 = vsel %vm437_vm0, %v2319_v62, %v2338_v61  ;;  %v5221_v60 = vld [vmem:[%s8084_s3 + $0x334] sm:$0xf0] }
 0x37f   :  { %v7225_v17 = vadd.f32 %v2339_v2, %v6937_v38  ;;  %v7229_v9 = vor.u32 %v5221_v60, %v4824_v10  ;;  %v5219_v38 = vld [vmem:[%s8084_s3 + $0x324] sm:$0xf0]  ;;  %v2933_v10 = vld [vmem:[#allocation2 + $0x18] sm:$0xf] }
 0x380   :  { %v7249_v53 = vor.u32 %v5219_v38, %v4816_v58  ;;  %v2934_v2 = vpack.c.bf16 %v2933_v10, %v2933_v10 }
 0x381   :  { %2866 = vmatpush.bf16.msrb.mxu0 %v7185_v52  ;;  %2879 = vmatpush.bf16.msrb.mxu1 %v7187_v49 }
 0x382   :  { %2900 = vmatpush.bf16.msrb.mxu2 %v7143_v47  ;;  %2913 = vmatpush.bf16.msrb.mxu3 %v7145_v21 }
 0x383   :  { %2739 = vmatmul.bf16.vlgmr.msra.gmra.mxu2 %v2729_v43  ;;  %2752 = vmatmul.bf16.vlgmr.msra.gmra.mxu3 %v2729_v43 }
 0x385   :  { %2867 = vmatpush.bf16.msrb.mxu0 %v7205_v18  ;;  %2880 = vmatpush.bf16.msrb.mxu1 %v7207_v35 }
 0x386   :  { %2901 = vmatpush.bf16.msrb.mxu2 %v7165_v6  ;;  %2914 = vmatpush.bf16.msrb.mxu3 %v7167_v50  ;;  %v2355_v51 = vpop.f32.mrf.mxu2  ;;  %v2368_v3 = vpop.f32.mrf.mxu3 }
 0x387   :  { %v2374_v39 = vrot.slane %v2368_v3, 4 }
 0x389   :  { %2868 = vmatpush.bf16.msrb.mxu0 %v7229_v9  ;;  %2881 = vmatpush.bf16.msrb.mxu1 %v7231_v46  ;;  %v2375_v8 = vsel %vm437_vm0, %v2355_v51, %v2374_v39  ;;  %v3005_v51 = vld [vmem:[#allocation2 + $0x30] sm:$0xf] }
 0x38a   :  { %2902 = vmatpush.bf16.msrb.mxu2 %v7185_v52  ;;  %2915 = vmatpush.bf16.msrb.mxu3 %v7187_v49  ;;  %v7297_v14 = vadd.f32 %v2375_v8, %v7009_v41  ;;  %v2897_v41 = vld [vmem:[#allocation2 + $0x12] sm:$0xf]  ;;  %v3006_v3 = vpack.c.bf16 %v3005_v51, %v3005_v51 }
 0x38b   :  { %v2898_v19 = vpack.c.bf16 %v2897_v41, %v2897_v41 }
 0x38d   :  { %2869 = vmatpush.bf16.msrb.mxu0 %v7249_v53  ;;  %2882 = vmatpush.bf16.msrb.mxu1 %v7251_v7 }
 0x38e   :  { %2903 = vmatpush.bf16.msrb.mxu2 %v7205_v18  ;;  %2916 = vmatpush.bf16.msrb.mxu3 %v7207_v35  ;;  %v2357_v63 = vpop.f32.mrf.mxu2  ;;  %v2370_v37 = vpop.f32.mrf.mxu3 }
 0x391   :  { %2870 = vmatpush.bf16.msrb.mxu0 %v7269_v34  ;;  %2883 = vmatpush.bf16.msrb.mxu1 %v7271_v30 }
 0x392   :  { %2904 = vmatpush.bf16.msrb.mxu2 %v7229_v9  ;;  %2917 = vmatpush.bf16.msrb.mxu3 %v7231_v46 }
 0x395   :  { %2871 = vmatpush.bf16.msrb.mxu0 %v7290_v20  ;;  %2884 = vmatpush.bf16.msrb.mxu1 %v7292_v11  ;;  %v2488_v40 = vpop.f32.mrf.mxu0  ;;  %v2501_v44 = vpop.f32.mrf.mxu1 }
 0x396   :  { %2905 = vmatpush.bf16.msrb.mxu2 %v7249_v53  ;;  %2918 = vmatpush.bf16.msrb.mxu3 %v7251_v7  ;;  %v2507_v45 = vrot.slane %v2501_v44, 4 }
 0x398   :  { %2872 = vmatmul.bf16.vlgmr.msrb.gmra.mxu0 %v2782_v28  ;;  %2885 = vmatmul.bf16.vlgmr.msrb.gmra.mxu1 %v2782_v28  ;;  %v2508_v56 = vsel %vm437_vm0, %v2488_v40, %v2507_v45  ;;  %v3077_v45 = vld [vmem:[#allocation2 + $0x3c] sm:$0xf] }
 0x399   :  { %2936 = vmatpush.bf16.msra.mxu0 %v7143_v47  ;;  %2949 = vmatpush.bf16.msra.mxu1 %v7145_v21  ;;  %v7317_v13 = vadd.f32 %v2508_v56, %v7029_v25  ;;  %v5243_v56 = vld [vmem:[%s8084_s3 + $0x3e4] sm:$0xf0] }
 0x39a   :  { %2906 = vmatpush.bf16.msrb.mxu2 %v7269_v34  ;;  %2919 = vmatpush.bf16.msrb.mxu3 %v7271_v30 }
 0x39d   :  { %2937 = vmatpush.bf16.msra.mxu0 %v7165_v6  ;;  %2950 = vmatpush.bf16.msra.mxu1 %v7167_v50  ;;  %v2490_v5 = vpop.f32.mrf.mxu0  ;;  %v2503_v54 = vpop.f32.mrf.mxu1 }
 0x39e   :  { %2907 = vmatpush.bf16.msrb.mxu2 %v7290_v20  ;;  %2920 = vmatpush.bf16.msrb.mxu3 %v7292_v11 }
 0x3a1   :  { %2938 = vmatpush.bf16.msra.mxu0 %v7185_v52  ;;  %2951 = vmatpush.bf16.msra.mxu1 %v7187_v49 }
 0x3a2   :  { %2972 = vmatpush.bf16.msra.mxu2 %v7143_v47  ;;  %2985 = vmatpush.bf16.msra.mxu3 %v7145_v21 }
 0x3a3   :  { %2908 = vmatmul.bf16.vlgmr.msrb.gmra.mxu2 %v2898_v19  ;;  %2921 = vmatmul.bf16.vlgmr.msrb.gmra.mxu3 %v2898_v19  ;;  %v4928_v19 = vld [vmem:[%s8084_s3 + $0x3e0] sm:$0xf] }
 0x3a5   :  { %2939 = vmatpush.bf16.msra.mxu0 %v7205_v18  ;;  %2952 = vmatpush.bf16.msra.mxu1 %v7207_v35 }
 0x3a6   :  { %2973 = vmatpush.bf16.msra.mxu2 %v7165_v6  ;;  %2986 = vmatpush.bf16.msra.mxu3 %v7167_v50  ;;  %v2524_v25 = vpop.f32.mrf.mxu2  ;;  %v2537_v62 = vpop.f32.mrf.mxu3 }
 0x3a7   :  { %v2543_v24 = vrot.slane %v2537_v62, 4 }
 0x3a9   :  { %2940 = vmatpush.bf16.msra.mxu0 %v7229_v9  ;;  %2953 = vmatpush.bf16.msra.mxu1 %v7231_v46  ;;  %v2544_v61 = vsel %vm437_vm0, %v2524_v25, %v2543_v24  ;;  %v7453_v25 = vor.u32 %v5243_v56, %v4928_v19  ;;  %v4920_v24 = vld [vmem:[%s8084_s3 + $0x3d0] sm:$0xf] }
 0x3aa   :  { %2974 = vmatpush.bf16.msra.mxu2 %v7185_v52  ;;  %2987 = vmatpush.bf16.msra.mxu3 %v7187_v49  ;;  %v7337_v43 = vadd.f32 %v2544_v61, %v7049_v29  ;;  %v2969_v29 = vld [vmem:[#allocation2 + $0x1e] sm:$0xf] }
 0x3ab   :  { %v2970_v59 = vpack.c.bf16 %v2969_v29, %v2969_v29  ;;  %v4922_v61 = vld [vmem:[%s8084_s3 + $0x3d8] sm:$0xf0]  ;;  %v5239_v29 = vld [vmem:[%s8084_s3 + $0x3c4] sm:$0xf0] }
 0x3ad   :  { %2941 = vmatpush.bf16.msra.mxu0 %v7249_v53  ;;  %2954 = vmatpush.bf16.msra.mxu1 %v7251_v7 }
 0x3ae   :  { %2975 = vmatpush.bf16.msra.mxu2 %v7205_v18  ;;  %2988 = vmatpush.bf16.msra.mxu3 %v7207_v35  ;;  %v2526_v60 = vpop.f32.mrf.mxu2  ;;  %v2539_v4 = vpop.f32.mrf.mxu3 }
 0x3af   :  { %v3113_v60 = vld [vmem:[#allocation2 + $0x42] sm:$0xf] }
 0x3b0   :  { %v4912_v4 = vld [vmem:[%s8084_s3 + $0x3c0] sm:$0xf] }
 0x3b1   :  { %2942 = vmatpush.bf16.msra.mxu0 %v7269_v34  ;;  %2955 = vmatpush.bf16.msra.mxu1 %v7271_v30 }
 0x3b2   :  { %2976 = vmatpush.bf16.msra.mxu2 %v7229_v9  ;;  %2989 = vmatpush.bf16.msra.mxu3 %v7231_v46 }
 0x3b5   :  { %2943 = vmatpush.bf16.msra.mxu0 %v7290_v20  ;;  %2956 = vmatpush.bf16.msra.mxu1 %v7292_v11  ;;  %v2560_v26 = vpop.f32.mrf.mxu0  ;;  %v2573_v58 = vpop.f32.mrf.mxu1 }
 0x3b6   :  { %2977 = vmatpush.bf16.msra.mxu2 %v7249_v53  ;;  %2990 = vmatpush.bf16.msra.mxu3 %v7251_v7  ;;  %v2579_v38 = vrot.slane %v2573_v58, 4 }
 0x3b8   :  { %2944 = vmatmul.bf16.vlgmr.msra.gmra.mxu0 %v2934_v2  ;;  %2957 = vmatmul.bf16.vlgmr.msra.gmra.mxu1 %v2934_v2  ;;  %v2580_v48 = vsel %vm437_vm0, %v2560_v26, %v2579_v38 }
 0x3b9   :  { %3008 = vmatpush.bf16.msrb.mxu0 %v7143_v47  ;;  %3021 = vmatpush.bf16.msrb.mxu1 %v7145_v21  ;;  %v7357_v15 = vadd.f32 %v2580_v48, %v7069_v27  ;;  %v7493_v48 = vor.u32 %v5239_v29, %v4912_v4 }
 0x3ba   :  { %2978 = vmatpush.bf16.msra.mxu2 %v7269_v34  ;;  %2991 = vmatpush.bf16.msra.mxu3 %v7271_v30 }
 0x3bd   :  { %3009 = vmatpush.bf16.msrb.mxu0 %v7165_v6  ;;  %3022 = vmatpush.bf16.msrb.mxu1 %v7167_v50  ;;  %v2562_v55 = vpop.f32.mrf.mxu0  ;;  %v2575_v36 = vpop.f32.mrf.mxu1 }
 0x3be   :  { %2979 = vmatpush.bf16.msra.mxu2 %v7290_v20  ;;  %2992 = vmatpush.bf16.msra.mxu3 %v7292_v11  ;;  %v4904_v36 = vld [vmem:[%s8084_s3 + $0x3b0] sm:$0xf] }
 0x3c1   :  { %3010 = vmatpush.bf16.msrb.mxu0 %v7185_v52  ;;  %3023 = vmatpush.bf16.msrb.mxu1 %v7187_v49 }
 0x3c2   :  { %3044 = vmatpush.bf16.msrb.mxu2 %v7143_v47  ;;  %3057 = vmatpush.bf16.msrb.mxu3 %v7145_v21 }
 0x3c3   :  { %2980 = vmatmul.bf16.vlgmr.msra.gmra.mxu2 %v2970_v59  ;;  %2993 = vmatmul.bf16.vlgmr.msra.gmra.mxu3 %v2970_v59  ;;  %v3114_v59 = vpack.c.bf16 %v3113_v60, %v3113_v60 }
 0x3c5   :  { %3011 = vmatpush.bf16.msrb.mxu0 %v7205_v18  ;;  %3024 = vmatpush.bf16.msrb.mxu1 %v7207_v35 }
 0x3c6   :  { %3045 = vmatpush.bf16.msrb.mxu2 %v7165_v6  ;;  %3058 = vmatpush.bf16.msrb.mxu3 %v7167_v50  ;;  %v2596_v27 = vpop.f32.mrf.mxu2  ;;  %v2609_v1 = vpop.f32.mrf.mxu3 }
 0x3c7   :  { %v2615_v12 = vrot.slane %v2609_v1, 4  ;;  %v4906_v1 = vld [vmem:[%s8084_s3 + $0x3b8] sm:$0xf0] }
 0x3c9   :  { %3012 = vmatpush.bf16.msrb.mxu0 %v7229_v9  ;;  %3025 = vmatpush.bf16.msrb.mxu1 %v7231_v46  ;;  %v2616_v42 = vsel %vm437_vm0, %v2596_v27, %v2615_v12  ;;  %v5236_v27 = vld [vmem:[%s8084_s3 + $0x3b4] sm:$0xf] }
 0x3ca   :  { %3046 = vmatpush.bf16.msrb.mxu2 %v7185_v52  ;;  %3059 = vmatpush.bf16.msrb.mxu3 %v7187_v49  ;;  %v7377_v31 = vadd.f32 %v2616_v42, %v7089_v57  ;;  %v3041_v57 = vld [vmem:[#allocation2 + $0x36] sm:$0xf]  ;;  %v7519_v51 = vor.u32 %v5236_v27, %v4906_v1 }
 0x3cb   :  { %v3042_v33 = vpack.c.bf16 %v3041_v57, %v3041_v57 }
 0x3cd   :  { %3013 = vmatpush.bf16.msrb.mxu0 %v7249_v53  ;;  %3026 = vmatpush.bf16.msrb.mxu1 %v7251_v7 }
 0x3ce   :  { %3047 = vmatpush.bf16.msrb.mxu2 %v7205_v18  ;;  %3060 = vmatpush.bf16.msrb.mxu3 %v7207_v35  ;;  %v2598_v16 = vpop.f32.mrf.mxu2  ;;  %v2611_v22 = vpop.f32.mrf.mxu3 }
 0x3cf   :  { %v5234_v16 = vld [vmem:[%s8084_s3 + $0x3a4] sm:$0xf]  ;;  %v4898_v22 = vld [vmem:[%s8084_s3 + $0x3a8] sm:$0xf0] }
 0x3d1   :  { %3014 = vmatpush.bf16.msrb.mxu0 %v7269_v34  ;;  %3027 = vmatpush.bf16.msrb.mxu1 %v7271_v30 }
 0x3d2   :  { %3048 = vmatpush.bf16.msrb.mxu2 %v7229_v9  ;;  %3061 = vmatpush.bf16.msrb.mxu3 %v7231_v46 }
 0x3d5   :  { %3015 = vmatpush.bf16.msrb.mxu0 %v7290_v20  ;;  %3028 = vmatpush.bf16.msrb.mxu1 %v7292_v11  ;;  %v2632_v32 = vpop.f32.mrf.mxu0  ;;  %v2645_v39 = vpop.f32.mrf.mxu1 }
 0x3d6   :  { %3049 = vmatpush.bf16.msrb.mxu2 %v7249_v53  ;;  %3062 = vmatpush.bf16.msrb.mxu3 %v7251_v7  ;;  %v2651_v8 = vrot.slane %v2645_v39, 4 }
 0x3d8   :  { %3016 = vmatmul.bf16.vlgmr.msrb.gmra.mxu0 %v3006_v3  ;;  %3029 = vmatmul.bf16.vlgmr.msrb.gmra.mxu1 %v3006_v3  ;;  %v2652_v28 = vsel %vm437_vm0, %v2632_v32, %v2651_v8  ;;  %v4896_v3 = vld [vmem:[%s8084_s3 + $0x3a0] sm:$0xf]  ;;  %v7539_v8 = vor.u32 %v5234_v16, %v4898_v22 }
 0x3d9   :  { %3080 = vmatpush.bf16.msra.mxu0 %v7143_v47  ;;  %3093 = vmatpush.bf16.msra.mxu1 %v7145_v21  ;;  %v7397_v63 = vadd.f32 %v2652_v28, %v7109_v23  ;;  %v5233_v28 = vld [vmem:[%s8084_s3 + $0x394] sm:$0xf0] }
 0x3da   :  { %3050 = vmatpush.bf16.msrb.mxu2 %v7269_v34  ;;  %3063 = vmatpush.bf16.msrb.mxu3 %v7271_v30 }
 0x3dd   :  { %3081 = vmatpush.bf16.msra.mxu0 %v7165_v6  ;;  %3094 = vmatpush.bf16.msra.mxu1 %v7167_v50  ;;  %v2634_v37 = vpop.f32.mrf.mxu0  ;;  %v2647_v41 = vpop.f32.mrf.mxu1 }
 0x3de   :  { %3051 = vmatpush.bf16.msrb.mxu2 %v7290_v20  ;;  %3064 = vmatpush.bf16.msrb.mxu3 %v7292_v11  ;;  %v5232_v37 = vld [vmem:[%s8084_s3 + $0x394] sm:$0xf]  ;;  %v4890_v41 = vld [vmem:[%s8084_s3 + $0x398] sm:$0xf0] }
 0x3e1   :  { %3082 = vmatpush.bf16.msra.mxu0 %v7185_v52  ;;  %3095 = vmatpush.bf16.msra.mxu1 %v7187_v49 }
 0x3e2   :  { %3116 = vmatpush.bf16.msra.mxu2 %v7143_v47  ;;  %3129 = vmatpush.bf16.msra.mxu3 %v7145_v21 }
 0x3e3   :  { %3052 = vmatmul.bf16.vlgmr.msrb.gmra.mxu2 %v3042_v33  ;;  %3065 = vmatmul.bf16.vlgmr.msrb.gmra.mxu3 %v3042_v33  ;;  %v4888_v33 = vld [vmem:[%s8084_s3 + $0x390] sm:$0xf] }
 0x3e5   :  { %3083 = vmatpush.bf16.msra.mxu0 %v7205_v18  ;;  %3096 = vmatpush.bf16.msra.mxu1 %v7207_v35 }
 0x3e6   :  { %3117 = vmatpush.bf16.msra.mxu2 %v7165_v6  ;;  %3130 = vmatpush.bf16.msra.mxu3 %v7167_v50  ;;  %v2668_v23 = vpop.f32.mrf.mxu2  ;;  %v2681_v47 = vpop.f32.mrf.mxu3  ;;  %v4936_v6 = vld [vmem:[%s8084_s3 + $0x3f0] sm:$0xf]  ;;  %v5245_v50 = vld [vmem:[%s8084_s3 + $0x3f4] sm:$0xf0] }
 0x3e7   :  { %v2687_v21 = vrot.slane %v2681_v47, 4  ;;  %v7431_v40 = vor.u32 %v5245_v50, %v4936_v6  ;;  %v7559_v47 = vor.u32 %v5232_v37, %v4890_v41 }
 0x3e9   :  { %3084 = vmatpush.bf16.msra.mxu0 %v7229_v9  ;;  %3097 = vmatpush.bf16.msra.mxu1 %v7231_v46 }
 0x3ea   :  { %3118 = vmatpush.bf16.msra.mxu2 %v7185_v52  ;;  %3131 = vmatpush.bf16.msra.mxu3 %v7187_v49  ;;  %v5244_v52 = vld [vmem:[%s8084_s3 + $0x3f4] sm:$0xf]  ;;  %v4938_v49 = vld [vmem:[%s8084_s3 + $0x3f8] sm:$0xf0] }
 0x3eb   :  { %v7433_v44 = vor.u32 %v5244_v52, %v4938_v49  ;;  %v5231_v52 = vld [vmem:[%s8084_s3 + $0x384] sm:$0xf0]  ;;  %v5230_v49 = vld [vmem:[%s8084_s3 + $0x384] sm:$0xf] }
 0x3ed   :  { %3085 = vmatpush.bf16.msra.mxu0 %v7249_v53  ;;  %3098 = vmatpush.bf16.msra.mxu1 %v7251_v7 }
 0x3ee   :  { %3119 = vmatpush.bf16.msra.mxu2 %v7205_v18  ;;  %3132 = vmatpush.bf16.msra.mxu3 %v7207_v35  ;;  %v2688_v18 = vsel %vm437_vm0, %v2668_v23, %v2687_v21  ;;  %v2670_v5 = vpop.f32.mrf.mxu2  ;;  %v2683_v54 = vpop.f32.mrf.mxu3  ;;  %v7557_v23 = vor.u32 %v5233_v28, %v4888_v33  ;;  %v4880_v21 = vld [vmem:[%s8084_s3 + $0x380] sm:$0xf] }
 0x3ef   :  { %v7429_v35 = vadd.f32 %v2688_v18, %v7141_v0  ;;  %v4930_v0 = vld [vmem:[%s8084_s3 + $0x3e8] sm:$0xf0]  ;;  %v7578_v56 = vor.u32 %v5231_v52, %v4880_v21 }
 0x3f0   :  { %v4882_v18 = vld [vmem:[%s8084_s3 + $0x388] sm:$0xf0] }
 0x3f1   :  { %3086 = vmatpush.bf16.msra.mxu0 %v7269_v34  ;;  %3099 = vmatpush.bf16.msra.mxu1 %v7271_v30 }
 0x3f2   :  { %3120 = vmatpush.bf16.msra.mxu2 %v7229_v9  ;;  %3133 = vmatpush.bf16.msra.mxu3 %v7231_v46  ;;  %v5242_v9 = vld [vmem:[%s8084_s3 + $0x3e4] sm:$0xf]  ;;  %v3078_v46 = vpack.c.bf16 %v3077_v45, %v3077_v45 }
 0x3f3   :  { %v7455_v62 = vor.u32 %v5242_v9, %v4930_v0  ;;  %v7580_v9 = vor.u32 %v5230_v49, %v4882_v18 }
 0x3f5   :  { %3087 = vmatpush.bf16.msra.mxu0 %v7290_v20  ;;  %3100 = vmatpush.bf16.msra.mxu1 %v7292_v11  ;;  %v2704_v26 = vpop.f32.mrf.mxu0  ;;  %v2717_v58 = vpop.f32.mrf.mxu1 }
 0x3f6   :  { %3121 = vmatpush.bf16.msra.mxu2 %v7249_v53  ;;  %3134 = vmatpush.bf16.msra.mxu3 %v7251_v7  ;;  %v5241_v53 = vld [vmem:[%s8084_s3 + $0x3d4] sm:$0xf0]  ;;  %v5240_v7 = vld [vmem:[%s8084_s3 + $0x3d4] sm:$0xf]  ;;  %v2723_v38 = vrot.slane %v2717_v58, 4 }
 0x3f7   :  { %v7473_v10 = vor.u32 %v5241_v53, %v4920_v24  ;;  %v7475_v2 = vor.u32 %v5240_v7, %v4922_v61 }
 0x3f8   :  { %3088 = vmatmul.bf16.vlgmr.msra.gmra.mxu0 %v3078_v46  ;;  %3101 = vmatmul.bf16.vlgmr.msra.gmra.mxu1 %v3078_v46  ;;  %v3166_v46 = vld [vmem:[#allocation2 + $0xd] sm:$0xf] }
 0x3f9   :  { %3249 = vmatpush.bf16.msrb.mxu0 %v7431_v40  ;;  %3262 = vmatpush.bf16.msrb.mxu1 %v7433_v44  ;;  %v3167_v5 = vpack.c.bf16 %v3166_v46, %v3166_v46 }
 0x3fa   :  { %3122 = vmatpush.bf16.msra.mxu2 %v7269_v34  ;;  %3135 = vmatpush.bf16.msra.mxu3 %v7271_v30  ;;  %v5238_v34 = vld [vmem:[%s8084_s3 + $0x3c4] sm:$0xf]  ;;  %v4914_v30 = vld [vmem:[%s8084_s3 + $0x3c8] sm:$0xf0] }
 0x3fb   :  { %v7495_v55 = vor.u32 %v5238_v34, %v4914_v30 }
 0x3fd   :  { %3250 = vmatpush.bf16.msrb.mxu0 %v7453_v25  ;;  %3263 = vmatpush.bf16.msrb.mxu1 %v7455_v62  ;;  %v2706_v57 = vpop.f32.mrf.mxu0  ;;  %v2719_v32 = vpop.f32.mrf.mxu1 }
 0x3fe   :  { %3123 = vmatpush.bf16.msra.mxu2 %v7290_v20  ;;  %3136 = vmatpush.bf16.msra.mxu3 %v7292_v11  ;;  %v2724_v20 = vsel %vm437_vm0, %v2704_v26, %v2723_v38  ;;  %v5237_v11 = vld [vmem:[%s8084_s3 + $0x3b4] sm:$0xf0] }
 0x3ff   :  { %v7513_v12 = vadd.f32 %v2724_v20, %v7225_v17  ;;  %v7517_v42 = vor.u32 %v5237_v11, %v4904_v36  ;;  %v5235_v17 = vld [vmem:[%s8084_s3 + $0x3a4] sm:$0xf0]  ;;  %v3318_v36 = vld [vmem:[#allocation2 + $0x19] sm:$0xf] }
 0x400   :  { %v7537_v39 = vor.u32 %v5235_v17, %v4896_v3  ;;  %v3319_v20 = vpack.c.bf16 %v3318_v36, %v3318_v36 }
 0x401   :  { %3251 = vmatpush.bf16.msrb.mxu0 %v7473_v10  ;;  %3264 = vmatpush.bf16.msrb.mxu1 %v7475_v2 }
 0x402   :  { %3285 = vmatpush.bf16.msrb.mxu2 %v7431_v40  ;;  %3298 = vmatpush.bf16.msrb.mxu3 %v7433_v44 }
 0x403   :  { %3124 = vmatmul.bf16.vlgmr.msra.gmra.mxu2 %v3114_v59  ;;  %3137 = vmatmul.bf16.vlgmr.msra.gmra.mxu3 %v3114_v59 }
 0x405   :  { %3252 = vmatpush.bf16.msrb.mxu0 %v7493_v48  ;;  %3265 = vmatpush.bf16.msrb.mxu1 %v7495_v55 }
 0x406   :  { %3286 = vmatpush.bf16.msrb.mxu2 %v7453_v25  ;;  %3299 = vmatpush.bf16.msrb.mxu3 %v7455_v62  ;;  %v2740_v6 = vpop.f32.mrf.mxu2  ;;  %v2753_v50 = vpop.f32.mrf.mxu3 }
 0x407   :  { %v2759_v45 = vrot.slane %v2753_v50, 4 }
 0x409   :  { %3253 = vmatpush.bf16.msrb.mxu0 %v7517_v42  ;;  %3266 = vmatpush.bf16.msrb.mxu1 %v7519_v51  ;;  %v2760_v19 = vsel %vm437_vm0, %v2740_v6, %v2759_v45  ;;  %v3390_v6 = vld [vmem:[#allocation2 + $0x31] sm:$0xf] }
 0x40a   :  { %3287 = vmatpush.bf16.msrb.mxu2 %v7473_v10  ;;  %3300 = vmatpush.bf16.msrb.mxu3 %v7475_v2  ;;  %v7585_v0 = vadd.f32 %v2760_v19, %v7297_v14  ;;  %v3282_v14 = vld [vmem:[#allocation2 + $0x13] sm:$0xf]  ;;  %v3391_v50 = vpack.c.bf16 %v3390_v6, %v3390_v6 }
 0x40b   :  { %v3283_v60 = vpack.c.bf16 %v3282_v14, %v3282_v14 }
 0x40d   :  { %3254 = vmatpush.bf16.msrb.mxu0 %v7537_v39  ;;  %3267 = vmatpush.bf16.msrb.mxu1 %v7539_v8 }
 0x40e   :  { %3288 = vmatpush.bf16.msrb.mxu2 %v7493_v48  ;;  %3301 = vmatpush.bf16.msrb.mxu3 %v7495_v55  ;;  %v2742_v54 = vpop.f32.mrf.mxu2  ;;  %v2755_v24 = vpop.f32.mrf.mxu3 }
 0x411   :  { %3255 = vmatpush.bf16.msrb.mxu0 %v7557_v23  ;;  %3268 = vmatpush.bf16.msrb.mxu1 %v7559_v47 }
 0x412   :  { %3289 = vmatpush.bf16.msrb.mxu2 %v7517_v42  ;;  %3302 = vmatpush.bf16.msrb.mxu3 %v7519_v51 }
 0x415   :  { %3256 = vmatpush.bf16.msrb.mxu0 %v7578_v56  ;;  %3269 = vmatpush.bf16.msrb.mxu1 %v7580_v9  ;;  %v2873_v53 = vpop.f32.mrf.mxu0  ;;  %v2886_v7 = vpop.f32.mrf.mxu1 }
 0x416   :  { %3290 = vmatpush.bf16.msrb.mxu2 %v7537_v39  ;;  %3303 = vmatpush.bf16.msrb.mxu3 %v7539_v8  ;;  %v2892_v61 = vrot.slane %v2886_v7, 4 }
 0x418   :  { %3257 = vmatmul.bf16.vlgmr.msrb.gmra.mxu0 %v3167_v5  ;;  %3270 = vmatmul.bf16.vlgmr.msrb.gmra.mxu1 %v3167_v5  ;;  %v2893_v4 = vsel %vm437_vm0, %v2873_v53, %v2892_v61  ;;  %v3462_v61 = vld [vmem:[#allocation2 + $0x3d] sm:$0xf] }
 0x419   :  { %3321 = vmatpush.bf16.msra.mxu0 %v7431_v40  ;;  %3334 = vmatpush.bf16.msra.mxu1 %v7433_v44  ;;  %v7605_v29 = vadd.f32 %v2893_v4, %v7317_v13  ;;  %v5259_v4 = vld [vmem:[%s8084_s3 + $0x464] sm:$0xf0] }
 0x41a   :  { %3291 = vmatpush.bf16.msrb.mxu2 %v7557_v23  ;;  %3304 = vmatpush.bf16.msrb.mxu3 %v7559_v47 }
 0x41d   :  { %3322 = vmatpush.bf16.msra.mxu0 %v7453_v25  ;;  %3335 = vmatpush.bf16.msra.mxu1 %v7455_v62  ;;  %v2875_v34 = vpop.f32.mrf.mxu0  ;;  %v2888_v30 = vpop.f32.mrf.mxu1 }
 0x41e   :  { %3292 = vmatpush.bf16.msrb.mxu2 %v7578_v56  ;;  %3305 = vmatpush.bf16.msrb.mxu3 %v7580_v9 }
 0x421   :  { %3323 = vmatpush.bf16.msra.mxu0 %v7473_v10  ;;  %3336 = vmatpush.bf16.msra.mxu1 %v7475_v2 }
 0x422   :  { %3357 = vmatpush.bf16.msra.mxu2 %v7431_v40  ;;  %3370 = vmatpush.bf16.msra.mxu3 %v7433_v44 }
 0x423   :  { %3293 = vmatmul.bf16.vlgmr.msrb.gmra.mxu2 %v3283_v60  ;;  %3306 = vmatmul.bf16.vlgmr.msrb.gmra.mxu3 %v3283_v60  ;;  %v5008_v60 = vld [vmem:[%s8084_s3 + $0x460] sm:$0xf] }
 0x425   :  { %3324 = vmatpush.bf16.msra.mxu0 %v7493_v48  ;;  %3337 = vmatpush.bf16.msra.mxu1 %v7495_v55 }
 0x426   :  { %3358 = vmatpush.bf16.msra.mxu2 %v7453_v25  ;;  %3371 = vmatpush.bf16.msra.mxu3 %v7455_v62  ;;  %v2909_v13 = vpop.f32.mrf.mxu2  ;;  %v2922_v26 = vpop.f32.mrf.mxu3 }
 0x427   :  { %v2928_v58 = vrot.slane %v2922_v26, 4 }
 0x429   :  { %3325 = vmatpush.bf16.msra.mxu0 %v7517_v42  ;;  %3338 = vmatpush.bf16.msra.mxu1 %v7519_v51  ;;  %v2929_v38 = vsel %vm437_vm0, %v2909_v13, %v2928_v58  ;;  %v7741_v13 = vor.u32 %v5259_v4, %v5008_v60  ;;  %v5000_v58 = vld [vmem:[%s8084_s3 + $0x450] sm:$0xf] }
 0x42a   :  { %3359 = vmatpush.bf16.msra.mxu2 %v7473_v10  ;;  %3372 = vmatpush.bf16.msra.mxu3 %v7475_v2  ;;  %v7625_v59 = vadd.f32 %v2929_v38, %v7337_v43  ;;  %v3354_v43 = vld [vmem:[#allocation2 + $0x1f] sm:$0xf] }
 0x42b   :  { %v3355_v16 = vpack.c.bf16 %v3354_v43, %v3354_v43  ;;  %v5002_v38 = vld [vmem:[%s8084_s3 + $0x458] sm:$0xf0]  ;;  %v5255_v43 = vld [vmem:[%s8084_s3 + $0x444] sm:$0xf0] }
 0x42d   :  { %3326 = vmatpush.bf16.msra.mxu0 %v7537_v39  ;;  %3339 = vmatpush.bf16.msra.mxu1 %v7539_v8 }
 0x42e   :  { %3360 = vmatpush.bf16.msra.mxu2 %v7493_v48  ;;  %3373 = vmatpush.bf16.msra.mxu3 %v7495_v55  ;;  %v2911_v11 = vpop.f32.mrf.mxu2  ;;  %v2924_v27 = vpop.f32.mrf.mxu3 }
 0x42f   :  { %v3498_v11 = vld [vmem:[#allocation2 + $0x43] sm:$0xf] }
 0x430   :  { %v4992_v27 = vld [vmem:[%s8084_s3 + $0x440] sm:$0xf] }
 0x431   :  { %3327 = vmatpush.bf16.msra.mxu0 %v7557_v23  ;;  %3340 = vmatpush.bf16.msra.mxu1 %v7559_v47 }
 0x432   :  { %3361 = vmatpush.bf16.msra.mxu2 %v7517_v42  ;;  %3374 = vmatpush.bf16.msra.mxu3 %v7519_v51 }
 0x435   :  { %3328 = vmatpush.bf16.msra.mxu0 %v7578_v56  ;;  %3341 = vmatpush.bf16.msra.mxu1 %v7580_v9  ;;  %v2945_v1 = vpop.f32.mrf.mxu0  ;;  %v2958_v3 = vpop.f32.mrf.mxu1 }
 0x436   :  { %3362 = vmatpush.bf16.msra.mxu2 %v7537_v39  ;;  %3375 = vmatpush.bf16.msra.mxu3 %v7539_v8  ;;  %v2964_v17 = vrot.slane %v2958_v3, 4 }
 0x438   :  { %3329 = vmatmul.bf16.vlgmr.msra.gmra.mxu0 %v3319_v20  ;;  %3342 = vmatmul.bf16.vlgmr.msra.gmra.mxu1 %v3319_v20  ;;  %v2965_v22 = vsel %vm437_vm0, %v2945_v1, %v2964_v17 }
 0x439   :  { %3393 = vmatpush.bf16.msrb.mxu0 %v7431_v40  ;;  %3406 = vmatpush.bf16.msrb.mxu1 %v7433_v44  ;;  %v7645_v57 = vadd.f32 %v2965_v22, %v7357_v15  ;;  %v7781_v22 = vor.u32 %v5255_v43, %v4992_v27 }
 0x43a   :  { %3363 = vmatpush.bf16.msra.mxu2 %v7557_v23  ;;  %3376 = vmatpush.bf16.msra.mxu3 %v7559_v47 }
 0x43d   :  { %3394 = vmatpush.bf16.msrb.mxu0 %v7453_v25  ;;  %3407 = vmatpush.bf16.msrb.mxu1 %v7455_v62  ;;  %v2947_v32 = vpop.f32.mrf.mxu0  ;;  %v2960_v33 = vpop.f32.mrf.mxu1 }
 0x43e   :  { %3364 = vmatpush.bf16.msra.mxu2 %v7578_v56  ;;  %3377 = vmatpush.bf16.msra.mxu3 %v7580_v9  ;;  %v4984_v33 = vld [vmem:[%s8084_s3 + $0x430] sm:$0xf] }
 0x441   :  { %3395 = vmatpush.bf16.msrb.mxu0 %v7473_v10  ;;  %3408 = vmatpush.bf16.msrb.mxu1 %v7475_v2 }
 0x442   :  { %3429 = vmatpush.bf16.msrb.mxu2 %v7431_v40  ;;  %3442 = vmatpush.bf16.msrb.mxu3 %v7433_v44 }
 0x443   :  { %3365 = vmatmul.bf16.vlgmr.msra.gmra.mxu2 %v3355_v16  ;;  %3378 = vmatmul.bf16.vlgmr.msra.gmra.mxu3 %v3355_v16  ;;  %v3499_v16 = vpack.c.bf16 %v3498_v11, %v3498_v11 }
 0x445   :  { %3396 = vmatpush.bf16.msrb.mxu0 %v7493_v48  ;;  %3409 = vmatpush.bf16.msrb.mxu1 %v7495_v55 }
 0x446   :  { %3430 = vmatpush.bf16.msrb.mxu2 %v7453_v25  ;;  %3443 = vmatpush.bf16.msrb.mxu3 %v7455_v62  ;;  %v2981_v15 = vpop.f32.mrf.mxu2  ;;  %v2994_v28 = vpop.f32.mrf.mxu3 }
 0x447   :  { %v3000_v37 = vrot.slane %v2994_v28, 4  ;;  %v4986_v28 = vld [vmem:[%s8084_s3 + $0x438] sm:$0xf0] }
 0x449   :  { %3397 = vmatpush.bf16.msrb.mxu0 %v7517_v42  ;;  %3410 = vmatpush.bf16.msrb.mxu1 %v7519_v51  ;;  %v3001_v41 = vsel %vm437_vm0, %v2981_v15, %v3000_v37  ;;  %v5252_v15 = vld [vmem:[%s8084_s3 + $0x434] sm:$0xf] }
 0x44a   :  { %3431 = vmatpush.bf16.msrb.mxu2 %v7473_v10  ;;  %3444 = vmatpush.bf16.msrb.mxu3 %v7475_v2  ;;  %v7665_v21 = vadd.f32 %v3001_v41, %v7377_v31  ;;  %v3426_v31 = vld [vmem:[#allocation2 + $0x37] sm:$0xf]  ;;  %v7807_v6 = vor.u32 %v5252_v15, %v4986_v28 }
 0x44b   :  { %v3427_v46 = vpack.c.bf16 %v3426_v31, %v3426_v31 }
 0x44d   :  { %3398 = vmatpush.bf16.msrb.mxu0 %v7537_v39  ;;  %3411 = vmatpush.bf16.msrb.mxu1 %v7539_v8 }
 0x44e   :  { %3432 = vmatpush.bf16.msrb.mxu2 %v7493_v48  ;;  %3445 = vmatpush.bf16.msrb.mxu3 %v7495_v55  ;;  %v2983_v52 = vpop.f32.mrf.mxu2  ;;  %v2996_v49 = vpop.f32.mrf.mxu3 }
 0x44f   :  { %v5250_v52 = vld [vmem:[%s8084_s3 + $0x424] sm:$0xf]  ;;  %v4978_v49 = vld [vmem:[%s8084_s3 + $0x428] sm:$0xf0] }
 0x451   :  { %3399 = vmatpush.bf16.msrb.mxu0 %v7557_v23  ;;  %3412 = vmatpush.bf16.msrb.mxu1 %v7559_v47 }
 0x452   :  { %3433 = vmatpush.bf16.msrb.mxu2 %v7517_v42  ;;  %3446 = vmatpush.bf16.msrb.mxu3 %v7519_v51 }
 0x455   :  { %3400 = vmatpush.bf16.msrb.mxu0 %v7578_v56  ;;  %3413 = vmatpush.bf16.msrb.mxu1 %v7580_v9  ;;  %v3017_v18 = vpop.f32.mrf.mxu0  ;;  %v3030_v45 = vpop.f32.mrf.mxu1 }
 0x456   :  { %3434 = vmatpush.bf16.msrb.mxu2 %v7537_v39  ;;  %3447 = vmatpush.bf16.msrb.mxu3 %v7539_v8  ;;  %v3036_v19 = vrot.slane %v3030_v45, 4 }
 0x458   :  { %3401 = vmatmul.bf16.vlgmr.msrb.gmra.mxu0 %v3391_v50  ;;  %3414 = vmatmul.bf16.vlgmr.msrb.gmra.mxu1 %v3391_v50  ;;  %v3037_v5 = vsel %vm437_vm0, %v3017_v18, %v3036_v19  ;;  %v4976_v50 = vld [vmem:[%s8084_s3 + $0x420] sm:$0xf]  ;;  %v7827_v19 = vor.u32 %v5250_v52, %v4978_v49 }
 0x459   :  { %3465 = vmatpush.bf16.msra.mxu0 %v7431_v40  ;;  %3478 = vmatpush.bf16.msra.mxu1 %v7433_v44  ;;  %v7685_v54 = vadd.f32 %v3037_v5, %v7397_v63  ;;  %v5249_v5 = vld [vmem:[%s8084_s3 + $0x414] sm:$0xf0] }
 0x45a   :  { %3435 = vmatpush.bf16.msrb.mxu2 %v7557_v23  ;;  %3448 = vmatpush.bf16.msrb.mxu3 %v7559_v47 }
 0x45d   :  { %3466 = vmatpush.bf16.msra.mxu0 %v7453_v25  ;;  %3479 = vmatpush.bf16.msra.mxu1 %v7455_v62  ;;  %v3019_v24 = vpop.f32.mrf.mxu0  ;;  %v3032_v14 = vpop.f32.mrf.mxu1 }
 0x45e   :  { %3436 = vmatpush.bf16.msrb.mxu2 %v7578_v56  ;;  %3449 = vmatpush.bf16.msrb.mxu3 %v7580_v9  ;;  %v5248_v24 = vld [vmem:[%s8084_s3 + $0x414] sm:$0xf]  ;;  %v4970_v14 = vld [vmem:[%s8084_s3 + $0x418] sm:$0xf0] }
 0x461   :  { %3467 = vmatpush.bf16.msra.mxu0 %v7473_v10  ;;  %3480 = vmatpush.bf16.msra.mxu1 %v7475_v2 }
 0x462   :  { %3501 = vmatpush.bf16.msra.mxu2 %v7431_v40  ;;  %3514 = vmatpush.bf16.msra.mxu3 %v7433_v44 }
 0x463   :  { %3437 = vmatmul.bf16.vlgmr.msrb.gmra.mxu2 %v3427_v46  ;;  %3450 = vmatmul.bf16.vlgmr.msrb.gmra.mxu3 %v3427_v46  ;;  %v4968_v46 = vld [vmem:[%s8084_s3 + $0x410] sm:$0xf] }
 0x465   :  { %3468 = vmatpush.bf16.msra.mxu0 %v7493_v48  ;;  %3481 = vmatpush.bf16.msra.mxu1 %v7495_v55 }
 0x466   :  { %3502 = vmatpush.bf16.msra.mxu2 %v7453_v25  ;;  %3515 = vmatpush.bf16.msra.mxu3 %v7455_v62  ;;  %v3053_v63 = vpop.f32.mrf.mxu2  ;;  %v3066_v40 = vpop.f32.mrf.mxu3  ;;  %v5016_v25 = vld [vmem:[%s8084_s3 + $0x470] sm:$0xf]  ;;  %v5261_v62 = vld [vmem:[%s8084_s3 + $0x474] sm:$0xf0] }
 0x467   :  { %v3072_v44 = vrot.slane %v3066_v40, 4  ;;  %v7719_v53 = vor.u32 %v5261_v62, %v5016_v25  ;;  %v7847_v40 = vor.u32 %v5248_v24, %v4970_v14 }
 0x469   :  { %3469 = vmatpush.bf16.msra.mxu0 %v7517_v42  ;;  %3482 = vmatpush.bf16.msra.mxu1 %v7519_v51 }
 0x46a   :  { %3503 = vmatpush.bf16.msra.mxu2 %v7473_v10  ;;  %3516 = vmatpush.bf16.msra.mxu3 %v7475_v2  ;;  %v5260_v10 = vld [vmem:[%s8084_s3 + $0x474] sm:$0xf]  ;;  %v5018_v2 = vld [vmem:[%s8084_s3 + $0x478] sm:$0xf0] }
 0x46b   :  { %v7721_v7 = vor.u32 %v5260_v10, %v5018_v2  ;;  %v5247_v10 = vld [vmem:[%s8084_s3 + $0x404] sm:$0xf0]  ;;  %v5246_v2 = vld [vmem:[%s8084_s3 + $0x404] sm:$0xf] }
 0x46d   :  { %3470 = vmatpush.bf16.msra.mxu0 %v7537_v39  ;;  %3483 = vmatpush.bf16.msra.mxu1 %v7539_v8 }
 0x46e   :  { %3504 = vmatpush.bf16.msra.mxu2 %v7493_v48  ;;  %3517 = vmatpush.bf16.msra.mxu3 %v7495_v55  ;;  %v3073_v48 = vsel %vm437_vm0, %v3053_v63, %v3072_v44  ;;  %v3055_v34 = vpop.f32.mrf.mxu2  ;;  %v3068_v30 = vpop.f32.mrf.mxu3  ;;  %v7845_v63 = vor.u32 %v5249_v5, %v4968_v46  ;;  %v4960_v44 = vld [vmem:[%s8084_s3 + $0x400] sm:$0xf] }
 0x46f   :  { %v7717_v55 = vadd.f32 %v3073_v48, %v7429_v35  ;;  %v5010_v35 = vld [vmem:[%s8084_s3 + $0x468] sm:$0xf0]  ;;  %v7866_v4 = vor.u32 %v5247_v10, %v4960_v44 }
 0x470   :  { %v4962_v48 = vld [vmem:[%s8084_s3 + $0x408] sm:$0xf0] }
 0x471   :  { %3471 = vmatpush.bf16.msra.mxu0 %v7557_v23  ;;  %3484 = vmatpush.bf16.msra.mxu1 %v7559_v47 }
 0x472   :  { %3505 = vmatpush.bf16.msra.mxu2 %v7517_v42  ;;  %3518 = vmatpush.bf16.msra.mxu3 %v7519_v51  ;;  %v5258_v42 = vld [vmem:[%s8084_s3 + $0x464] sm:$0xf]  ;;  %v3463_v51 = vpack.c.bf16 %v3462_v61, %v3462_v61 }
 0x473   :  { %v7743_v26 = vor.u32 %v5258_v42, %v5010_v35  ;;  %v7868_v42 = vor.u32 %v5246_v2, %v4962_v48 }
 0x475   :  { %3472 = vmatpush.bf16.msra.mxu0 %v7578_v56  ;;  %3485 = vmatpush.bf16.msra.mxu1 %v7580_v9  ;;  %v3089_v1 = vpop.f32.mrf.mxu0  ;;  %v3102_v3 = vpop.f32.mrf.mxu1 }
 0x476   :  { %3506 = vmatpush.bf16.msra.mxu2 %v7537_v39  ;;  %3519 = vmatpush.bf16.msra.mxu3 %v7539_v8  ;;  %v5257_v39 = vld [vmem:[%s8084_s3 + $0x454] sm:$0xf0]  ;;  %v5256_v8 = vld [vmem:[%s8084_s3 + $0x454] sm:$0xf]  ;;  %v3108_v17 = vrot.slane %v3102_v3, 4 }
 0x477   :  { %v7761_v36 = vor.u32 %v5257_v39, %v5000_v58  ;;  %v7763_v20 = vor.u32 %v5256_v8, %v5002_v38 }
 0x478   :  { %3473 = vmatmul.bf16.vlgmr.msra.gmra.mxu0 %v3463_v51  ;;  %3486 = vmatmul.bf16.vlgmr.msra.gmra.mxu1 %v3463_v51  ;;  %v3551_v51 = vld [vmem:[#allocation2 + $0xe] sm:$0xf] }
 0x479   :  { %3634 = vmatpush.bf16.msrb.mxu0 %v7719_v53  ;;  %3647 = vmatpush.bf16.msrb.mxu1 %v7721_v7  ;;  %v3552_v34 = vpack.c.bf16 %v3551_v51, %v3551_v51 }
 0x47a   :  { %3507 = vmatpush.bf16.msra.mxu2 %v7557_v23  ;;  %3520 = vmatpush.bf16.msra.mxu3 %v7559_v47  ;;  %v5254_v23 = vld [vmem:[%s8084_s3 + $0x444] sm:$0xf]  ;;  %v4994_v47 = vld [vmem:[%s8084_s3 + $0x448] sm:$0xf0] }
 0x47b   :  { %v7783_v32 = vor.u32 %v5254_v23, %v4994_v47 }
 0x47d   :  { %3635 = vmatpush.bf16.msrb.mxu0 %v7741_v13  ;;  %3648 = vmatpush.bf16.msrb.mxu1 %v7743_v26  ;;  %v3091_v31 = vpop.f32.mrf.mxu0  ;;  %v3104_v18 = vpop.f32.mrf.mxu1 }
 0x47e   :  { %3508 = vmatpush.bf16.msra.mxu2 %v7578_v56  ;;  %3521 = vmatpush.bf16.msra.mxu3 %v7580_v9  ;;  %v3109_v56 = vsel %vm437_vm0, %v3089_v1, %v3108_v17  ;;  %v5253_v9 = vld [vmem:[%s8084_s3 + $0x434] sm:$0xf0] }
 0x47f   :  { %v7801_v37 = vadd.f32 %v3109_v56, %v7513_v12  ;;  %v7805_v41 = vor.u32 %v5253_v9, %v4984_v33  ;;  %v5251_v12 = vld [vmem:[%s8084_s3 + $0x424] sm:$0xf0]  ;;  %v3703_v33 = vld [vmem:[#allocation2 + $0x1a] sm:$0xf] }
 0x480   :  { %v7825_v45 = vor.u32 %v5251_v12, %v4976_v50  ;;  %v3704_v56 = vpack.c.bf16 %v3703_v33, %v3703_v33 }
 0x481   :  { %3636 = vmatpush.bf16.msrb.mxu0 %v7761_v36  ;;  %3649 = vmatpush.bf16.msrb.mxu1 %v7763_v20 }
 0x482   :  { %3670 = vmatpush.bf16.msrb.mxu2 %v7719_v53  ;;  %3683 = vmatpush.bf16.msrb.mxu3 %v7721_v7 }
 0x483   :  { %3509 = vmatmul.bf16.vlgmr.msra.gmra.mxu2 %v3499_v16  ;;  %3522 = vmatmul.bf16.vlgmr.msra.gmra.mxu3 %v3499_v16 }
 0x485   :  { %3637 = vmatpush.bf16.msrb.mxu0 %v7781_v22  ;;  %3650 = vmatpush.bf16.msrb.mxu1 %v7783_v32 }
 0x486   :  { %3671 = vmatpush.bf16.msrb.mxu2 %v7741_v13  ;;  %3684 = vmatpush.bf16.msrb.mxu3 %v7743_v26  ;;  %v3125_v25 = vpop.f32.mrf.mxu2  ;;  %v3138_v62 = vpop.f32.mrf.mxu3 }
 0x487   :  { %v3144_v61 = vrot.slane %v3138_v62, 4 }
 0x489   :  { %3638 = vmatpush.bf16.msrb.mxu0 %v7805_v41  ;;  %3651 = vmatpush.bf16.msrb.mxu1 %v7807_v6  ;;  %v3145_v60 = vsel %vm437_vm0, %v3125_v25, %v3144_v61  ;;  %v3775_v25 = vld [vmem:[#allocation2 + $0x32] sm:$0xf] }
 0x48a   :  { %3672 = vmatpush.bf16.msrb.mxu2 %v7761_v36  ;;  %3685 = vmatpush.bf16.msrb.mxu3 %v7763_v20  ;;  %v7873_v35 = vadd.f32 %v3145_v60, %v7585_v0  ;;  %v3667_v0 = vld [vmem:[#allocation2 + $0x14] sm:$0xf]  ;;  %v3776_v62 = vpack.c.bf16 %v3775_v25, %v3775_v25  ;;  %v5273_v25 = vld [vmem:[%s8086_s5 + $0x58] sm:$0xff] }
 0x48b   :  { %v3668_v11 = vpack.c.bf16 %v3667_v0, %v3667_v0 }
 0x48d   :  { %3639 = vmatpush.bf16.msrb.mxu0 %v7825_v45  ;;  %3652 = vmatpush.bf16.msrb.mxu1 %v7827_v19 }
 0x48e   :  { %3673 = vmatpush.bf16.msrb.mxu2 %v7781_v22  ;;  %3686 = vmatpush.bf16.msrb.mxu3 %v7783_v32  ;;  %v3127_v30 = vpop.f32.mrf.mxu2  ;;  %v3140_v58 = vpop.f32.mrf.mxu3 }
 0x491   :  { %3640 = vmatpush.bf16.msrb.mxu0 %v7845_v63  ;;  %3653 = vmatpush.bf16.msrb.mxu1 %v7847_v40 }
 0x492   :  { %3674 = vmatpush.bf16.msrb.mxu2 %v7805_v41  ;;  %3687 = vmatpush.bf16.msrb.mxu3 %v7807_v6 }
 0x495   :  { %3641 = vmatpush.bf16.msrb.mxu0 %v7866_v4  ;;  %3654 = vmatpush.bf16.msrb.mxu1 %v7868_v42  ;;  %v3258_v39 = vpop.f32.mrf.mxu0  ;;  %v3271_v8 = vpop.f32.mrf.mxu1 }
 0x496   :  { %3675 = vmatpush.bf16.msrb.mxu2 %v7825_v45  ;;  %3688 = vmatpush.bf16.msrb.mxu3 %v7827_v19  ;;  %v3277_v38 = vrot.slane %v3271_v8, 4 }
 0x498   :  { %3642 = vmatmul.bf16.vlgmr.msrb.gmra.mxu0 %v3552_v34  ;;  %3655 = vmatmul.bf16.vlgmr.msrb.gmra.mxu1 %v3552_v34  ;;  %v3278_v27 = vsel %vm437_vm0, %v3258_v39, %v3277_v38 }
 0x499   :  { %3706 = vmatpush.bf16.msra.mxu0 %v7719_v53  ;;  %3719 = vmatpush.bf16.msra.mxu1 %v7721_v7  ;;  %v7893_v43 = vadd.f32 %v3278_v27, %v7605_v29 }
 0x49a   :  { %3676 = vmatpush.bf16.msrb.mxu2 %v7845_v63  ;;  %3689 = vmatpush.bf16.msrb.mxu3 %v7847_v40 }
 0x49d   :  { %3707 = vmatpush.bf16.msra.mxu0 %v7741_v13  ;;  %3720 = vmatpush.bf16.msra.mxu1 %v7743_v26  ;;  %v3260_v23 = vpop.f32.mrf.mxu0  ;;  %v3273_v47 = vpop.f32.mrf.mxu1 }
 0x49e   :  { %3677 = vmatpush.bf16.msrb.mxu2 %v7866_v4  ;;  %3690 = vmatpush.bf16.msrb.mxu3 %v7868_v42 }
 0x4a1   :  { %3708 = vmatpush.bf16.msra.mxu0 %v7761_v36  ;;  %3721 = vmatpush.bf16.msra.mxu1 %v7763_v20 }
 0x4a2   :  { %3742 = vmatpush.bf16.msra.mxu2 %v7719_v53  ;;  %3755 = vmatpush.bf16.msra.mxu3 %v7721_v7 }
 0x4a3   :  { %3678 = vmatmul.bf16.vlgmr.msrb.gmra.mxu2 %v3668_v11  ;;  %3691 = vmatmul.bf16.vlgmr.msrb.gmra.mxu3 %v3668_v11 }
 0x4a5   :  { %3709 = vmatpush.bf16.msra.mxu0 %v7781_v22  ;;  %3722 = vmatpush.bf16.msra.mxu1 %v7783_v32 }
 0x4a6   :  { %3743 = vmatpush.bf16.msra.mxu2 %v7741_v13  ;;  %3756 = vmatpush.bf16.msra.mxu3 %v7743_v26  ;;  %v3294_v29 = vpop.f32.mrf.mxu2  ;;  %v3307_v1 = vpop.f32.mrf.mxu3 }
 0x4a7   :  { %v3313_v3 = vrot.slane %v3307_v1, 4 }
 0x4a9   :  { %3710 = vmatpush.bf16.msra.mxu0 %v7805_v41  ;;  %3723 = vmatpush.bf16.msra.mxu1 %v7807_v6  ;;  %v3314_v17 = vsel %vm437_vm0, %v3294_v29, %v3313_v3  ;;  %v5269_v3 = vld [vmem:[%s8086_s5 + $0x38] sm:$0xff] }
 0x4aa   :  { %3744 = vmatpush.bf16.msra.mxu2 %v7761_v36  ;;  %3757 = vmatpush.bf16.msra.mxu3 %v7763_v20  ;;  %v7913_v16 = vadd.f32 %v3314_v17, %v7625_v59  ;;  %v3739_v59 = vld [vmem:[#allocation2 + $0x20] sm:$0xf]  ;;  %v5276_v17 = vld [vmem:[%s8086_s5 + $0x70] sm:$0xff] }
 0x4ab   :  { %v3740_v52 = vpack.c.bf16 %v3739_v59, %v3739_v59  ;;  %v5275_v59 = vld [vmem:[%s8086_s5 + $0x68] sm:$0xff] }
 0x4ad   :  { %3711 = vmatpush.bf16.msra.mxu0 %v7825_v45  ;;  %3724 = vmatpush.bf16.msra.mxu1 %v7827_v19 }
 0x4ae   :  { %3745 = vmatpush.bf16.msra.mxu2 %v7781_v22  ;;  %3758 = vmatpush.bf16.msra.mxu3 %v7783_v32  ;;  %v3296_v9 = vpop.f32.mrf.mxu2  ;;  %v3309_v15 = vpop.f32.mrf.mxu3 }
 0x4af   :  { %v5267_v15 = vld [vmem:[%s8086_s5 + $0x28] sm:$0xff] }
 0x4b1   :  { %3712 = vmatpush.bf16.msra.mxu0 %v7845_v63  ;;  %3725 = vmatpush.bf16.msra.mxu1 %v7847_v40 }
 0x4b2   :  { %3746 = vmatpush.bf16.msra.mxu2 %v7805_v41  ;;  %3759 = vmatpush.bf16.msra.mxu3 %v7807_v6 }
 0x4b5   :  { %3713 = vmatpush.bf16.msra.mxu0 %v7866_v4  ;;  %3726 = vmatpush.bf16.msra.mxu1 %v7868_v42  ;;  %v3330_v28 = vpop.f32.mrf.mxu0  ;;  %v3343_v50 = vpop.f32.mrf.mxu1 }
 0x4b6   :  { %3747 = vmatpush.bf16.msra.mxu2 %v7825_v45  ;;  %3760 = vmatpush.bf16.msra.mxu3 %v7827_v19  ;;  %v3349_v12 = vrot.slane %v3343_v50, 4 }
 0x4b8   :  { %3714 = vmatmul.bf16.vlgmr.msra.gmra.mxu0 %v3704_v56  ;;  %3727 = vmatmul.bf16.vlgmr.msra.gmra.mxu1 %v3704_v56  ;;  %v3350_v49 = vsel %vm437_vm0, %v3330_v28, %v3349_v12 }
 0x4b9   :  { %3778 = vmatpush.bf16.msrb.mxu0 %v7719_v53  ;;  %3791 = vmatpush.bf16.msrb.mxu1 %v7721_v7  ;;  %v7933_v31 = vadd.f32 %v3350_v49, %v7645_v57 }
 0x4ba   :  { %3748 = vmatpush.bf16.msra.mxu2 %v7845_v63  ;;  %3761 = vmatpush.bf16.msra.mxu3 %v7847_v40 }
 0x4bd   :  { %3779 = vmatpush.bf16.msrb.mxu0 %v7741_v13  ;;  %3792 = vmatpush.bf16.msrb.mxu1 %v7743_v26  ;;  %v3332_v18 = vpop.f32.mrf.mxu0  ;;  %v3345_v46 = vpop.f32.mrf.mxu1 }
 0x4be   :  { %3749 = vmatpush.bf16.msra.mxu2 %v7866_v4  ;;  %3762 = vmatpush.bf16.msra.mxu3 %v7868_v42  ;;  %v5266_v18 = vld [vmem:[%s8086_s5 + $0x20] sm:$0xff] }
 0x4bf   :  { %v5274_v46 = vld [vmem:[%s8086_s5 + $0x60] sm:$0xff] }
 0x4c1   :  { %3780 = vmatpush.bf16.msrb.mxu0 %v7761_v36  ;;  %3793 = vmatpush.bf16.msrb.mxu1 %v7763_v20 }
 0x4c2   :  { %3814 = vmatpush.bf16.msrb.mxu2 %v7719_v53  ;;  %3827 = vmatpush.bf16.msrb.mxu3 %v7721_v7 }
 0x4c3   :  { %3750 = vmatmul.bf16.vlgmr.msra.gmra.mxu2 %v3740_v52  ;;  %3763 = vmatmul.bf16.vlgmr.msra.gmra.mxu3 %v3740_v52 }
 0x4c5   :  { %3781 = vmatpush.bf16.msrb.mxu0 %v7781_v22  ;;  %3794 = vmatpush.bf16.msrb.mxu1 %v7783_v32 }
 0x4c6   :  { %3815 = vmatpush.bf16.msrb.mxu2 %v7741_v13  ;;  %3828 = vmatpush.bf16.msrb.mxu3 %v7743_v26  ;;  %v3366_v57 = vpop.f32.mrf.mxu2  ;;  %v3379_v5 = vpop.f32.mrf.mxu3 }
 0x4c7   :  { %v3385_v24 = vrot.slane %v3379_v5, 4 }
 0x4c9   :  { %3782 = vmatpush.bf16.msrb.mxu0 %v7805_v41  ;;  %3795 = vmatpush.bf16.msrb.mxu1 %v7807_v6  ;;  %v3386_v14 = vsel %vm437_vm0, %v3366_v57, %v3385_v24 }
 0x4ca   :  { %3816 = vmatpush.bf16.msrb.mxu2 %v7761_v36  ;;  %3829 = vmatpush.bf16.msrb.mxu3 %v7763_v20  ;;  %v7953_v44 = vadd.f32 %v3386_v14, %v7665_v21  ;;  %v3811_v21 = vld [vmem:[#allocation2 + $0x38] sm:$0xf] }
 0x4cb   :  { %v3812_v51 = vpack.c.bf16 %v3811_v21, %v3811_v21  ;;  %v5265_v14 = vld [vmem:[%s8086_s5 + $0x18] sm:$0xff] }
 0x4cd   :  { %3783 = vmatpush.bf16.msrb.mxu0 %v7825_v45  ;;  %3796 = vmatpush.bf16.msrb.mxu1 %v7827_v19 }
 0x4ce   :  { %3817 = vmatpush.bf16.msrb.mxu2 %v7781_v22  ;;  %3830 = vmatpush.bf16.msrb.mxu3 %v7783_v32  ;;  %v3368_v10 = vpop.f32.mrf.mxu2  ;;  %v3381_v2 = vpop.f32.mrf.mxu3 }
 0x4d1   :  { %3784 = vmatpush.bf16.msrb.mxu0 %v7845_v63  ;;  %3797 = vmatpush.bf16.msrb.mxu1 %v7847_v40 }
 0x4d2   :  { %3818 = vmatpush.bf16.msrb.mxu2 %v7805_v41  ;;  %3831 = vmatpush.bf16.msrb.mxu3 %v7807_v6 }
 0x4d5   :  { %3785 = vmatpush.bf16.msrb.mxu0 %v7866_v4  ;;  %3798 = vmatpush.bf16.msrb.mxu1 %v7868_v42  ;;  %v3402_v48 = vpop.f32.mrf.mxu0  ;;  %v3415_v61 = vpop.f32.mrf.mxu1 }
 0x4d6   :  { %3819 = vmatpush.bf16.msrb.mxu2 %v7825_v45  ;;  %3832 = vmatpush.bf16.msrb.mxu3 %v7827_v19  ;;  %v3421_v60 = vrot.slane %v3415_v61, 4  ;;  %v5271_v61 = vld [vmem:[%s8086_s5 + $0x48] sm:$0xff] }
 0x4d8   :  { %3786 = vmatmul.bf16.vlgmr.msrb.gmra.mxu0 %v3776_v62  ;;  %3799 = vmatmul.bf16.vlgmr.msrb.gmra.mxu1 %v3776_v62  ;;  %v3422_v34 = vsel %vm437_vm0, %v3402_v48, %v3421_v60  ;;  %v5263_v48 = vld [vmem:[%s8086_s5 + $0x8] sm:$0xff]  ;;  %v5262_v60 = vld [vmem:[%s8086_s5] sm:$0xff] }
 0x4d9   :  { %3850 = vmatpush.bf16.msra.mxu0 %v7719_v53  ;;  %3863 = vmatpush.bf16.msra.mxu1 %v7721_v7  ;;  %v7973_v30 = vadd.f32 %v3422_v34, %v7685_v54 }
 0x4da   :  { %3820 = vmatpush.bf16.msrb.mxu2 %v7845_v63  ;;  %3833 = vmatpush.bf16.msrb.mxu3 %v7847_v40 }
 0x4dd   :  { %3851 = vmatpush.bf16.msra.mxu0 %v7741_v13  ;;  %3864 = vmatpush.bf16.msra.mxu1 %v7743_v26  ;;  %v3404_v58 = vpop.f32.mrf.mxu0  ;;  %v3417_v0 = vpop.f32.mrf.mxu1 }
 0x4de   :  { %3821 = vmatpush.bf16.msrb.mxu2 %v7866_v4  ;;  %3834 = vmatpush.bf16.msrb.mxu3 %v7868_v42 }
 0x4e1   :  { %3852 = vmatpush.bf16.msra.mxu0 %v7761_v36  ;;  %3865 = vmatpush.bf16.msra.mxu1 %v7763_v20 }
 0x4e2   :  { %3886 = vmatpush.bf16.msra.mxu2 %v7719_v53  ;;  %3899 = vmatpush.bf16.msra.mxu3 %v7721_v7 }
 0x4e3   :  { %3822 = vmatmul.bf16.vlgmr.msrb.gmra.mxu2 %v3812_v51  ;;  %3835 = vmatmul.bf16.vlgmr.msrb.gmra.mxu3 %v3812_v51  ;;  %v5270_v51 = vld [vmem:[%s8086_s5 + $0x40] sm:$0xff] }
 0x4e5   :  { %3853 = vmatpush.bf16.msra.mxu0 %v7781_v22  ;;  %3866 = vmatpush.bf16.msra.mxu1 %v7783_v32 }
 0x4e6   :  { %3887 = vmatpush.bf16.msra.mxu2 %v7741_v13  ;;  %3900 = vmatpush.bf16.msra.mxu3 %v7743_v26  ;;  %v3438_v54 = vpop.f32.mrf.mxu2  ;;  %v3451_v53 = vpop.f32.mrf.mxu3 }
 0x4e7   :  { %v3457_v7 = vrot.slane %v3451_v53, 4 }
 0x4e9   :  { %3854 = vmatpush.bf16.msra.mxu0 %v7805_v41  ;;  %3867 = vmatpush.bf16.msra.mxu1 %v7807_v6  ;;  %v3458_v13 = vsel %vm437_vm0, %v3438_v54, %v3457_v7 }
 0x4ea   :  { %3888 = vmatpush.bf16.msra.mxu2 %v7761_v36  ;;  %3901 = vmatpush.bf16.msra.mxu3 %v7763_v20  ;;  %v7993_v26 = vadd.f32 %v3458_v13, %v7717_v55  ;;  %v3847_v36 = vld [vmem:[#allocation2 + $0x3e] sm:$0xf]  ;;  %v3883_v55 = vld [vmem:[#allocation2 + $0x44] sm:$0xf] }
 0x4eb   :  { %v3848_v20 = vpack.c.bf16 %v3847_v36, %v3847_v36 }
 0x4ed   :  { %3855 = vmatpush.bf16.msra.mxu0 %v7825_v45  ;;  %3868 = vmatpush.bf16.msra.mxu1 %v7827_v19 }
 0x4ee   :  { %3889 = vmatpush.bf16.msra.mxu2 %v7781_v22  ;;  %3902 = vmatpush.bf16.msra.mxu3 %v7783_v32  ;;  %v3440_v22 = vpop.f32.mrf.mxu2  ;;  %v3453_v32 = vpop.f32.mrf.mxu3 }
 0x4f1   :  { %3856 = vmatpush.bf16.msra.mxu0 %v7845_v63  ;;  %3869 = vmatpush.bf16.msra.mxu1 %v7847_v40 }
 0x4f2   :  { %3890 = vmatpush.bf16.msra.mxu2 %v7805_v41  ;;  %3903 = vmatpush.bf16.msra.mxu3 %v7807_v6 }
 0x4f5   :  { %3857 = vmatpush.bf16.msra.mxu0 %v7866_v4  ;;  %3870 = vmatpush.bf16.msra.mxu1 %v7868_v42  ;;  %v3474_v41 = vpop.f32.mrf.mxu0  ;;  %v3487_v6 = vpop.f32.mrf.mxu1 }
 0x4f6   :  { %3891 = vmatpush.bf16.msra.mxu2 %v7825_v45  ;;  %3904 = vmatpush.bf16.msra.mxu3 %v7827_v19  ;;  %v3493_v39 = vrot.slane %v3487_v6, 4  ;;  %v3884_v45 = vpack.c.bf16 %v3883_v55, %v3883_v55 }
 0x4f8   :  { %3858 = vmatmul.bf16.vlgmr.msra.gmra.mxu0 %v3848_v20  ;;  %3871 = vmatmul.bf16.vlgmr.msra.gmra.mxu1 %v3848_v20  ;;  %v3494_v19 = vsel %vm437_vm0, %v3474_v41, %v3493_v39 }
 0x4f9   :  { %v8005_v8 = vadd.f32 %v3494_v19, %v7801_v37  ;;  %v5277_v37 = vld [vmem:[%s8086_s5 + $0x78] sm:$0xff]  ;;  %4086 = vmatpush.bf16.msrb.mxu0 %v5269_v3 }
 0x4fa   :  { %3892 = vmatpush.bf16.msra.mxu2 %v7845_v63  ;;  %3905 = vmatpush.bf16.msra.mxu3 %v7847_v40 }
 0x4fb   :  { %4099 = vmatpush.bf16.msrb.mxu1 %v5277_v37 }
 0x4fd   :  { %v3476_v38 = vpop.f32.mrf.mxu0  ;;  %v3489_v63 = vpop.f32.mrf.mxu1 }
 0x4fe   :  { %3893 = vmatpush.bf16.msra.mxu2 %v7866_v4  ;;  %3906 = vmatpush.bf16.msra.mxu3 %v7868_v42 }
 0x4ff   :  { %4100 = vmatpush.bf16.msrb.mxu1 %v5276_v17 }
 0x501   :  { %3894 = vmatmul.bf16.vlgmr.msra.gmra.mxu2 %v3884_v45  ;;  %3907 = vmatmul.bf16.vlgmr.msra.gmra.mxu3 %v3884_v45 }
 0x502   :  { %4152 = vmatpush.bf16.msrb.mxu2 %v5269_v3  ;;  %4165 = vmatpush.bf16.msrb.mxu3 %v5277_v37 }
 0x503   :  { %4101 = vmatpush.bf16.msrb.mxu1 %v5275_v59 }
 0x506   :  { %v3510_v11 = vpop.f32.mrf.mxu2  ;;  %v3523_v40 = vpop.f32.mrf.mxu3  ;;  %4166 = vmatpush.bf16.msrb.mxu3 %v5276_v17 }
 0x507   :  { %v3529_v27 = vrot.slane %v3523_v40, 4  ;;  %4102 = vmatpush.bf16.msrb.mxu1 %v5274_v46 }
 0x509   :  { %v3530_v23 = vsel %vm437_vm0, %v3510_v11, %v3529_v27 }
 0x50a   :  { %v8009_v4 = vadd.f32 %v3530_v23, %v7873_v35  ;;  %v5268_v35 = vld [vmem:[%s8086_s5 + $0x30] sm:$0xff]  ;;  %4167 = vmatpush.bf16.msrb.mxu3 %v5275_v59 }
 0x50b   :  { %4087 = vmatpush.bf16.msrb.mxu0 %v5268_v35  ;;  %4153 = vmatpush.bf16.msrb.mxu2 %v5268_v35 }
 0x50c   :  { %4103 = vmatpush.bf16.msrb.mxu1 %v5273_v25 }
 0x50e   :  { %v3512_v42 = vpop.f32.mrf.mxu2  ;;  %v3525_v47 = vpop.f32.mrf.mxu3  ;;  %4168 = vmatpush.bf16.msrb.mxu3 %v5274_v46 }
 0x50f   :  { %4088 = vmatpush.bf16.msrb.mxu0 %v5267_v15  ;;  %4154 = vmatpush.bf16.msrb.mxu2 %v5267_v15 }
 0x512   :  { %4169 = vmatpush.bf16.msrb.mxu3 %v5273_v25 }
 0x513   :  { %4089 = vmatpush.bf16.msrb.mxu0 %v5266_v18  ;;  %4155 = vmatpush.bf16.msrb.mxu2 %v5266_v18 }
 0x515   :  { %v3643_v29 = vpop.f32.mrf.mxu0  ;;  %v3656_v1 = vpop.f32.mrf.mxu1 }
 0x516   :  { %v3662_v9 = vrot.slane %v3656_v1, 4 }
 0x517   :  { %4090 = vmatpush.bf16.msrb.mxu0 %v5265_v14  ;;  %4156 = vmatpush.bf16.msrb.mxu2 %v5265_v14 }
 0x518   :  { %v3663_v12 = vsel %vm437_vm0, %v3643_v29, %v3662_v9 }
 0x519   :  { %v3665_v57 = vadd.f32 %v3663_v12, %v7893_v43  ;;  %v5264_v43 = vld [vmem:[%s8086_s5 + $0x10] sm:$0xff] }
 0x51b   :  { %4091 = vmatpush.bf16.msrb.mxu0 %v5264_v43  ;;  %4157 = vmatpush.bf16.msrb.mxu2 %v5264_v43 }
 0x51d   :  { %v3645_v33 = vpop.f32.mrf.mxu0  ;;  %v3658_v56 = vpop.f32.mrf.mxu1 }
 0x51f   :  { %4092 = vmatpush.bf16.msrb.mxu0 %v5263_v48  ;;  %4158 = vmatpush.bf16.msrb.mxu2 %v5263_v48 }
 0x523   :  { %4093 = vmatpush.bf16.msrb.mxu0 %v5262_v60  ;;  %4159 = vmatpush.bf16.msrb.mxu2 %v5262_v60 }
 0x526   :  { %v3679_v28 = vpop.f32.mrf.mxu2  ;;  %v3692_v50 = vpop.f32.mrf.mxu3 }
 0x527   :  { %v3698_v52 = vrot.slane %v3692_v50, 4 }
 0x529   :  { %v3699_v49 = vsel %vm437_vm0, %v3679_v28, %v3698_v52 }
 0x52a   :  { %v3701_v5 = vadd.f32 %v3699_v49, %v7913_v16  ;;  %v5272_v16 = vld [vmem:[%s8086_s5 + $0x50] sm:$0xff] }
 0x52b   :  { %4104 = vmatpush.bf16.msrb.mxu1 %v5272_v16  ;;  %4170 = vmatpush.bf16.msrb.mxu3 %v5272_v16 }
 0x52c   :  { %v3954_v24 = vmax.f32 %v3665_v57, %v3701_v5 }
 0x52e   :  { %v3681_v62 = vpop.f32.mrf.mxu2  ;;  %v3694_v10 = vpop.f32.mrf.mxu3  ;;  %v5022_v0 = vrot.slane %v3954_v24, 9 }
 0x52f   :  { %4105 = vmatpush.bf16.msrb.mxu1 %v5271_v61  ;;  %4171 = vmatpush.bf16.msrb.mxu3 %v5271_v61 }
 0x530   :  { %v3959_v53 = vmax.f32 %v3954_v24, %v5022_v0 }
 0x532   :  { %v3960_v32 = vmax.f32 %v3959_v53, 0.0 }
 0x533   :  { %4106 = vmatpush.bf16.msrb.mxu1 %v5270_v51  ;;  %4172 = vmatpush.bf16.msrb.mxu3 %v5270_v51 }
 0x534   :  { %v5023_v39 = vrot.slane %v3960_v32, 10 }
 0x535   :  { %v3715_v2 = vpop.f32.mrf.mxu0  ;;  %v3728_v21 = vpop.f32.mrf.mxu1 }
 0x536   :  { %v3734_v54 = vrot.slane %v3728_v21, 4  ;;  %v3966_v11 = vadd.f32 %v5023_v39, %v3960_v32 }
 0x538   :  { %v3735_v36 = vsel %vm437_vm0, %v3715_v2, %v3734_v54 }
 0x539   :  { %v3737_v55 = vadd.f32 %v3735_v36, %v7933_v31 }
 0x53d   :  { %v3717_v34 = vpop.f32.mrf.mxu0  ;;  %v3730_v58 = vpop.f32.mrf.mxu1 }
 0x546   :  { %v3751_v7 = vpop.f32.mrf.mxu2  ;;  %v3764_v13 = vpop.f32.mrf.mxu3 }
 0x547   :  { %v3770_v20 = vrot.slane %v3764_v13, 4 }
 0x549   :  { %v3771_v22 = vsel %vm437_vm0, %v3751_v7, %v3770_v20 }
 0x54a   :  { %v3773_v41 = vadd.f32 %v3771_v22, %v7953_v44 }
 0x54c   :  { %v3969_v6 = vmax.f32 %v3737_v55, %v3773_v41 }
 0x54e   :  { %v5024_v45 = vrot.slane %v3969_v6, 9  ;;  %v3753_v19 = vpop.f32.mrf.mxu2  ;;  %v3766_v38 = vpop.f32.mrf.mxu3 }
 0x550   :  { %v3974_v63 = vmax.f32 %v3969_v6, %v5024_v45 }
 0x552   :  { %v3975_v40 = vmax.f32 %v3974_v63, 0.0 }
 0x554   :  { %v3976_v27 = vadd.f32 %v3975_v40, %v3966_v11  ;;  %v5025_v23 = vrot.slane %v3975_v40, 10 }
 0x555   :  { %v3787_v42 = vpop.f32.mrf.mxu0  ;;  %v3800_v47 = vpop.f32.mrf.mxu1 }
 0x556   :  { %v3981_v29 = vadd.f32 %v5025_v23, %v3976_v27  ;;  %v3806_v33 = vrot.slane %v3800_v47, 4 }
 0x558   :  { %v3982_v1 = vmul.f32 0.25, %v3981_v29  ;;  %v3807_v15 = vsel %vm437_vm0, %v3787_v42, %v3806_v33 }
 0x559   :  { %v3809_v50 = vadd.f32 %v3807_v15, %v7973_v30 }
 0x55a   :  { %v3984_v3 = vperm.slane %v3982_v1, 0  ;;  %v3985_v37 = vperm.slane %v3982_v1, 4 }
 0x55c   :  { %v3988_v35 = vpack.c.bf16 %v3984_v3, %v3984_v3  ;;  %v3989_v31 = vpack.c.bf16 %v3985_v37, %v3985_v37 }
 0x55d   :  { %v3789_v17 = vpop.f32.mrf.mxu0  ;;  %v3802_v44 = vpop.f32.mrf.mxu1 }
 0x55e   :  { %4094 = vmatmul.bf16.vlgmr.msrb.gmra.mxu0 %v3988_v35  ;;  %4107 = vmatmul.bf16.vlgmr.msrb.gmra.mxu1 %v3989_v31 }
 0x566   :  { %v3823_v56 = vpop.f32.mrf.mxu2  ;;  %v3836_v9 = vpop.f32.mrf.mxu3 }
 0x567   :  { %v3842_v59 = vrot.slane %v3836_v9, 4 }
 0x569   :  { %v3843_v28 = vsel %vm437_vm0, %v3823_v56, %v3842_v59 }
 0x56a   :  { %v3845_v12 = vadd.f32 %v3843_v28, %v7993_v26 }
 0x56c   :  { %v4116_v52 = vmax.f32 %v3809_v50, %v3845_v12 }
 0x56e   :  { %v3825_v49 = vpop.f32.mrf.mxu2  ;;  %v3838_v18 = vpop.f32.mrf.mxu3  ;;  %v5090_v14 = vrot.slane %v4116_v52, 9 }
 0x570   :  { %v4121_v62 = vmax.f32 %v4116_v52, %v5090_v14 }
 0x572   :  { %v4122_v30 = vmax.f32 %v4121_v62, 0.0 }
 0x574   :  { %v5091_v60 = vrot.slane %v4122_v30, 10 }
 0x575   :  { %v3859_v46 = vpop.f32.mrf.mxu0  ;;  %v3872_v57 = vpop.f32.mrf.mxu1 }
 0x576   :  { %v3878_v25 = vrot.slane %v3872_v57, 4  ;;  %v4128_v54 = vadd.f32 %v5091_v60, %v4122_v30 }
 0x578   :  { %v3879_v16 = vsel %vm437_vm0, %v3859_v46, %v3878_v25 }
 0x579   :  { %v3881_v26 = vadd.f32 %v3879_v16, %v8005_v8  ;;  %v3951_v8 = vld [vmem:[%s8087_s6] sm:$0x1] }
 0x57d   :  { %v3861_v5 = vpop.f32.mrf.mxu0  ;;  %v3874_v24 = vpop.f32.mrf.mxu1 }
 0x584   :  { %v3895_v10 = vpop.f32.mrf.mxu2  ;;  %v3908_v43 = vpop.f32.mrf.mxu3 }
 0x585   :  { %v3914_v2 = vrot.slane %v3908_v43, 4 }
 0x587   :  { %v3915_v21 = vsel %vm437_vm0, %v3895_v10, %v3914_v2 }
 0x588   :  { %v3917_v48 = vadd.f32 %v3915_v21, %v8009_v4 }
 0x58a   :  { %v4131_v61 = vmax.f32 %v3881_v26, %v3917_v48 }
 0x58c   :  { %v5092_v51 = vrot.slane %v4131_v61, 9  ;;  %v3897_v34 = vpop.f32.mrf.mxu2  ;;  %v3910_v58 = vpop.f32.mrf.mxu3 }
 0x58e   :  { %v4136_v0 = vmax.f32 %v4131_v61, %v5092_v51 }
 0x590   :  { %v4137_v53 = vmax.f32 %v4136_v0, 0.0 }
 0x592   :  { %v4138_v7 = vadd.f32 %v4137_v53, %v4128_v54  ;;  %v5093_v13 = vrot.slane %v4137_v53, 10 }
 0x594   :  { %v4143_v36 = vadd.f32 %v5093_v13, %v4138_v7 }
 0x596   :  { %v4144_v20 = vmul.f32 0.25, %v4143_v36 }
 0x598   :  { %v4146_v22 = vperm.slane %v4144_v20, 0  ;;  %v4147_v32 = vperm.slane %v4144_v20, 4 }
 0x59a   :  { %v4150_v55 = vpack.c.bf16 %v4146_v22, %v4146_v22  ;;  %v4151_v41 = vpack.c.bf16 %v4147_v32, %v4147_v32 }
 0x59c   :  { %4160 = vmatmul.bf16.vlgmr.msrb.gmra.mxu2 %v4150_v55  ;;  %4173 = vmatmul.bf16.vlgmr.msrb.gmra.mxu3 %v4151_v41 }
 0x5db   :  { %v4095_v4 = vpop.f32.mrf.mxu0  ;;  %v4108_v6 = vpop.f32.mrf.mxu1 }
 0x5dc   :  { %v4096_v39 = vadd.f32 %v4095_v4, %v3951_v8 }
 0x5de   :  { %v4109_v45 = vadd.f32 %v4108_v6, %v4096_v39 }
 0x5e0   :  { %4113 = vst.msk [vmem:[#allocation4] sm:$0x1] %vm4112_vm1, %v4109_v45 }
 0x5e3   :  { %v4097_v19 = vpop.f32.mrf.mxu0  ;;  %v4110_v38 = vpop.f32.mrf.mxu1 }
 0x61f   :  { %v4161_v63 = vpop.f32.mrf.mxu2  ;;  %v4174_v11 = vpop.f32.mrf.mxu3 }
 0x620   :  { %v4162_v40 = vadd.f32 %v4161_v63, %v3951_v8 }
 0x622   :  { %v4175_v27 = vadd.f32 %v4174_v11, %v4162_v40 }
 0x624   :  { %4178 = vst.msk [vmem:[#allocation4 + $0x1] sm:$0x1] %vm4112_vm1, %v4175_v27 }
 0x625   :  { %4189 = dma.vmem_to_hbm [thread:$0]  %s4185_s9, 32, %s4187_s12, [#allocation5]  }
 0x627   :  { %v4163_v23 = vpop.f32.mrf.mxu2  ;;  %v4176_v42 = vpop.f32.mrf.mxu3 }
 0x628   :  { %5304 = dma.done.wait [#allocation5], 32  }
 0x629   :  { %5305 = vsyncadd [#allocation5], 4294967264 }
 0x62a   :  { %4194 = vsyncpa [#allocation5], 1 }

</bundles_post_ra>
